<compile_context>
chip_gen: v6e
topology: v6e:2x2x1
jax: 0.10.0
libtpu: 0.0.40
codegen_flags: <defaults>
</compile_context>

<pallas_src>
import functools

import jax
import jax.numpy as jnp
import numpy as np
from jax import lax
from jax.experimental import pallas as pl
from jax.experimental.pallas import tpu as pltpu

N_ANGLES = 18
N_DET = 139


def _round_up(x, m):
    return ((x + m - 1) // m) * m


# ----------------------------------------------------------------------------
# Radon projection: Y = X @ A^T with A kept in its natural (rows, pixels) layout.
# ----------------------------------------------------------------------------
def _radon_matmul_kernel_1k(x_ref, a_ref, o_ref):
    # x_ref : (Mp, Pp) bf16   -- all flattened images, fully resident
    # a_ref : (tn, Pp) bf16   -- one slab of radon rows (natural layout)
    # o_ref : (Mp, tn) f32
    o_ref[...] = lax.dot_general(
        x_ref[...], a_ref[...],
        dimension_numbers=(((1,), (1,)), ((), ())),    # contract over pixels
        preferred_element_type=jnp.float32)


def _radon_matmul_kernel_acc(x_ref, a_ref, o_ref, acc_ref, *, tk):
    # Fallback for very large pixel counts: K-tiled with an f32 VMEM accumulator.
    k = pl.program_id(1)

    @pl.when(k == 0)
    def _init():
        acc_ref[...] = jnp.zeros_like(acc_ref)

    xk = x_ref[:, pl.ds(pl.multiple_of(k * tk, 128), tk)]
    acc_ref[...] += lax.dot_general(
        xk, a_ref[...],
        dimension_numbers=(((1,), (1,)), ((), ())),
        preferred_element_type=jnp.float32)

    @pl.when(k == pl.num_programs(1) - 1)
    def _store():
        o_ref[...] = acc_ref[...]


def prepare_radon_matrix(A, tn=256, a_buf_budget_bytes=20 * 1024 * 1024):
    """One-time setup (outside jit): bf16-cast and pad the constant radon matrix.

    tn=256 keeps the N-tile count even (Rp=2560 -> 10 tiles) for v7x 2-TC
    sharding.  The K axis is a single tile whenever the double-buffered A slab
    (2 * tn * tk * 2 B) fits the budget; otherwise it is split into equal
    128-aligned tiles.
    """
    R, P = A.shape
    P128 = _round_up(P, 128)
    tk_max = max(128, (a_buf_budget_bytes // (4 * tn)) // 128 * 128)
    if P128 <= tk_max:
        nk, tk = 1, P128
    else:
        nk = -(-P128 // tk_max)
        tk = _round_up(-(-P128 // nk), 128)
    Pp = nk * tk
    Rp = _round_up(R, tn)
    Ap = jnp.pad(A.astype(jnp.bfloat16), ((0, Rp - R), (0, Pp - P)))
    return Ap, (R, P, tn, tk)


def radon_project(xflat, Ap, meta):
    """(M, P) @ A^T -> (M, R), with A stored as (R, P)."""
    R, P, tn, tk = meta
    M = xflat.shape[0]
    assert xflat.shape[1] == P
    Rp, Pp = Ap.shape
    nk = Pp // tk
    Mp = _round_up(max(M, 16), 16)                     # bf16 sublane packing
    xp = jnp.pad(xflat.astype(jnp.bfloat16), ((0, Mp - M), (0, Pp - P)))

    cost = pl.CostEstimate(
        flops=2 * Mp * Pp * Rp,
        transcendentals=0,
        bytes_accessed=Mp * Pp * 2 + Rp * Pp * 2 + Mp * Rp * 4)

    if nk == 1:
        out = pl.pallas_call(
            _radon_matmul_kernel_1k,
            out_shape=jax.ShapeDtypeStruct((Mp, Rp), jnp.float32),
            grid=(Rp // tn,),
            in_specs=[
                pl.BlockSpec((Mp, Pp), lambda j: (0, 0)),    # X fully resident
                pl.BlockSpec((tn, Pp), lambda j: (j, 0)),    # streamed A slab
            ],
            out_specs=pl.BlockSpec((Mp, tn), lambda j: (0, j)),
            compiler_params=pltpu.CompilerParams(
                dimension_semantics=("parallel",),
                vmem_limit_bytes=32 * 1024 * 1024),
            cost_estimate=cost,
        )(xp, Ap)
    else:
        kernel = functools.partial(_radon_matmul_kernel_acc, tk=tk)
        out = pl.pallas_call(
            kernel,
            out_shape=jax.ShapeDtypeStruct((Mp, Rp), jnp.float32),
            grid=(Rp // tn, nk),                             # K last, "arbitrary"
            in_specs=[
                pl.BlockSpec((Mp, Pp), lambda j, k: (0, 0)),  # X fully resident
                pl.BlockSpec((tn, tk), lambda j, k: (j, k)),  # streamed A tile
            ],
            out_specs=pl.BlockSpec((Mp, tn), lambda j, k: (0, j)),
            scratch_shapes=[pltpu.VMEM((Mp, tn), jnp.float32)],
            compiler_params=pltpu.CompilerParams(
                dimension_semantics=("parallel", "arbitrary"),
                vmem_limit_bytes=32 * 1024 * 1024),
            cost_estimate=cost,
        )(xp, Ap)
    return out[:M, :R]


# ----------------------------------------------------------------------------
# Embed.forward: F.conv2d(I, Emb, padding=k//2) as an in-VMEM shifted-dot kernel.
# The image is spatially padded, its row width rounded up to a multiple of 128
# (lane alignment + lane-dense output), and row-flattened.  For each kernel row
# kh, the 9 kw-shifted views of the slab starting at the (128-aligned) offset
# kh*Wp are staged into a (9*Cin_p, hwp) buffer and contracted in ONE MXU dot
# against the (Cout_p, 9*Cin_p) weight row.  Output rows are computed at width
# Wp and cropped to W on the host.
# ----------------------------------------------------------------------------
def _conv_kernel(f_ref, w_ref, o_ref, stage_ref, *, ksize, wp, hwp, cin_p):
    # f_ref     : (Cin_p, L) bf16        one padded, row-flattened image
    # w_ref     : (ksize, Cout_p, ksize*Cin_p) bf16
    # o_ref     : (Cout_p, hwp) f32      "wide" rows (width Wp, cropped later)
    # stage_ref : (ksize*Cin_p, hwp) bf16 scratch
    o_ref[...] = jnp.zeros_like(o_ref)
    for kh in range(ksize):                       # ref stores bound live ranges
        base = kh * wp                            # wp % 128 == 0 -> lane-aligned
        for kw in range(ksize):
            stage_ref[kw * cin_p:(kw + 1) * cin_p, :] = (
                f_ref[:, base + kw:base + kw + hwp])
        o_ref[...] += jnp.dot(w_ref[kh], stage_ref[...],
                              preferred_element_type=jnp.float32)


def embed_forward(x, emb_w):
    """Equivalent of Embed.forward (conv2d, 'same' zero padding), in Pallas."""
    B, Cin, H, W = x.shape
    Cout, Cin2, K, _ = emb_w.shape
    assert Cin2 == Cin
    pad = K // 2
    Hp = H + 2 * pad
    Wp = _round_up(W + 2 * pad, 128)              # lane-aligned padded row width
    Cin_p = _round_up(Cin, 8)
    Cout_p = _round_up(Cout, 8)
    HWp = H * Wp
    L = Hp * Wp + (K - 1)                         # tail guard for the last taps

    xpad = jnp.pad(x.astype(jnp.bfloat16),
                   ((0, 0), (0, Cin_p - Cin), (pad, pad), (pad, Wp - W - pad)))
    f = jnp.pad(xpad.reshape(B, Cin_p, Hp * Wp), ((0, 0), (0, 0), (0, K - 1)))

    # Weight layout: wstack[kh, co, kw*Cin_p + ci] = emb_w[co, ci, kh, kw]
    wstack = jnp.pad(emb_w.astype(jnp.bfloat16),
                     ((0, Cout_p - Cout), (0, Cin_p - Cin), (0, 0), (0, 0)))
    wstack = wstack.transpose(2, 0, 3, 1).reshape(K, Cout_p, K * Cin_p)

    kernel = functools.partial(_conv_kernel, ksize=K, wp=Wp, hwp=HWp, cin_p=Cin_p)
    out_wide = pl.pallas_call(
        kernel,
        out_shape=jax.ShapeDtypeStruct((B, Cout_p, HWp), jnp.float32),
        grid=(B,),
        in_specs=[
            pl.BlockSpec((None, Cin_p, L), lambda b: (b, 0, 0)),
            pl.BlockSpec((K, Cout_p, K * Cin_p), lambda b: (0, 0, 0)),
        ],
        out_specs=pl.BlockSpec((None, Cout_p, HWp), lambda b: (b, 0, 0)),
        scratch_shapes=[pltpu.VMEM((K * Cin_p, HWp), jnp.bfloat16)],
        compiler_params=pltpu.CompilerParams(
            dimension_semantics=("parallel",),
            vmem_limit_bytes=32 * 1024 * 1024),
    )(f, wstack)
    # crop padded channels and crop wide rows (width Wp) back to W
    return out_wide[:, :Cout, :].reshape(B, Cout, H, Wp)[:, :, :, :W]


# ----------------------------------------------------------------------------
# radonTransform.forward
# ----------------------------------------------------------------------------
def radon_forward(x, emb_w, Ap, *, meta, emb=True):
    """Mirrors radonTransform.forward: Y[b, c] = A @ vec(Emb(x)[b, c])."""
    if emb:
        x = embed_forward(x, emb_w)                  # (B, 3, H, W)
    B, C, H, W = x.shape
    xflat = x.reshape(B * C, H * W)                  # row order b*C + c (torch path)
    y = radon_project(xflat, Ap, meta)               # (B*C, 18*139) -- Pallas hot path
    return y.reshape(B, C, N_ANGLES, N_DET)


# ----------------------------------------------------------------------------
# Deterministic parameter setup (Embed.__init__ with learned=True):
# 0 * xavier_uniform == zeros, then identity delta on channels 0..2.
# ----------------------------------------------------------------------------
def make_emb_weight(nin, embdsize, k=9):
    w = jnp.zeros((nin, embdsize, k, k), dtype=jnp.float32)
    c = k // 2
    for i in range(3):
        w = w.at[i, i, c, c].set(1.0)
    return w


# ----------------------------------------------------------------------------
# Pure-JAX (f32) reference for validation
# ----------------------------------------------------------------------------
def reference_forward(x, emb_w, A):
    pad = emb_w.shape[-1] // 2
    conv = lax.conv_general_dilated(
        x, emb_w, window_strides=(1, 1),
        padding=((pad, pad), (pad, pad)),
        dimension_numbers=("NCHW", "OIHW", "NCHW"))
    B = x.shape[0]
    T = conv.reshape(B, 3, -1)
    Y = jnp.einsum("rp,bcp->bcr", A, T)
    return Y.reshape(B, 3, N_ANGLES, N_DET)


if __name__ == "__main__":
    B, embdsize, nin, H, W = 2, 4, 3, 16, 16
    key = jax.random.PRNGKey(0)
    k1, k2, k3 = jax.random.split(key, 3)

    x = jax.random.normal(k1, (B, embdsize, H, W), dtype=jnp.float32)
    # TODO(synk): radonMat18.mat is not available; synthesize a deterministic dense
    # stand-in A with the same shape contract (18*139 projections x H*W pixels).
    A = jax.random.normal(k2, (N_ANGLES * N_DET, H * W), dtype=jnp.float32) / (H * W)
    emb_w = make_emb_weight(nin, embdsize)

    # One-time setup of the constant radon matrix (bf16 cast + pad, outside jit).
    Ap, meta = prepare_radon_matrix(A)

    fwd = jax.jit(functools.partial(radon_forward, meta=meta, emb=True))

    y = jax.block_until_ready(fwd(x, emb_w, Ap))
    assert y.shape == (B, nin, N_ANGLES, N_DET) and y.dtype == jnp.float32
    y_ref = reference_forward(x, emb_w, A)
    np.testing.assert_allclose(np.asarray(y), np.asarray(y_ref), rtol=1e-2, atol=1e-3)

    # Extra check with non-trivial conv weights so all 81 taps are exercised.
    emb_w2 = 0.05 * jax.random.normal(k3, (nin, embdsize, 9, 9), dtype=jnp.float32)
    y2 = jax.block_until_ready(fwd(x, emb_w2, Ap))
    y2_ref = reference_forward(x, emb_w2, A)
    np.testing.assert_allclose(np.asarray(y2), np.asarray(y2_ref), rtol=1e-2, atol=2e-3)

    print("KERNEL_OK")
</pallas_src>

<mosaic_0001>
module attributes {stable_mosaic.version = 11 : i64} {
  func.func @_conv_kernel(%arg0: i32, %arg1: memref<1x8x3080xbf16, #tpu.memory_space<vmem>>, %arg2: memref<9x8x72xbf16, #tpu.memory_space<vmem>>, %arg3: memref<1x8x2048xf32, #tpu.memory_space<vmem>>, %arg4: memref<72x2048xbf16, #tpu.memory_space<vmem>>) attributes {dimension_semantics = [#tpu.dimension_semantics<parallel>], iteration_bounds = array<i64: 2>, scalar_prefetch = 0 : i64, scratch_operands = 1 : i64, tpu.core_type = #tpu.core_type<tc>, window_params = [{transform_indices = @transform_0, window_bounds = array<i64: 1, 8, 3080>}, {pipeline_mode = #tpu.pipeline_mode<synchronous>, transform_indices = @transform_1, window_bounds = array<i64: 9, 8, 72>}, {transform_indices = @transform_2, window_bounds = array<i64: 1, 8, 2048>}]} {
    %cst = arith.constant 0.000000e+00 : f32
    %0 = vector.broadcast %cst : f32 to vector<8x2048xf32>
    %c0 = arith.constant 0 : index
    %c0_0 = arith.constant 0 : index
    %c0_1 = arith.constant 0 : index
    %1 = vector.load %arg3[%c0, %c0_0, %c0_1] : memref<1x8x2048xf32, #tpu.memory_space<vmem>>, vector<1x8x2048xf32>
    %2 = vector.shape_cast %1 : vector<1x8x2048xf32> to vector<8x2048xf32>
    %3 = vector.shape_cast %0 : vector<8x2048xf32> to vector<1x8x2048xf32>
    tpu.vector_store %arg3[%c0, %c0_0, %c0_1], %3 {strides = array<i32>} : memref<1x8x2048xf32, #tpu.memory_space<vmem>>, vector<1x8x2048xf32>,
    %c0_2 = arith.constant 0 : index
    %c0_3 = arith.constant 0 : index
    %c0_4 = arith.constant 0 : index
    %4 = vector.load %arg1[%c0_2, %c0_3, %c0_4] : memref<1x8x3080xbf16, #tpu.memory_space<vmem>>, vector<1x8x2048xbf16>
    %5 = vector.shape_cast %4 : vector<1x8x2048xbf16> to vector<8x2048xbf16>
    %c0_5 = arith.constant 0 : index
    %c0_6 = arith.constant 0 : index
    %6 = vector.load %arg4[%c0_5, %c0_6] : memref<72x2048xbf16, #tpu.memory_space<vmem>>, vector<8x2048xbf16>
    tpu.vector_store %arg4[%c0_5, %c0_6], %5 {strides = array<i32>} : memref<72x2048xbf16, #tpu.memory_space<vmem>>, vector<8x2048xbf16>,
    %c0_7 = arith.constant 0 : index
    %c0_8 = arith.constant 0 : index
    %c1 = arith.constant 1 : index
    %7 = vector.load %arg1[%c0_7, %c0_8, %c1] : memref<1x8x3080xbf16, #tpu.memory_space<vmem>>, vector<1x8x2048xbf16>
    %8 = vector.shape_cast %7 : vector<1x8x2048xbf16> to vector<8x2048xbf16>
    %c8 = arith.constant 8 : index
    %c0_9 = arith.constant 0 : index
    %9 = vector.load %arg4[%c8, %c0_9] : memref<72x2048xbf16, #tpu.memory_space<vmem>>, vector<8x2048xbf16>
    tpu.vector_store %arg4[%c8, %c0_9], %8 {strides = array<i32>} : memref<72x2048xbf16, #tpu.memory_space<vmem>>, vector<8x2048xbf16>,
    %c0_10 = arith.constant 0 : index
    %c0_11 = arith.constant 0 : index
    %c2 = arith.constant 2 : index
    %10 = vector.load %arg1[%c0_10, %c0_11, %c2] : memref<1x8x3080xbf16, #tpu.memory_space<vmem>>, vector<1x8x2048xbf16>
    %11 = vector.shape_cast %10 : vector<1x8x2048xbf16> to vector<8x2048xbf16>
    %c16 = arith.constant 16 : index
    %c0_12 = arith.constant 0 : index
    %12 = vector.load %arg4[%c16, %c0_12] : memref<72x2048xbf16, #tpu.memory_space<vmem>>, vector<8x2048xbf16>
    tpu.vector_store %arg4[%c16, %c0_12], %11 {strides = array<i32>} : memref<72x2048xbf16, #tpu.memory_space<vmem>>, vector<8x2048xbf16>,
    %c0_13 = arith.constant 0 : index
    %c0_14 = arith.constant 0 : index
    %c3 = arith.constant 3 : index
    %13 = vector.load %arg1[%c0_13, %c0_14, %c3] : memref<1x8x3080xbf16, #tpu.memory_space<vmem>>, vector<1x8x2048xbf16>
    %14 = vector.shape_cast %13 : vector<1x8x2048xbf16> to vector<8x2048xbf16>
    %c24 = arith.constant 24 : index
    %c0_15 = arith.constant 0 : index
    %15 = vector.load %arg4[%c24, %c0_15] : memref<72x2048xbf16, #tpu.memory_space<vmem>>, vector<8x2048xbf16>
    tpu.vector_store %arg4[%c24, %c0_15], %14 {strides = array<i32>} : memref<72x2048xbf16, #tpu.memory_space<vmem>>, vector<8x2048xbf16>,
    %c0_16 = arith.constant 0 : index
    %c0_17 = arith.constant 0 : index
    %c4 = arith.constant 4 : index
    %16 = vector.load %arg1[%c0_16, %c0_17, %c4] : memref<1x8x3080xbf16, #tpu.memory_space<vmem>>, vector<1x8x2048xbf16>
    %17 = vector.shape_cast %16 : vector<1x8x2048xbf16> to vector<8x2048xbf16>
    %c32 = arith.constant 32 : index
    %c0_18 = arith.constant 0 : index
    %18 = vector.load %arg4[%c32, %c0_18] : memref<72x2048xbf16, #tpu.memory_space<vmem>>, vector<8x2048xbf16>
    tpu.vector_store %arg4[%c32, %c0_18], %17 {strides = array<i32>} : memref<72x2048xbf16, #tpu.memory_space<vmem>>, vector<8x2048xbf16>,
    %c0_19 = arith.constant 0 : index
    %c0_20 = arith.constant 0 : index
    %c5 = arith.constant 5 : index
    %19 = vector.load %arg1[%c0_19, %c0_20, %c5] : memref<1x8x3080xbf16, #tpu.memory_space<vmem>>, vector<1x8x2048xbf16>
    %20 = vector.shape_cast %19 : vector<1x8x2048xbf16> to vector<8x2048xbf16>
    %c40 = arith.constant 40 : index
    %c0_21 = arith.constant 0 : index
    %21 = vector.load %arg4[%c40, %c0_21] : memref<72x2048xbf16, #tpu.memory_space<vmem>>, vector<8x2048xbf16>
    tpu.vector_store %arg4[%c40, %c0_21], %20 {strides = array<i32>} : memref<72x2048xbf16, #tpu.memory_space<vmem>>, vector<8x2048xbf16>,
    %c0_22 = arith.constant 0 : index
    %c0_23 = arith.constant 0 : index
    %c6 = arith.constant 6 : index
    %22 = vector.load %arg1[%c0_22, %c0_23, %c6] : memref<1x8x3080xbf16, #tpu.memory_space<vmem>>, vector<1x8x2048xbf16>
    %23 = vector.shape_cast %22 : vector<1x8x2048xbf16> to vector<8x2048xbf16>
    %c48 = arith.constant 48 : index
    %c0_24 = arith.constant 0 : index
    %24 = vector.load %arg4[%c48, %c0_24] : memref<72x2048xbf16, #tpu.memory_space<vmem>>, vector<8x2048xbf16>
    tpu.vector_store %arg4[%c48, %c0_24], %23 {strides = array<i32>} : memref<72x2048xbf16, #tpu.memory_space<vmem>>, vector<8x2048xbf16>,
    %c0_25 = arith.constant 0 : index
    %c0_26 = arith.constant 0 : index
    %c7 = arith.constant 7 : index
    %25 = vector.load %arg1[%c0_25, %c0_26, %c7] : memref<1x8x3080xbf16, #tpu.memory_space<vmem>>, vector<1x8x2048xbf16>
    %26 = vector.shape_cast %25 : vector<1x8x2048xbf16> to vector<8x2048xbf16>
    %c56 = arith.constant 56 : index
    %c0_27 = arith.constant 0 : index
    %27 = vector.load %arg4[%c56, %c0_27] : memref<72x2048xbf16, #tpu.memory_space<vmem>>, vector<8x2048xbf16>
    tpu.vector_store %arg4[%c56, %c0_27], %26 {strides = array<i32>} : memref<72x2048xbf16, #tpu.memory_space<vmem>>, vector<8x2048xbf16>,
    %c0_28 = arith.constant 0 : index
    %c0_29 = arith.constant 0 : index
    %c8_30 = arith.constant 8 : index
    %28 = vector.load %arg1[%c0_28, %c0_29, %c8_30] : memref<1x8x3080xbf16, #tpu.memory_space<vmem>>, vector<1x8x2048xbf16>
    %29 = vector.shape_cast %28 : vector<1x8x2048xbf16> to vector<8x2048xbf16>
    %c64 = arith.constant 64 : index
    %c0_31 = arith.constant 0 : index
    %30 = vector.load %arg4[%c64, %c0_31] : memref<72x2048xbf16, #tpu.memory_space<vmem>>, vector<8x2048xbf16>
    tpu.vector_store %arg4[%c64, %c0_31], %29 {strides = array<i32>} : memref<72x2048xbf16, #tpu.memory_space<vmem>>, vector<8x2048xbf16>,
    %c0_32 = arith.constant 0 : index
    %c0_33 = arith.constant 0 : index
    %c0_34 = arith.constant 0 : index
    %31 = vector.load %arg3[%c0_32, %c0_33, %c0_34] : memref<1x8x2048xf32, #tpu.memory_space<vmem>>, vector<1x8x2048xf32>
    %32 = vector.shape_cast %31 : vector<1x8x2048xf32> to vector<8x2048xf32>
    %c0_35 = arith.constant 0 : index
    %c0_36 = arith.constant 0 : index
    %c0_37 = arith.constant 0 : index
    %33 = vector.load %arg2[%c0_35, %c0_36, %c0_37] : memref<9x8x72xbf16, #tpu.memory_space<vmem>>, vector<1x8x72xbf16>
    %34 = vector.shape_cast %33 : vector<1x8x72xbf16> to vector<8x72xbf16>
    %c0_38 = arith.constant 0 : index
    %c0_39 = arith.constant 0 : index
    %35 = vector.load %arg4[%c0_38, %c0_39] : memref<72x2048xbf16, #tpu.memory_space<vmem>>, vector<72x2048xbf16>
    %cst_40 = arith.constant dense<0.000000e+00> : vector<8x2048xf32>
    %36 = tpu.matmul %34, %35, %cst_40 {dimension_numbers = #tpu.dot_dimension_numbers<[1], [0], [0], [1], [0, 0, 1, 1], [], []>} : vector<8x72xbf16>, vector<72x2048xbf16>, vector<8x2048xf32> -> vector<8x2048xf32>
    %37 = arith.addf %32, %36 : vector<8x2048xf32>
    %c0_41 = arith.constant 0 : index
    %c0_42 = arith.constant 0 : index
    %c0_43 = arith.constant 0 : index
    %38 = vector.load %arg3[%c0_41, %c0_42, %c0_43] : memref<1x8x2048xf32, #tpu.memory_space<vmem>>, vector<1x8x2048xf32>
    %39 = vector.shape_cast %38 : vector<1x8x2048xf32> to vector<8x2048xf32>
    %40 = vector.shape_cast %37 : vector<8x2048xf32> to vector<1x8x2048xf32>
    tpu.vector_store %arg3[%c0_41, %c0_42, %c0_43], %40 {strides = array<i32>} : memref<1x8x2048xf32, #tpu.memory_space<vmem>>, vector<1x8x2048xf32>,
    %c0_44 = arith.constant 0 : index
    %c0_45 = arith.constant 0 : index
    %c128 = arith.constant 128 : index
    %41 = vector.load %arg1[%c0_44, %c0_45, %c128] : memref<1x8x3080xbf16, #tpu.memory_space<vmem>>, vector<1x8x2048xbf16>
    %42 = vector.shape_cast %41 : vector<1x8x2048xbf16> to vector<8x2048xbf16>
    %c0_46 = arith.constant 0 : index
    %c0_47 = arith.constant 0 : index
    %43 = vector.load %arg4[%c0_46, %c0_47] : memref<72x2048xbf16, #tpu.memory_space<vmem>>, vector<8x2048xbf16>
    tpu.vector_store %arg4[%c0_46, %c0_47], %42 {strides = array<i32>} : memref<72x2048xbf16, #tpu.memory_space<vmem>>, vector<8x2048xbf16>,
    %c0_48 = arith.constant 0 : index
    %c0_49 = arith.constant 0 : index
    %c129 = arith.constant 129 : index
    %44 = vector.load %arg1[%c0_48, %c0_49, %c129] : memref<1x8x3080xbf16, #tpu.memory_space<vmem>>, vector<1x8x2048xbf16>
    %45 = vector.shape_cast %44 : vector<1x8x2048xbf16> to vector<8x2048xbf16>
    %c8_50 = arith.constant 8 : index
    %c0_51 = arith.constant 0 : index
    %46 = vector.load %arg4[%c8_50, %c0_51] : memref<72x2048xbf16, #tpu.memory_space<vmem>>, vector<8x2048xbf16>
    tpu.vector_store %arg4[%c8_50, %c0_51], %45 {strides = array<i32>} : memref<72x2048xbf16, #tpu.memory_space<vmem>>, vector<8x2048xbf16>,
    %c0_52 = arith.constant 0 : index
    %c0_53 = arith.constant 0 : index
    %c130 = arith.constant 130 : index
    %47 = vector.load %arg1[%c0_52, %c0_53, %c130] : memref<1x8x3080xbf16, #tpu.memory_space<vmem>>, vector<1x8x2048xbf16>
    %48 = vector.shape_cast %47 : vector<1x8x2048xbf16> to vector<8x2048xbf16>
    %c16_54 = arith.constant 16 : index
    %c0_55 = arith.constant 0 : index
    %49 = vector.load %arg4[%c16_54, %c0_55] : memref<72x2048xbf16, #tpu.memory_space<vmem>>, vector<8x2048xbf16>
    tpu.vector_store %arg4[%c16_54, %c0_55], %48 {strides = array<i32>} : memref<72x2048xbf16, #tpu.memory_space<vmem>>, vector<8x2048xbf16>,
    %c0_56 = arith.constant 0 : index
    %c0_57 = arith.constant 0 : index
    %c131 = arith.constant 131 : index
    %50 = vector.load %arg1[%c0_56, %c0_57, %c131] : memref<1x8x3080xbf16, #tpu.memory_space<vmem>>, vector<1x8x2048xbf16>
    %51 = vector.shape_cast %50 : vector<1x8x2048xbf16> to vector<8x2048xbf16>
    %c24_58 = arith.constant 24 : index
    %c0_59 = arith.constant 0 : index
    %52 = vector.load %arg4[%c24_58, %c0_59] : memref<72x2048xbf16, #tpu.memory_space<vmem>>, vector<8x2048xbf16>
    tpu.vector_store %arg4[%c24_58, %c0_59], %51 {strides = array<i32>} : memref<72x2048xbf16, #tpu.memory_space<vmem>>, vector<8x2048xbf16>,
    %c0_60 = arith.constant 0 : index
    %c0_61 = arith.constant 0 : index
    %c132 = arith.constant 132 : index
    %53 = vector.load %arg1[%c0_60, %c0_61, %c132] : memref<1x8x3080xbf16, #tpu.memory_space<vmem>>, vector<1x8x2048xbf16>
    %54 = vector.shape_cast %53 : vector<1x8x2048xbf16> to vector<8x2048xbf16>
    %c32_62 = arith.constant 32 : index
    %c0_63 = arith.constant 0 : index
    %55 = vector.load %arg4[%c32_62, %c0_63] : memref<72x2048xbf16, #tpu.memory_space<vmem>>, vector<8x2048xbf16>
    tpu.vector_store %arg4[%c32_62, %c0_63], %54 {strides = array<i32>} : memref<72x2048xbf16, #tpu.memory_space<vmem>>, vector<8x2048xbf16>,
    %c0_64 = arith.constant 0 : index
    %c0_65 = arith.constant 0 : index
    %c133 = arith.constant 133 : index
    %56 = vector.load %arg1[%c0_64, %c0_65, %c133] : memref<1x8x3080xbf16, #tpu.memory_space<vmem>>, vector<1x8x2048xbf16>
    %57 = vector.shape_cast %56 : vector<1x8x2048xbf16> to vector<8x2048xbf16>
    %c40_66 = arith.constant 40 : index
    %c0_67 = arith.constant 0 : index
    %58 = vector.load %arg4[%c40_66, %c0_67] : memref<72x2048xbf16, #tpu.memory_space<vmem>>, vector<8x2048xbf16>
    tpu.vector_store %arg4[%c40_66, %c0_67], %57 {strides = array<i32>} : memref<72x2048xbf16, #tpu.memory_space<vmem>>, vector<8x2048xbf16>,
    %c0_68 = arith.constant 0 : index
    %c0_69 = arith.constant 0 : index
    %c134 = arith.constant 134 : index
    %59 = vector.load %arg1[%c0_68, %c0_69, %c134] : memref<1x8x3080xbf16, #tpu.memory_space<vmem>>, vector<1x8x2048xbf16>
    %60 = vector.shape_cast %59 : vector<1x8x2048xbf16> to vector<8x2048xbf16>
    %c48_70 = arith.constant 48 : index
    %c0_71 = arith.constant 0 : index
    %61 = vector.load %arg4[%c48_70, %c0_71] : memref<72x2048xbf16, #tpu.memory_space<vmem>>, vector<8x2048xbf16>
    tpu.vector_store %arg4[%c48_70, %c0_71], %60 {strides = array<i32>} : memref<72x2048xbf16, #tpu.memory_space<vmem>>, vector<8x2048xbf16>,
    %c0_72 = arith.constant 0 : index
    %c0_73 = arith.constant 0 : index
    %c135 = arith.constant 135 : index
    %62 = vector.load %arg1[%c0_72, %c0_73, %c135] : memref<1x8x3080xbf16, #tpu.memory_space<vmem>>, vector<1x8x2048xbf16>
    %63 = vector.shape_cast %62 : vector<1x8x2048xbf16> to vector<8x2048xbf16>
    %c56_74 = arith.constant 56 : index
    %c0_75 = arith.constant 0 : index
    %64 = vector.load %arg4[%c56_74, %c0_75] : memref<72x2048xbf16, #tpu.memory_space<vmem>>, vector<8x2048xbf16>
    tpu.vector_store %arg4[%c56_74, %c0_75], %63 {strides = array<i32>} : memref<72x2048xbf16, #tpu.memory_space<vmem>>, vector<8x2048xbf16>,
    %c0_76 = arith.constant 0 : index
    %c0_77 = arith.constant 0 : index
    %c136 = arith.constant 136 : index
    %65 = vector.load %arg1[%c0_76, %c0_77, %c136] : memref<1x8x3080xbf16, #tpu.memory_space<vmem>>, vector<1x8x2048xbf16>
    %66 = vector.shape_cast %65 : vector<1x8x2048xbf16> to vector<8x2048xbf16>
    %c64_78 = arith.constant 64 : index
    %c0_79 = arith.constant 0 : index
    %67 = vector.load %arg4[%c64_78, %c0_79] : memref<72x2048xbf16, #tpu.memory_space<vmem>>, vector<8x2048xbf16>
    tpu.vector_store %arg4[%c64_78, %c0_79], %66 {strides = array<i32>} : memref<72x2048xbf16, #tpu.memory_space<vmem>>, vector<8x2048xbf16>,
    %c0_80 = arith.constant 0 : index
    %c0_81 = arith.constant 0 : index
    %c0_82 = arith.constant 0 : index
    %68 = vector.load %arg3[%c0_80, %c0_81, %c0_82] : memref<1x8x2048xf32, #tpu.memory_space<vmem>>, vector<1x8x2048xf32>
    %69 = vector.shape_cast %68 : vector<1x8x2048xf32> to vector<8x2048xf32>
    %c1_83 = arith.constant 1 : index
    %c0_84 = arith.constant 0 : index
    %c0_85 = arith.constant 0 : index
    %70 = vector.load %arg2[%c1_83, %c0_84, %c0_85] : memref<9x8x72xbf16, #tpu.memory_space<vmem>>, vector<1x8x72xbf16>
    %71 = vector.shape_cast %70 : vector<1x8x72xbf16> to vector<8x72xbf16>
    %c0_86 = arith.constant 0 : index
    %c0_87 = arith.constant 0 : index
    %72 = vector.load %arg4[%c0_86, %c0_87] : memref<72x2048xbf16, #tpu.memory_space<vmem>>, vector<72x2048xbf16>
    %cst_88 = arith.constant dense<0.000000e+00> : vector<8x2048xf32>
    %73 = tpu.matmul %71, %72, %cst_88 {dimension_numbers = #tpu.dot_dimension_numbers<[1], [0], [0], [1], [0, 0, 1, 1], [], []>} : vector<8x72xbf16>, vector<72x2048xbf16>, vector<8x2048xf32> -> vector<8x2048xf32>
    %74 = arith.addf %69, %73 : vector<8x2048xf32>
    %c0_89 = arith.constant 0 : index
    %c0_90 = arith.constant 0 : index
    %c0_91 = arith.constant 0 : index
    %75 = vector.load %arg3[%c0_89, %c0_90, %c0_91] : memref<1x8x2048xf32, #tpu.memory_space<vmem>>, vector<1x8x2048xf32>
    %76 = vector.shape_cast %75 : vector<1x8x2048xf32> to vector<8x2048xf32>
    %77 = vector.shape_cast %74 : vector<8x2048xf32> to vector<1x8x2048xf32>
    tpu.vector_store %arg3[%c0_89, %c0_90, %c0_91], %77 {strides = array<i32>} : memref<1x8x2048xf32, #tpu.memory_space<vmem>>, vector<1x8x2048xf32>,
    %c0_92 = arith.constant 0 : index
    %c0_93 = arith.constant 0 : index
    %c256 = arith.constant 256 : index
    %78 = vector.load %arg1[%c0_92, %c0_93, %c256] : memref<1x8x3080xbf16, #tpu.memory_space<vmem>>, vector<1x8x2048xbf16>
    %79 = vector.shape_cast %78 : vector<1x8x2048xbf16> to vector<8x2048xbf16>
    %c0_94 = arith.constant 0 : index
    %c0_95 = arith.constant 0 : index
    %80 = vector.load %arg4[%c0_94, %c0_95] : memref<72x2048xbf16, #tpu.memory_space<vmem>>, vector<8x2048xbf16>
    tpu.vector_store %arg4[%c0_94, %c0_95], %79 {strides = array<i32>} : memref<72x2048xbf16, #tpu.memory_space<vmem>>, vector<8x2048xbf16>,
    %c0_96 = arith.constant 0 : index
    %c0_97 = arith.constant 0 : index
    %c257 = arith.constant 257 : index
    %81 = vector.load %arg1[%c0_96, %c0_97, %c257] : memref<1x8x3080xbf16, #tpu.memory_space<vmem>>, vector<1x8x2048xbf16>
    %82 = vector.shape_cast %81 : vector<1x8x2048xbf16> to vector<8x2048xbf16>
    %c8_98 = arith.constant 8 : index
    %c0_99 = arith.constant 0 : index
    %83 = vector.load %arg4[%c8_98, %c0_99] : memref<72x2048xbf16, #tpu.memory_space<vmem>>, vector<8x2048xbf16>
    tpu.vector_store %arg4[%c8_98, %c0_99], %82 {strides = array<i32>} : memref<72x2048xbf16, #tpu.memory_space<vmem>>, vector<8x2048xbf16>,
    %c0_100 = arith.constant 0 : index
    %c0_101 = arith.constant 0 : index
    %c258 = arith.constant 258 : index
    %84 = vector.load %arg1[%c0_100, %c0_101, %c258] : memref<1x8x3080xbf16, #tpu.memory_space<vmem>>, vector<1x8x2048xbf16>
    %85 = vector.shape_cast %84 : vector<1x8x2048xbf16> to vector<8x2048xbf16>
    %c16_102 = arith.constant 16 : index
    %c0_103 = arith.constant 0 : index
    %86 = vector.load %arg4[%c16_102, %c0_103] : memref<72x2048xbf16, #tpu.memory_space<vmem>>, vector<8x2048xbf16>
    tpu.vector_store %arg4[%c16_102, %c0_103], %85 {strides = array<i32>} : memref<72x2048xbf16, #tpu.memory_space<vmem>>, vector<8x2048xbf16>,
    %c0_104 = arith.constant 0 : index
    %c0_105 = arith.constant 0 : index
    %c259 = arith.constant 259 : index
    %87 = vector.load %arg1[%c0_104, %c0_105, %c259] : memref<1x8x3080xbf16, #tpu.memory_space<vmem>>, vector<1x8x2048xbf16>
    %88 = vector.shape_cast %87 : vector<1x8x2048xbf16> to vector<8x2048xbf16>
    %c24_106 = arith.constant 24 : index
    %c0_107 = arith.constant 0 : index
    %89 = vector.load %arg4[%c24_106, %c0_107] : memref<72x2048xbf16, #tpu.memory_space<vmem>>, vector<8x2048xbf16>
    tpu.vector_store %arg4[%c24_106, %c0_107], %88 {strides = array<i32>} : memref<72x2048xbf16, #tpu.memory_space<vmem>>, vector<8x2048xbf16>,
    %c0_108 = arith.constant 0 : index
    %c0_109 = arith.constant 0 : index
    %c260 = arith.constant 260 : index
    %90 = vector.load %arg1[%c0_108, %c0_109, %c260] : memref<1x8x3080xbf16, #tpu.memory_space<vmem>>, vector<1x8x2048xbf16>
    %91 = vector.shape_cast %90 : vector<1x8x2048xbf16> to vector<8x2048xbf16>
    %c32_110 = arith.constant 32 : index
    %c0_111 = arith.constant 0 : index
    %92 = vector.load %arg4[%c32_110, %c0_111] : memref<72x2048xbf16, #tpu.memory_space<vmem>>, vector<8x2048xbf16>
    tpu.vector_store %arg4[%c32_110, %c0_111], %91 {strides = array<i32>} : memref<72x2048xbf16, #tpu.memory_space<vmem>>, vector<8x2048xbf16>,
    %c0_112 = arith.constant 0 : index
    %c0_113 = arith.constant 0 : index
    %c261 = arith.constant 261 : index
    %93 = vector.load %arg1[%c0_112, %c0_113, %c261] : memref<1x8x3080xbf16, #tpu.memory_space<vmem>>, vector<1x8x2048xbf16>
    %94 = vector.shape_cast %93 : vector<1x8x2048xbf16> to vector<8x2048xbf16>
    %c40_114 = arith.constant 40 : index
    %c0_115 = arith.constant 0 : index
    %95 = vector.load %arg4[%c40_114, %c0_115] : memref<72x2048xbf16, #tpu.memory_space<vmem>>, vector<8x2048xbf16>
    tpu.vector_store %arg4[%c40_114, %c0_115], %94 {strides = array<i32>} : memref<72x2048xbf16, #tpu.memory_space<vmem>>, vector<8x2048xbf16>,
    %c0_116 = arith.constant 0 : index
    %c0_117 = arith.constant 0 : index
    %c262 = arith.constant 262 : index
    %96 = vector.load %arg1[%c0_116, %c0_117, %c262] : memref<1x8x3080xbf16, #tpu.memory_space<vmem>>, vector<1x8x2048xbf16>
    %97 = vector.shape_cast %96 : vector<1x8x2048xbf16> to vector<8x2048xbf16>
    %c48_118 = arith.constant 48 : index
    %c0_119 = arith.constant 0 : index
    %98 = vector.load %arg4[%c48_118, %c0_119] : memref<72x2048xbf16, #tpu.memory_space<vmem>>, vector<8x2048xbf16>
    tpu.vector_store %arg4[%c48_118, %c0_119], %97 {strides = array<i32>} : memref<72x2048xbf16, #tpu.memory_space<vmem>>, vector<8x2048xbf16>,
    %c0_120 = arith.constant 0 : index
    %c0_121 = arith.constant 0 : index
    %c263 = arith.constant 263 : index
    %99 = vector.load %arg1[%c0_120, %c0_121, %c263] : memref<1x8x3080xbf16, #tpu.memory_space<vmem>>, vector<1x8x2048xbf16>
    %100 = vector.shape_cast %99 : vector<1x8x2048xbf16> to vector<8x2048xbf16>
    %c56_122 = arith.constant 56 : index
    %c0_123 = arith.constant 0 : index
    %101 = vector.load %arg4[%c56_122, %c0_123] : memref<72x2048xbf16, #tpu.memory_space<vmem>>, vector<8x2048xbf16>
    tpu.vector_store %arg4[%c56_122, %c0_123], %100 {strides = array<i32>} : memref<72x2048xbf16, #tpu.memory_space<vmem>>, vector<8x2048xbf16>,
    %c0_124 = arith.constant 0 : index
    %c0_125 = arith.constant 0 : index
    %c264 = arith.constant 264 : index
    %102 = vector.load %arg1[%c0_124, %c0_125, %c264] : memref<1x8x3080xbf16, #tpu.memory_space<vmem>>, vector<1x8x2048xbf16>
    %103 = vector.shape_cast %102 : vector<1x8x2048xbf16> to vector<8x2048xbf16>
    %c64_126 = arith.constant 64 : index
    %c0_127 = arith.constant 0 : index
    %104 = vector.load %arg4[%c64_126, %c0_127] : memref<72x2048xbf16, #tpu.memory_space<vmem>>, vector<8x2048xbf16>
    tpu.vector_store %arg4[%c64_126, %c0_127], %103 {strides = array<i32>} : memref<72x2048xbf16, #tpu.memory_space<vmem>>, vector<8x2048xbf16>,
    %c0_128 = arith.constant 0 : index
    %c0_129 = arith.constant 0 : index
    %c0_130 = arith.constant 0 : index
    %105 = vector.load %arg3[%c0_128, %c0_129, %c0_130] : memref<1x8x2048xf32, #tpu.memory_space<vmem>>, vector<1x8x2048xf32>
    %106 = vector.shape_cast %105 : vector<1x8x2048xf32> to vector<8x2048xf32>
    %c2_131 = arith.constant 2 : index
    %c0_132 = arith.constant 0 : index
    %c0_133 = arith.constant 0 : index
    %107 = vector.load %arg2[%c2_131, %c0_132, %c0_133] : memref<9x8x72xbf16, #tpu.memory_space<vmem>>, vector<1x8x72xbf16>
    %108 = vector.shape_cast %107 : vector<1x8x72xbf16> to vector<8x72xbf16>
    %c0_134 = arith.constant 0 : index
    %c0_135 = arith.constant 0 : index
    %109 = vector.load %arg4[%c0_134, %c0_135] : memref<72x2048xbf16, #tpu.memory_space<vmem>>, vector<72x2048xbf16>
    %cst_136 = arith.constant dense<0.000000e+00> : vector<8x2048xf32>
    %110 = tpu.matmul %108, %109, %cst_136 {dimension_numbers = #tpu.dot_dimension_numbers<[1], [0], [0], [1], [0, 0, 1, 1], [], []>} : vector<8x72xbf16>, vector<72x2048xbf16>, vector<8x2048xf32> -> vector<8x2048xf32>
    %111 = arith.addf %106, %110 : vector<8x2048xf32>
    %c0_137 = arith.constant 0 : index
    %c0_138 = arith.constant 0 : index
    %c0_139 = arith.constant 0 : index
    %112 = vector.load %arg3[%c0_137, %c0_138, %c0_139] : memref<1x8x2048xf32, #tpu.memory_space<vmem>>, vector<1x8x2048xf32>
    %113 = vector.shape_cast %112 : vector<1x8x2048xf32> to vector<8x2048xf32>
    %114 = vector.shape_cast %111 : vector<8x2048xf32> to vector<1x8x2048xf32>
    tpu.vector_store %arg3[%c0_137, %c0_138, %c0_139], %114 {strides = array<i32>} : memref<1x8x2048xf32, #tpu.memory_space<vmem>>, vector<1x8x2048xf32>,
    %c0_140 = arith.constant 0 : index
    %c0_141 = arith.constant 0 : index
    %c384 = arith.constant 384 : index
    %115 = vector.load %arg1[%c0_140, %c0_141, %c384] : memref<1x8x3080xbf16, #tpu.memory_space<vmem>>, vector<1x8x2048xbf16>
    %116 = vector.shape_cast %115 : vector<1x8x2048xbf16> to vector<8x2048xbf16>
    %c0_142 = arith.constant 0 : index
    %c0_143 = arith.constant 0 : index
    %117 = vector.load %arg4[%c0_142, %c0_143] : memref<72x2048xbf16, #tpu.memory_space<vmem>>, vector<8x2048xbf16>
    tpu.vector_store %arg4[%c0_142, %c0_143], %116 {strides = array<i32>} : memref<72x2048xbf16, #tpu.memory_space<vmem>>, vector<8x2048xbf16>,
    %c0_144 = arith.constant 0 : index
    %c0_145 = arith.constant 0 : index
    %c385 = arith.constant 385 : index
    %118 = vector.load %arg1[%c0_144, %c0_145, %c385] : memref<1x8x3080xbf16, #tpu.memory_space<vmem>>, vector<1x8x2048xbf16>
    %119 = vector.shape_cast %118 : vector<1x8x2048xbf16> to vector<8x2048xbf16>
    %c8_146 = arith.constant 8 : index
    %c0_147 = arith.constant 0 : index
    %120 = vector.load %arg4[%c8_146, %c0_147] : memref<72x2048xbf16, #tpu.memory_space<vmem>>, vector<8x2048xbf16>
    tpu.vector_store %arg4[%c8_146, %c0_147], %119 {strides = array<i32>} : memref<72x2048xbf16, #tpu.memory_space<vmem>>, vector<8x2048xbf16>,
    %c0_148 = arith.constant 0 : index
    %c0_149 = arith.constant 0 : index
    %c386 = arith.constant 386 : index
    %121 = vector.load %arg1[%c0_148, %c0_149, %c386] : memref<1x8x3080xbf16, #tpu.memory_space<vmem>>, vector<1x8x2048xbf16>
    %122 = vector.shape_cast %121 : vector<1x8x2048xbf16> to vector<8x2048xbf16>
    %c16_150 = arith.constant 16 : index
    %c0_151 = arith.constant 0 : index
    %123 = vector.load %arg4[%c16_150, %c0_151] : memref<72x2048xbf16, #tpu.memory_space<vmem>>, vector<8x2048xbf16>
    tpu.vector_store %arg4[%c16_150, %c0_151], %122 {strides = array<i32>} : memref<72x2048xbf16, #tpu.memory_space<vmem>>, vector<8x2048xbf16>,
    %c0_152 = arith.constant 0 : index
    %c0_153 = arith.constant 0 : index
    %c387 = arith.constant 387 : index
    %124 = vector.load %arg1[%c0_152, %c0_153, %c387] : memref<1x8x3080xbf16, #tpu.memory_space<vmem>>, vector<1x8x2048xbf16>
    %125 = vector.shape_cast %124 : vector<1x8x2048xbf16> to vector<8x2048xbf16>
    %c24_154 = arith.constant 24 : index
    %c0_155 = arith.constant 0 : index
    %126 = vector.load %arg4[%c24_154, %c0_155] : memref<72x2048xbf16, #tpu.memory_space<vmem>>, vector<8x2048xbf16>
    tpu.vector_store %arg4[%c24_154, %c0_155], %125 {strides = array<i32>} : memref<72x2048xbf16, #tpu.memory_space<vmem>>, vector<8x2048xbf16>,
    %c0_156 = arith.constant 0 : index
    %c0_157 = arith.constant 0 : index
    %c388 = arith.constant 388 : index
    %127 = vector.load %arg1[%c0_156, %c0_157, %c388] : memref<1x8x3080xbf16, #tpu.memory_space<vmem>>, vector<1x8x2048xbf16>
    %128 = vector.shape_cast %127 : vector<1x8x2048xbf16> to vector<8x2048xbf16>
    %c32_158 = arith.constant 32 : index
    %c0_159 = arith.constant 0 : index
    %129 = vector.load %arg4[%c32_158, %c0_159] : memref<72x2048xbf16, #tpu.memory_space<vmem>>, vector<8x2048xbf16>
    tpu.vector_store %arg4[%c32_158, %c0_159], %128 {strides = array<i32>} : memref<72x2048xbf16, #tpu.memory_space<vmem>>, vector<8x2048xbf16>,
    %c0_160 = arith.constant 0 : index
    %c0_161 = arith.constant 0 : index
    %c389 = arith.constant 389 : index
    %130 = vector.load %arg1[%c0_160, %c0_161, %c389] : memref<1x8x3080xbf16, #tpu.memory_space<vmem>>, vector<1x8x2048xbf16>
    %131 = vector.shape_cast %130 : vector<1x8x2048xbf16> to vector<8x2048xbf16>
    %c40_162 = arith.constant 40 : index
    %c0_163 = arith.constant 0 : index
    %132 = vector.load %arg4[%c40_162, %c0_163] : memref<72x2048xbf16, #tpu.memory_space<vmem>>, vector<8x2048xbf16>
    tpu.vector_store %arg4[%c40_162, %c0_163], %131 {strides = array<i32>} : memref<72x2048xbf16, #tpu.memory_space<vmem>>, vector<8x2048xbf16>,
    %c0_164 = arith.constant 0 : index
    %c0_165 = arith.constant 0 : index
    %c390 = arith.constant 390 : index
    %133 = vector.load %arg1[%c0_164, %c0_165, %c390] : memref<1x8x3080xbf16, #tpu.memory_space<vmem>>, vector<1x8x2048xbf16>
    %134 = vector.shape_cast %133 : vector<1x8x2048xbf16> to vector<8x2048xbf16>
    %c48_166 = arith.constant 48 : index
    %c0_167 = arith.constant 0 : index
    %135 = vector.load %arg4[%c48_166, %c0_167] : memref<72x2048xbf16, #tpu.memory_space<vmem>>, vector<8x2048xbf16>
    tpu.vector_store %arg4[%c48_166, %c0_167], %134 {strides = array<i32>} : memref<72x2048xbf16, #tpu.memory_space<vmem>>, vector<8x2048xbf16>,
    %c0_168 = arith.constant 0 : index
    %c0_169 = arith.constant 0 : index
    %c391 = arith.constant 391 : index
    %136 = vector.load %arg1[%c0_168, %c0_169, %c391] : memref<1x8x3080xbf16, #tpu.memory_space<vmem>>, vector<1x8x2048xbf16>
    %137 = vector.shape_cast %136 : vector<1x8x2048xbf16> to vector<8x2048xbf16>
    %c56_170 = arith.constant 56 : index
    %c0_171 = arith.constant 0 : index
    %138 = vector.load %arg4[%c56_170, %c0_171] : memref<72x2048xbf16, #tpu.memory_space<vmem>>, vector<8x2048xbf16>
    tpu.vector_store %arg4[%c56_170, %c0_171], %137 {strides = array<i32>} : memref<72x2048xbf16, #tpu.memory_space<vmem>>, vector<8x2048xbf16>,
    %c0_172 = arith.constant 0 : index
    %c0_173 = arith.constant 0 : index
    %c392 = arith.constant 392 : index
    %139 = vector.load %arg1[%c0_172, %c0_173, %c392] : memref<1x8x3080xbf16, #tpu.memory_space<vmem>>, vector<1x8x2048xbf16>
    %140 = vector.shape_cast %139 : vector<1x8x2048xbf16> to vector<8x2048xbf16>
    %c64_174 = arith.constant 64 : index
    %c0_175 = arith.constant 0 : index
    %141 = vector.load %arg4[%c64_174, %c0_175] : memref<72x2048xbf16, #tpu.memory_space<vmem>>, vector<8x2048xbf16>
    tpu.vector_store %arg4[%c64_174, %c0_175], %140 {strides = array<i32>} : memref<72x2048xbf16, #tpu.memory_space<vmem>>, vector<8x2048xbf16>,
    %c0_176 = arith.constant 0 : index
    %c0_177 = arith.constant 0 : index
    %c0_178 = arith.constant 0 : index
    %142 = vector.load %arg3[%c0_176, %c0_177, %c0_178] : memref<1x8x2048xf32, #tpu.memory_space<vmem>>, vector<1x8x2048xf32>
    %143 = vector.shape_cast %142 : vector<1x8x2048xf32> to vector<8x2048xf32>
    %c3_179 = arith.constant 3 : index
    %c0_180 = arith.constant 0 : index
    %c0_181 = arith.constant 0 : index
    %144 = vector.load %arg2[%c3_179, %c0_180, %c0_181] : memref<9x8x72xbf16, #tpu.memory_space<vmem>>, vector<1x8x72xbf16>
    %145 = vector.shape_cast %144 : vector<1x8x72xbf16> to vector<8x72xbf16>
    %c0_182 = arith.constant 0 : index
    %c0_183 = arith.constant 0 : index
    %146 = vector.load %arg4[%c0_182, %c0_183] : memref<72x2048xbf16, #tpu.memory_space<vmem>>, vector<72x2048xbf16>
    %cst_184 = arith.constant dense<0.000000e+00> : vector<8x2048xf32>
    %147 = tpu.matmul %145, %146, %cst_184 {dimension_numbers = #tpu.dot_dimension_numbers<[1], [0], [0], [1], [0, 0, 1, 1], [], []>} : vector<8x72xbf16>, vector<72x2048xbf16>, vector<8x2048xf32> -> vector<8x2048xf32>
    %148 = arith.addf %143, %147 : vector<8x2048xf32>
    %c0_185 = arith.constant 0 : index
    %c0_186 = arith.constant 0 : index
    %c0_187 = arith.constant 0 : index
    %149 = vector.load %arg3[%c0_185, %c0_186, %c0_187] : memref<1x8x2048xf32, #tpu.memory_space<vmem>>, vector<1x8x2048xf32>
    %150 = vector.shape_cast %149 : vector<1x8x2048xf32> to vector<8x2048xf32>
    %151 = vector.shape_cast %148 : vector<8x2048xf32> to vector<1x8x2048xf32>
    tpu.vector_store %arg3[%c0_185, %c0_186, %c0_187], %151 {strides = array<i32>} : memref<1x8x2048xf32, #tpu.memory_space<vmem>>, vector<1x8x2048xf32>,
    %c0_188 = arith.constant 0 : index
    %c0_189 = arith.constant 0 : index
    %c512 = arith.constant 512 : index
    %152 = vector.load %arg1[%c0_188, %c0_189, %c512] : memref<1x8x3080xbf16, #tpu.memory_space<vmem>>, vector<1x8x2048xbf16>
    %153 = vector.shape_cast %152 : vector<1x8x2048xbf16> to vector<8x2048xbf16>
    %c0_190 = arith.constant 0 : index
    %c0_191 = arith.constant 0 : index
    %154 = vector.load %arg4[%c0_190, %c0_191] : memref<72x2048xbf16, #tpu.memory_space<vmem>>, vector<8x2048xbf16>
    tpu.vector_store %arg4[%c0_190, %c0_191], %153 {strides = array<i32>} : memref<72x2048xbf16, #tpu.memory_space<vmem>>, vector<8x2048xbf16>,
    %c0_192 = arith.constant 0 : index
    %c0_193 = arith.constant 0 : index
    %c513 = arith.constant 513 : index
    %155 = vector.load %arg1[%c0_192, %c0_193, %c513] : memref<1x8x3080xbf16, #tpu.memory_space<vmem>>, vector<1x8x2048xbf16>
    %156 = vector.shape_cast %155 : vector<1x8x2048xbf16> to vector<8x2048xbf16>
    %c8_194 = arith.constant 8 : index
    %c0_195 = arith.constant 0 : index
    %157 = vector.load %arg4[%c8_194, %c0_195] : memref<72x2048xbf16, #tpu.memory_space<vmem>>, vector<8x2048xbf16>
    tpu.vector_store %arg4[%c8_194, %c0_195], %156 {strides = array<i32>} : memref<72x2048xbf16, #tpu.memory_space<vmem>>, vector<8x2048xbf16>,
    %c0_196 = arith.constant 0 : index
    %c0_197 = arith.constant 0 : index
    %c514 = arith.constant 514 : index
    %158 = vector.load %arg1[%c0_196, %c0_197, %c514] : memref<1x8x3080xbf16, #tpu.memory_space<vmem>>, vector<1x8x2048xbf16>
    %159 = vector.shape_cast %158 : vector<1x8x2048xbf16> to vector<8x2048xbf16>
    %c16_198 = arith.constant 16 : index
    %c0_199 = arith.constant 0 : index
    %160 = vector.load %arg4[%c16_198, %c0_199] : memref<72x2048xbf16, #tpu.memory_space<vmem>>, vector<8x2048xbf16>
    tpu.vector_store %arg4[%c16_198, %c0_199], %159 {strides = array<i32>} : memref<72x2048xbf16, #tpu.memory_space<vmem>>, vector<8x2048xbf16>,
    %c0_200 = arith.constant 0 : index
    %c0_201 = arith.constant 0 : index
    %c515 = arith.constant 515 : index
    %161 = vector.load %arg1[%c0_200, %c0_201, %c515] : memref<1x8x3080xbf16, #tpu.memory_space<vmem>>, vector<1x8x2048xbf16>
    %162 = vector.shape_cast %161 : vector<1x8x2048xbf16> to vector<8x2048xbf16>
    %c24_202 = arith.constant 24 : index
    %c0_203 = arith.constant 0 : index
    %163 = vector.load %arg4[%c24_202, %c0_203] : memref<72x2048xbf16, #tpu.memory_space<vmem>>, vector<8x2048xbf16>
    tpu.vector_store %arg4[%c24_202, %c0_203], %162 {strides = array<i32>} : memref<72x2048xbf16, #tpu.memory_space<vmem>>, vector<8x2048xbf16>,
    %c0_204 = arith.constant 0 : index
    %c0_205 = arith.constant 0 : index
    %c516 = arith.constant 516 : index
    %164 = vector.load %arg1[%c0_204, %c0_205, %c516] : memref<1x8x3080xbf16, #tpu.memory_space<vmem>>, vector<1x8x2048xbf16>
    %165 = vector.shape_cast %164 : vector<1x8x2048xbf16> to vector<8x2048xbf16>
    %c32_206 = arith.constant 32 : index
    %c0_207 = arith.constant 0 : index
    %166 = vector.load %arg4[%c32_206, %c0_207] : memref<72x2048xbf16, #tpu.memory_space<vmem>>, vector<8x2048xbf16>
    tpu.vector_store %arg4[%c32_206, %c0_207], %165 {strides = array<i32>} : memref<72x2048xbf16, #tpu.memory_space<vmem>>, vector<8x2048xbf16>,
    %c0_208 = arith.constant 0 : index
    %c0_209 = arith.constant 0 : index
    %c517 = arith.constant 517 : index
    %167 = vector.load %arg1[%c0_208, %c0_209, %c517] : memref<1x8x3080xbf16, #tpu.memory_space<vmem>>, vector<1x8x2048xbf16>
    %168 = vector.shape_cast %167 : vector<1x8x2048xbf16> to vector<8x2048xbf16>
    %c40_210 = arith.constant 40 : index
    %c0_211 = arith.constant 0 : index
    %169 = vector.load %arg4[%c40_210, %c0_211] : memref<72x2048xbf16, #tpu.memory_space<vmem>>, vector<8x2048xbf16>
    tpu.vector_store %arg4[%c40_210, %c0_211], %168 {strides = array<i32>} : memref<72x2048xbf16, #tpu.memory_space<vmem>>, vector<8x2048xbf16>,
    %c0_212 = arith.constant 0 : index
    %c0_213 = arith.constant 0 : index
    %c518 = arith.constant 518 : index
    %170 = vector.load %arg1[%c0_212, %c0_213, %c518] : memref<1x8x3080xbf16, #tpu.memory_space<vmem>>, vector<1x8x2048xbf16>
    %171 = vector.shape_cast %170 : vector<1x8x2048xbf16> to vector<8x2048xbf16>
    %c48_214 = arith.constant 48 : index
    %c0_215 = arith.constant 0 : index
    %172 = vector.load %arg4[%c48_214, %c0_215] : memref<72x2048xbf16, #tpu.memory_space<vmem>>, vector<8x2048xbf16>
    tpu.vector_store %arg4[%c48_214, %c0_215], %171 {strides = array<i32>} : memref<72x2048xbf16, #tpu.memory_space<vmem>>, vector<8x2048xbf16>,
    %c0_216 = arith.constant 0 : index
    %c0_217 = arith.constant 0 : index
    %c519 = arith.constant 519 : index
    %173 = vector.load %arg1[%c0_216, %c0_217, %c519] : memref<1x8x3080xbf16, #tpu.memory_space<vmem>>, vector<1x8x2048xbf16>
    %174 = vector.shape_cast %173 : vector<1x8x2048xbf16> to vector<8x2048xbf16>
    %c56_218 = arith.constant 56 : index
    %c0_219 = arith.constant 0 : index
    %175 = vector.load %arg4[%c56_218, %c0_219] : memref<72x2048xbf16, #tpu.memory_space<vmem>>, vector<8x2048xbf16>
    tpu.vector_store %arg4[%c56_218, %c0_219], %174 {strides = array<i32>} : memref<72x2048xbf16, #tpu.memory_space<vmem>>, vector<8x2048xbf16>,
    %c0_220 = arith.constant 0 : index
    %c0_221 = arith.constant 0 : index
    %c520 = arith.constant 520 : index
    %176 = vector.load %arg1[%c0_220, %c0_221, %c520] : memref<1x8x3080xbf16, #tpu.memory_space<vmem>>, vector<1x8x2048xbf16>
    %177 = vector.shape_cast %176 : vector<1x8x2048xbf16> to vector<8x2048xbf16>
    %c64_222 = arith.constant 64 : index
    %c0_223 = arith.constant 0 : index
    %178 = vector.load %arg4[%c64_222, %c0_223] : memref<72x2048xbf16, #tpu.memory_space<vmem>>, vector<8x2048xbf16>
    tpu.vector_store %arg4[%c64_222, %c0_223], %177 {strides = array<i32>} : memref<72x2048xbf16, #tpu.memory_space<vmem>>, vector<8x2048xbf16>,
    %c0_224 = arith.constant 0 : index
    %c0_225 = arith.constant 0 : index
    %c0_226 = arith.constant 0 : index
    %179 = vector.load %arg3[%c0_224, %c0_225, %c0_226] : memref<1x8x2048xf32, #tpu.memory_space<vmem>>, vector<1x8x2048xf32>
    %180 = vector.shape_cast %179 : vector<1x8x2048xf32> to vector<8x2048xf32>
    %c4_227 = arith.constant 4 : index
    %c0_228 = arith.constant 0 : index
    %c0_229 = arith.constant 0 : index
    %181 = vector.load %arg2[%c4_227, %c0_228, %c0_229] : memref<9x8x72xbf16, #tpu.memory_space<vmem>>, vector<1x8x72xbf16>
    %182 = vector.shape_cast %181 : vector<1x8x72xbf16> to vector<8x72xbf16>
    %c0_230 = arith.constant 0 : index
    %c0_231 = arith.constant 0 : index
    %183 = vector.load %arg4[%c0_230, %c0_231] : memref<72x2048xbf16, #tpu.memory_space<vmem>>, vector<72x2048xbf16>
    %cst_232 = arith.constant dense<0.000000e+00> : vector<8x2048xf32>
    %184 = tpu.matmul %182, %183, %cst_232 {dimension_numbers = #tpu.dot_dimension_numbers<[1], [0], [0], [1], [0, 0, 1, 1], [], []>} : vector<8x72xbf16>, vector<72x2048xbf16>, vector<8x2048xf32> -> vector<8x2048xf32>
    %185 = arith.addf %180, %184 : vector<8x2048xf32>
    %c0_233 = arith.constant 0 : index
    %c0_234 = arith.constant 0 : index
    %c0_235 = arith.constant 0 : index
    %186 = vector.load %arg3[%c0_233, %c0_234, %c0_235] : memref<1x8x2048xf32, #tpu.memory_space<vmem>>, vector<1x8x2048xf32>
    %187 = vector.shape_cast %186 : vector<1x8x2048xf32> to vector<8x2048xf32>
    %188 = vector.shape_cast %185 : vector<8x2048xf32> to vector<1x8x2048xf32>
    tpu.vector_store %arg3[%c0_233, %c0_234, %c0_235], %188 {strides = array<i32>} : memref<1x8x2048xf32, #tpu.memory_space<vmem>>, vector<1x8x2048xf32>,
    %c0_236 = arith.constant 0 : index
    %c0_237 = arith.constant 0 : index
    %c640 = arith.constant 640 : index
    %189 = vector.load %arg1[%c0_236, %c0_237, %c640] : memref<1x8x3080xbf16, #tpu.memory_space<vmem>>, vector<1x8x2048xbf16>
    %190 = vector.shape_cast %189 : vector<1x8x2048xbf16> to vector<8x2048xbf16>
    %c0_238 = arith.constant 0 : index
    %c0_239 = arith.constant 0 : index
    %191 = vector.load %arg4[%c0_238, %c0_239] : memref<72x2048xbf16, #tpu.memory_space<vmem>>, vector<8x2048xbf16>
    tpu.vector_store %arg4[%c0_238, %c0_239], %190 {strides = array<i32>} : memref<72x2048xbf16, #tpu.memory_space<vmem>>, vector<8x2048xbf16>,
    %c0_240 = arith.constant 0 : index
    %c0_241 = arith.constant 0 : index
    %c641 = arith.constant 641 : index
    %192 = vector.load %arg1[%c0_240, %c0_241, %c641] : memref<1x8x3080xbf16, #tpu.memory_space<vmem>>, vector<1x8x2048xbf16>
    %193 = vector.shape_cast %192 : vector<1x8x2048xbf16> to vector<8x2048xbf16>
    %c8_242 = arith.constant 8 : index
    %c0_243 = arith.constant 0 : index
    %194 = vector.load %arg4[%c8_242, %c0_243] : memref<72x2048xbf16, #tpu.memory_space<vmem>>, vector<8x2048xbf16>
    tpu.vector_store %arg4[%c8_242, %c0_243], %193 {strides = array<i32>} : memref<72x2048xbf16, #tpu.memory_space<vmem>>, vector<8x2048xbf16>,
    %c0_244 = arith.constant 0 : index
    %c0_245 = arith.constant 0 : index
    %c642 = arith.constant 642 : index
    %195 = vector.load %arg1[%c0_244, %c0_245, %c642] : memref<1x8x3080xbf16, #tpu.memory_space<vmem>>, vector<1x8x2048xbf16>
    %196 = vector.shape_cast %195 : vector<1x8x2048xbf16> to vector<8x2048xbf16>
    %c16_246 = arith.constant 16 : index
    %c0_247 = arith.constant 0 : index
    %197 = vector.load %arg4[%c16_246, %c0_247] : memref<72x2048xbf16, #tpu.memory_space<vmem>>, vector<8x2048xbf16>
    tpu.vector_store %arg4[%c16_246, %c0_247], %196 {strides = array<i32>} : memref<72x2048xbf16, #tpu.memory_space<vmem>>, vector<8x2048xbf16>,
    %c0_248 = arith.constant 0 : index
    %c0_249 = arith.constant 0 : index
    %c643 = arith.constant 643 : index
    %198 = vector.load %arg1[%c0_248, %c0_249, %c643] : memref<1x8x3080xbf16, #tpu.memory_space<vmem>>, vector<1x8x2048xbf16>
    %199 = vector.shape_cast %198 : vector<1x8x2048xbf16> to vector<8x2048xbf16>
    %c24_250 = arith.constant 24 : index
    %c0_251 = arith.constant 0 : index
    %200 = vector.load %arg4[%c24_250, %c0_251] : memref<72x2048xbf16, #tpu.memory_space<vmem>>, vector<8x2048xbf16>
    tpu.vector_store %arg4[%c24_250, %c0_251], %199 {strides = array<i32>} : memref<72x2048xbf16, #tpu.memory_space<vmem>>, vector<8x2048xbf16>,
    %c0_252 = arith.constant 0 : index
    %c0_253 = arith.constant 0 : index
    %c644 = arith.constant 644 : index
    %201 = vector.load %arg1[%c0_252, %c0_253, %c644] : memref<1x8x3080xbf16, #tpu.memory_space<vmem>>, vector<1x8x2048xbf16>
    %202 = vector.shape_cast %201 : vector<1x8x2048xbf16> to vector<8x2048xbf16>
    %c32_254 = arith.constant 32 : index
    %c0_255 = arith.constant 0 : index
    %203 = vector.load %arg4[%c32_254, %c0_255] : memref<72x2048xbf16, #tpu.memory_space<vmem>>, vector<8x2048xbf16>
    tpu.vector_store %arg4[%c32_254, %c0_255], %202 {strides = array<i32>} : memref<72x2048xbf16, #tpu.memory_space<vmem>>, vector<8x2048xbf16>,
    %c0_256 = arith.constant 0 : index
    %c0_257 = arith.constant 0 : index
    %c645 = arith.constant 645 : index
    %204 = vector.load %arg1[%c0_256, %c0_257, %c645] : memref<1x8x3080xbf16, #tpu.memory_space<vmem>>, vector<1x8x2048xbf16>
    %205 = vector.shape_cast %204 : vector<1x8x2048xbf16> to vector<8x2048xbf16>
    %c40_258 = arith.constant 40 : index
    %c0_259 = arith.constant 0 : index
    %206 = vector.load %arg4[%c40_258, %c0_259] : memref<72x2048xbf16, #tpu.memory_space<vmem>>, vector<8x2048xbf16>
    tpu.vector_store %arg4[%c40_258, %c0_259], %205 {strides = array<i32>} : memref<72x2048xbf16, #tpu.memory_space<vmem>>, vector<8x2048xbf16>,
    %c0_260 = arith.constant 0 : index
    %c0_261 = arith.constant 0 : index
    %c646 = arith.constant 646 : index
    %207 = vector.load %arg1[%c0_260, %c0_261, %c646] : memref<1x8x3080xbf16, #tpu.memory_space<vmem>>, vector<1x8x2048xbf16>
    %208 = vector.shape_cast %207 : vector<1x8x2048xbf16> to vector<8x2048xbf16>
    %c48_262 = arith.constant 48 : index
    %c0_263 = arith.constant 0 : index
    %209 = vector.load %arg4[%c48_262, %c0_263] : memref<72x2048xbf16, #tpu.memory_space<vmem>>, vector<8x2048xbf16>
    tpu.vector_store %arg4[%c48_262, %c0_263], %208 {strides = array<i32>} : memref<72x2048xbf16, #tpu.memory_space<vmem>>, vector<8x2048xbf16>,
    %c0_264 = arith.constant 0 : index
    %c0_265 = arith.constant 0 : index
    %c647 = arith.constant 647 : index
    %210 = vector.load %arg1[%c0_264, %c0_265, %c647] : memref<1x8x3080xbf16, #tpu.memory_space<vmem>>, vector<1x8x2048xbf16>
    %211 = vector.shape_cast %210 : vector<1x8x2048xbf16> to vector<8x2048xbf16>
    %c56_266 = arith.constant 56 : index
    %c0_267 = arith.constant 0 : index
    %212 = vector.load %arg4[%c56_266, %c0_267] : memref<72x2048xbf16, #tpu.memory_space<vmem>>, vector<8x2048xbf16>
    tpu.vector_store %arg4[%c56_266, %c0_267], %211 {strides = array<i32>} : memref<72x2048xbf16, #tpu.memory_space<vmem>>, vector<8x2048xbf16>,
    %c0_268 = arith.constant 0 : index
    %c0_269 = arith.constant 0 : index
    %c648 = arith.constant 648 : index
    %213 = vector.load %arg1[%c0_268, %c0_269, %c648] : memref<1x8x3080xbf16, #tpu.memory_space<vmem>>, vector<1x8x2048xbf16>
    %214 = vector.shape_cast %213 : vector<1x8x2048xbf16> to vector<8x2048xbf16>
    %c64_270 = arith.constant 64 : index
    %c0_271 = arith.constant 0 : index
    %215 = vector.load %arg4[%c64_270, %c0_271] : memref<72x2048xbf16, #tpu.memory_space<vmem>>, vector<8x2048xbf16>
    tpu.vector_store %arg4[%c64_270, %c0_271], %214 {strides = array<i32>} : memref<72x2048xbf16, #tpu.memory_space<vmem>>, vector<8x2048xbf16>,
    %c0_272 = arith.constant 0 : index
    %c0_273 = arith.constant 0 : index
    %c0_274 = arith.constant 0 : index
    %216 = vector.load %arg3[%c0_272, %c0_273, %c0_274] : memref<1x8x2048xf32, #tpu.memory_space<vmem>>, vector<1x8x2048xf32>
    %217 = vector.shape_cast %216 : vector<1x8x2048xf32> to vector<8x2048xf32>
    %c5_275 = arith.constant 5 : index
    %c0_276 = arith.constant 0 : index
    %c0_277 = arith.constant 0 : index
    %218 = vector.load %arg2[%c5_275, %c0_276, %c0_277] : memref<9x8x72xbf16, #tpu.memory_space<vmem>>, vector<1x8x72xbf16>
    %219 = vector.shape_cast %218 : vector<1x8x72xbf16> to vector<8x72xbf16>
    %c0_278 = arith.constant 0 : index
    %c0_279 = arith.constant 0 : index
    %220 = vector.load %arg4[%c0_278, %c0_279] : memref<72x2048xbf16, #tpu.memory_space<vmem>>, vector<72x2048xbf16>
    %cst_280 = arith.constant dense<0.000000e+00> : vector<8x2048xf32>
    %221 = tpu.matmul %219, %220, %cst_280 {dimension_numbers = #tpu.dot_dimension_numbers<[1], [0], [0], [1], [0, 0, 1, 1], [], []>} : vector<8x72xbf16>, vector<72x2048xbf16>, vector<8x2048xf32> -> vector<8x2048xf32>
    %222 = arith.addf %217, %221 : vector<8x2048xf32>
    %c0_281 = arith.constant 0 : index
    %c0_282 = arith.constant 0 : index
    %c0_283 = arith.constant 0 : index
    %223 = vector.load %arg3[%c0_281, %c0_282, %c0_283] : memref<1x8x2048xf32, #tpu.memory_space<vmem>>, vector<1x8x2048xf32>
    %224 = vector.shape_cast %223 : vector<1x8x2048xf32> to vector<8x2048xf32>
    %225 = vector.shape_cast %222 : vector<8x2048xf32> to vector<1x8x2048xf32>
    tpu.vector_store %arg3[%c0_281, %c0_282, %c0_283], %225 {strides = array<i32>} : memref<1x8x2048xf32, #tpu.memory_space<vmem>>, vector<1x8x2048xf32>,
    %c0_284 = arith.constant 0 : index
    %c0_285 = arith.constant 0 : index
    %c768 = arith.constant 768 : index
    %226 = vector.load %arg1[%c0_284, %c0_285, %c768] : memref<1x8x3080xbf16, #tpu.memory_space<vmem>>, vector<1x8x2048xbf16>
    %227 = vector.shape_cast %226 : vector<1x8x2048xbf16> to vector<8x2048xbf16>
    %c0_286 = arith.constant 0 : index
    %c0_287 = arith.constant 0 : index
    %228 = vector.load %arg4[%c0_286, %c0_287] : memref<72x2048xbf16, #tpu.memory_space<vmem>>, vector<8x2048xbf16>
    tpu.vector_store %arg4[%c0_286, %c0_287], %227 {strides = array<i32>} : memref<72x2048xbf16, #tpu.memory_space<vmem>>, vector<8x2048xbf16>,
    %c0_288 = arith.constant 0 : index
    %c0_289 = arith.constant 0 : index
    %c769 = arith.constant 769 : index
    %229 = vector.load %arg1[%c0_288, %c0_289, %c769] : memref<1x8x3080xbf16, #tpu.memory_space<vmem>>, vector<1x8x2048xbf16>
    %230 = vector.shape_cast %229 : vector<1x8x2048xbf16> to vector<8x2048xbf16>
    %c8_290 = arith.constant 8 : index
    %c0_291 = arith.constant 0 : index
    %231 = vector.load %arg4[%c8_290, %c0_291] : memref<72x2048xbf16, #tpu.memory_space<vmem>>, vector<8x2048xbf16>
    tpu.vector_store %arg4[%c8_290, %c0_291], %230 {strides = array<i32>} : memref<72x2048xbf16, #tpu.memory_space<vmem>>, vector<8x2048xbf16>,
    %c0_292 = arith.constant 0 : index
    %c0_293 = arith.constant 0 : index
    %c770 = arith.constant 770 : index
    %232 = vector.load %arg1[%c0_292, %c0_293, %c770] : memref<1x8x3080xbf16, #tpu.memory_space<vmem>>, vector<1x8x2048xbf16>
    %233 = vector.shape_cast %232 : vector<1x8x2048xbf16> to vector<8x2048xbf16>
    %c16_294 = arith.constant 16 : index
    %c0_295 = arith.constant 0 : index
    %234 = vector.load %arg4[%c16_294, %c0_295] : memref<72x2048xbf16, #tpu.memory_space<vmem>>, vector<8x2048xbf16>
    tpu.vector_store %arg4[%c16_294, %c0_295], %233 {strides = array<i32>} : memref<72x2048xbf16, #tpu.memory_space<vmem>>, vector<8x2048xbf16>,
    %c0_296 = arith.constant 0 : index
    %c0_297 = arith.constant 0 : index
    %c771 = arith.constant 771 : index
    %235 = vector.load %arg1[%c0_296, %c0_297, %c771] : memref<1x8x3080xbf16, #tpu.memory_space<vmem>>, vector<1x8x2048xbf16>
    %236 = vector.shape_cast %235 : vector<1x8x2048xbf16> to vector<8x2048xbf16>
    %c24_298 = arith.constant 24 : index
    %c0_299 = arith.constant 0 : index
    %237 = vector.load %arg4[%c24_298, %c0_299] : memref<72x2048xbf16, #tpu.memory_space<vmem>>, vector<8x2048xbf16>
    tpu.vector_store %arg4[%c24_298, %c0_299], %236 {strides = array<i32>} : memref<72x2048xbf16, #tpu.memory_space<vmem>>, vector<8x2048xbf16>,
    %c0_300 = arith.constant 0 : index
    %c0_301 = arith.constant 0 : index
    %c772 = arith.constant 772 : index
    %238 = vector.load %arg1[%c0_300, %c0_301, %c772] : memref<1x8x3080xbf16, #tpu.memory_space<vmem>>, vector<1x8x2048xbf16>
    %239 = vector.shape_cast %238 : vector<1x8x2048xbf16> to vector<8x2048xbf16>
    %c32_302 = arith.constant 32 : index
    %c0_303 = arith.constant 0 : index
    %240 = vector.load %arg4[%c32_302, %c0_303] : memref<72x2048xbf16, #tpu.memory_space<vmem>>, vector<8x2048xbf16>
    tpu.vector_store %arg4[%c32_302, %c0_303], %239 {strides = array<i32>} : memref<72x2048xbf16, #tpu.memory_space<vmem>>, vector<8x2048xbf16>,
    %c0_304 = arith.constant 0 : index
    %c0_305 = arith.constant 0 : index
    %c773 = arith.constant 773 : index
    %241 = vector.load %arg1[%c0_304, %c0_305, %c773] : memref<1x8x3080xbf16, #tpu.memory_space<vmem>>, vector<1x8x2048xbf16>
    %242 = vector.shape_cast %241 : vector<1x8x2048xbf16> to vector<8x2048xbf16>
    %c40_306 = arith.constant 40 : index
    %c0_307 = arith.constant 0 : index
    %243 = vector.load %arg4[%c40_306, %c0_307] : memref<72x2048xbf16, #tpu.memory_space<vmem>>, vector<8x2048xbf16>
    tpu.vector_store %arg4[%c40_306, %c0_307], %242 {strides = array<i32>} : memref<72x2048xbf16, #tpu.memory_space<vmem>>, vector<8x2048xbf16>,
    %c0_308 = arith.constant 0 : index
    %c0_309 = arith.constant 0 : index
    %c774 = arith.constant 774 : index
    %244 = vector.load %arg1[%c0_308, %c0_309, %c774] : memref<1x8x3080xbf16, #tpu.memory_space<vmem>>, vector<1x8x2048xbf16>
    %245 = vector.shape_cast %244 : vector<1x8x2048xbf16> to vector<8x2048xbf16>
    %c48_310 = arith.constant 48 : index
    %c0_311 = arith.constant 0 : index
    %246 = vector.load %arg4[%c48_310, %c0_311] : memref<72x2048xbf16, #tpu.memory_space<vmem>>, vector<8x2048xbf16>
    tpu.vector_store %arg4[%c48_310, %c0_311], %245 {strides = array<i32>} : memref<72x2048xbf16, #tpu.memory_space<vmem>>, vector<8x2048xbf16>,
    %c0_312 = arith.constant 0 : index
    %c0_313 = arith.constant 0 : index
    %c775 = arith.constant 775 : index
    %247 = vector.load %arg1[%c0_312, %c0_313, %c775] : memref<1x8x3080xbf16, #tpu.memory_space<vmem>>, vector<1x8x2048xbf16>
    %248 = vector.shape_cast %247 : vector<1x8x2048xbf16> to vector<8x2048xbf16>
    %c56_314 = arith.constant 56 : index
    %c0_315 = arith.constant 0 : index
    %249 = vector.load %arg4[%c56_314, %c0_315] : memref<72x2048xbf16, #tpu.memory_space<vmem>>, vector<8x2048xbf16>
    tpu.vector_store %arg4[%c56_314, %c0_315], %248 {strides = array<i32>} : memref<72x2048xbf16, #tpu.memory_space<vmem>>, vector<8x2048xbf16>,
    %c0_316 = arith.constant 0 : index
    %c0_317 = arith.constant 0 : index
    %c776 = arith.constant 776 : index
    %250 = vector.load %arg1[%c0_316, %c0_317, %c776] : memref<1x8x3080xbf16, #tpu.memory_space<vmem>>, vector<1x8x2048xbf16>
    %251 = vector.shape_cast %250 : vector<1x8x2048xbf16> to vector<8x2048xbf16>
    %c64_318 = arith.constant 64 : index
    %c0_319 = arith.constant 0 : index
    %252 = vector.load %arg4[%c64_318, %c0_319] : memref<72x2048xbf16, #tpu.memory_space<vmem>>, vector<8x2048xbf16>
    tpu.vector_store %arg4[%c64_318, %c0_319], %251 {strides = array<i32>} : memref<72x2048xbf16, #tpu.memory_space<vmem>>, vector<8x2048xbf16>,
    %c0_320 = arith.constant 0 : index
    %c0_321 = arith.constant 0 : index
    %c0_322 = arith.constant 0 : index
    %253 = vector.load %arg3[%c0_320, %c0_321, %c0_322] : memref<1x8x2048xf32, #tpu.memory_space<vmem>>, vector<1x8x2048xf32>
    %254 = vector.shape_cast %253 : vector<1x8x2048xf32> to vector<8x2048xf32>
    %c6_323 = arith.constant 6 : index
    %c0_324 = arith.constant 0 : index
    %c0_325 = arith.constant 0 : index
    %255 = vector.load %arg2[%c6_323, %c0_324, %c0_325] : memref<9x8x72xbf16, #tpu.memory_space<vmem>>, vector<1x8x72xbf16>
    %256 = vector.shape_cast %255 : vector<1x8x72xbf16> to vector<8x72xbf16>
    %c0_326 = arith.constant 0 : index
    %c0_327 = arith.constant 0 : index
    %257 = vector.load %arg4[%c0_326, %c0_327] : memref<72x2048xbf16, #tpu.memory_space<vmem>>, vector<72x2048xbf16>
    %cst_328 = arith.constant dense<0.000000e+00> : vector<8x2048xf32>
    %258 = tpu.matmul %256, %257, %cst_328 {dimension_numbers = #tpu.dot_dimension_numbers<[1], [0], [0], [1], [0, 0, 1, 1], [], []>} : vector<8x72xbf16>, vector<72x2048xbf16>, vector<8x2048xf32> -> vector<8x2048xf32>
    %259 = arith.addf %254, %258 : vector<8x2048xf32>
    %c0_329 = arith.constant 0 : index
    %c0_330 = arith.constant 0 : index
    %c0_331 = arith.constant 0 : index
    %260 = vector.load %arg3[%c0_329, %c0_330, %c0_331] : memref<1x8x2048xf32, #tpu.memory_space<vmem>>, vector<1x8x2048xf32>
    %261 = vector.shape_cast %260 : vector<1x8x2048xf32> to vector<8x2048xf32>
    %262 = vector.shape_cast %259 : vector<8x2048xf32> to vector<1x8x2048xf32>
    tpu.vector_store %arg3[%c0_329, %c0_330, %c0_331], %262 {strides = array<i32>} : memref<1x8x2048xf32, #tpu.memory_space<vmem>>, vector<1x8x2048xf32>,
    %c0_332 = arith.constant 0 : index
    %c0_333 = arith.constant 0 : index
    %c896 = arith.constant 896 : index
    %263 = vector.load %arg1[%c0_332, %c0_333, %c896] : memref<1x8x3080xbf16, #tpu.memory_space<vmem>>, vector<1x8x2048xbf16>
    %264 = vector.shape_cast %263 : vector<1x8x2048xbf16> to vector<8x2048xbf16>
    %c0_334 = arith.constant 0 : index
    %c0_335 = arith.constant 0 : index
    %265 = vector.load %arg4[%c0_334, %c0_335] : memref<72x2048xbf16, #tpu.memory_space<vmem>>, vector<8x2048xbf16>
    tpu.vector_store %arg4[%c0_334, %c0_335], %264 {strides = array<i32>} : memref<72x2048xbf16, #tpu.memory_space<vmem>>, vector<8x2048xbf16>,
    %c0_336 = arith.constant 0 : index
    %c0_337 = arith.constant 0 : index
    %c897 = arith.constant 897 : index
    %266 = vector.load %arg1[%c0_336, %c0_337, %c897] : memref<1x8x3080xbf16, #tpu.memory_space<vmem>>, vector<1x8x2048xbf16>
    %267 = vector.shape_cast %266 : vector<1x8x2048xbf16> to vector<8x2048xbf16>
    %c8_338 = arith.constant 8 : index
    %c0_339 = arith.constant 0 : index
    %268 = vector.load %arg4[%c8_338, %c0_339] : memref<72x2048xbf16, #tpu.memory_space<vmem>>, vector<8x2048xbf16>
    tpu.vector_store %arg4[%c8_338, %c0_339], %267 {strides = array<i32>} : memref<72x2048xbf16, #tpu.memory_space<vmem>>, vector<8x2048xbf16>,
    %c0_340 = arith.constant 0 : index
    %c0_341 = arith.constant 0 : index
    %c898 = arith.constant 898 : index
    %269 = vector.load %arg1[%c0_340, %c0_341, %c898] : memref<1x8x3080xbf16, #tpu.memory_space<vmem>>, vector<1x8x2048xbf16>
    %270 = vector.shape_cast %269 : vector<1x8x2048xbf16> to vector<8x2048xbf16>
    %c16_342 = arith.constant 16 : index
    %c0_343 = arith.constant 0 : index
    %271 = vector.load %arg4[%c16_342, %c0_343] : memref<72x2048xbf16, #tpu.memory_space<vmem>>, vector<8x2048xbf16>
    tpu.vector_store %arg4[%c16_342, %c0_343], %270 {strides = array<i32>} : memref<72x2048xbf16, #tpu.memory_space<vmem>>, vector<8x2048xbf16>,
    %c0_344 = arith.constant 0 : index
    %c0_345 = arith.constant 0 : index
    %c899 = arith.constant 899 : index
    %272 = vector.load %arg1[%c0_344, %c0_345, %c899] : memref<1x8x3080xbf16, #tpu.memory_space<vmem>>, vector<1x8x2048xbf16>
    %273 = vector.shape_cast %272 : vector<1x8x2048xbf16> to vector<8x2048xbf16>
    %c24_346 = arith.constant 24 : index
    %c0_347 = arith.constant 0 : index
    %274 = vector.load %arg4[%c24_346, %c0_347] : memref<72x2048xbf16, #tpu.memory_space<vmem>>, vector<8x2048xbf16>
    tpu.vector_store %arg4[%c24_346, %c0_347], %273 {strides = array<i32>} : memref<72x2048xbf16, #tpu.memory_space<vmem>>, vector<8x2048xbf16>,
    %c0_348 = arith.constant 0 : index
    %c0_349 = arith.constant 0 : index
    %c900 = arith.constant 900 : index
    %275 = vector.load %arg1[%c0_348, %c0_349, %c900] : memref<1x8x3080xbf16, #tpu.memory_space<vmem>>, vector<1x8x2048xbf16>
    %276 = vector.shape_cast %275 : vector<1x8x2048xbf16> to vector<8x2048xbf16>
    %c32_350 = arith.constant 32 : index
    %c0_351 = arith.constant 0 : index
    %277 = vector.load %arg4[%c32_350, %c0_351] : memref<72x2048xbf16, #tpu.memory_space<vmem>>, vector<8x2048xbf16>
    tpu.vector_store %arg4[%c32_350, %c0_351], %276 {strides = array<i32>} : memref<72x2048xbf16, #tpu.memory_space<vmem>>, vector<8x2048xbf16>,
    %c0_352 = arith.constant 0 : index
    %c0_353 = arith.constant 0 : index
    %c901 = arith.constant 901 : index
    %278 = vector.load %arg1[%c0_352, %c0_353, %c901] : memref<1x8x3080xbf16, #tpu.memory_space<vmem>>, vector<1x8x2048xbf16>
    %279 = vector.shape_cast %278 : vector<1x8x2048xbf16> to vector<8x2048xbf16>
    %c40_354 = arith.constant 40 : index
    %c0_355 = arith.constant 0 : index
    %280 = vector.load %arg4[%c40_354, %c0_355] : memref<72x2048xbf16, #tpu.memory_space<vmem>>, vector<8x2048xbf16>
    tpu.vector_store %arg4[%c40_354, %c0_355], %279 {strides = array<i32>} : memref<72x2048xbf16, #tpu.memory_space<vmem>>, vector<8x2048xbf16>,
    %c0_356 = arith.constant 0 : index
    %c0_357 = arith.constant 0 : index
    %c902 = arith.constant 902 : index
    %281 = vector.load %arg1[%c0_356, %c0_357, %c902] : memref<1x8x3080xbf16, #tpu.memory_space<vmem>>, vector<1x8x2048xbf16>
    %282 = vector.shape_cast %281 : vector<1x8x2048xbf16> to vector<8x2048xbf16>
    %c48_358 = arith.constant 48 : index
    %c0_359 = arith.constant 0 : index
    %283 = vector.load %arg4[%c48_358, %c0_359] : memref<72x2048xbf16, #tpu.memory_space<vmem>>, vector<8x2048xbf16>
    tpu.vector_store %arg4[%c48_358, %c0_359], %282 {strides = array<i32>} : memref<72x2048xbf16, #tpu.memory_space<vmem>>, vector<8x2048xbf16>,
    %c0_360 = arith.constant 0 : index
    %c0_361 = arith.constant 0 : index
    %c903 = arith.constant 903 : index
    %284 = vector.load %arg1[%c0_360, %c0_361, %c903] : memref<1x8x3080xbf16, #tpu.memory_space<vmem>>, vector<1x8x2048xbf16>
    %285 = vector.shape_cast %284 : vector<1x8x2048xbf16> to vector<8x2048xbf16>
    %c56_362 = arith.constant 56 : index
    %c0_363 = arith.constant 0 : index
    %286 = vector.load %arg4[%c56_362, %c0_363] : memref<72x2048xbf16, #tpu.memory_space<vmem>>, vector<8x2048xbf16>
    tpu.vector_store %arg4[%c56_362, %c0_363], %285 {strides = array<i32>} : memref<72x2048xbf16, #tpu.memory_space<vmem>>, vector<8x2048xbf16>,
    %c0_364 = arith.constant 0 : index
    %c0_365 = arith.constant 0 : index
    %c904 = arith.constant 904 : index
    %287 = vector.load %arg1[%c0_364, %c0_365, %c904] : memref<1x8x3080xbf16, #tpu.memory_space<vmem>>, vector<1x8x2048xbf16>
    %288 = vector.shape_cast %287 : vector<1x8x2048xbf16> to vector<8x2048xbf16>
    %c64_366 = arith.constant 64 : index
    %c0_367 = arith.constant 0 : index
    %289 = vector.load %arg4[%c64_366, %c0_367] : memref<72x2048xbf16, #tpu.memory_space<vmem>>, vector<8x2048xbf16>
    tpu.vector_store %arg4[%c64_366, %c0_367], %288 {strides = array<i32>} : memref<72x2048xbf16, #tpu.memory_space<vmem>>, vector<8x2048xbf16>,
    %c0_368 = arith.constant 0 : index
    %c0_369 = arith.constant 0 : index
    %c0_370 = arith.constant 0 : index
    %290 = vector.load %arg3[%c0_368, %c0_369, %c0_370] : memref<1x8x2048xf32, #tpu.memory_space<vmem>>, vector<1x8x2048xf32>
    %291 = vector.shape_cast %290 : vector<1x8x2048xf32> to vector<8x2048xf32>
    %c7_371 = arith.constant 7 : index
    %c0_372 = arith.constant 0 : index
    %c0_373 = arith.constant 0 : index
    %292 = vector.load %arg2[%c7_371, %c0_372, %c0_373] : memref<9x8x72xbf16, #tpu.memory_space<vmem>>, vector<1x8x72xbf16>
    %293 = vector.shape_cast %292 : vector<1x8x72xbf16> to vector<8x72xbf16>
    %c0_374 = arith.constant 0 : index
    %c0_375 = arith.constant 0 : index
    %294 = vector.load %arg4[%c0_374, %c0_375] : memref<72x2048xbf16, #tpu.memory_space<vmem>>, vector<72x2048xbf16>
    %cst_376 = arith.constant dense<0.000000e+00> : vector<8x2048xf32>
    %295 = tpu.matmul %293, %294, %cst_376 {dimension_numbers = #tpu.dot_dimension_numbers<[1], [0], [0], [1], [0, 0, 1, 1], [], []>} : vector<8x72xbf16>, vector<72x2048xbf16>, vector<8x2048xf32> -> vector<8x2048xf32>
    %296 = arith.addf %291, %295 : vector<8x2048xf32>
    %c0_377 = arith.constant 0 : index
    %c0_378 = arith.constant 0 : index
    %c0_379 = arith.constant 0 : index
    %297 = vector.load %arg3[%c0_377, %c0_378, %c0_379] : memref<1x8x2048xf32, #tpu.memory_space<vmem>>, vector<1x8x2048xf32>
    %298 = vector.shape_cast %297 : vector<1x8x2048xf32> to vector<8x2048xf32>
    %299 = vector.shape_cast %296 : vector<8x2048xf32> to vector<1x8x2048xf32>
    tpu.vector_store %arg3[%c0_377, %c0_378, %c0_379], %299 {strides = array<i32>} : memref<1x8x2048xf32, #tpu.memory_space<vmem>>, vector<1x8x2048xf32>,
    %c0_380 = arith.constant 0 : index
    %c0_381 = arith.constant 0 : index
    %c1024 = arith.constant 1024 : index
    %300 = vector.load %arg1[%c0_380, %c0_381, %c1024] : memref<1x8x3080xbf16, #tpu.memory_space<vmem>>, vector<1x8x2048xbf16>
    %301 = vector.shape_cast %300 : vector<1x8x2048xbf16> to vector<8x2048xbf16>
    %c0_382 = arith.constant 0 : index
    %c0_383 = arith.constant 0 : index
    %302 = vector.load %arg4[%c0_382, %c0_383] : memref<72x2048xbf16, #tpu.memory_space<vmem>>, vector<8x2048xbf16>
    tpu.vector_store %arg4[%c0_382, %c0_383], %301 {strides = array<i32>} : memref<72x2048xbf16, #tpu.memory_space<vmem>>, vector<8x2048xbf16>,
    %c0_384 = arith.constant 0 : index
    %c0_385 = arith.constant 0 : index
    %c1025 = arith.constant 1025 : index
    %303 = vector.load %arg1[%c0_384, %c0_385, %c1025] : memref<1x8x3080xbf16, #tpu.memory_space<vmem>>, vector<1x8x2048xbf16>
    %304 = vector.shape_cast %303 : vector<1x8x2048xbf16> to vector<8x2048xbf16>
    %c8_386 = arith.constant 8 : index
    %c0_387 = arith.constant 0 : index
    %305 = vector.load %arg4[%c8_386, %c0_387] : memref<72x2048xbf16, #tpu.memory_space<vmem>>, vector<8x2048xbf16>
    tpu.vector_store %arg4[%c8_386, %c0_387], %304 {strides = array<i32>} : memref<72x2048xbf16, #tpu.memory_space<vmem>>, vector<8x2048xbf16>,
    %c0_388 = arith.constant 0 : index
    %c0_389 = arith.constant 0 : index
    %c1026 = arith.constant 1026 : index
    %306 = vector.load %arg1[%c0_388, %c0_389, %c1026] : memref<1x8x3080xbf16, #tpu.memory_space<vmem>>, vector<1x8x2048xbf16>
    %307 = vector.shape_cast %306 : vector<1x8x2048xbf16> to vector<8x2048xbf16>
    %c16_390 = arith.constant 16 : index
    %c0_391 = arith.constant 0 : index
    %308 = vector.load %arg4[%c16_390, %c0_391] : memref<72x2048xbf16, #tpu.memory_space<vmem>>, vector<8x2048xbf16>
    tpu.vector_store %arg4[%c16_390, %c0_391], %307 {strides = array<i32>} : memref<72x2048xbf16, #tpu.memory_space<vmem>>, vector<8x2048xbf16>,
    %c0_392 = arith.constant 0 : index
    %c0_393 = arith.constant 0 : index
    %c1027 = arith.constant 1027 : index
    %309 = vector.load %arg1[%c0_392, %c0_393, %c1027] : memref<1x8x3080xbf16, #tpu.memory_space<vmem>>, vector<1x8x2048xbf16>
    %310 = vector.shape_cast %309 : vector<1x8x2048xbf16> to vector<8x2048xbf16>
    %c24_394 = arith.constant 24 : index
    %c0_395 = arith.constant 0 : index
    %311 = vector.load %arg4[%c24_394, %c0_395] : memref<72x2048xbf16, #tpu.memory_space<vmem>>, vector<8x2048xbf16>
    tpu.vector_store %arg4[%c24_394, %c0_395], %310 {strides = array<i32>} : memref<72x2048xbf16, #tpu.memory_space<vmem>>, vector<8x2048xbf16>,
    %c0_396 = arith.constant 0 : index
    %c0_397 = arith.constant 0 : index
    %c1028 = arith.constant 1028 : index
    %312 = vector.load %arg1[%c0_396, %c0_397, %c1028] : memref<1x8x3080xbf16, #tpu.memory_space<vmem>>, vector<1x8x2048xbf16>
    %313 = vector.shape_cast %312 : vector<1x8x2048xbf16> to vector<8x2048xbf16>
    %c32_398 = arith.constant 32 : index
    %c0_399 = arith.constant 0 : index
    %314 = vector.load %arg4[%c32_398, %c0_399] : memref<72x2048xbf16, #tpu.memory_space<vmem>>, vector<8x2048xbf16>
    tpu.vector_store %arg4[%c32_398, %c0_399], %313 {strides = array<i32>} : memref<72x2048xbf16, #tpu.memory_space<vmem>>, vector<8x2048xbf16>,
    %c0_400 = arith.constant 0 : index
    %c0_401 = arith.constant 0 : index
    %c1029 = arith.constant 1029 : index
    %315 = vector.load %arg1[%c0_400, %c0_401, %c1029] : memref<1x8x3080xbf16, #tpu.memory_space<vmem>>, vector<1x8x2048xbf16>
    %316 = vector.shape_cast %315 : vector<1x8x2048xbf16> to vector<8x2048xbf16>
    %c40_402 = arith.constant 40 : index
    %c0_403 = arith.constant 0 : index
    %317 = vector.load %arg4[%c40_402, %c0_403] : memref<72x2048xbf16, #tpu.memory_space<vmem>>, vector<8x2048xbf16>
    tpu.vector_store %arg4[%c40_402, %c0_403], %316 {strides = array<i32>} : memref<72x2048xbf16, #tpu.memory_space<vmem>>, vector<8x2048xbf16>,
    %c0_404 = arith.constant 0 : index
    %c0_405 = arith.constant 0 : index
    %c1030 = arith.constant 1030 : index
    %318 = vector.load %arg1[%c0_404, %c0_405, %c1030] : memref<1x8x3080xbf16, #tpu.memory_space<vmem>>, vector<1x8x2048xbf16>
    %319 = vector.shape_cast %318 : vector<1x8x2048xbf16> to vector<8x2048xbf16>
    %c48_406 = arith.constant 48 : index
    %c0_407 = arith.constant 0 : index
    %320 = vector.load %arg4[%c48_406, %c0_407] : memref<72x2048xbf16, #tpu.memory_space<vmem>>, vector<8x2048xbf16>
    tpu.vector_store %arg4[%c48_406, %c0_407], %319 {strides = array<i32>} : memref<72x2048xbf16, #tpu.memory_space<vmem>>, vector<8x2048xbf16>,
    %c0_408 = arith.constant 0 : index
    %c0_409 = arith.constant 0 : index
    %c1031 = arith.constant 1031 : index
    %321 = vector.load %arg1[%c0_408, %c0_409, %c1031] : memref<1x8x3080xbf16, #tpu.memory_space<vmem>>, vector<1x8x2048xbf16>
    %322 = vector.shape_cast %321 : vector<1x8x2048xbf16> to vector<8x2048xbf16>
    %c56_410 = arith.constant 56 : index
    %c0_411 = arith.constant 0 : index
    %323 = vector.load %arg4[%c56_410, %c0_411] : memref<72x2048xbf16, #tpu.memory_space<vmem>>, vector<8x2048xbf16>
    tpu.vector_store %arg4[%c56_410, %c0_411], %322 {strides = array<i32>} : memref<72x2048xbf16, #tpu.memory_space<vmem>>, vector<8x2048xbf16>,
    %c0_412 = arith.constant 0 : index
    %c0_413 = arith.constant 0 : index
    %c1032 = arith.constant 1032 : index
    %324 = vector.load %arg1[%c0_412, %c0_413, %c1032] : memref<1x8x3080xbf16, #tpu.memory_space<vmem>>, vector<1x8x2048xbf16>
    %325 = vector.shape_cast %324 : vector<1x8x2048xbf16> to vector<8x2048xbf16>
    %c64_414 = arith.constant 64 : index
    %c0_415 = arith.constant 0 : index
    %326 = vector.load %arg4[%c64_414, %c0_415] : memref<72x2048xbf16, #tpu.memory_space<vmem>>, vector<8x2048xbf16>
    tpu.vector_store %arg4[%c64_414, %c0_415], %325 {strides = array<i32>} : memref<72x2048xbf16, #tpu.memory_space<vmem>>, vector<8x2048xbf16>,
    %c0_416 = arith.constant 0 : index
    %c0_417 = arith.constant 0 : index
    %c0_418 = arith.constant 0 : index
    %327 = vector.load %arg3[%c0_416, %c0_417, %c0_418] : memref<1x8x2048xf32, #tpu.memory_space<vmem>>, vector<1x8x2048xf32>
    %328 = vector.shape_cast %327 : vector<1x8x2048xf32> to vector<8x2048xf32>
    %c8_419 = arith.constant 8 : index
    %c0_420 = arith.constant 0 : index
    %c0_421 = arith.constant 0 : index
    %329 = vector.load %arg2[%c8_419, %c0_420, %c0_421] : memref<9x8x72xbf16, #tpu.memory_space<vmem>>, vector<1x8x72xbf16>
    %330 = vector.shape_cast %329 : vector<1x8x72xbf16> to vector<8x72xbf16>
    %c0_422 = arith.constant 0 : index
    %c0_423 = arith.constant 0 : index
    %331 = vector.load %arg4[%c0_422, %c0_423] : memref<72x2048xbf16, #tpu.memory_space<vmem>>, vector<72x2048xbf16>
    %cst_424 = arith.constant dense<0.000000e+00> : vector<8x2048xf32>
    %332 = tpu.matmul %330, %331, %cst_424 {dimension_numbers = #tpu.dot_dimension_numbers<[1], [0], [0], [1], [0, 0, 1, 1], [], []>} : vector<8x72xbf16>, vector<72x2048xbf16>, vector<8x2048xf32> -> vector<8x2048xf32>
    %333 = arith.addf %328, %332 : vector<8x2048xf32>
    %c0_425 = arith.constant 0 : index
    %c0_426 = arith.constant 0 : index
    %c0_427 = arith.constant 0 : index
    %334 = vector.load %arg3[%c0_425, %c0_426, %c0_427] : memref<1x8x2048xf32, #tpu.memory_space<vmem>>, vector<1x8x2048xf32>
    %335 = vector.shape_cast %334 : vector<1x8x2048xf32> to vector<8x2048xf32>
    %336 = vector.shape_cast %333 : vector<8x2048xf32> to vector<1x8x2048xf32>
    tpu.vector_store %arg3[%c0_425, %c0_426, %c0_427], %336 {strides = array<i32>} : memref<1x8x2048xf32, #tpu.memory_space<vmem>>, vector<1x8x2048xf32>,
    return
  }
  func.func @transform_0(%arg0: i32) -> (i32, i32, i32) {
    %c0_i32 = arith.constant 0 : i32
    %c0_i32_0 = arith.constant 0 : i32
    %c0_i32_1 = arith.constant 0 : i32
    return %arg0, %c0_i32, %c0_i32_0 : i32, i32, i32
  }
  func.func @transform_1(%arg0: i32) -> (i32, i32, i32) {
    %c0_i32 = arith.constant 0 : i32
    %c0_i32_0 = arith.constant 0 : i32
    %c0_i32_1 = arith.constant 0 : i32
    %c0_i32_2 = arith.constant 0 : i32
    return %c0_i32, %c0_i32_0, %c0_i32_1 : i32, i32, i32
  }
  func.func @transform_2(%arg0: i32) -> (i32, i32, i32) {
    %c0_i32 = arith.constant 0 : i32
    %c0_i32_0 = arith.constant 0 : i32
    %c0_i32_1 = arith.constant 0 : i32
    return %arg0, %c0_i32, %c0_i32_0 : i32, i32, i32
  }
}

module attributes {stable_mosaic.version = 11 : i64} {
  func.func @_radon_matmul_kernel_1k(%arg0: i32, %arg1: memref<16x256xbf16, #tpu.memory_space<vmem>>, %arg2: memref<256x256xbf16, #tpu.memory_space<vmem>>, %arg3: memref<16x256xf32, #tpu.memory_space<vmem>>) attributes {dimension_semantics = [#tpu.dimension_semantics<parallel>], iteration_bounds = array<i64: 10>, scalar_prefetch = 0 : i64, scratch_operands = 0 : i64, tpu.core_type = #tpu.core_type<tc>, window_params = [{pipeline_mode = #tpu.pipeline_mode<synchronous>, transform_indices = @transform_0, window_bounds = array<i64: 16, 256>}, {transform_indices = @transform_1, window_bounds = array<i64: 256, 256>}, {transform_indices = @transform_2, window_bounds = array<i64: 16, 256>}]} {
    %c0 = arith.constant 0 : index
    %c0_0 = arith.constant 0 : index
    %0 = vector.load %arg1[%c0, %c0_0] : memref<16x256xbf16, #tpu.memory_space<vmem>>, vector<16x256xbf16>
    %c0_1 = arith.constant 0 : index
    %c0_2 = arith.constant 0 : index
    %1 = vector.load %arg2[%c0_1, %c0_2] : memref<256x256xbf16, #tpu.memory_space<vmem>>, vector<256x256xbf16>
    %cst = arith.constant dense<0.000000e+00> : vector<16x256xf32>
    %2 = tpu.matmul %0, %1, %cst {dimension_numbers = #tpu.dot_dimension_numbers<[1], [1], [0], [0], [0, 0, 1, 0], [], []>} : vector<16x256xbf16>, vector<256x256xbf16>, vector<16x256xf32> -> vector<16x256xf32>
    %c0_3 = arith.constant 0 : index
    %c0_4 = arith.constant 0 : index
    %3 = vector.load %arg3[%c0_3, %c0_4] : memref<16x256xf32, #tpu.memory_space<vmem>>, vector<16x256xf32>
    tpu.vector_store %arg3[%c0_3, %c0_4], %2 {strides = array<i32>} : memref<16x256xf32, #tpu.memory_space<vmem>>, vector<16x256xf32>,
    return
  }
  func.func @transform_0(%arg0: i32) -> (i32, i32) {
    %c0_i32 = arith.constant 0 : i32
    %c0_i32_0 = arith.constant 0 : i32
    %c0_i32_1 = arith.constant 0 : i32
    return %c0_i32, %c0_i32_0 : i32, i32
  }
  func.func @transform_1(%arg0: i32) -> (i32, i32) {
    %c0_i32 = arith.constant 0 : i32
    %c0_i32_0 = arith.constant 0 : i32
    return %arg0, %c0_i32 : i32, i32
  }
  func.func @transform_2(%arg0: i32) -> (i32, i32) {
    %c0_i32 = arith.constant 0 : i32
    %c0_i32_0 = arith.constant 0 : i32
    return %c0_i32, %arg0 : i32, i32
  }
}

</mosaic_0001>

<bundles_post_ra>
// kernel: radon_forward.3
= control target key start
LH: loop header
LB: loop body
LE: loop exit
PB: predicated region body
PF: predicated region fallthrough
CT: control target
= control target key end

     0   :  { %s642_s9 = smov 0   ;;  %s644_s10 = smov 0   ;;  %s732_s0 = inlined_call_operand.vmem [shape: bf16[16,256], index: 0, kind: input, shape index: {}]   ;;  %s733_s1 = inlined_call_operand.vmem [shape: bf16[2560,256], index: 1, kind: input, shape index: {}]   ;;  %s734_s2 = inlined_call_operand.vmem [shape: f32[16,2560], index: 2, kind: output, shape index: {}]  }
   0x1   :  { %s646_s11 = smov 0  }
   0x2 LB: > { %s655_s12 = sadd.s32 4294967295, %s625_s11   ;;  %s657_s13 = sadd.s32 1, %s625_s11   ;;  %s625_s11 = sphi %s646_s11, %s738_s11   ;;  %s621_s10 = sphi %s644_s10, %s737_s10   ;;  %s617_s9 = sphi %s642_s9, %s736_s9  }
   0x3   : > { %s63_s14 = ssub.s32 %s625_s11, %s657_s13  ;;  %s66_s15 = sadd.s32 1, %s621_s10 }
   0x4   : > { %p64_p0 = scmp.eq.s32.totalorder %s63_s14, 0  ;;  %p76_p1 = scmp.ne.s32.totalorder %s621_s10, %s617_s9 }
   0x5   : > { %p77_p2 = scmp.eq.s32.totalorder %s655_s12, 9  ;;  %p482_p3 = scmp.ge.s32.totalorder %s625_s11, 1 }
   0x6   : > { %s665_s16 = scalar_select %p64_p0, %s621_s10, %s66_s15  }
   0x7   : > { %p667_p4 = por %p77_p2, %p76_p1  ;;  %p114_p5 = scmp.lt.s32.totalorder %s625_s11, 11 }
   0x9   : > { %p115_p6 = pnand %p482_p3, %p114_p5 }
   0xa   : > { %s484_s18 = sshll.u32 (!%p115_p6), %s655_s12, 5  ;;  %s133_s27 = sand.u32 (!%p115_p6), 1, %s617_s9  }
   0xb   : > { %118 = sbr.rel (%p115_p6) target bundleno = 356 (0x164), region = 28  ;;  %p137_p7 = scmp.lt.s32.totalorder (!%p115_p6), %s484_s18, 319 }
   0xc   : > { %s483_s28 = sshll.u32 (!%p115_p6), %s133_s27, 5 }
   0xd   : > { %s135_s29 = scalar_lea.vmem (!%p115_p6), [#allocation2], %s483_s28 }
  0x10   : > { %v602_v0 = vld [vmem:[%s732_s0 + $0x4] ss:$8 sps:$4 sm:$0xff]   ;;  %s740_s18 = smov (!%p137_p7, %s484_s18), 319  ;;  %v600_v33 = vld [vmem:[%s732_s0] ss:$8 sps:$4 sm:$0xff]   ;;  %s527_s30 = sshll.u32 (%p667_p4), %s655_s12, 4 }
  0x11   : > { %380 = vmatprep.mubr.bf16.mxu0 %v602_v0  ;;  %s526_s21 = sshll.u32 %s740_s18, 3  ;;  %s404_s5 = scalar_lea.vmem (%p667_p4), %s734_s2, %s527_s30 }
  0x12   : > { %s678_s24 = scalar_lea.vmem %s733_s1, %s526_s21 }
  0x13   : > { %v552_v1 = vld [vmem:[%s678_s24 + $0x74] ss:$8 sps:$4 sm:$0xff]   ;;  %v554_v2 = vld [vmem:[%s678_s24 + $0x70] ss:$8 sps:$4 sm:$0xff]   ;;  %v555_v3 = vld [vmem:[%s678_s24 + $0x64] ss:$8 sps:$4 sm:$0xff]  }
  0x14   : > { %348 = vmatprep.subr.bf16.mxu0 %v552_v1  ;;  %v557_v4 = vld [vmem:[%s678_s24 + $0x60] ss:$8 sps:$4 sm:$0xff]   ;;  %v558_v5 = vld [vmem:[%s678_s24 + $0x54] ss:$8 sps:$4 sm:$0xff]   ;;  %v560_v6 = vld [vmem:[%s678_s24 + $0x50] ss:$8 sps:$4 sm:$0xff]  }
  0x15   : > { %349 = vmatpush1.bf16.xpose.msra.mxu0 %v554_v2  ;;  %v561_v7 = vld [vmem:[%s678_s24 + $0x44] ss:$8 sps:$4 sm:$0xff]   ;;  %v563_v8 = vld [vmem:[%s678_s24 + $0x40] ss:$8 sps:$4 sm:$0xff]   ;;  %v564_v9 = vld [vmem:[%s678_s24 + $0x34] ss:$8 sps:$4 sm:$0xff]  }
  0x16   : > { %350 = vmatprep.subr.bf16.mxu0 %v555_v3  ;;  %v566_v10 = vld [vmem:[%s678_s24 + $0x30] ss:$8 sps:$4 sm:$0xff]   ;;  %v567_v11 = vld [vmem:[%s678_s24 + $0x24] ss:$8 sps:$4 sm:$0xff]   ;;  %v569_v12 = vld [vmem:[%s678_s24 + $0x20] ss:$8 sps:$4 sm:$0xff]  }
  0x17   : > { %v570_v13 = vld [vmem:[%s678_s24 + $0x14] ss:$8 sps:$4 sm:$0xff]   ;;  %v572_v14 = vld [vmem:[%s678_s24 + $0x10] ss:$8 sps:$4 sm:$0xff]   ;;  %v573_v15 = vld [vmem:[%s678_s24 + $0x4] ss:$8 sps:$4 sm:$0xff]  }
  0x18   : > { %v575_v16 = vld [vmem:[%s678_s24] ss:$8 sps:$4 sm:$0xff]   ;;  %v576_v17 = vld [vmem:[%s678_s24 + $0xf4] ss:$8 sps:$4 sm:$0xff]   ;;  %v578_v18 = vld [vmem:[%s678_s24 + $0xf0] ss:$8 sps:$4 sm:$0xff]  }
  0x19   : > { %v579_v19 = vld [vmem:[%s678_s24 + $0xe4] ss:$8 sps:$4 sm:$0xff]   ;;  %v581_v20 = vld [vmem:[%s678_s24 + $0xe0] ss:$8 sps:$4 sm:$0xff]   ;;  %v582_v21 = vld [vmem:[%s678_s24 + $0xd4] ss:$8 sps:$4 sm:$0xff]  }
  0x1a   : > { %v584_v22 = vld [vmem:[%s678_s24 + $0xd0] ss:$8 sps:$4 sm:$0xff]   ;;  %v585_v23 = vld [vmem:[%s678_s24 + $0xc4] ss:$8 sps:$4 sm:$0xff]   ;;  %v587_v24 = vld [vmem:[%s678_s24 + $0xc0] ss:$8 sps:$4 sm:$0xff]  }
  0x1b   : > { %v588_v25 = vld [vmem:[%s678_s24 + $0xb4] ss:$8 sps:$4 sm:$0xff]   ;;  %v590_v26 = vld [vmem:[%s678_s24 + $0xb0] ss:$8 sps:$4 sm:$0xff]   ;;  %v591_v27 = vld [vmem:[%s678_s24 + $0xa4] ss:$8 sps:$4 sm:$0xff]  }
  0x1c   : > { %v593_v28 = vld [vmem:[%s678_s24 + $0xa0] ss:$8 sps:$4 sm:$0xff]   ;;  %v594_v29 = vld [vmem:[%s678_s24 + $0x94] ss:$8 sps:$4 sm:$0xff]   ;;  %v596_v30 = vld [vmem:[%s678_s24 + $0x90] ss:$8 sps:$4 sm:$0xff]  }
  0x1d   : > { %351 = vmatpush1.bf16.xpose.msra.mxu0 %v557_v4  ;;  %v597_v31 = vld [vmem:[%s678_s24 + $0x84] ss:$8 sps:$4 sm:$0xff]   ;;  %v599_v32 = vld [vmem:[%s678_s24 + $0x80] ss:$8 sps:$4 sm:$0xff]  }
  0x1e   : > { %352 = vmatprep.subr.bf16.mxu0 %v558_v5 }
  0x25   : > { %353 = vmatpush1.bf16.xpose.msra.mxu0 %v560_v6 }
  0x26   : > { %354 = vmatprep.subr.bf16.mxu0 %v561_v7 }
  0x2d   : > { %355 = vmatpush1.bf16.xpose.msra.mxu0 %v563_v8 }
  0x2e   : > { %356 = vmatprep.subr.bf16.mxu0 %v564_v9 }
  0x35   : > { %357 = vmatpush1.bf16.xpose.msra.mxu0 %v566_v10 }
  0x36   : > { %358 = vmatprep.subr.bf16.mxu0 %v567_v11 }
  0x3d   : > { %359 = vmatpush1.bf16.xpose.msra.mxu0 %v569_v12 }
  0x3e   : > { %360 = vmatprep.subr.bf16.mxu0 %v570_v13 }
  0x45   : > { %361 = vmatpush1.bf16.xpose.msra.mxu0 %v572_v14 }
  0x46   : > { %362 = vmatprep.subr.bf16.mxu0 %v573_v15 }
  0x4d   : > { %363 = vmatpush1.bf16.xpose.msra.mxu0 %v575_v16 }
  0x4e   : > { %364 = vmatprep.subr.bf16.mxu0 %v576_v17 }
  0x55   : > { %365 = vmatpush2.bf16.xpose.msra.mxu0 %v578_v18 }
  0x56   : > { %366 = vmatprep.subr.bf16.mxu0 %v579_v19 }
  0x5d   : > { %367 = vmatpush2.bf16.xpose.msra.mxu0 %v581_v20 }
  0x5e   : > { %368 = vmatprep.subr.bf16.mxu0 %v582_v21 }
  0x65   : > { %369 = vmatpush2.bf16.xpose.msra.mxu0 %v584_v22 }
  0x66   : > { %370 = vmatprep.subr.bf16.mxu0 %v585_v23 }
  0x6d   : > { %371 = vmatpush2.bf16.xpose.msra.mxu0 %v587_v24 }
  0x6e   : > { %372 = vmatprep.subr.bf16.mxu0 %v588_v25 }
  0x75   : > { %373 = vmatpush2.bf16.xpose.msra.mxu0 %v590_v26 }
  0x76   : > { %374 = vmatprep.subr.bf16.mxu0 %v591_v27 }
  0x7d   : > { %375 = vmatpush2.bf16.xpose.msra.mxu0 %v593_v28 }
  0x7e   : > { %376 = vmatprep.subr.bf16.mxu0 %v594_v29 }
  0x85   : > { %377 = vmatpush2.bf16.xpose.msra.mxu0 %v596_v30 }
  0x86   : > { %378 = vmatprep.subr.bf16.mxu0 %v597_v31 }
  0x8d   : > { %379 = vmatpush2.bf16.xpose.msra.mxu0 %v599_v32 }
  0x94   : > { %381 = vmatmul.mubr.bf16.vlgmr.msra.gmra.mxu0 %v600_v33 }
 0x154   : > { %v382_v34 = vpop.f32.mrf.mxu0 }
 0x155   : > { %391 = vst [vmem:[%s135_s29] sm:$0xff] %v382_v34 }
 0x156   : > { %v384_v35 = vpop.f32.mrf.mxu0 }
 0x157   : > { %392 = vst [vmem:[%s135_s29 + $0x8] sm:$0xff] %v384_v35  ;;  %401 = sbr.rel (!%p667_p4) target bundleno = 356 (0x164), region = 32 }
 0x158   : > { %v386_v36 = vpop.f32.mrf.mxu0 }
 0x159   : > { %393 = vst [vmem:[%s135_s29 + $0x10] sm:$0xff] %v386_v36 }
 0x15a   : > { %v388_v37 = vpop.f32.mrf.mxu0 }
 0x15b   : > { %394 = vst [vmem:[%s135_s29 + $0x18] sm:$0xff] %v388_v37 }
 0x15c   : > { %v417_v38 = vld [vmem:[%s135_s29] sm:$0xff] }
 0x15d   : > { %418 = vst [vmem:[%s404_s5] sm:$0xff] %v417_v38 }
 0x15e   : > { %v419_v39 = vld [vmem:[%s135_s29 + $0x8] sm:$0xff] }
 0x15f   : > { %420 = vst [vmem:[%s404_s5 + $0x8] sm:$0xff] %v419_v39 }
 0x160   : > { %v421_v40 = vld [vmem:[%s135_s29 + $0x10] sm:$0xff] }
 0x161   : > { %422 = vst [vmem:[%s404_s5 + $0xa0] sm:$0xff] %v421_v40 }
 0x162   : > { %v423_v41 = vld [vmem:[%s135_s29 + $0x18] sm:$0xff] }
 0x163   : > { %424 = vst [vmem:[%s404_s5 + $0xa8] sm:$0xff] %v423_v41 }
 0x164 PF: > { %p9_p8 = scmp.ge.s32.totalorder %s657_s13, 12   ;;  %s736_s9 = smov %s621_s10 }
 0x165   : > { %s737_s10 = smov %s665_s16  ;;  %s738_s11 = smov %s657_s13 }
 0x166   :  { %11 = sbr.rel (!%p9_p8) target bundleno = 2 (0x2), region = 81 }

// kernel: radon_forward.2
= control target key start
LH: loop header
LB: loop body
LE: loop exit
PB: predicated region body
PF: predicated region fallthrough
CT: control target
= control target key end

     0   :  { %s14614_s9 = smov 0   ;;  %s20924_s0 = inlined_call_operand.vmem [shape: bf16[2,8,3080], index: 0, kind: input, shape index: {}]   ;;  %s20925_s1 = inlined_call_operand.vmem [shape: bf16[9,8,72], index: 1, kind: input, shape index: {}]   ;;  %s20926_s2 = inlined_call_operand.vmem [shape: f32[2,8,2048], index: 2, kind: output, shape index: {}]  }
   0x1 LB: > { %s13663_s10 = sadd.s32 4294967295, %s14588_s9   ;;  %p13667_p0 = scmp.ge.s32.totalorder %s14588_s9, 1  ;;  %s14588_s9 = sphi %s14614_s9, %s12_s9  }
   0x2   : > { %p112_p1 = scmp.lt.s32.totalorder %s14588_s9, 3 }
   0x4   : > { %p113_p2 = pnand %p13667_p0, %p112_p1 }
   0x6   : > { %116 = sbr.rel (%p113_p2) target bundleno = 1644 (0x66c), region = 28 }
   0xb   : > { %p134_p3 = scmp.lt.s32.totalorder %s13663_s10, 1  ;;  %s14590_s15 = smov 127   ;;  %v20927_v34 = vmov 0   ;;  %vm222_vm0 = vcmask 1043456   ;;  %vm614_vm1 = vcmask 998400   ;;  %vm692_vm2 = vcmask 990208  }
   0xc   : > { %s14591_s16 = smov 126   ;;  %s14592_s17 = smov 125   ;;  %1336 = vmatprep.mubr.bf16.mxu0 %v20927_v34  ;;  %1377 = vmatprep.mubr.bf16.mxu1 %v20927_v34  ;;  %vm770_vm3 = vcmask 982016   ;;  %vm536_vm4 = vcmask 1006592   ;;  %vm380_vm5 = vcmask 1022976   ;;  %vm302_vm6 = vcmask 1031168  }
   0xd   : > { %s21641_s10 = smov (!%p134_p3, %s13663_s10), 1  ;;  %s14593_s18 = smov 124   ;;  %vm458_vm7 = vcmask 1014784   ;;  %vm224_vm8 = vcmask 1039360   ;;  %vm1251_vm9 = vcmask 588800  }
   0xe   : > { %s14546_s11 = smul.u32 100, %s21641_s10  ;;  %s14594_s19 = smov 123  }
   0xf   : > { %s14595_s20 = smov 122   ;;  %s14596_s21 = smov 121  }
  0x10   : > { %s14628_s14 = scalar_lea.vmem %s20924_s0, %s14546_s11  ;;  %s14597_s22 = smov 120  }
  0x11   : > { %v14631_v0 = vld [vmem:[%s14628_s14 + $0x10] sm:$0xff]  ;;  %v14634_v1 = vld [vmem:[%s14628_s14] sm:$0xff]  ;;  %v14641_v2 = vld [vmem:[%s14628_s14 + $0x18] sm:$0xff]  ;;  %s14545_s7 = sshll.u32 %s21641_s10, 7 }
  0x12   : > { %199 = vrot.lane.b32.xlu1 %v14631_v0, %s14590_s15  ;;  %195 = vrot.lane.b32.xlu0 %v14634_v1, %s14590_s15  ;;  %v14644_v3 = vld [vmem:[%s14628_s14 + $0x8] sm:$0xff]  ;;  %v14654_v5 = vld [vmem:[%s14628_s14 + $0x20] sm:$0xff]  ;;  %s19300_s11 = scalar_lea.vmem %s20926_s2, %s14545_s7 }
  0x13   : > { %v14651_v4 = vld [vmem:[%s14628_s14 + $0x28] sm:$0xff]  ;;  %v14661_v6 = vld [vmem:[%s14628_s14 + $0x38] sm:$0xff]  ;;  %v14664_v7 = vld [vmem:[%s14628_s14 + $0x30] sm:$0xff] }
  0x14   : > { %v185_v8 = vld [vmem:[%s14628_s14 + $0x40] sm:$0xf]  ;;  %v14827_v30 = vld [vmem:[%s14628_s14 + $0xc] sm:$0xff]  ;;  %v14830_v31 = vld [vmem:[%s14628_s14 + $0x4] sm:$0xff] }
  0x15   : > { %v264_v9 = vld [vmem:[%s14628_s14 + $0x40] sm:$0xf]  ;;  %v14846_v36 = vld [vmem:[%s14628_s14 + $0x14] sm:$0xff]  ;;  %v14857_v39 = vld [vmem:[%s14628_s14 + $0x2c] sm:$0xff] }
  0x16   : > { %201 = vrot.lane.b32.xlu1 %v14641_v2, %s14590_s15  ;;  %197 = vrot.lane.b32.xlu0 %v14644_v3, %s14590_s15  ;;  %v342_v10 = vld [vmem:[%s14628_s14 + $0x40] sm:$0xf]  ;;  %v14860_v40 = vld [vmem:[%s14628_s14 + $0x24] sm:$0xff] }
  0x17   : > { %v420_v11 = vld [vmem:[%s14628_s14 + $0x40] sm:$0xf]  ;;  %v14874_v44 = vld [vmem:[%s14628_s14 + $0x34] sm:$0xff]  ;;  %v1688_v47 = vld [vmem:[%s14628_s14 + $0x44] sm:$0xf] }
  0x18   : > { %v498_v12 = vld [vmem:[%s14628_s14 + $0x40] sm:$0xf]  ;;  %21131 = vst [vmem:[#allocation14_spill] sm:$0xff] %v14874_v44  ;;  %v1765_v56 = vld [vmem:[%s14628_s14 + $0x44] sm:$0xf] }
  0x19   : > { %v576_v13 = vld [vmem:[%s14628_s14 + $0x40] sm:$0xf] }
  0x1a   : > { %205 = vrot.lane.b32.xlu1 %v14651_v4, %s14590_s15  ;;  %203 = vrot.lane.b32.xlu0 %v14654_v5, %s14590_s15  ;;  %v654_v18 = vld [vmem:[%s14628_s14 + $0x40] sm:$0xf] }
  0x1b   : > { %v732_v27 = vld [vmem:[%s14628_s14 + $0x40] sm:$0xf] }
  0x1c   : > { %v14843_v35 = vld [vmem:[%s14628_s14 + $0x1c] sm:$0xff] }
  0x1d   : > { %v14871_v43 = vld [vmem:[%s14628_s14 + $0x3c] sm:$0xff] }
  0x1e   : > { %209 = vrot.lane.b32.xlu1 %v14661_v6, %s14590_s15  ;;  %207 = vrot.lane.b32.xlu0 %v14664_v7, %s14590_s15 }
  0x22   : > { %274 = vrot.lane.b32.xlu1 %v14634_v1, %s14591_s16  ;;  %211 = vrot.lane.b32.xlu0 %v185_v8, %s14590_s15 }
  0x26   : > { %278 = vrot.lane.b32.xlu1 %v14631_v0, %s14591_s16  ;;  %276 = vrot.lane.b32.xlu0 %v14644_v3, %s14591_s16 }
  0x2a   : > { %282 = vrot.lane.b32.xlu1 %v14654_v5, %s14591_s16  ;;  %280 = vrot.lane.b32.xlu0 %v14641_v2, %s14591_s16 }
  0x2e   : > { %286 = vrot.lane.b32.xlu1 %v14664_v7, %s14591_s16  ;;  %284 = vrot.lane.b32.xlu0 %v14651_v4, %s14591_s16 }
  0x32   : > { %290 = vrot.lane.b32.xlu1 %v264_v9, %s14591_s16  ;;  %288 = vrot.lane.b32.xlu0 %v14661_v6, %s14591_s16 }
  0x36   : > { %354 = vrot.lane.b32.xlu1 %v14644_v3, %s14592_s17  ;;  %352 = vrot.lane.b32.xlu0 %v14634_v1, %s14592_s17 }
  0x3a   : > { %358 = vrot.lane.b32.xlu1 %v14641_v2, %s14592_s17  ;;  %356 = vrot.lane.b32.xlu0 %v14631_v0, %s14592_s17 }
  0x3e   : > { %362 = vrot.lane.b32.xlu1 %v14651_v4, %s14592_s17  ;;  %360 = vrot.lane.b32.xlu0 %v14654_v5, %s14592_s17 }
  0x42   : > { %366 = vrot.lane.b32.xlu1 %v14661_v6, %s14592_s17  ;;  %364 = vrot.lane.b32.xlu0 %v14664_v7, %s14592_s17 }
  0x46   : > { %430 = vrot.lane.b32.xlu1 %v14634_v1, %s14593_s18  ;;  %368 = vrot.lane.b32.xlu0 %v342_v10, %s14592_s17 }
  0x4a   : > { %434 = vrot.lane.b32.xlu1 %v14631_v0, %s14593_s18  ;;  %432 = vrot.lane.b32.xlu0 %v14644_v3, %s14593_s18 }
  0x4e   : > { %438 = vrot.lane.b32.xlu1 %v14654_v5, %s14593_s18  ;;  %436 = vrot.lane.b32.xlu0 %v14641_v2, %s14593_s18 }
  0x52   : > { %442 = vrot.lane.b32.xlu1 %v14664_v7, %s14593_s18  ;;  %440 = vrot.lane.b32.xlu0 %v14651_v4, %s14593_s18 }
  0x56   : > { %446 = vrot.lane.b32.xlu1 %v420_v11, %s14593_s18  ;;  %444 = vrot.lane.b32.xlu0 %v14661_v6, %s14593_s18 }
  0x5a   : > { %510 = vrot.lane.b32.xlu1 %v14644_v3, %s14594_s19  ;;  %508 = vrot.lane.b32.xlu0 %v14634_v1, %s14594_s19 }
  0x5e   : > { %514 = vrot.lane.b32.xlu1 %v14641_v2, %s14594_s19  ;;  %512 = vrot.lane.b32.xlu0 %v14631_v0, %s14594_s19 }
  0x62   : > { %518 = vrot.lane.b32.xlu1 %v14651_v4, %s14594_s19  ;;  %516 = vrot.lane.b32.xlu0 %v14654_v5, %s14594_s19 }
  0x66   : > { %522 = vrot.lane.b32.xlu1 %v14661_v6, %s14594_s19  ;;  %520 = vrot.lane.b32.xlu0 %v14664_v7, %s14594_s19 }
  0x6a   : > { %586 = vrot.lane.b32.xlu1 %v14634_v1, %s14595_s20  ;;  %524 = vrot.lane.b32.xlu0 %v498_v12, %s14594_s19  ;;  %v1919_v12 = vld [vmem:[%s14628_s14 + $0x44] sm:$0xf] }
  0x6e   : > { %590 = vrot.lane.b32.xlu1 %v14631_v0, %s14595_s20  ;;  %588 = vrot.lane.b32.xlu0 %v14644_v3, %s14595_s20 }
  0x72   : > { %594 = vrot.lane.b32.xlu1 %v14654_v5, %s14595_s20  ;;  %592 = vrot.lane.b32.xlu0 %v14641_v2, %s14595_s20 }
  0x76   : > { %598 = vrot.lane.b32.xlu1 %v14664_v7, %s14595_s20  ;;  %596 = vrot.lane.b32.xlu0 %v14651_v4, %s14595_s20 }
  0x7a   : > { %602 = vrot.lane.b32.xlu1 %v576_v13, %s14595_s20  ;;  %600 = vrot.lane.b32.xlu0 %v14661_v6, %s14595_s20 }
  0x7e   : > { %666 = vrot.lane.b32.xlu1 %v14644_v3, %s14596_s21  ;;  %664 = vrot.lane.b32.xlu0 %v14634_v1, %s14596_s21 }
  0x82   : > { %670 = vrot.lane.b32.xlu1 %v14641_v2, %s14596_s21  ;;  %668 = vrot.lane.b32.xlu0 %v14631_v0, %s14596_s21 }
  0x84   : > { %v14770_v14 = vpop.permute.xlu1 %199  ;;  %v14772_v15 = vpop.permute.xlu0 %195 }
  0x86   : > { %674 = vrot.lane.b32.xlu1 %v14651_v4, %s14596_s21  ;;  %672 = vrot.lane.b32.xlu0 %v14654_v5, %s14596_s21 }
  0x88   : > { %v14778_v16 = vpop.permute.xlu1 %201  ;;  %v14780_v17 = vpop.permute.xlu0 %197 }
  0x89   : > { %21120 = vst [vmem:[#allocation3_spill] sm:$0xff] %v14778_v16 }
  0x8a   : > { %678 = vrot.lane.b32.xlu1 %v14661_v6, %s14596_s21  ;;  %676 = vrot.lane.b32.xlu0 %v14664_v7, %s14596_s21 }
  0x8c   : > { %v14787_v19 = vpop.permute.xlu1 %205  ;;  %v14789_v20 = vpop.permute.xlu0 %203 }
  0x8d   : > { %21121 = vst [vmem:[#allocation4_spill] sm:$0xff] %v14787_v19  ;;  %21122 = vst [vmem:[#allocation5_spill] sm:$0xff] %v14789_v20 }
  0x8e   : > { %742 = vrot.lane.b32.xlu1 %v14634_v1, %s14597_s22  ;;  %680 = vrot.lane.b32.xlu0 %v654_v18, %s14596_s21 }
  0x90   : > { %v14794_v21 = vpop.permute.xlu1 %209  ;;  %v14796_v22 = vpop.permute.xlu0 %207 }
  0x91   : > { %21123 = vst [vmem:[#allocation6_spill] sm:$0xff] %v14794_v21  ;;  %21124 = vst [vmem:[#allocation7_spill] sm:$0xff] %v14796_v22 }
  0x92   : > { %746 = vrot.lane.b32.xlu1 %v14631_v0, %s14597_s22  ;;  %744 = vrot.lane.b32.xlu0 %v14644_v3, %s14597_s22  ;;  %v1842_v3 = vld [vmem:[%s14628_s14 + $0x44] sm:$0xf] }
  0x94   : > { %v14802_v23 = vpop.permute.xlu1 %274  ;;  %v14804_v24 = vpop.permute.xlu0 %211 }
  0x95   : > { %21125 = vst [vmem:[#allocation8_spill] sm:$0xff] %v14804_v24 }
  0x96   : > { %750 = vrot.lane.b32.xlu1 %v14654_v5, %s14597_s22  ;;  %748 = vrot.lane.b32.xlu0 %v14641_v2, %s14597_s22 }
  0x98   : > { %v14810_v25 = vpop.permute.xlu1 %278  ;;  %v14812_v26 = vpop.permute.xlu0 %276 }
  0x9a   : > { %754 = vrot.lane.b32.xlu1 %v14664_v7, %s14597_s22  ;;  %752 = vrot.lane.b32.xlu0 %v14651_v4, %s14597_s22 }
  0x9c   : > { %v14819_v28 = vpop.permute.xlu1 %282  ;;  %v14821_v29 = vpop.permute.xlu0 %280 }
  0x9d   : > { %21126 = vst [vmem:[#allocation9_spill] sm:$0xff] %v14821_v29 }
  0x9e   : > { %758 = vrot.lane.b32.xlu1 %v732_v27, %s14597_s22  ;;  %756 = vrot.lane.b32.xlu0 %v14661_v6, %s14597_s22 }
  0xa0   : > { %v14832_v32 = vpop.permute.xlu1 %286  ;;  %v14834_v33 = vpop.permute.xlu0 %284 }
  0xa1   : > { %21127 = vst [vmem:[#allocation10_spill] sm:$0xff] %v14832_v32  ;;  %21128 = vst [vmem:[#allocation11_spill] sm:$0xff] %v14834_v33 }
  0xa2   : > { %1700 = vrot.lane.b32.xlu1 %v14827_v30, %s14590_s15  ;;  %1698 = vrot.lane.b32.xlu0 %v14830_v31, %s14590_s15 }
  0xa4   : > { %v14848_v37 = vpop.permute.xlu1 %290  ;;  %v14850_v38 = vpop.permute.xlu0 %288 }
  0xa5   : > { %21129 = vst [vmem:[#allocation12_spill] sm:$0xff] %v14848_v37  ;;  %21130 = vst [vmem:[#allocation13_spill] sm:$0xff] %v14850_v38 }
  0xa6   : > { %1704 = vrot.lane.b32.xlu1 %v14843_v35, %s14590_s15  ;;  %1702 = vrot.lane.b32.xlu0 %v14846_v36, %s14590_s15 }
  0xa8   : > { %v14862_v41 = vpop.permute.xlu1 %354  ;;  %v14864_v42 = vpop.permute.xlu0 %352 }
  0xaa   : > { %1708 = vrot.lane.b32.xlu1 %v14857_v39, %s14590_s15  ;;  %1706 = vrot.lane.b32.xlu0 %v14860_v40, %s14590_s15 }
  0xac   : > { %v14876_v45 = vpop.permute.xlu1 %358  ;;  %v14878_v46 = vpop.permute.xlu0 %356 }
  0xad   : > { %21132 = vst [vmem:[#allocation15_spill] sm:$0xff] %v14876_v45 }
  0xae   : > { %1712 = vrot.lane.b32.xlu1 %v14871_v43, %s14590_s15  ;;  %1710 = vrot.lane.b32.xlu0 %v14874_v44, %s14590_s15 }
  0xb0   : > { %v14885_v48 = vpop.permute.xlu1 %362  ;;  %v14887_v49 = vpop.permute.xlu0 %360 }
  0xb1   : > { %21133 = vst [vmem:[#allocation16_spill] sm:$0xff] %v14885_v48  ;;  %21134 = vst [vmem:[#allocation17_spill] sm:$0xff] %v14887_v49 }
  0xb2   : > { %1775 = vrot.lane.b32.xlu1 %v14830_v31, %s14591_s16  ;;  %1714 = vrot.lane.b32.xlu0 %v1688_v47, %s14590_s15 }
  0xb4   : > { %v14892_v50 = vpop.permute.xlu1 %366  ;;  %v14894_v51 = vpop.permute.xlu0 %364 }
  0xb5   : > { %21135 = vst [vmem:[#allocation18_spill] sm:$0xff] %v14892_v50  ;;  %21136 = vst [vmem:[#allocation19_spill] sm:$0xff] %v14894_v51  ;;  %v370_v51 = vrot.slane %v14864_v42, 4 }
  0xb6   : > { %1779 = vrot.lane.b32.xlu1 %v14846_v36, %s14591_s16  ;;  %1777 = vrot.lane.b32.xlu0 %v14827_v30, %s14591_s16 }
  0xb8   : > { %v14900_v52 = vpop.permute.xlu1 %430  ;;  %v14902_v53 = vpop.permute.xlu0 %368 }
  0xb9   : > { %21137 = vst [vmem:[#allocation20_spill] sm:$0xff] %v14902_v53  ;;  %v1996_v53 = vld [vmem:[%s14628_s14 + $0x44] sm:$0xf] }
  0xba   : > { %1783 = vrot.lane.b32.xlu1 %v14860_v40, %s14591_s16  ;;  %1781 = vrot.lane.b32.xlu0 %v14843_v35, %s14591_s16 }
  0xbc   : > { %v14908_v54 = vpop.permute.xlu1 %434  ;;  %v14910_v55 = vpop.permute.xlu0 %432 }
  0xbd   : > { %21138 = vst [vmem:[#allocation21_spill] sm:$0xff] %v14908_v54 }
  0xbe   : > { %1787 = vrot.lane.b32.xlu1 %v14874_v44, %s14591_s16  ;;  %1785 = vrot.lane.b32.xlu0 %v14857_v39, %s14591_s16 }
  0xc0   : > { %v14917_v57 = vpop.permute.xlu1 %438  ;;  %v14919_v58 = vpop.permute.xlu0 %436 }
  0xc2   : > { %1791 = vrot.lane.b32.xlu1 %v1765_v56, %s14591_s16  ;;  %1789 = vrot.lane.b32.xlu0 %v14871_v43, %s14591_s16 }
  0xc4   : > { %v14924_v59 = vpop.permute.xlu1 %442  ;;  %v14926_v60 = vpop.permute.xlu0 %440 }
  0xc5   : > { %21139 = vst [vmem:[#allocation22_spill] sm:$0xff] %v14924_v59  ;;  %21140 = vst [vmem:[#allocation23_spill] sm:$0xff] %v14926_v60 }
  0xc6   : > { %1854 = vrot.lane.b32.xlu1 %v14827_v30, %s14592_s17  ;;  %1852 = vrot.lane.b32.xlu0 %v14830_v31, %s14592_s17 }
  0xc8   : > { %v14932_v61 = vpop.permute.xlu1 %446  ;;  %v14934_v62 = vpop.permute.xlu0 %444 }
  0xc9   : > { %21141 = vst [vmem:[#allocation24_spill] sm:$0xff] %v14932_v61  ;;  %21142 = vst [vmem:[#allocation25_spill] sm:$0xff] %v14934_v62  ;;  %v448_v61 = vrot.slane %v14900_v52, 4 }
  0xca   : > { %1858 = vrot.lane.b32.xlu1 %v14843_v35, %s14592_s17  ;;  %1856 = vrot.lane.b32.xlu0 %v14846_v36, %s14592_s17 }
  0xcc   : > { %v14940_v63 = vpop.permute.xlu1 %510  ;;  %v14942_v0 = vpop.permute.xlu0 %508 }
  0xcd   : > { %v527_v22 = vrot.slane %v14940_v63, 4 }
  0xce   : > { %1862 = vrot.lane.b32.xlu1 %v14857_v39, %s14592_s17  ;;  %1860 = vrot.lane.b32.xlu0 %v14860_v40, %s14592_s17 }
  0xd0   : > { %v14948_v1 = vpop.permute.xlu1 %514  ;;  %v14950_v2 = vpop.permute.xlu0 %512 }
  0xd2   : > { %1866 = vrot.lane.b32.xlu1 %v14871_v43, %s14592_s17  ;;  %1864 = vrot.lane.b32.xlu0 %v14874_v44, %s14592_s17 }
  0xd4   : > { %v14957_v4 = vpop.permute.xlu1 %518  ;;  %v14959_v5 = vpop.permute.xlu0 %516 }
  0xd5   : > { %21143 = vst [vmem:[#allocation26_spill] sm:$0xff] %v14957_v4  ;;  %v21156_v4 = vrot.slane %v14908_v54, 4 }
  0xd6   : > { %1929 = vrot.lane.b32.xlu1 %v14830_v31, %s14593_s18  ;;  %1868 = vrot.lane.b32.xlu0 %v1842_v3, %s14592_s17 }
  0xd8   : > { %v14964_v6 = vpop.permute.xlu1 %522  ;;  %v14966_v7 = vpop.permute.xlu0 %520 }
  0xd9   : > { %21144 = vst [vmem:[#allocation27_spill] sm:$0xff] %v14964_v6  ;;  %21145 = vst [vmem:[#allocation28_spill] sm:$0xff] %v14966_v7 }
  0xda   : > { %1933 = vrot.lane.b32.xlu1 %v14846_v36, %s14593_s18  ;;  %1931 = vrot.lane.b32.xlu0 %v14827_v30, %s14593_s18 }
  0xdc   : > { %v14972_v8 = vpop.permute.xlu1 %586  ;;  %v14974_v9 = vpop.permute.xlu0 %524 }
  0xdd   : > { %21146 = vst [vmem:[#allocation29_spill] sm:$0xff] %v14974_v9  ;;  %v604_v19 = vrot.slane %v14972_v8, 4 }
  0xde   : > { %1937 = vrot.lane.b32.xlu1 %v14860_v40, %s14593_s18  ;;  %1935 = vrot.lane.b32.xlu0 %v14843_v35, %s14593_s18 }
  0xe0   : > { %v14980_v10 = vpop.permute.xlu1 %590  ;;  %v14982_v11 = vpop.permute.xlu0 %588 }
  0xe1   : > { %v605_v48 = vrot.slane %v14982_v11, 4  ;;  %v21158_v49 = vrot.slane %v14980_v10, 4 }
  0xe2   : > { %1941 = vrot.lane.b32.xlu1 %v14874_v44, %s14593_s18  ;;  %1939 = vrot.lane.b32.xlu0 %v14857_v39, %s14593_s18 }
  0xe3   : > { %v616_v45 = vsel %vm222_vm0, %v605_v48, %v21158_v49  ;;  %v372_v49 = vrot.slane %v14878_v46, 4 }
  0xe4   : > { %v14989_v13 = vpop.permute.xlu1 %594  ;;  %v14991_v18 = vpop.permute.xlu0 %592 }
  0xe6   : > { %1945 = vrot.lane.b32.xlu1 %v1919_v12, %s14593_s18  ;;  %1943 = vrot.lane.b32.xlu0 %v14871_v43, %s14593_s18 }
  0xe8   : > { %v14996_v27 = vpop.permute.xlu1 %598  ;;  %v14998_v47 = vpop.permute.xlu0 %596 }
  0xe9   : > { %21147 = vst [vmem:[#allocation30_spill] sm:$0xff] %v14996_v27  ;;  %21148 = vst [vmem:[#allocation31_spill] sm:$0xff] %v14998_v47 }
  0xea   : > { %2008 = vrot.lane.b32.xlu1 %v14827_v30, %s14594_s19  ;;  %2006 = vrot.lane.b32.xlu0 %v14830_v31, %s14594_s19 }
  0xec   : > { %v15004_v56 = vpop.permute.xlu1 %602  ;;  %v15006_v3 = vpop.permute.xlu0 %600 }
  0xed   : > { %21149 = vst [vmem:[#allocation32_spill] sm:$0xff] %v15004_v56  ;;  %21150 = vst [vmem:[#allocation33_spill] sm:$0xff] %v15006_v3 }
  0xee   : > { %2012 = vrot.lane.b32.xlu1 %v14843_v35, %s14594_s19  ;;  %2010 = vrot.lane.b32.xlu0 %v14846_v36, %s14594_s19 }
  0xf0   : > { %v15012_v12 = vpop.permute.xlu1 %666  ;;  %v15014_v34 = vpop.permute.xlu0 %664 }
  0xf1   : > { %v683_v3 = vrot.slane %v15012_v12, 4  ;;  %v682_v56 = vrot.slane %v15014_v34, 4 }
  0xf2   : > { %2016 = vrot.lane.b32.xlu1 %v14857_v39, %s14594_s19  ;;  %2014 = vrot.lane.b32.xlu0 %v14860_v40, %s14594_s19 }
  0xf3   : > { %v691_v47 = vsel %vm222_vm0, %v682_v56, %v683_v3 }
  0xf4   : > { %v15020_v24 = vpop.permute.xlu1 %670  ;;  %v15022_v21 = vpop.permute.xlu0 %668 }
  0xf6   : > { %2020 = vrot.lane.b32.xlu1 %v14871_v43, %s14594_s19  ;;  %2018 = vrot.lane.b32.xlu0 %v14874_v44, %s14594_s19 }
  0xf8   : > { %v15029_v50 = vpop.permute.xlu1 %674  ;;  %v15031_v38 = vpop.permute.xlu0 %672 }
  0xf9   : > { %21151 = vst [vmem:[#allocation34_spill] sm:$0xff] %v15029_v50  ;;  %v2073_v50 = vld [vmem:[%s14628_s14 + $0x44] sm:$0xf] }
  0xfa   : > { %2083 = vrot.lane.b32.xlu1 %v14830_v31, %s14595_s20  ;;  %2022 = vrot.lane.b32.xlu0 %v1996_v53, %s14594_s19  ;;  %v526_v53 = vrot.slane %v14942_v0, 4 }
  0xfc   : > { %v15036_v37 = vpop.permute.xlu1 %678  ;;  %v15038_v9 = vpop.permute.xlu0 %676  ;;  %v535_v59 = vsel %vm222_vm0, %v526_v53, %v527_v22  ;;  %v613_v53 = vsel %vm222_vm0, %v604_v19, %v605_v48 }
  0xfd   : > { %21152 = vst [vmem:[#allocation35_spill] sm:$0xff] %v15036_v37  ;;  %21153 = vst [vmem:[#allocation36_spill] sm:$0xff] %v15038_v9  ;;  %v21155_v37 = vrot.slane %v15022_v21, 4 }
  0xfe   : > { %2087 = vrot.lane.b32.xlu1 %v14846_v36, %s14595_s20  ;;  %2085 = vrot.lane.b32.xlu0 %v14827_v30, %s14595_s20 }
  0xff   : > { %v694_v27 = vsel %vm222_vm0, %v683_v3, %v21155_v37 }
 0x100   : > { %v743_v6 = vpop.permute.xlu1 %742  ;;  %v15044_v62 = vpop.permute.xlu0 %680 }
 0x101   : > { %21154 = vst [vmem:[#allocation37_spill] sm:$0xff] %v15044_v62  ;;  %v449_v62 = vrot.slane %v14910_v55, 4  ;;  %v760_v7 = vrot.slane %v743_v6, 4 }
 0x102   : > { %2091 = vrot.lane.b32.xlu1 %v14860_v40, %s14595_s20  ;;  %2089 = vrot.lane.b32.xlu0 %v14843_v35, %s14595_s20 }
 0x103   : > { %v460_v9 = vsel %vm222_vm0, %v449_v62, %v21156_v4  ;;  %v457_v48 = vsel %vm222_vm0, %v448_v61, %v449_v62  ;;  %v537_v61 = vsel %vm536_vm4, %v14942_v0, %v535_v59 }
 0x104   : > { %v15063_v33 = vpop.permute.xlu1 %746  ;;  %v745_v32 = vpop.permute.xlu0 %744 }
 0x105   : > { %v761_v60 = vrot.slane %v745_v32, 4  ;;  %v21157_v20 = vrot.slane %v15063_v33, 4 }
 0x106   : > { %2095 = vrot.lane.b32.xlu1 %v14874_v44, %s14595_s20  ;;  %2093 = vrot.lane.b32.xlu0 %v14857_v39, %s14595_s20 }
 0x107   : > { %v769_v56 = vsel %vm222_vm0, %v760_v7, %v761_v60  ;;  %v772_v16 = vsel %vm222_vm0, %v761_v60, %v21157_v20  ;;  %v693_v7 = vsel %vm692_vm2, %v15014_v34, %v691_v47  ;;  %v695_v20 = vsel %vm692_vm2, %v15012_v12, %v694_v27 }
 0x108   : > { %v15089_v44 = vpop.permute.xlu1 %750  ;;  %v15091_v37 = vpop.permute.xlu0 %748  ;;  %v771_v3 = vsel %vm770_vm3, %v743_v6, %v769_v56  ;;  %v773_v4 = vsel %vm770_vm3, %v745_v32, %v772_v16  ;;  %v21159_v16 = vrot.slane %v14950_v2, 4  ;;  %v617_v32 = vsel %vm614_vm1, %v14982_v11, %v616_v45 }
 0x109   : > { %v13736_v54 = vcombine.high %v771_v3, %v771_v3  ;;  %v13738_v29 = vcombine.high %v773_v4, %v773_v4  ;;  %v13735_v60 = vcombine.low %v771_v3, %v771_v3  ;;  %v13737_v6 = vcombine.low %v773_v4, %v773_v4 }
 0x10a   : > { %2099 = vrot.lane.b32.xlu1 %v2073_v50, %s14595_s20  ;;  %2097 = vrot.lane.b32.xlu0 %v14871_v43, %s14595_s20  ;;  %v538_v19 = vsel %vm222_vm0, %v527_v22, %v21159_v16  ;;  %v615_v34 = vsel %vm614_vm1, %v14972_v8, %v613_v53  ;;  %v13722_v56 = vcombine.high %v617_v32, %v695_v20  ;;  %v214_v45 = vrot.slane %v14780_v17, 4 }
 0x10b   : > { %13751 = vmatprep.subr.msk.bf16.mxu0 %vm222_vm0, %v13736_v54  ;;  %13753 = vmatprep.subr.msk.bf16.mxu1 %vm222_vm0, %v13738_v29  ;;  %v1257_v27 = vsel %vm222_vm0, %v13735_v60, 0  ;;  %v1263_v47 = vsel %vm222_vm0, %v13737_v6, 0  ;;  %v13720_v12 = vcombine.high %v615_v34, %v693_v7  ;;  %v21160_v54 = vrot.slane %v14810_v25, 4 }
 0x10c   : > { %v15114_v50 = vpop.permute.xlu1 %754  ;;  %v15118_v22 = vpop.permute.xlu0 %752  ;;  %v21161_v29 = vrot.slane %v14812_v26, 4  ;;  %1311 = vmatpush1.bf16.msra.mxu0 %v1257_v27  ;;  %1352 = vmatpush1.bf16.msra.mxu1 %v1263_v47  ;;  %v539_v62 = vsel %vm536_vm4, %v14940_v63, %v538_v19  ;;  %v292_v11 = vrot.slane %v14802_v23, 4  ;;  %v21162_v3 = vrot.slane %v14862_v41, 4 }
 0x10d   : > { %v461_v53 = vsel %vm458_vm7, %v14910_v55, %v460_v9  ;;  %1312 = vmatprep.subr.bf16.mxu0 %v13720_v12  ;;  %1353 = vmatprep.subr.bf16.mxu1 %v13722_v56  ;;  %v215_v60 = vrot.slane %v14770_v14, 4  ;;  %v13721_v63 = vcombine.low %v617_v32, %v695_v20  ;;  %v459_v55 = vsel %vm458_vm7, %v14900_v52, %v457_v48 }
 0x10e   : > { %v304_v8 = vsel %vm222_vm0, %v21161_v29, %v21160_v54  ;;  %v379_v4 = vsel %vm222_vm0, %v370_v51, %v21162_v3  ;;  %v21163_v59 = vmov %v21162_v3  ;;  %2162 = vrot.lane.b32.xlu1 %v14827_v30, %s14596_s21  ;;  %2160 = vrot.lane.b32.xlu0 %v14830_v31, %s14596_s21  ;;  %v13719_v51 = vcombine.low %v615_v34, %v693_v7  ;;  %v161_v3 = vld [vmem:[%s14628_s14] sm:$0xff] }
 0x10f   : > { %v382_v0 = vsel %vm222_vm0, %v21163_v59, %v372_v49  ;;  %v213_v9 = vrot.slane %v14772_v15, 4  ;;  %v13704_v19 = vcombine.high %v459_v55, %v537_v61  ;;  %v13706_v27 = vcombine.high %v461_v53, %v539_v62 }
 0x110   : > { %v15149_v6 = vpop.permute.xlu1 %758  ;;  %v15151_v16 = vpop.permute.xlu0 %756  ;;  %v21164_v47 = vmov %v21161_v29  ;;  %v226_v7 = vsel %vm222_vm0, %v214_v45, %v215_v60  ;;  %v381_v52 = vsel %vm380_vm5, %v14864_v42, %v379_v4  ;;  %1313 = vmatpush1.bf16.msra.mxu0 %v13719_v51  ;;  %1354 = vmatpush1.bf16.msra.mxu1 %v13721_v63  ;;  %v383_v20 = vsel %vm380_vm5, %v14862_v41, %v382_v0 }
 0x111   : > { %v301_v12 = vsel %vm222_vm0, %v292_v11, %v21164_v47  ;;  %v305_v32 = vsel %vm302_vm6, %v14812_v26, %v304_v8  ;;  %v20961_v34 = vrot.slane %v15089_v44, 4  ;;  %v763_v48 = vrot.slane %v15091_v37, 4  ;;  %1314 = vmatprep.subr.bf16.mxu0 %v13704_v19  ;;  %1355 = vmatprep.subr.bf16.mxu1 %v13706_v27 }
 0x112   : > { %v223_v56 = vsel %vm222_vm0, %v213_v9, %v214_v45  ;;  %2166 = vrot.lane.b32.xlu1 %v14843_v35, %s14596_s21  ;;  %2164 = vrot.lane.b32.xlu0 %v14846_v36, %s14596_s21  ;;  %v13703_v41 = vcombine.low %v459_v55, %v537_v61  ;;  %v13705_v42 = vcombine.low %v461_v53, %v539_v62  ;;  %v15184_v61 = vld [vmem:[%s14628_s14 + $0x8] sm:$0xff]  ;;  %v685_v62 = vrot.slane %v15020_v24, 4 }
 0x113   : > { %v303_v26 = vsel %vm302_vm6, %v14802_v23, %v301_v12  ;;  %v13690_v11 = vcombine.high %v305_v32, %v383_v20  ;;  %v227_v45 = vsel %vm224_vm8, %v14780_v17, %v226_v7  ;;  %v225_v4 = vsel %vm224_vm8, %v14772_v15, %v223_v56 }
 0x114   : > { %v15174_v54 = vpop.permute.xlu1 %1700  ;;  %v15176_v29 = vpop.permute.xlu0 %1698  ;;  %v13688_v8 = vcombine.high %v303_v26, %v381_v52  ;;  %1315 = vmatpush1.bf16.msra.mxu0 %v13703_v41  ;;  %1356 = vmatpush1.bf16.msra.mxu1 %v13705_v42  ;;  %v20960_v23 = vrot.slane %v15031_v38, 4  ;;  %v21165_v53 = vrot.slane %v15063_v33, 4  ;;  %v776_v17 = vsel %vm222_vm0, %v763_v48, %v20961_v34 }
 0x115   : > { %1357 = vmatprep.subr.bf16.mxu1 %v13690_v11  ;;  %v20959_v0 = vrot.slane %v14989_v13, 4  ;;  %v607_v15 = vrot.slane %v14991_v18, 4  ;;  %v13687_v51 = vcombine.low %v303_v26, %v381_v52  ;;  %v13689_v63 = vcombine.low %v305_v32, %v383_v20 }
 0x116   : > { %v774_v59 = vsel %vm222_vm0, %v21165_v53, %v763_v48  ;;  %1316 = vmatprep.subr.bf16.mxu0 %v13688_v8  ;;  %2170 = vrot.lane.b32.xlu1 %v14857_v39, %s14596_s21  ;;  %v13672_v19 = vcombine.high %v161_v3, %v225_v4  ;;  %v13674_v27 = vcombine.high %v15184_v61, %v227_v45  ;;  %v20962_v7 = vrot.slane %v14917_v57, 4  ;;  %v21168_v8 = vld [vmem:[#allocation9_spill] sm:$0xff] }
 0x117   : > { %2168 = vrot.lane.b32.xlu0 %v14860_v40, %s14596_s21  ;;  %v13671_v47 = vcombine.low %v161_v3, %v225_v4  ;;  %v13673_v12 = vcombine.low %v15184_v61, %v227_v45  ;;  %v451_v48 = vrot.slane %v14919_v58, 4  ;;  %v777_v56 = vsel %vm770_vm3, %v15091_v37, %v776_v17  ;;  %v21170_v4 = vld [vmem:[#allocation14_spill] sm:$0xff] }
 0x118   : > { %v15200_v55 = vpop.permute.xlu1 %1704  ;;  %v15202_v9 = vpop.permute.xlu0 %1702  ;;  %1317 = vmatpush1.bf16.msra.mxu0 %v13687_v51  ;;  %1358 = vmatpush1.bf16.msra.mxu1 %v13689_v63  ;;  %v775_v52 = vsel %vm770_vm3, %v15063_v33, %v774_v59  ;;  %v529_v20 = vrot.slane %v14948_v1, 4  ;;  %v20963_v32 = vrot.slane %v14959_v5, 4  ;;  %v21167_v41 = vrot.slane %v15022_v21, 4  ;;  %v2150_v63 = vld [vmem:[%s14628_s14 + $0x44] sm:$0xf] }
 0x119   : > { %21166 = vst [vmem:[#allocation38_spill] sm:$0xff] %v15200_v55  ;;  %1318 = vmatprep.subr.bf16.mxu0 %v13672_v19  ;;  %1359 = vmatprep.subr.bf16.mxu1 %v13674_v27  ;;  %v698_v37 = vsel %vm222_vm0, %v685_v62, %v20960_v23  ;;  %v20967_v26 = vrot.slane %v14819_v28, 4  ;;  %v295_v11 = vrot.slane %v21168_v8, 4  ;;  %v620_v33 = vsel %vm222_vm0, %v607_v15, %v20959_v0  ;;  %v21173_v27 = vld [vmem:[#allocation15_spill] sm:$0xff]  ;;  %v21174_v0 = vld [vmem:[#allocation17_spill] sm:$0xff] }
 0x11a   : > { %v696_v42 = vsel %vm222_vm0, %v21167_v41, %v685_v62  ;;  %v21169_v45 = vrot.slane %v14980_v10, 4  ;;  %2174 = vrot.lane.b32.xlu1 %v14871_v43, %s14596_s21  ;;  %v13741_v53 = vcombine.low %v777_v56, %v777_v56  ;;  %v13742_v62 = vcombine.high %v777_v56, %v777_v56  ;;  %v3566_v55 = vld [vmem:[%s14628_s14 + $0x48] sm:$0xf] }
 0x11b   : > { %2172 = vrot.lane.b32.xlu0 %v21170_v4, %s14596_s21  ;;  %v13740_v51 = vcombine.high %v775_v52, %v775_v52  ;;  %v13739_v19 = vcombine.low %v775_v52, %v775_v52  ;;  %v373_v41 = vrot.slane %v21173_v27, 4  ;;  %v699_v56 = vsel %vm692_vm2, %v15020_v24, %v698_v37 }
 0x11c   : > { %v618_v3 = vsel %vm222_vm0, %v21169_v45, %v607_v15  ;;  %v15232_v59 = vpop.permute.xlu1 %1708  ;;  %v15234_v17 = vpop.permute.xlu0 %1706  ;;  %v697_v15 = vsel %vm692_vm2, %v15022_v21, %v696_v42  ;;  %1319 = vmatpush1.bf16.msra.mxu0 %v13671_v47  ;;  %1360 = vmatpush1.bf16.msra.mxu1 %v13673_v12  ;;  %v15243_v45 = vld [vmem:[%s20925_s1] sm:$0xf]  ;;  %v20969_v23 = vrot.slane %v21174_v0, 4  ;;  %v464_v52 = vsel %vm222_vm0, %v451_v48, %v20962_v7  ;;  %v21176_v12 = vld [vmem:[#allocation21_spill] sm:$0xff] }
 0x11d   : > { %21171 = vst [vmem:[#allocation9_spill] sm:$0xff] %v15232_v59  ;;  %21172 = vst [vmem:[#allocation14_spill] sm:$0xff] %v15234_v17  ;;  %v21175_v34 = vrot.slane %v14950_v2, 4  ;;  %13755 = vmatprep.subr.msk.bf16.mxu0 %vm222_vm0, %v13740_v51  ;;  %13757 = vmatprep.subr.msk.bf16.mxu1 %vm222_vm0, %v13742_v62  ;;  %v542_v47 = vsel %vm222_vm0, %v529_v20, %v20963_v32  ;;  %v21177_v24 = vrot.slane %v21176_v12, 4  ;;  %v21226_v59 = vld [vmem:[#allocation29_spill] sm:$0xff] }
 0x11e   : > { %v621_v37 = vsel %vm614_vm1, %v14991_v18, %v620_v33  ;;  %v619_v7 = vsel %vm614_vm1, %v14980_v10, %v618_v3  ;;  %2237 = vrot.lane.b32.xlu1 %v14830_v31, %s14597_s22  ;;  %v1269_v18 = vsel %vm222_vm0, %v13739_v19, 0  ;;  %v21180_v33 = vld [vmem:[#allocation3_spill] sm:$0xff]  ;;  %v308_v3 = vsel %vm222_vm0, %v295_v11, %v20967_v26 }
 0x11f   : > { %v540_v21 = vsel %vm222_vm0, %v21175_v34, %v529_v20  ;;  %v462_v42 = vsel %vm222_vm0, %v21177_v24, %v451_v48  ;;  %2176 = vrot.lane.b32.xlu0 %v2150_v63, %s14596_s21  ;;  %13752 = vmatmul.mubr.msk.bf16.vlgmr.msra.gmra.mxu0 %vm1251_vm9, %v15243_v45  ;;  %v1275_v48 = vsel %vm222_vm0, %v13741_v53, 0  ;;  %v13724_v10 = vcombine.high %v619_v7, %v697_v15  ;;  %v21181_v24 = vld [vmem:[#allocation5_spill] sm:$0xff] }
 0x120   : > { %v15269_v34 = vpop.permute.xlu1 %1712  ;;  %v15271_v62 = vpop.permute.xlu0 %1710  ;;  %13754 = vmatmul.mubr.msk.bf16.vlgmr.msra.gmra.mxu1 %vm1251_vm9, %v15243_v45  ;;  %v13726_v20 = vcombine.high %v621_v37, %v699_v56  ;;  %v216_v31 = vrot.slane %v21180_v33, 4  ;;  %v541_v51 = vsel %vm536_vm4, %v14950_v2, %v540_v21  ;;  %1393 = vmatpush1.bf16.msra.mxu0 %v1269_v18  ;;  %v543_v63 = vsel %vm536_vm4, %v14948_v1, %v542_v47 }
 0x121   : > { %21178 = vst [vmem:[#allocation15_spill] sm:$0xff] %v15269_v34  ;;  %21179 = vst [vmem:[#allocation17_spill] sm:$0xff] %v15271_v62  ;;  %1434 = vmatpush1.bf16.msra.mxu1 %v1275_v48  ;;  %v20965_v19 = vrot.slane %v21181_v24, 4  ;;  %v384_v53 = vsel %vm222_vm0, %v372_v49, %v373_v41  ;;  %v465_v32 = vsel %vm458_vm7, %v14919_v58, %v464_v52  ;;  %1394 = vmatprep.subr.bf16.mxu0 %v13724_v10  ;;  %v21184_v10 = vmov 0  }
 0x122   : > { %1435 = vmatprep.subr.bf16.mxu1 %v13726_v20  ;;  %v386_v2 = vsel %vm222_vm0, %v373_v41, %v20969_v23  ;;  %v463_v21 = vsel %vm458_vm7, %v21176_v12, %v462_v42  ;;  %v13723_v18 = vcombine.low %v619_v7, %v697_v15  ;;  %v13725_v1 = vcombine.low %v621_v37, %v699_v56 }
 0x123   : > { %2241 = vrot.lane.b32.xlu1 %v14846_v36, %s14597_s22  ;;  %2239 = vrot.lane.b32.xlu0 %v14827_v30, %s14597_s22  ;;  %v21182_v49 = vrot.slane %v14810_v25, 4  ;;  %v13708_v41 = vcombine.high %v463_v21, %v541_v51  ;;  %v13710_v48 = vcombine.high %v465_v32, %v543_v63  ;;  %v385_v36 = vsel %vm380_vm5, %v14878_v46, %v384_v53 }
 0x124   : > { %v15305_v52 = vpop.permute.xlu1 %1775  ;;  %v15307_v47 = vpop.permute.xlu0 %1714  ;;  %1418 = vmatprep.mubr.bf16.mxu0 %v21184_v10  ;;  %1459 = vmatprep.mubr.bf16.mxu1 %v21184_v10  ;;  %v387_v30 = vsel %vm380_vm5, %v21173_v27, %v386_v2  ;;  %v228_v7 = vsel %vm222_vm0, %v215_v60, %v216_v31  ;;  %v20964_v15 = vrot.slane %v15114_v50, 4  ;;  %v765_v56 = vrot.slane %v15118_v22, 4 }
 0x125   : > { %v306_v58 = vsel %vm222_vm0, %v21182_v49, %v295_v11  ;;  %21183 = vst [vmem:[#allocation21_spill] sm:$0xff] %v15307_v47  ;;  %1395 = vmatpush1.bf16.msra.mxu0 %v13723_v18  ;;  %1436 = vmatpush1.bf16.msra.mxu1 %v13725_v1  ;;  %v309_v11 = vsel %vm302_vm6, %v21168_v8, %v308_v3  ;;  %v21185_v3 = vld [vmem:[#allocation34_spill] sm:$0xff]  ;;  %v21187_v53 = vrot.slane %v15089_v44, 4  ;;  %v21189_v49 = vld [vmem:[#allocation31_spill] sm:$0xff]  ;;  %v21211_v34 = vrot.slane %v21174_v0, 4 }
 0x126   : > { %1396 = vmatprep.subr.bf16.mxu0 %v13708_v41  ;;  %1437 = vmatprep.subr.bf16.mxu1 %v13710_v48  ;;  %v230_v46 = vsel %vm222_vm0, %v216_v31, %v20965_v19  ;;  %v307_v27 = vsel %vm302_vm6, %v14810_v25, %v306_v58  ;;  %v13707_v12 = vcombine.low %v463_v21, %v541_v51  ;;  %v15336_v31 = vld [vmem:[%s14628_s14 + $0x10] sm:$0xff]  ;;  %v21186_v51 = vld [vmem:[#allocation36_spill] sm:$0xff]  ;;  %v21188_v18 = vld [vmem:[#allocation30_spill] sm:$0xff]  ;;  %v534_v62 = vrot.slane %v21226_v59, 4 }
 0x127   : > { %v13709_v60 = vcombine.low %v465_v32, %v543_v63  ;;  %2245 = vrot.lane.b32.xlu1 %v14860_v40, %s14597_s22  ;;  %2243 = vrot.lane.b32.xlu0 %v14843_v35, %s14597_s22  ;;  %v13692_v37 = vcombine.high %v307_v27, %v385_v36  ;;  %v13694_v20 = vcombine.high %v309_v11, %v387_v30  ;;  %v15341_v32 = vld [vmem:[%s14628_s14 + $0x18] sm:$0xff]  ;;  %v687_v35 = vrot.slane %v21185_v3, 4 }
 0x128   : > { %v15331_v8 = vpop.permute.xlu1 %1779  ;;  %v15333_v42 = vpop.permute.xlu0 %1777  ;;  %v229_v25 = vsel %vm224_vm8, %v14770_v14, %v228_v7  ;;  %v231_v40 = vsel %vm224_vm8, %v21180_v33, %v230_v46  ;;  %v20966_v63 = vrot.slane %v21186_v51, 4  ;;  %v778_v2 = vsel %vm222_vm0, %v21187_v53, %v765_v56  ;;  %v2227_v46 = vld [vmem:[%s14628_s14 + $0x44] sm:$0xf] }
 0x129   : > { %1397 = vmatpush1.bf16.msra.mxu0 %v13707_v12  ;;  %1438 = vmatpush1.bf16.msra.mxu1 %v13709_v60  ;;  %v780_v21 = vsel %vm222_vm0, %v765_v56, %v20964_v15  ;;  %v13691_v14 = vcombine.low %v307_v27, %v385_v36  ;;  %v20968_v1 = vrot.slane %v21188_v18, 4  ;;  %v609_v33 = vrot.slane %v21189_v49, 4  ;;  %v21191_v27 = vld [vmem:[#allocation22_spill] sm:$0xff] }
 0x12a   : > { %1398 = vmatprep.subr.bf16.mxu0 %v13692_v37  ;;  %1439 = vmatprep.subr.bf16.mxu1 %v13694_v20  ;;  %v13693_v58 = vcombine.low %v309_v11, %v387_v30  ;;  %v13675_v7 = vcombine.low %v15336_v31, %v229_v25  ;;  %v13676_v56 = vcombine.high %v15336_v31, %v229_v25  ;;  %v20970_v12 = vrot.slane %v21191_v27, 4  ;;  %v21192_v30 = vld [vmem:[#allocation23_spill] sm:$0xff]  ;;  %v21193_v60 = vld [vmem:[#allocation26_spill] sm:$0xff]  ;;  %v21194_v20 = vld [vmem:[#allocation28_spill] sm:$0xff] }
 0x12b   : > { %2249 = vrot.lane.b32.xlu1 %v21170_v4, %s14597_s22  ;;  %2247 = vrot.lane.b32.xlu0 %v14857_v39, %s14597_s22  ;;  %v13678_v36 = vcombine.high %v15341_v32, %v231_v40  ;;  %v453_v11 = vrot.slane %v21192_v30, 4  ;;  %v781_v4 = vsel %vm770_vm3, %v15118_v22, %v780_v21  ;;  %v779_v39 = vsel %vm770_vm3, %v15089_v44, %v778_v2  ;;  %v21196_v22 = vld [vmem:[#allocation10_spill] sm:$0xff]  ;;  %v21201_v21 = vld [vmem:[#allocation16_spill] sm:$0xff] }
 0x12c   : > { %v15359_v41 = vpop.permute.xlu1 %1783  ;;  %v15361_v48 = vpop.permute.xlu0 %1781  ;;  %v531_v37 = vrot.slane %v21193_v60, 4  ;;  %v21195_v25 = vrot.slane %v15031_v38, 4  ;;  %v702_v19 = vsel %vm222_vm0, %v687_v35, %v20966_v63  ;;  %v624_v44 = vsel %vm222_vm0, %v609_v33, %v20968_v1  ;;  %v21200_v1 = vld [vmem:[#allocation11_spill] sm:$0xff] }
 0x12d   : > { %21190 = vst [vmem:[#allocation3_spill] sm:$0xff] %v15361_v48  ;;  %1399 = vmatpush1.bf16.msra.mxu0 %v13691_v14  ;;  %1440 = vmatpush1.bf16.msra.mxu1 %v13693_v58  ;;  %v21197_v2 = vrot.slane %v14989_v13, 4  ;;  %v13677_v58 = vcombine.low %v15341_v32, %v231_v40  ;;  %v13744_v63 = vcombine.high %v779_v39, %v779_v39  ;;  %v297_v23 = vrot.slane %v21200_v1, 4 }
 0x12e   : > { %v700_v15 = vsel %vm222_vm0, %v21195_v25, %v687_v35  ;;  %1400 = vmatprep.subr.bf16.mxu0 %v13676_v56  ;;  %1441 = vmatprep.subr.bf16.mxu1 %v13678_v36  ;;  %v13745_v56 = vcombine.low %v781_v4, %v781_v4  ;;  %v13746_v36 = vcombine.high %v781_v4, %v781_v4  ;;  %v375_v53 = vrot.slane %v21201_v21, 4 }
 0x12f   : > { %v622_v14 = vsel %vm222_vm0, %v21197_v2, %v609_v33  ;;  %2253 = vrot.lane.b32.xlu1 %v2227_v46, %s14597_s22  ;;  %2251 = vrot.lane.b32.xlu0 %v14871_v43, %s14597_s22  ;;  %v13743_v26 = vcombine.low %v779_v39, %v779_v39  ;;  %v701_v40 = vsel %vm692_vm2, %v15031_v38, %v700_v15  ;;  %v21202_v33 = vld [vmem:[#allocation19_spill] sm:$0xff]  ;;  %v21203_v39 = vrot.slane %v14959_v5, 4 }
 0x130   : > { %v15392_v35 = vpop.permute.xlu1 %1787  ;;  %v15394_v25 = vpop.permute.xlu0 %1785  ;;  %v703_v43 = vsel %vm692_vm2, %v21185_v3, %v702_v19  ;;  %v468_v4 = vsel %vm222_vm0, %v453_v11, %v20970_v12  ;;  %v21204_v38 = vrot.slane %v21194_v20, 4  ;;  %v21205_v19 = vrot.slane %v14917_v57, 4  ;;  %v21210_v46 = vld [vmem:[#allocation7_spill] sm:$0xff] }
 0x131   : > { %21198 = vst [vmem:[#allocation5_spill] sm:$0xff] %v15392_v35  ;;  %21199 = vst [vmem:[#allocation34_spill] sm:$0xff] %v15394_v25  ;;  %1401 = vmatpush1.bf16.msra.mxu0 %v13675_v7  ;;  %1442 = vmatpush1.bf16.msra.mxu1 %v13677_v58  ;;  %v544_v2 = vsel %vm222_vm0, %v21203_v39, %v531_v37  ;;  %v625_v7 = vsel %vm614_vm1, %v21189_v49, %v624_v44  ;;  %v1281_v49 = vsel %vm222_vm0, %v13743_v26, 0  ;;  %v15436_v44 = vld [vmem:[%s14628_s14 + $0x20] sm:$0xff] }
 0x132   : > { %13759 = vmatprep.subr.msk.bf16.mxu0 %vm222_vm0, %v13744_v63  ;;  %13761 = vmatprep.subr.msk.bf16.mxu1 %vm222_vm0, %v13746_v36  ;;  %v546_v15 = vsel %vm222_vm0, %v531_v37, %v21204_v38  ;;  %v466_v3 = vsel %vm222_vm0, %v21205_v19, %v453_v11  ;;  %v623_v58 = vsel %vm614_vm1, %v14989_v13, %v622_v14  ;;  %v1287_v13 = vsel %vm222_vm0, %v13745_v56, 0  ;;  %v21208_v14 = vld [vmem:[#allocation4_spill] sm:$0xff] }
 0x133   : > { %3193 = vrot.lane.b32.xlu1 %v15336_v31, %s14590_s15  ;;  %3191 = vrot.lane.b32.xlu0 %v15184_v61, %s14590_s15  ;;  %v13728_v11 = vcombine.high %v623_v58, %v701_v40  ;;  %v13730_v37 = vcombine.high %v625_v7, %v703_v43  ;;  %v218_v39 = vrot.slane %v21208_v14, 4  ;;  %v21209_v38 = vrot.slane %v21196_v22, 4 }
 0x134   : > { %v15425_v63 = vpop.permute.xlu1 %1791  ;;  %v15427_v36 = vpop.permute.xlu0 %1789  ;;  %13756 = vmatmul.mubr.msk.bf16.vlgmr.msra.gmra.mxu0 %vm1251_vm9, %v15243_v45  ;;  %13758 = vmatmul.mubr.msk.bf16.vlgmr.msra.gmra.mxu1 %vm1251_vm9, %v15243_v45  ;;  %v545_v12 = vsel %vm536_vm4, %v14959_v5, %v544_v2  ;;  %v547_v26 = vsel %vm536_vm4, %v21193_v60, %v546_v15  ;;  %v20973_v56 = vrot.slane %v21210_v46, 4  ;;  %v388_v47 = vsel %vm222_vm0, %v21211_v34, %v375_v53 }
 0x135   : > { %21206 = vst [vmem:[#allocation36_spill] sm:$0xff] %v15425_v63  ;;  %21207 = vst [vmem:[#allocation30_spill] sm:$0xff] %v15427_v36  ;;  %v312_v19 = vsel %vm222_vm0, %v297_v23, %v21209_v38  ;;  %1475 = vmatpush1.bf16.msra.mxu0 %v1281_v49  ;;  %1516 = vmatpush1.bf16.msra.mxu1 %v1287_v13  ;;  %v469_v36 = vsel %vm458_vm7, %v21192_v30, %v468_v4  ;;  %v21212_v38 = vrot.slane %v21202_v33, 4 }
 0x136   : > { %1476 = vmatprep.subr.bf16.mxu0 %v13728_v11  ;;  %1517 = vmatprep.subr.bf16.mxu1 %v13730_v37  ;;  %v467_v2 = vsel %vm458_vm7, %v14917_v57, %v466_v3  ;;  %v13727_v60 = vcombine.low %v623_v58, %v701_v40  ;;  %v13729_v15 = vcombine.low %v625_v7, %v703_v43  ;;  %v21213_v34 = vrot.slane %v14819_v28, 4  ;;  %v15469_v57 = vld [vmem:[%s14628_s14 + $0x30] sm:$0xff]  ;;  %v15485_v37 = vld [vmem:[%s14628_s14 + $0x28] sm:$0xff] }
 0x137   : > { %v390_v5 = vsel %vm222_vm0, %v375_v53, %v21212_v38  ;;  %3197 = vrot.lane.b32.xlu1 %v15436_v44, %s14590_s15  ;;  %3195 = vrot.lane.b32.xlu0 %v15341_v32, %s14590_s15  ;;  %v13712_v53 = vcombine.high %v467_v2, %v545_v12  ;;  %v13714_v13 = vcombine.high %v469_v36, %v547_v26  ;;  %v21214_v40 = vrot.slane %v21181_v24, 4 }
 0x138   : > { %v310_v30 = vsel %vm222_vm0, %v21213_v34, %v297_v23  ;;  %v15464_v4 = vpop.permute.xlu1 %1854  ;;  %v15466_v49 = vpop.permute.xlu0 %1852  ;;  %1500 = vmatprep.mubr.bf16.mxu0 %v21184_v10  ;;  %1541 = vmatprep.mubr.bf16.mxu1 %v21184_v10  ;;  %v389_v23 = vsel %vm380_vm5, %v21174_v0, %v388_v47  ;;  %v391_v3 = vsel %vm380_vm5, %v21201_v21, %v390_v5  ;;  %v768_v58 = vrot.slane %v15149_v6, 4 }
 0x139   : > { %v232_v43 = vsel %vm222_vm0, %v21214_v40, %v218_v39  ;;  %1477 = vmatpush1.bf16.msra.mxu0 %v13727_v60  ;;  %1518 = vmatpush1.bf16.msra.mxu1 %v13729_v15  ;;  %v313_v7 = vsel %vm302_vm6, %v21200_v1, %v312_v19  ;;  %v767_v11 = vrot.slane %v15151_v16, 4  ;;  %v234_v0 = vsel %vm222_vm0, %v218_v39, %v20973_v56  ;;  %v15501_v60 = vld [vmem:[%s14628_s14 + $0x40] sm:$0xff] }
 0x13a   : > { %1478 = vmatprep.subr.bf16.mxu0 %v13712_v53  ;;  %1519 = vmatprep.subr.bf16.mxu1 %v13714_v13  ;;  %v311_v47 = vsel %vm302_vm6, %v14819_v28, %v310_v30  ;;  %v13711_v21 = vcombine.low %v467_v2, %v545_v12  ;;  %v13713_v38 = vcombine.low %v469_v36, %v547_v26  ;;  %v21216_v36 = vld [vmem:[#allocation35_spill] sm:$0xff]  ;;  %v21217_v26 = vld [vmem:[#allocation37_spill] sm:$0xff]  ;;  %v21218_v15 = vrot.slane %v15114_v50, 4  ;;  %v21219_v13 = vld [vmem:[#allocation32_spill] sm:$0xff] }
 0x13b   : > { %3201 = vrot.lane.b32.xlu1 %v15469_v57, %s14590_s15  ;;  %3199 = vrot.lane.b32.xlu0 %v15485_v37, %s14590_s15  ;;  %v13696_v19 = vcombine.high %v311_v47, %v389_v23  ;;  %v13698_v5 = vcombine.high %v313_v7, %v391_v3  ;;  %v233_v28 = vsel %vm224_vm8, %v21181_v24, %v232_v43  ;;  %v689_v39 = vrot.slane %v21216_v36, 4  ;;  %v15514_v24 = vld [vmem:[%s14628_s14 + $0x38] sm:$0xff]  ;;  %v21220_v43 = vld [vmem:[#allocation33_spill] sm:$0xff]  ;;  %v21225_v56 = vld [vmem:[#allocation27_spill] sm:$0xff] }
 0x13c   : > { %v15496_v6 = vpop.permute.xlu1 %1858  ;;  %v15498_v1 = vpop.permute.xlu0 %1856  ;;  %v235_v12 = vsel %vm224_vm8, %v21208_v14, %v234_v0  ;;  %v690_v2 = vrot.slane %v21217_v26, 4  ;;  %v782_v34 = vsel %vm222_vm0, %v21218_v15, %v767_v11  ;;  %v784_v30 = vsel %vm222_vm0, %v767_v11, %v768_v58  ;;  %v21224_v15 = vld [vmem:[#allocation25_spill] sm:$0xff] }
 0x13d   : > { %21215 = vst [vmem:[#allocation31_spill] sm:$0xff] %v15496_v6  ;;  %1479 = vmatpush1.bf16.msra.mxu0 %v13711_v21  ;;  %1520 = vmatpush1.bf16.msra.mxu1 %v13713_v38  ;;  %v13695_v53 = vcombine.low %v311_v47, %v389_v23  ;;  %v612_v40 = vrot.slane %v21219_v13, 4  ;;  %v611_v14 = vrot.slane %v21220_v43, 4  ;;  %v13697_v0 = vcombine.low %v313_v7, %v391_v3  ;;  %v14565_v21 = vld [vmem:[%s14628_s14 + $0x20] sm:$0xff]  ;;  %v3181_v47 = vld [vmem:[%s14628_s14 + $0x48] sm:$0xf] }
 0x13e   : > { %1480 = vmatprep.subr.bf16.mxu0 %v13696_v19  ;;  %1521 = vmatprep.subr.bf16.mxu1 %v13698_v5  ;;  %v13679_v38 = vcombine.low %v14565_v21, %v233_v28  ;;  %v13680_v19 = vcombine.high %v14565_v21, %v233_v28  ;;  %v13682_v23 = vcombine.high %v15485_v37, %v235_v12  ;;  %v21223_v5 = vld [vmem:[#allocation24_spill] sm:$0xff]  ;;  %v455_v3 = vrot.slane %v21224_v15, 4 }
 0x13f   : > { %3205 = vrot.lane.b32.xlu1 %v15501_v60, %s14590_s15  ;;  %3203 = vrot.lane.b32.xlu0 %v15514_v24, %s14590_s15  ;;  %v456_v26 = vrot.slane %v21223_v5, 4  ;;  %v785_v7 = vsel %vm770_vm3, %v15151_v16, %v784_v30  ;;  %v783_v13 = vsel %vm770_vm3, %v15114_v50, %v782_v34  ;;  %v533_v63 = vrot.slane %v21225_v56, 4 }
 0x140   : > { %v15523_v58 = vpop.permute.xlu1 %1862  ;;  %v15525_v11 = vpop.permute.xlu0 %1860  ;;  %v21227_v28 = vrot.slane %v21186_v51, 4  ;;  %v706_v5 = vsel %vm222_vm0, %v689_v39, %v690_v2  ;;  %v628_v16 = vsel %vm222_vm0, %v611_v14, %v612_v40  ;;  %v21229_v30 = vrot.slane %v21188_v18, 4  ;;  %v21232_v40 = vld [vmem:[#allocation13_spill] sm:$0xff] }
 0x141   : > { %21221 = vst [vmem:[#allocation22_spill] sm:$0xff] %v15523_v58  ;;  %21222 = vst [vmem:[#allocation23_spill] sm:$0xff] %v15525_v11  ;;  %1481 = vmatpush1.bf16.msra.mxu0 %v13695_v53  ;;  %1522 = vmatpush1.bf16.msra.mxu1 %v13697_v0  ;;  %v21228_v58 = vld [vmem:[#allocation12_spill] sm:$0xff]  ;;  %v13681_v34 = vcombine.low %v15485_v37, %v235_v12  ;;  %v13749_v59 = vcombine.low %v785_v7, %v785_v7 }
 0x142   : > { %v704_v21 = vsel %vm222_vm0, %v21227_v28, %v689_v39  ;;  %1482 = vmatprep.subr.bf16.mxu0 %v13680_v19  ;;  %1523 = vmatprep.subr.bf16.mxu1 %v13682_v23  ;;  %v300_v25 = vrot.slane %v21228_v58, 4  ;;  %v626_v50 = vsel %vm222_vm0, %v21229_v30, %v611_v14  ;;  %v13750_v53 = vcombine.high %v785_v7, %v785_v7  ;;  %v21233_v23 = vld [vmem:[#allocation18_spill] sm:$0xff] }
 0x143   : > { %3268 = vrot.lane.b32.xlu1 %v15184_v61, %s14591_s16  ;;  %3207 = vrot.lane.b32.xlu0 %v3181_v47, %s14590_s15  ;;  %v13748_v0 = vcombine.high %v783_v13, %v783_v13  ;;  %v13747_v58 = vcombine.low %v783_v13, %v783_v13  ;;  %v299_v19 = vrot.slane %v21232_v40, 4  ;;  %v377_v28 = vrot.slane %v21233_v23, 4  ;;  %v21234_v47 = vld [vmem:[#allocation20_spill] sm:$0xff] }
 0x144   : > { %v15550_v39 = vpop.permute.xlu1 %1866  ;;  %v15552_v2 = vpop.permute.xlu0 %1864  ;;  %v705_v12 = vsel %vm692_vm2, %v21186_v51, %v704_v21  ;;  %v707_v14 = vsel %vm692_vm2, %v21216_v36, %v706_v5  ;;  %v378_v7 = vrot.slane %v21234_v47, 4  ;;  %v472_v30 = vsel %vm222_vm0, %v455_v3, %v456_v26  ;;  %v21238_v5 = vld [vmem:[#allocation6_spill] sm:$0xff] }
 0x145   : > { %21230 = vst [vmem:[#allocation26_spill] sm:$0xff] %v15550_v39  ;;  %21231 = vst [vmem:[#allocation28_spill] sm:$0xff] %v15552_v2  ;;  %1483 = vmatpush1.bf16.msra.mxu0 %v13679_v38  ;;  %1524 = vmatpush1.bf16.msra.mxu1 %v13681_v34  ;;  %v21235_v39 = vrot.slane %v21194_v20, 4  ;;  %v550_v2 = vsel %vm222_vm0, %v533_v63, %v534_v62  ;;  %v21236_v51 = vrot.slane %v21191_v27, 4 }
 0x146   : > { %13763 = vmatprep.subr.msk.bf16.mxu0 %vm222_vm0, %v13748_v0  ;;  %13765 = vmatprep.subr.msk.bf16.mxu1 %vm222_vm0, %v13750_v53  ;;  %v629_v36 = vsel %vm614_vm1, %v21220_v43, %v628_v16  ;;  %v627_v26 = vsel %vm614_vm1, %v21188_v18, %v626_v50  ;;  %v1293_v43 = vsel %vm222_vm0, %v13747_v58, 0  ;;  %v1299_v18 = vsel %vm222_vm0, %v13749_v59, 0 }
 0x147   : > { %v548_v13 = vsel %vm222_vm0, %v21235_v39, %v533_v63  ;;  %v470_v38 = vsel %vm222_vm0, %v21236_v51, %v455_v3  ;;  %3272 = vrot.lane.b32.xlu1 %v15341_v32, %s14591_s16  ;;  %3270 = vrot.lane.b32.xlu0 %v15336_v31, %s14591_s16  ;;  %v13732_v3 = vcombine.high %v627_v26, %v705_v12  ;;  %v220_v16 = vrot.slane %v21238_v5, 4  ;;  %v21239_v39 = vld [vmem:[#allocation8_spill] sm:$0xff] }
 0x148   : > { %v15579_v62 = vpop.permute.xlu1 %1929  ;;  %v15581_v63 = vpop.permute.xlu0 %1868  ;;  %13760 = vmatmul.mubr.msk.bf16.vlgmr.msra.gmra.mxu0 %vm1251_vm9, %v15243_v45  ;;  %13762 = vmatmul.mubr.msk.bf16.vlgmr.msra.gmra.mxu1 %vm1251_vm9, %v15243_v45  ;;  %v13734_v21 = vcombine.high %v629_v36, %v707_v14  ;;  %v316_v50 = vsel %vm222_vm0, %v299_v19, %v300_v25  ;;  %v549_v34 = vsel %vm536_vm4, %v21194_v20, %v548_v13  ;;  %v221_v0 = vrot.slane %v21239_v39, 4 }
 0x149   : > { %21237 = vst [vmem:[#allocation10_spill] sm:$0xff] %v15581_v63  ;;  %1557 = vmatpush1.bf16.msra.mxu0 %v1293_v43  ;;  %1598 = vmatpush1.bf16.msra.mxu1 %v1299_v18  ;;  %v551_v53 = vsel %vm536_vm4, %v21225_v56, %v550_v2  ;;  %v21240_v58 = vrot.slane %v21202_v33, 4  ;;  %v394_v47 = vsel %vm222_vm0, %v377_v28, %v378_v7  ;;  %v21241_v56 = vrot.slane %v21196_v22, 4 }
 0x14a   : > { %v473_v51 = vsel %vm458_vm7, %v21224_v15, %v472_v30  ;;  %1558 = vmatprep.subr.bf16.mxu0 %v13732_v3  ;;  %1599 = vmatprep.subr.bf16.mxu1 %v13734_v21  ;;  %v471_v20 = vsel %vm458_vm7, %v21191_v27, %v470_v38  ;;  %v13731_v25 = vcombine.low %v627_v26, %v705_v12  ;;  %v3258_v21 = vld [vmem:[%s14628_s14 + $0x48] sm:$0xf] }
 0x14b   : > { %v392_v59 = vsel %vm222_vm0, %v21240_v58, %v377_v28  ;;  %v13733_v13 = vcombine.low %v629_v36, %v707_v14  ;;  %3276 = vrot.lane.b32.xlu1 %v15485_v37, %s14591_s16  ;;  %3274 = vrot.lane.b32.xlu0 %v15436_v44, %s14591_s16  ;;  %v314_v2 = vsel %vm222_vm0, %v21241_v56, %v299_v19  ;;  %v21242_v19 = vrot.slane %v21210_v46, 4 }
 0x14c   : > { %v15611_v28 = vpop.permute.xlu1 %1933  ;;  %v15613_v15 = vpop.permute.xlu0 %1931  ;;  %v13716_v7 = vcombine.high %v471_v20, %v549_v34  ;;  %v13718_v30 = vcombine.high %v473_v51, %v551_v53  ;;  %1582 = vmatprep.mubr.bf16.mxu0 %v21184_v10  ;;  %1623 = vmatprep.mubr.bf16.mxu1 %v21184_v10  ;;  %v393_v27 = vsel %vm380_vm5, %v21202_v33, %v392_v59 }
 0x14d   : > { %1559 = vmatpush1.bf16.msra.mxu0 %v13731_v25  ;;  %1600 = vmatpush1.bf16.msra.mxu1 %v13733_v13  ;;  %v395_v12 = vsel %vm380_vm5, %v21233_v23, %v394_v47  ;;  %v236_v14 = vsel %vm222_vm0, %v21242_v19, %v220_v16  ;;  %v238_v38 = vsel %vm222_vm0, %v220_v16, %v221_v0  ;;  %v14566_v0 = vld [vmem:[%s14628_s14 + $0x30] sm:$0xff] }
 0x14e   : > { %v317_v36 = vsel %vm302_vm6, %v21232_v40, %v316_v50  ;;  %1560 = vmatprep.subr.bf16.mxu0 %v13716_v7  ;;  %1601 = vmatprep.subr.bf16.mxu1 %v13718_v30  ;;  %v315_v33 = vsel %vm302_vm6, %v21196_v22, %v314_v2  ;;  %v13715_v26 = vcombine.low %v471_v20, %v549_v34  ;;  %v3335_v7 = vld [vmem:[%s14628_s14 + $0x48] sm:$0xf] }
 0x14f   : > { %v13717_v43 = vcombine.low %v473_v51, %v551_v53  ;;  %3280 = vrot.lane.b32.xlu1 %v15514_v24, %s14591_s16  ;;  %3278 = vrot.lane.b32.xlu0 %v15469_v57, %s14591_s16  ;;  %v13700_v3 = vcombine.high %v315_v33, %v393_v27  ;;  %v13702_v40 = vcombine.high %v317_v36, %v395_v12 }
 0x150   : > { %v15633_v23 = vpop.permute.xlu1 %1937  ;;  %v15635_v18 = vpop.permute.xlu0 %1935  ;;  %v237_v16 = vsel %vm224_vm8, %v21210_v46, %v236_v14  ;;  %v239_v22 = vsel %vm224_vm8, %v21238_v5, %v238_v38  ;;  %v13699_v50 = vcombine.low %v315_v33, %v393_v27  ;;  %v13701_v34 = vcombine.low %v317_v36, %v395_v12 }
 0x151   : > { %1561 = vmatpush1.bf16.msra.mxu0 %v13715_v26  ;;  %1602 = vmatpush1.bf16.msra.mxu1 %v13717_v43  ;;  %v13684_v46 = vcombine.high %v14566_v0, %v237_v16  ;;  %v13686_v58 = vcombine.high %v15514_v24, %v239_v22  ;;  %v13683_v5 = vcombine.low %v14566_v0, %v237_v16  ;;  %v3412_v26 = vld [vmem:[%s14628_s14 + $0x48] sm:$0xf] }
 0x152   : > { %1562 = vmatprep.subr.bf16.mxu0 %v13700_v3  ;;  %1603 = vmatprep.subr.bf16.mxu1 %v13702_v40  ;;  %v13685_v59 = vcombine.low %v15514_v24, %v239_v22  ;;  %v3489_v0 = vld [vmem:[%s14628_s14 + $0x48] sm:$0xf] }
 0x153   : > { %3284 = vrot.lane.b32.xlu1 %v3258_v21, %s14591_s16  ;;  %3282 = vrot.lane.b32.xlu0 %v15501_v60, %s14591_s16 }
 0x154   : > { %v15645_v53 = vpop.permute.xlu1 %1941  ;;  %v15647_v39 = vpop.permute.xlu0 %1939 }
 0x155   : > { %21243 = vst [vmem:[#allocation11_spill] sm:$0xff] %v15645_v53  ;;  %21244 = vst [vmem:[#allocation16_spill] sm:$0xff] %v15647_v39  ;;  %1563 = vmatpush1.bf16.msra.mxu0 %v13699_v50  ;;  %1604 = vmatpush1.bf16.msra.mxu1 %v13701_v34 }
 0x156   : > { %1564 = vmatprep.subr.bf16.mxu0 %v13684_v46  ;;  %1605 = vmatprep.subr.bf16.mxu1 %v13686_v58 }
 0x157   : > { %3347 = vrot.lane.b32.xlu1 %v15336_v31, %s14592_s17  ;;  %3345 = vrot.lane.b32.xlu0 %v15184_v61, %s14592_s17 }
 0x158   : > { %v15656_v47 = vpop.permute.xlu1 %1945  ;;  %v15658_v51 = vpop.permute.xlu0 %1943 }
 0x159   : > { %21245 = vst [vmem:[#allocation19_spill] sm:$0xff] %v15656_v47  ;;  %21246 = vst [vmem:[#allocation4_spill] sm:$0xff] %v15658_v51  ;;  %1565 = vmatpush1.bf16.msra.mxu0 %v13683_v5  ;;  %1606 = vmatpush1.bf16.msra.mxu1 %v13685_v59 }
 0x15b   : > { %3351 = vrot.lane.b32.xlu1 %v15436_v44, %s14592_s17  ;;  %3349 = vrot.lane.b32.xlu0 %v15341_v32, %s14592_s17 }
 0x15c   : > { %v15664_v20 = vpop.permute.xlu1 %2008  ;;  %v15666_v25 = vpop.permute.xlu0 %2006  ;;  %13764 = vmatmul.mubr.msk.bf16.vlgmr.msra.gmra.mxu0 %vm1251_vm9, %v15243_v45  ;;  %13766 = vmatmul.mubr.msk.bf16.vlgmr.msra.gmra.mxu1 %vm1251_vm9, %v15243_v45 }
 0x15d   : > { %2829 = vmatprep.mubr.bf16.mxu0 %v21184_v10  ;;  %2870 = vmatprep.mubr.bf16.mxu1 %v21184_v10 }
 0x15f   : > { %3355 = vrot.lane.b32.xlu1 %v15469_v57, %s14592_s17  ;;  %3353 = vrot.lane.b32.xlu0 %v15485_v37, %s14592_s17 }
 0x160   : > { %v15678_v13 = vpop.permute.xlu1 %2012  ;;  %v15680_v56 = vpop.permute.xlu0 %2010 }
 0x163   : > { %3359 = vrot.lane.b32.xlu1 %v15501_v60, %s14592_s17  ;;  %3357 = vrot.lane.b32.xlu0 %v15514_v24, %s14592_s17 }
 0x164   : > { %v15686_v45 = vpop.permute.xlu1 %2016  ;;  %v15688_v2 = vpop.permute.xlu0 %2014 }
 0x165   : > { %21247 = vst [vmem:[#allocation7_spill] sm:$0xff] %v15686_v45 }
 0x167   : > { %3422 = vrot.lane.b32.xlu1 %v15184_v61, %s14593_s18  ;;  %3361 = vrot.lane.b32.xlu0 %v3335_v7, %s14592_s17 }
 0x168   : > { %v15694_v30 = vpop.permute.xlu1 %2020  ;;  %v15696_v27 = vpop.permute.xlu0 %2018 }
 0x169   : > { %21248 = vst [vmem:[#allocation35_spill] sm:$0xff] %v15694_v30  ;;  %21249 = vst [vmem:[#allocation37_spill] sm:$0xff] %v15696_v27 }
 0x16b   : > { %3426 = vrot.lane.b32.xlu1 %v15341_v32, %s14593_s18  ;;  %3424 = vrot.lane.b32.xlu0 %v15336_v31, %s14593_s18 }
 0x16c   : > { %v15702_v12 = vpop.permute.xlu1 %2083  ;;  %v15704_v19 = vpop.permute.xlu0 %2022 }
 0x16d   : > { %21250 = vst [vmem:[#allocation32_spill] sm:$0xff] %v15704_v19  ;;  %v2025_v19 = vrot.slane %v15664_v20, 4 }
 0x16f   : > { %3430 = vrot.lane.b32.xlu1 %v15485_v37, %s14593_s18  ;;  %3428 = vrot.lane.b32.xlu0 %v15436_v44, %s14593_s18 }
 0x170   : > { %v15710_v14 = vpop.permute.xlu1 %2087  ;;  %v15712_v38 = vpop.permute.xlu0 %2085 }
 0x171   : > { %21251 = vst [vmem:[#allocation33_spill] sm:$0xff] %v15710_v14  ;;  %v2102_v51 = vrot.slane %v15712_v38, 4 }
 0x173   : > { %3434 = vrot.lane.b32.xlu1 %v15514_v24, %s14593_s18  ;;  %3432 = vrot.lane.b32.xlu0 %v15469_v57, %s14593_s18 }
 0x174   : > { %v15718_v36 = vpop.permute.xlu1 %2091  ;;  %v15720_v33 = vpop.permute.xlu0 %2089 }
 0x177   : > { %3438 = vrot.lane.b32.xlu1 %v3412_v26, %s14593_s18  ;;  %3436 = vrot.lane.b32.xlu0 %v15501_v60, %s14593_s18 }
 0x178   : > { %v15726_v43 = vpop.permute.xlu1 %2095  ;;  %v15728_v3 = vpop.permute.xlu0 %2093 }
 0x179   : > { %21252 = vst [vmem:[#allocation24_spill] sm:$0xff] %v15726_v43  ;;  %21253 = vst [vmem:[#allocation25_spill] sm:$0xff] %v15728_v3  ;;  %v1948_v43 = vrot.slane %v15613_v15, 4 }
 0x17b   : > { %3501 = vrot.lane.b32.xlu1 %v15336_v31, %s14594_s19  ;;  %3499 = vrot.lane.b32.xlu0 %v15184_v61, %s14594_s19 }
 0x17c   : > { %v15734_v40 = vpop.permute.xlu1 %2099  ;;  %v15736_v21 = vpop.permute.xlu0 %2097 }
 0x17d   : > { %21254 = vst [vmem:[#allocation27_spill] sm:$0xff] %v15734_v40  ;;  %21255 = vst [vmem:[#allocation29_spill] sm:$0xff] %v15736_v21  ;;  %v2024_v21 = vrot.slane %v15666_v25, 4  ;;  %v2101_v40 = vrot.slane %v15702_v12, 4 }
 0x17f   : > { %3505 = vrot.lane.b32.xlu1 %v15436_v44, %s14594_s19  ;;  %3503 = vrot.lane.b32.xlu0 %v15341_v32, %s14594_s19  ;;  %v2033_v53 = vsel %vm222_vm0, %v2024_v21, %v2025_v19 }
 0x180   : > { %v2163_v16 = vpop.permute.xlu1 %2162  ;;  %v2161_v22 = vpop.permute.xlu0 %2160 }
 0x181   : > { %v2179_v30 = vrot.slane %v2163_v16, 4  ;;  %v2178_v47 = vrot.slane %v2161_v22, 4 }
 0x183   : > { %3509 = vrot.lane.b32.xlu1 %v15469_v57, %s14594_s19  ;;  %3507 = vrot.lane.b32.xlu0 %v15485_v37, %s14594_s19 }
 0x184   : > { %v15746_v50 = vpop.permute.xlu1 %2166  ;;  %v15748_v34 = vpop.permute.xlu0 %2164 }
 0x185   : > { %v21260_v63 = vrot.slane %v15748_v34, 4 }
 0x187   : > { %3513 = vrot.lane.b32.xlu1 %v15501_v60, %s14594_s19  ;;  %3511 = vrot.lane.b32.xlu0 %v15514_v24, %s14594_s19  ;;  %v2189_v27 = vsel %vm222_vm0, %v2179_v30, %v21260_v63 }
 0x188   : > { %v15755_v46 = vpop.permute.xlu1 %2170  ;;  %v2190_v11 = vsel %vm692_vm2, %v2163_v16, %v2189_v27 }
 0x189   : > { %21256 = vst [vmem:[#allocation12_spill] sm:$0xff] %v15755_v46  ;;  %v15757_v58 = vpop.permute.xlu0 %2168  ;;  %v21261_v46 = vrot.slane %v15710_v14, 4  ;;  %v21263_v14 = vrot.slane %v15680_v56, 4 }
 0x18b   : > { %3576 = vrot.lane.b32.xlu1 %v15184_v61, %s14595_s20  ;;  %3515 = vrot.lane.b32.xlu0 %v3489_v0, %s14594_s19  ;;  %v1871_v61 = vrot.slane %v15464_v4, 4  ;;  %v1870_v0 = vrot.slane %v15466_v49, 4  ;;  %v2112_v63 = vsel %vm222_vm0, %v2102_v51, %v21261_v46 }
 0x18c   : > { %v15762_v5 = vpop.permute.xlu1 %2174 }
 0x18d   : > { %21257 = vst [vmem:[#allocation13_spill] sm:$0xff] %v15762_v5  ;;  %v15764_v59 = vpop.permute.xlu0 %2172  ;;  %v2187_v5 = vsel %vm222_vm0, %v2178_v47, %v2179_v30  ;;  %v2110_v47 = vsel %vm222_vm0, %v2101_v40, %v2102_v51  ;;  %v1947_v51 = vrot.slane %v15579_v62, 4 }
 0x18e   : > { %21258 = vst [vmem:[#allocation18_spill] sm:$0xff] %v15764_v59  ;;  %v2188_v46 = vsel %vm692_vm2, %v2161_v22, %v2187_v5 }
 0x18f   : > { %3580 = vrot.lane.b32.xlu1 %v15341_v32, %s14595_s20  ;;  %3578 = vrot.lane.b32.xlu0 %v15336_v31, %s14595_s20 }
 0x190   : > { %v2238_v7 = vpop.permute.xlu1 %2237 }
 0x191   : > { %v15770_v26 = vpop.permute.xlu0 %2176  ;;  %v2255_v45 = vrot.slane %v2238_v7, 4 }
 0x192   : > { %21259 = vst [vmem:[#allocation20_spill] sm:$0xff] %v15770_v26 }
 0x193   : > { %3584 = vrot.lane.b32.xlu1 %v15485_v37, %s14595_s20  ;;  %3582 = vrot.lane.b32.xlu0 %v15436_v44, %s14595_s20 }
 0x195   : > { %v15788_v26 = vpop.permute.xlu1 %2241  ;;  %v2240_v39 = vpop.permute.xlu0 %2239 }
 0x196   : > { %v2256_v35 = vrot.slane %v2240_v39, 4  ;;  %v21262_v59 = vrot.slane %v15788_v26, 4 }
 0x197   : > { %3588 = vrot.lane.b32.xlu1 %v15514_v24, %s14595_s20  ;;  %3586 = vrot.lane.b32.xlu0 %v15469_v57, %s14595_s20 }
 0x198   : > { %v2264_v3 = vsel %vm222_vm0, %v2255_v45, %v2256_v35  ;;  %v2266_v10 = vsel %vm222_vm0, %v2256_v35, %v21262_v59  ;;  %v2035_v35 = vsel %vm222_vm0, %v2025_v19, %v21263_v14  ;;  %v2111_v19 = vsel %vm614_vm1, %v15702_v12, %v2110_v47 }
 0x199   : > { %v2267_v30 = vsel %vm770_vm3, %v2240_v39, %v2266_v10  ;;  %v15813_v17 = vpop.permute.xlu1 %2245  ;;  %v15815_v6 = vpop.permute.xlu0 %2243  ;;  %v2265_v21 = vsel %vm770_vm3, %v2238_v7, %v2264_v3  ;;  %v2113_v10 = vsel %vm614_vm1, %v15712_v38, %v2112_v63  ;;  %v21264_v3 = vrot.slane %v15611_v28, 4  ;;  %v15844_v7 = vld [vmem:[%s14628_s14 + $0x8] sm:$0xff] }
 0x19a   : > { %v13834_v45 = vcombine.low %v2267_v30, %v2267_v30  ;;  %v13835_v48 = vcombine.high %v2267_v30, %v2267_v30  ;;  %v13833_v39 = vcombine.high %v2265_v21, %v2265_v21  ;;  %v13832_v27 = vcombine.low %v2265_v21, %v2265_v21 }
 0x19b   : > { %3592 = vrot.lane.b32.xlu1 %v3566_v55, %s14595_s20  ;;  %3590 = vrot.lane.b32.xlu0 %v15501_v60, %s14595_s20  ;;  %v1958_v40 = vsel %vm222_vm0, %v1948_v43, %v21264_v3  ;;  %v13819_v38 = vcombine.high %v2113_v10, %v2190_v11  ;;  %v1956_v55 = vsel %vm222_vm0, %v1947_v51, %v1948_v43  ;;  %v1716_v12 = vrot.slane %v15176_v29, 4 }
 0x19c   : > { %13850 = vmatprep.subr.msk.bf16.mxu1 %vm222_vm0, %v13835_v48  ;;  %v2756_v14 = vsel %vm222_vm0, %v13834_v45, 0  ;;  %13848 = vmatprep.subr.msk.bf16.mxu0 %vm222_vm0, %v13833_v39  ;;  %v2750_v5 = vsel %vm222_vm0, %v13832_v27, 0  ;;  %v13817_v59 = vcombine.high %v2111_v19, %v2188_v46  ;;  %v2036_v48 = vsel %vm536_vm4, %v15664_v20, %v2035_v35 }
 0x19d   : > { %v15838_v16 = vpop.permute.xlu1 %2249  ;;  %v15840_v22 = vpop.permute.xlu0 %2247  ;;  %2845 = vmatpush1.bf16.msra.mxu1 %v2756_v14  ;;  %v1718_v63 = vrot.slane %v15202_v9, 4  ;;  %v2034_v43 = vsel %vm536_vm4, %v15666_v25, %v2033_v53  ;;  %2804 = vmatpush1.bf16.msra.mxu0 %v2750_v5  ;;  %v21265_v47 = vrot.slane %v15498_v1, 4  ;;  %v1793_v21 = vrot.slane %v15305_v52, 4 }
 0x19e   : > { %2846 = vmatprep.subr.bf16.mxu1 %v13819_v38  ;;  %v1879_v45 = vsel %vm222_vm0, %v1870_v0, %v1871_v61  ;;  %v1959_v20 = vsel %vm458_vm7, %v15613_v15, %v1958_v40  ;;  %2805 = vmatprep.subr.bf16.mxu0 %v13817_v59  ;;  %v13818_v35 = vcombine.low %v2113_v10, %v2190_v11  ;;  %v21266_v53 = vrot.slane %v15331_v8, 4 }
 0x19f   : > { %v1881_v30 = vsel %vm222_vm0, %v1871_v61, %v21265_v47  ;;  %3655 = vrot.lane.b32.xlu1 %v15336_v31, %s14596_s21  ;;  %v21267_v25 = vrot.slane %v15333_v42, 4  ;;  %v1957_v39 = vsel %vm458_vm7, %v15579_v62, %v1956_v55  ;;  %v13816_v27 = vcombine.low %v2111_v19, %v2188_v46  ;;  %3653 = vrot.lane.b32.xlu0 %v15844_v7, %s14596_s21 }
 0x1a0   : > { %v13803_v61 = vcombine.high %v1959_v20, %v2036_v48  ;;  %v13801_v10 = vcombine.high %v1957_v39, %v2034_v43  ;;  %v1882_v3 = vsel %vm380_vm5, %v15464_v4, %v1881_v30  ;;  %v1880_v62 = vsel %vm380_vm5, %v15466_v49, %v1879_v45 }
 0x1a1   : > { %v1804_v51 = vsel %vm222_vm0, %v21267_v25, %v21266_v53  ;;  %v21268_v15 = vmov %v21267_v25  ;;  %v15873_v0 = vpop.permute.xlu1 %2253  ;;  %v15875_v31 = vpop.permute.xlu0 %2251  ;;  %2847 = vmatpush1.bf16.msra.mxu1 %v13818_v35  ;;  %v2259_v46 = vrot.slane %v15813_v17, 4  ;;  %v2258_v40 = vrot.slane %v15815_v6, 4  ;;  %2806 = vmatpush1.bf16.msra.mxu0 %v13816_v27 }
 0x1a2   : > { %v1802_v11 = vsel %vm222_vm0, %v1793_v21, %v21268_v15  ;;  %2848 = vmatprep.subr.bf16.mxu1 %v13803_v61  ;;  %v21269_v19 = vrot.slane %v15174_v54, 4  ;;  %v1805_v49 = vsel %vm302_vm6, %v15333_v42, %v1804_v51  ;;  %2807 = vmatprep.subr.bf16.mxu0 %v13801_v10  ;;  %v13802_v55 = vcombine.low %v1959_v20, %v2036_v48  ;;  %v15904_v42 = vld [vmem:[%s14628_s14 + $0xc] sm:$0xff]  ;;  %v14567_v51 = vld [vmem:[%s14628_s14 + $0x4] sm:$0xff] }
 0x1a3   : > { %3659 = vrot.lane.b32.xlu1 %v15436_v44, %s14596_s21  ;;  %v1803_v5 = vsel %vm302_vm6, %v15305_v52, %v1802_v11  ;;  %v13800_v59 = vcombine.low %v1957_v39, %v2034_v43  ;;  %3657 = vrot.lane.b32.xlu0 %v15341_v32, %s14596_s21  ;;  %v13787_v47 = vcombine.high %v1805_v49, %v1882_v3  ;;  %v2182_v44 = vrot.slane %v15757_v58, 4 }
 0x1a4   : > { %v1727_v14 = vsel %vm222_vm0, %v21269_v19, %v1718_v63  ;;  %v21270_v38 = vmov %v21269_v19  ;;  %v2270_v32 = vsel %vm222_vm0, %v2258_v40, %v2259_v46  ;;  %v2181_v43 = vrot.slane %v15746_v50, 4 }
 0x1a5   : > { %v1725_v4 = vsel %vm222_vm0, %v1716_v12, %v21270_v38  ;;  %v15899_v30 = vpop.permute.xlu1 %3193  ;;  %v15901_v21 = vpop.permute.xlu0 %3191  ;;  %2849 = vmatpush1.bf16.msra.mxu1 %v13802_v55  ;;  %v13785_v12 = vcombine.high %v1803_v5, %v1880_v62  ;;  %v1728_v48 = vsel %vm224_vm8, %v15174_v54, %v1727_v14  ;;  %2808 = vmatpush1.bf16.msra.mxu0 %v13800_v59  ;;  %v21271_v45 = vrot.slane %v15788_v26, 4 }
 0x1a6   : > { %v1726_v52 = vsel %vm224_vm8, %v15176_v29, %v1725_v4  ;;  %2850 = vmatprep.subr.bf16.mxu1 %v13787_v47  ;;  %v13786_v54 = vcombine.low %v1805_v49, %v1882_v3  ;;  %v13784_v29 = vcombine.low %v1803_v5, %v1880_v62  ;;  %v2105_v35 = vrot.slane %v15718_v36, 4  ;;  %v21274_v5 = vld [vmem:[#allocation33_spill] sm:$0xff] }
 0x1a7   : > { %v2268_v20 = vsel %vm222_vm0, %v21271_v45, %v2258_v40  ;;  %2809 = vmatprep.subr.bf16.mxu0 %v13785_v12  ;;  %3663 = vrot.lane.b32.xlu1 %v15469_v57, %s14596_s21  ;;  %v2104_v53 = vrot.slane %v15720_v33, 4  ;;  %v13771_v25 = vcombine.high %v15904_v42, %v1728_v48  ;;  %v13768_v39 = vcombine.low %v14567_v51, %v1726_v52 }
 0x1a8   : > { %3661 = vrot.lane.b32.xlu0 %v15485_v37, %s14596_s21  ;;  %v2271_v27 = vsel %vm770_vm3, %v15815_v6, %v2270_v32  ;;  %v13769_v57 = vcombine.high %v14567_v51, %v1726_v52  ;;  %v2028_v11 = vrot.slane %v15688_v2, 4  ;;  %v13770_v10 = vcombine.low %v15904_v42, %v1728_v48  ;;  %v3643_v52 = vld [vmem:[%s14628_s14 + $0x48] sm:$0xf]  ;;  %v15964_v32 = vld [vmem:[%s20925_s1 + $0x4] sm:$0xf] }
 0x1a9   : > { %v15928_v61 = vpop.permute.xlu1 %3197  ;;  %v15930_v15 = vpop.permute.xlu0 %3195  ;;  %2851 = vmatpush1.bf16.msra.mxu1 %v13786_v54  ;;  %2810 = vmatpush1.bf16.msra.mxu0 %v13784_v29  ;;  %v2269_v3 = vsel %vm770_vm3, %v15788_v26, %v2268_v20  ;;  %v2193_v62 = vsel %vm222_vm0, %v2181_v43, %v2182_v44  ;;  %v21001_v6 = vrot.slane %v15359_v41, 4  ;;  %v21007_v40 = vrot.slane %v15633_v23, 4  ;;  %v21278_v20 = vld [vmem:[#allocation3_spill] sm:$0xff] }
 0x1aa   : > { %21272 = vst [vmem:[#allocation6_spill] sm:$0xff] %v15928_v61  ;;  %2852 = vmatprep.subr.bf16.mxu1 %v13771_v25  ;;  %v2027_v19 = vrot.slane %v15678_v13, 4  ;;  %v21273_v14 = vrot.slane %v15748_v34, 4  ;;  %2811 = vmatprep.subr.bf16.mxu0 %v13769_v57  ;;  %v1950_v26 = vrot.slane %v15635_v18, 4  ;;  %v2116_v4 = vsel %vm222_vm0, %v2104_v53, %v2105_v35  ;;  %v21279_v29 = vld [vmem:[#allocation23_spill] sm:$0xff] }
 0x1ab   : > { %3667 = vrot.lane.b32.xlu1 %v15501_v60, %s14596_s21  ;;  %v13838_v49 = vcombine.low %v2271_v27, %v2271_v27  ;;  %v13839_v55 = vcombine.high %v2271_v27, %v2271_v27  ;;  %v21275_v59 = vrot.slane %v21274_v5, 4  ;;  %v13837_v60 = vcombine.high %v2269_v3, %v2269_v3  ;;  %v21280_v27 = vld [vmem:[#allocation31_spill] sm:$0xff] }
 0x1ac   : > { %v2191_v38 = vsel %vm222_vm0, %v21273_v14, %v2181_v43  ;;  %3665 = vrot.lane.b32.xlu0 %v15514_v24, %s14596_s21  ;;  %v13836_v43 = vcombine.low %v2269_v3, %v2269_v3  ;;  %v2194_v45 = vsel %vm692_vm2, %v15746_v50, %v2193_v62  ;;  %v1796_v54 = vrot.slane %v21278_v20, 4 }
 0x1ad   : > { %v2114_v47 = vsel %vm222_vm0, %v21275_v59, %v2104_v53  ;;  %v15956_v12 = vpop.permute.xlu1 %3201  ;;  %v15958_v48 = vpop.permute.xlu0 %3199  ;;  %2853 = vmatpush1.bf16.msra.mxu1 %v13770_v10  ;;  %v21002_v53 = vrot.slane %v21279_v29, 4  ;;  %v2192_v25 = vsel %vm692_vm2, %v15748_v34, %v2191_v38  ;;  %2812 = vmatpush1.bf16.msra.mxu0 %v13768_v39  ;;  %v2039_v51 = vsel %vm222_vm0, %v2027_v19, %v2028_v11  ;;  %v3713_v59 = vld [vmem:[%s14628_s14 + $0x10] sm:$0xff] }
 0x1ae   : > { %21276 = vst [vmem:[#allocation8_spill] sm:$0xff] %v15956_v12  ;;  %21277 = vst [vmem:[#allocation33_spill] sm:$0xff] %v15958_v48  ;;  %13854 = vmatprep.subr.msk.bf16.mxu1 %vm222_vm0, %v13839_v55  ;;  %v1873_v57 = vrot.slane %v21280_v27, 4  ;;  %v21281_v10 = vrot.slane %v15680_v56, 4  ;;  %v2117_v3 = vsel %vm614_vm1, %v15720_v33, %v2116_v4  ;;  %13852 = vmatprep.subr.msk.bf16.mxu0 %vm222_vm0, %v13837_v60  ;;  %v2768_v33 = vsel %vm222_vm0, %v13838_v49, 0  ;;  %v21327_v12 = vld [vmem:[#allocation35_spill] sm:$0xff] }
 0x1af   : > { %3730 = vrot.lane.b32.xlu1 %v15844_v7, %s14597_s22  ;;  %v1962_v34 = vsel %vm222_vm0, %v1950_v26, %v21007_v40  ;;  %v2115_v39 = vsel %vm614_vm1, %v21274_v5, %v2114_v47  ;;  %v13823_v62 = vcombine.high %v2117_v3, %v2194_v45  ;;  %v21282_v14 = vrot.slane %v15611_v28, 4  ;;  %v21285_v47 = vld [vmem:[#allocation14_spill] sm:$0xff] }
 0x1b0   : > { %v2037_v50 = vsel %vm222_vm0, %v21281_v10, %v2027_v19  ;;  %3669 = vrot.lane.b32.xlu0 %v3643_v52, %s14596_s21  ;;  %13851 = vmatmul.mubr.msk.bf16.vlgmr.msra.gmra.mxu1 %vm1251_vm9, %v15964_v32  ;;  %v3714_v19 = vld [vmem:[%s14628_s14 + $0x18] sm:$0xff]  ;;  %v2762_v55 = vsel %vm222_vm0, %v13836_v43, 0  ;;  %v13821_v5 = vcombine.high %v2115_v39, %v2192_v25  ;;  %v2040_v49 = vsel %vm536_vm4, %v15678_v13, %v2039_v51 }
 0x1b1   : > { %v1960_v7 = vsel %vm222_vm0, %v21282_v14, %v1950_v26  ;;  %v15998_v38 = vpop.permute.xlu1 %3205  ;;  %v16000_v4 = vpop.permute.xlu0 %3203  ;;  %13849 = vmatmul.mubr.msk.bf16.vlgmr.msra.gmra.mxu0 %vm1251_vm9, %v15964_v32  ;;  %2927 = vmatpush1.bf16.msra.mxu1 %v2768_v33  ;;  %v21006_v60 = vrot.slane %v21285_v47, 4  ;;  %v1808_v26 = vsel %vm222_vm0, %v1796_v54, %v21001_v6  ;;  %v2038_v52 = vsel %vm536_vm4, %v15680_v56, %v2037_v50  ;;  %v21286_v10 = vld [vmem:[#allocation38_spill] sm:$0xff] }
 0x1b2   : > { %21283 = vst [vmem:[#allocation3_spill] sm:$0xff] %v15998_v38  ;;  %21284 = vst [vmem:[#allocation23_spill] sm:$0xff] %v16000_v4  ;;  %2886 = vmatpush1.bf16.msra.mxu0 %v2762_v55  ;;  %2928 = vmatprep.subr.bf16.mxu1 %v13823_v62  ;;  %v1885_v43 = vsel %vm222_vm0, %v1873_v57, %v21002_v53  ;;  %v1719_v33 = vrot.slane %v21286_v10, 4  ;;  %v21287_v14 = vrot.slane %v15498_v1, 4  ;;  %v21288_v55 = vmov 0  }
 0x1b3   : > { %v1963_v51 = vsel %vm458_vm7, %v15635_v18, %v1962_v34  ;;  %2887 = vmatprep.subr.bf16.mxu0 %v13821_v5  ;;  %v13822_v6 = vcombine.low %v2117_v3, %v2194_v45  ;;  %3734 = vrot.lane.b32.xlu1 %v3714_v19, %s14597_s22  ;;  %v1961_v56 = vsel %vm458_vm7, %v15611_v28, %v1960_v7  ;;  %v21289_v53 = vrot.slane %v15331_v8, 4  ;;  %v3715_v3 = vld [vmem:[%s14628_s14 + $0x20] sm:$0xff] }
 0x1b4   : > { %v1883_v13 = vsel %vm222_vm0, %v21287_v14, %v1873_v57  ;;  %v13820_v50 = vcombine.low %v2115_v39, %v2192_v25  ;;  %3732 = vrot.lane.b32.xlu0 %v3713_v59, %s14597_s22  ;;  %v13807_v62 = vcombine.high %v1963_v51, %v2040_v49  ;;  %2911 = vmatprep.mubr.bf16.mxu0 %v21288_v55  ;;  %v21004_v34 = vrot.slane %v15838_v16, 4 }
 0x1b5   : > { %v1806_v57 = vsel %vm222_vm0, %v21289_v53, %v1796_v54  ;;  %v16031_v14 = vpop.permute.xlu1 %3268  ;;  %v16033_v18 = vpop.permute.xlu0 %3207  ;;  %2929 = vmatpush1.bf16.msra.mxu1 %v13822_v6  ;;  %v13805_v45 = vcombine.high %v1961_v56, %v2038_v52  ;;  %v1886_v28 = vsel %vm380_vm5, %v21280_v27, %v1885_v43  ;;  %2952 = vmatprep.mubr.bf16.mxu1 %v21288_v55  ;;  %v2260_v39 = vrot.slane %v15840_v22, 4  ;;  %v3717_v43 = vld [vmem:[%s14628_s14 + $0x30] sm:$0xff] }
 0x1b6   : > { %21290 = vst [vmem:[#allocation31_spill] sm:$0xff] %v16033_v18  ;;  %v1884_v25 = vsel %vm380_vm5, %v15498_v1, %v1883_v13  ;;  %2888 = vmatpush1.bf16.msra.mxu0 %v13820_v50  ;;  %2930 = vmatprep.subr.bf16.mxu1 %v13807_v62  ;;  %v1731_v6 = vsel %vm222_vm0, %v1719_v33, %v21006_v60  ;;  %v21294_v62 = vld [vmem:[#allocation25_spill] sm:$0xff]  ;;  %v21303_v60 = vld [vmem:[#allocation34_spill] sm:$0xff]  ;;  %v2031_v4 = vrot.slane %v21327_v12, 4 }
 0x1b7   : > { %v1729_v54 = vsel %vm222_vm0, %v1718_v63, %v1719_v33  ;;  %v1809_v53 = vsel %vm302_vm6, %v21278_v20, %v1808_v26  ;;  %2889 = vmatprep.subr.bf16.mxu0 %v13805_v45  ;;  %v13806_v1 = vcombine.low %v1963_v51, %v2040_v49  ;;  %3738 = vrot.lane.b32.xlu1 %v15485_v37, %s14597_s22  ;;  %v16062_v20 = vld [vmem:[%s14628_s14 + $0x1c] sm:$0xff]  ;;  %v21292_v33 = vld [vmem:[#allocation12_spill] sm:$0xff] }
 0x1b8   : > { %v1807_v27 = vsel %vm302_vm6, %v15331_v8, %v1806_v57  ;;  %v13804_v19 = vcombine.low %v1961_v56, %v2038_v52  ;;  %3736 = vrot.lane.b32.xlu0 %v3715_v3, %s14597_s22  ;;  %v13791_v7 = vcombine.high %v1809_v53, %v1886_v28  ;;  %v1732_v49 = vsel %vm224_vm8, %v21286_v10, %v1731_v6  ;;  %v21291_v37 = vld [vmem:[#allocation18_spill] sm:$0xff]  ;;  %v21293_v56 = vld [vmem:[#allocation24_spill] sm:$0xff] }
 0x1b9   : > { %v16056_v5 = vpop.permute.xlu1 %3272  ;;  %v16058_v59 = vpop.permute.xlu0 %3270  ;;  %2931 = vmatpush1.bf16.msra.mxu1 %v13806_v1  ;;  %v13789_v63 = vcombine.high %v1807_v27, %v1884_v25  ;;  %v1730_v8 = vsel %vm224_vm8, %v15202_v9, %v1729_v54  ;;  %v21003_v26 = vrot.slane %v21291_v37, 4  ;;  %v2274_v52 = vsel %vm222_vm0, %v2260_v39, %v21004_v34  ;;  %v3720_v3 = vld [vmem:[%s14628_s14 + $0x48] sm:$0xf]  ;;  %v14568_v6 = vld [vmem:[%s14628_s14 + $0x14] sm:$0xff] }
 0x1ba   : > { %2890 = vmatpush1.bf16.msra.mxu0 %v13804_v19  ;;  %2932 = vmatprep.subr.bf16.mxu1 %v13791_v7  ;;  %v2183_v13 = vrot.slane %v21292_v33, 4  ;;  %v2272_v51 = vsel %vm222_vm0, %v2259_v46, %v2260_v39  ;;  %v13790_v10 = vcombine.low %v1809_v53, %v1886_v28  ;;  %v13788_v9 = vcombine.low %v1807_v27, %v1884_v25  ;;  %v3719_v25 = vld [vmem:[%s14628_s14 + $0x40] sm:$0xff]  ;;  %v21296_v53 = vld [vmem:[#allocation37_spill] sm:$0xff] }
 0x1bb   : > { %2891 = vmatprep.subr.bf16.mxu0 %v13789_v63  ;;  %3742 = vrot.lane.b32.xlu1 %v15514_v24, %s14597_s22  ;;  %v21005_v50 = vrot.slane %v21293_v56, 4  ;;  %v2106_v57 = vrot.slane %v21294_v62, 4  ;;  %v13775_v45 = vcombine.high %v16062_v20, %v1732_v49  ;;  %v13772_v54 = vcombine.low %v14568_v6, %v1730_v8  ;;  %v21297_v7 = vld [vmem:[#allocation5_spill] sm:$0xff]  ;;  %v21304_v63 = vld [vmem:[#allocation28_spill] sm:$0xff] }
 0x1bc   : > { %3740 = vrot.lane.b32.xlu0 %v3717_v43, %s14597_s22  ;;  %v2275_v46 = vsel %vm770_vm3, %v15840_v22, %v2274_v52  ;;  %v13773_v24 = vcombine.high %v14568_v6, %v1730_v8  ;;  %v21009_v1 = vrot.slane %v21296_v53, 4  ;;  %v13774_v27 = vcombine.low %v16062_v20, %v1732_v49  ;;  %v21298_v43 = vld [vmem:[#allocation11_spill] sm:$0xff]  ;;  %v21300_v49 = vld [vmem:[#allocation16_spill] sm:$0xff] }
 0x1bd   : > { %v16086_v39 = vpop.permute.xlu1 %3276  ;;  %v16088_v28 = vpop.permute.xlu0 %3274  ;;  %2933 = vmatpush1.bf16.msra.mxu1 %v13790_v10  ;;  %v2273_v19 = vsel %vm770_vm3, %v15813_v17, %v2272_v51  ;;  %v2197_v22 = vsel %vm222_vm0, %v2183_v13, %v21003_v26  ;;  %v21008_v52 = vrot.slane %v21298_v43, 4  ;;  %v21299_v8 = vld [vmem:[#allocation7_spill] sm:$0xff]  ;;  %v2120_v17 = vsel %vm222_vm0, %v2106_v57, %v21005_v50  ;;  %v16111_v26 = vld [vmem:[%s14628_s14 + $0x14] sm:$0xff] }
 0x1be   : > { %21295 = vst [vmem:[#allocation14_spill] sm:$0xff] %v16088_v28  ;;  %2892 = vmatpush1.bf16.msra.mxu0 %v13788_v9  ;;  %2934 = vmatprep.subr.bf16.mxu1 %v13775_v45  ;;  %v2029_v10 = vrot.slane %v21299_v8, 4  ;;  %v2195_v9 = vsel %vm222_vm0, %v2182_v44, %v2183_v13  ;;  %v1952_v45 = vrot.slane %v21300_v49, 4  ;;  %v13842_v51 = vcombine.low %v2275_v46, %v2275_v46 }
 0x1bf   : > { %2893 = vmatprep.subr.bf16.mxu0 %v13773_v24  ;;  %3746 = vrot.lane.b32.xlu1 %v3720_v3, %s14597_s22  ;;  %v13843_v6 = vcombine.high %v2275_v46, %v2275_v46  ;;  %v2118_v34 = vsel %vm222_vm0, %v2105_v35, %v2106_v57  ;;  %v13841_v3 = vcombine.high %v2273_v19, %v2273_v19  ;;  %v1798_v46 = vrot.slane %v21303_v60, 4  ;;  %v21305_v57 = vld [vmem:[#allocation22_spill] sm:$0xff] }
 0x1c0   : > { %3744 = vrot.lane.b32.xlu0 %v3719_v25, %s14597_s22  ;;  %v13840_v24 = vcombine.low %v2273_v19, %v2273_v19  ;;  %v2198_v50 = vsel %vm692_vm2, %v21292_v33, %v2197_v22  ;;  %v21011_v25 = vrot.slane %v21304_v63, 4  ;;  %v2196_v40 = vsel %vm692_vm2, %v15757_v58, %v2195_v9  ;;  %v16150_v22 = vld [vmem:[%s14628_s14 + $0x24] sm:$0xff] }
 0x1c1   : > { %v16116_v44 = vpop.permute.xlu1 %3280  ;;  %v16118_v13 = vpop.permute.xlu0 %3278  ;;  %2935 = vmatpush1.bf16.msra.mxu1 %v13774_v27  ;;  %v2043_v35 = vsel %vm222_vm0, %v2029_v10, %v21009_v1  ;;  %v1875_v27 = vrot.slane %v21305_v57, 4  ;;  %v2041_v33 = vsel %vm222_vm0, %v2028_v11, %v2029_v10  ;;  %v2121_v19 = vsel %vm614_vm1, %v21294_v62, %v2120_v17 }
 0x1c2   : > { %21301 = vst [vmem:[#allocation38_spill] sm:$0xff] %v16116_v44  ;;  %21302 = vst [vmem:[#allocation18_spill] sm:$0xff] %v16118_v13  ;;  %2894 = vmatpush1.bf16.msra.mxu0 %v13772_v54  ;;  %13858 = vmatprep.subr.msk.bf16.mxu1 %vm222_vm0, %v13843_v6  ;;  %v1966_v58 = vsel %vm222_vm0, %v1952_v45, %v21008_v52  ;;  %v2119_v54 = vsel %vm614_vm1, %v15718_v36, %v2118_v34  ;;  %v2780_v11 = vsel %vm222_vm0, %v13842_v51, 0 }
 0x1c3   : > { %13856 = vmatprep.subr.msk.bf16.mxu0 %vm222_vm0, %v13841_v3  ;;  %4686 = vrot.lane.b32.xlu1 %v16111_v26, %s14590_s15  ;;  %v13827_v62 = vcombine.high %v2121_v19, %v2198_v50  ;;  %v21306_v10 = vrot.slane %v15633_v23, 4  ;;  %v2774_v36 = vsel %vm222_vm0, %v13840_v24, 0  ;;  %v13825_v34 = vcombine.high %v2119_v54, %v2196_v40  ;;  %v21309_v3 = vld [vmem:[#allocation17_spill] sm:$0xff] }
 0x1c4   : > { %4684 = vrot.lane.b32.xlu0 %v15904_v42, %s14590_s15  ;;  %13855 = vmatmul.mubr.msk.bf16.vlgmr.msra.gmra.mxu1 %vm1251_vm9, %v15964_v32  ;;  %v2044_v51 = vsel %vm536_vm4, %v21299_v8, %v2043_v35  ;;  %v21310_v1 = vrot.slane %v21297_v7, 4  ;;  %v1889_v24 = vsel %vm222_vm0, %v1875_v27, %v21011_v25  ;;  %v21312_v8 = vrot.slane %v21279_v29, 4 }
 0x1c5   : > { %v1964_v9 = vsel %vm222_vm0, %v21306_v10, %v1952_v45  ;;  %v16155_v17 = vpop.permute.xlu1 %3284  ;;  %v16157_v6 = vpop.permute.xlu0 %3282  ;;  %13853 = vmatmul.mubr.msk.bf16.vlgmr.msra.gmra.mxu0 %vm1251_vm9, %v15964_v32  ;;  %3009 = vmatpush1.bf16.msra.mxu1 %v2780_v11  ;;  %v2042_v10 = vsel %vm536_vm4, %v15688_v2, %v2041_v33  ;;  %v21311_v11 = vld [vmem:[#allocation9_spill] sm:$0xff]  ;;  %v1967_v52 = vsel %vm458_vm7, %v21300_v49, %v1966_v58 }
 0x1c6   : > { %21307 = vst [vmem:[#allocation12_spill] sm:$0xff] %v16155_v17  ;;  %21308 = vst [vmem:[#allocation24_spill] sm:$0xff] %v16157_v6  ;;  %v1812_v45 = vsel %vm222_vm0, %v1798_v46, %v21310_v1  ;;  %2968 = vmatpush1.bf16.msra.mxu0 %v2774_v36  ;;  %3010 = vmatprep.subr.bf16.mxu1 %v13827_v62  ;;  %v1721_v38 = vrot.slane %v21311_v11, 4  ;;  %v1887_v35 = vsel %vm222_vm0, %v21312_v8, %v1875_v27  ;;  %v16186_v36 = vld [vmem:[%s14628_s14 + $0x34] sm:$0xff]  ;;  %v21325_v6 = vld [vmem:[#allocation36_spill] sm:$0xff] }
 0x1c7   : > { %2969 = vmatprep.subr.bf16.mxu0 %v13825_v34  ;;  %v13826_v1 = vcombine.low %v2121_v19, %v2198_v50  ;;  %4690 = vrot.lane.b32.xlu1 %v16150_v22, %s14590_s15  ;;  %v1965_v2 = vsel %vm458_vm7, %v15633_v23, %v1964_v9  ;;  %v13824_v33 = vcombine.low %v2119_v54, %v2196_v40  ;;  %v21313_v27 = vrot.slane %v15359_v41, 4 }
 0x1c8   : > { %4688 = vrot.lane.b32.xlu0 %v16062_v20, %s14590_s15  ;;  %v13811_v62 = vcombine.high %v1967_v52, %v2044_v51  ;;  %2993 = vmatprep.mubr.bf16.mxu0 %v21288_v55  ;;  %v13809_v23 = vcombine.high %v1965_v2, %v2042_v10  ;;  %v1890_v40 = vsel %vm380_vm5, %v21305_v57, %v1889_v24  ;;  %v2263_v54 = vrot.slane %v15873_v0, 4  ;;  %v16214_v0 = vld [vmem:[%s14628_s14 + $0x2c] sm:$0xff] }
 0x1c9   : > { %v1810_v49 = vsel %vm222_vm0, %v21313_v27, %v1798_v46  ;;  %v16192_v50 = vpop.permute.xlu1 %3347  ;;  %v16194_v19 = vpop.permute.xlu0 %3345  ;;  %3011 = vmatpush1.bf16.msra.mxu1 %v13826_v1  ;;  %3034 = vmatprep.mubr.bf16.mxu1 %v21288_v55  ;;  %v1888_v58 = vsel %vm380_vm5, %v21279_v29, %v1887_v35  ;;  %v2262_v46 = vrot.slane %v15875_v31, 4  ;;  %v21314_v9 = vrot.slane %v21309_v3, 4  ;;  %v21318_v27 = vld [vmem:[#allocation13_spill] sm:$0xff] }
 0x1ca   : > { %2970 = vmatpush1.bf16.msra.mxu0 %v13824_v33  ;;  %3012 = vmatprep.subr.bf16.mxu1 %v13811_v62  ;;  %v21315_v8 = vrot.slane %v21285_v47, 4  ;;  %v1813_v24 = vsel %vm302_vm6, %v21303_v60, %v1812_v45  ;;  %v13810_v29 = vcombine.low %v1967_v52, %v2044_v51  ;;  %v1811_v35 = vsel %vm302_vm6, %v15359_v41, %v1810_v49  ;;  %v16221_v62 = vld [vmem:[%s14628_s14 + $0x44] sm:$0xff] }
 0x1cb   : > { %v1735_v34 = vsel %vm222_vm0, %v1721_v38, %v21314_v9  ;;  %2971 = vmatprep.subr.bf16.mxu0 %v13809_v23  ;;  %4694 = vrot.lane.b32.xlu1 %v16186_v36, %s14590_s15  ;;  %v13808_v1 = vcombine.low %v1965_v2, %v2042_v10  ;;  %v13795_v33 = vcombine.high %v1813_v24, %v1890_v40  ;;  %v21317_v45 = vld [vmem:[#allocation20_spill] sm:$0xff]  ;;  %v2185_v49 = vrot.slane %v21318_v27, 4 }
 0x1cc   : > { %v1733_v57 = vsel %vm222_vm0, %v21315_v8, %v1721_v38  ;;  %4692 = vrot.lane.b32.xlu0 %v16214_v0, %s14590_s15  ;;  %v13793_v52 = vcombine.high %v1811_v35, %v1888_v58  ;;  %v1736_v51 = vsel %vm224_vm8, %v21311_v11, %v1735_v34  ;;  %v2186_v10 = vrot.slane %v21317_v45, 4  ;;  %v21320_v34 = vld [vmem:[#allocation27_spill] sm:$0xff]  ;;  %v21324_v45 = vld [vmem:[#allocation32_spill] sm:$0xff] }
 0x1cd   : > { %v16223_v38 = vpop.permute.xlu1 %3351  ;;  %v16225_v60 = vpop.permute.xlu0 %3349  ;;  %3013 = vmatpush1.bf16.msra.mxu1 %v13810_v29  ;;  %v1734_v41 = vsel %vm224_vm8, %v21285_v47, %v1733_v57  ;;  %v2278_v2 = vsel %vm222_vm0, %v2262_v46, %v2263_v54  ;;  %v21319_v23 = vrot.slane %v15838_v16, 4  ;;  %v13794_v8 = vcombine.low %v1813_v24, %v1890_v40  ;;  %v16240_v47 = vld [vmem:[%s14628_s14 + $0x3c] sm:$0xff]  ;;  %v21321_v54 = vld [vmem:[#allocation29_spill] sm:$0xff] }
 0x1ce   : > { %21316 = vst [vmem:[#allocation25_spill] sm:$0xff] %v16223_v38  ;;  %2972 = vmatpush1.bf16.msra.mxu0 %v13808_v1  ;;  %3014 = vmatprep.subr.bf16.mxu1 %v13795_v33  ;;  %v13792_v11 = vcombine.low %v1811_v35, %v1888_v58  ;;  %v2109_v57 = vrot.slane %v21320_v34, 4  ;;  %v2108_v29 = vrot.slane %v21321_v54, 4  ;;  %v13779_v1 = vcombine.high %v16214_v0, %v1736_v51  ;;  %v14569_v33 = vld [vmem:[%s14628_s14 + $0x24] sm:$0xff]  ;;  %v4674_v35 = vld [vmem:[%s14628_s14 + $0x4c] sm:$0xf] }
 0x1cf   : > { %v2276_v9 = vsel %vm222_vm0, %v21319_v23, %v2262_v46  ;;  %2973 = vmatprep.subr.bf16.mxu0 %v13793_v52  ;;  %4698 = vrot.lane.b32.xlu1 %v16221_v62, %s14590_s15  ;;  %v13776_v46 = vcombine.low %v14569_v33, %v1734_v41  ;;  %v2279_v40 = vsel %vm770_vm3, %v15875_v31, %v2278_v2  ;;  %v2032_v23 = vrot.slane %v21324_v45, 4  ;;  %v21326_v2 = vld [vmem:[#allocation19_spill] sm:$0xff] }
 0x1d0   : > { %4696 = vrot.lane.b32.xlu0 %v16240_v47, %s14590_s15  ;;  %v13777_v58 = vcombine.high %v14569_v33, %v1734_v41  ;;  %v2201_v34 = vsel %vm222_vm0, %v2185_v49, %v2186_v10  ;;  %v13778_v25 = vcombine.low %v16214_v0, %v1736_v51  ;;  %v2277_v18 = vsel %vm770_vm3, %v15838_v16, %v2276_v9  ;;  %v21329_v10 = vld [vmem:[#allocation4_spill] sm:$0xff] }
 0x1d1   : > { %v16250_v24 = vpop.permute.xlu1 %3355  ;;  %v16252_v52 = vpop.permute.xlu0 %3353  ;;  %3015 = vmatpush1.bf16.msra.mxu1 %v13794_v8  ;;  %v1801_v31 = vrot.slane %v21325_v6, 4  ;;  %v1955_v17 = vrot.slane %v21326_v2, 4  ;;  %v21328_v41 = vrot.slane %v21291_v37, 4  ;;  %v1954_v51 = vrot.slane %v21329_v10, 4 }
 0x1d2   : > { %21322 = vst [vmem:[#allocation37_spill] sm:$0xff] %v16250_v24  ;;  %21323 = vst [vmem:[#allocation5_spill] sm:$0xff] %v16252_v52  ;;  %2974 = vmatpush1.bf16.msra.mxu0 %v13792_v11  ;;  %3016 = vmatprep.subr.bf16.mxu1 %v13779_v1  ;;  %v2124_v11 = vsel %vm222_vm0, %v2108_v29, %v2109_v57  ;;  %v13846_v1 = vcombine.low %v2279_v40, %v2279_v40  ;;  %v21330_v6 = vrot.slane %v21293_v56, 4  ;;  %v21334_v24 = vld [vmem:[#allocation10_spill] sm:$0xff] }
 0x1d3   : > { %v2199_v8 = vsel %vm222_vm0, %v21328_v41, %v2185_v49  ;;  %2975 = vmatprep.subr.bf16.mxu0 %v13777_v58  ;;  %4761 = vrot.lane.b32.xlu1 %v15904_v42, %s14591_s16  ;;  %v13847_v16 = vcombine.high %v2279_v40, %v2279_v40  ;;  %v13845_v49 = vcombine.high %v2277_v18, %v2277_v18  ;;  %v21333_v41 = vld [vmem:[#allocation30_spill] sm:$0xff]  ;;  %v1878_v40 = vrot.slane %v21334_v24, 4 }
 0x1d4   : > { %4700 = vrot.lane.b32.xlu0 %v4674_v35, %s14590_s15  ;;  %v2122_v9 = vsel %vm222_vm0, %v21330_v6, %v2108_v29  ;;  %v13844_v58 = vcombine.low %v2277_v18, %v2277_v18  ;;  %v2202_v2 = vsel %vm692_vm2, %v21318_v27, %v2201_v34  ;;  %v1800_v57 = vrot.slane %v21333_v41, 4  ;;  %v21335_v29 = vld [vmem:[#allocation26_spill] sm:$0xff] }
 0x1d5   : > { %v16274_v33 = vpop.permute.xlu1 %3359  ;;  %v16276_v45 = vpop.permute.xlu0 %3357  ;;  %3017 = vmatpush1.bf16.msra.mxu1 %v13778_v25  ;;  %v2047_v35 = vsel %vm222_vm0, %v2031_v4, %v2032_v23  ;;  %v2200_v13 = vsel %vm692_vm2, %v21291_v37, %v2199_v8  ;;  %v1877_v6 = vrot.slane %v21335_v29, 4  ;;  %v21336_v25 = vrot.slane %v21296_v53, 4 }
 0x1d6   : > { %21331 = vst [vmem:[#allocation11_spill] sm:$0xff] %v16274_v33  ;;  %21332 = vst [vmem:[#allocation7_spill] sm:$0xff] %v16276_v45  ;;  %2976 = vmatpush1.bf16.msra.mxu0 %v13776_v46  ;;  %13862 = vmatprep.subr.msk.bf16.mxu1 %vm222_vm0, %v13847_v16  ;;  %v2125_v27 = vsel %vm614_vm1, %v21321_v54, %v2124_v11  ;;  %v1970_v24 = vsel %vm222_vm0, %v1954_v51, %v1955_v17  ;;  %v21337_v54 = vrot.slane %v21298_v43, 4 }
 0x1d7   : > { %v2045_v18 = vsel %vm222_vm0, %v21336_v25, %v2031_v4  ;;  %13860 = vmatprep.subr.msk.bf16.mxu0 %vm222_vm0, %v13845_v49  ;;  %4765 = vrot.lane.b32.xlu1 %v16062_v20, %s14591_s16  ;;  %v2123_v37 = vsel %vm614_vm1, %v21293_v56, %v2122_v9  ;;  %v2792_v4 = vsel %vm222_vm0, %v13846_v1, 0  ;;  %v13831_v46 = vcombine.high %v2125_v27, %v2202_v2  ;;  %v21339_v1 = vld [vmem:[#allocation21_spill] sm:$0xff]  ;;  %v21340_v25 = vld [vmem:[#allocation15_spill] sm:$0xff] }
 0x1d8   : > { %4763 = vrot.lane.b32.xlu0 %v16111_v26, %s14591_s16  ;;  %13859 = vmatmul.mubr.msk.bf16.vlgmr.msra.gmra.mxu1 %vm1251_vm9, %v15964_v32  ;;  %v1968_v23 = vsel %vm222_vm0, %v21337_v54, %v1954_v51  ;;  %v2786_v56 = vsel %vm222_vm0, %v13844_v58, 0  ;;  %v13829_v17 = vcombine.high %v2123_v37, %v2200_v13  ;;  %v2048_v11 = vsel %vm536_vm4, %v21327_v12, %v2047_v35 }
 0x1d9   : > { %v16306_v34 = vpop.permute.xlu1 %3422  ;;  %v16308_v8 = vpop.permute.xlu0 %3361  ;;  %13857 = vmatmul.mubr.msk.bf16.vlgmr.msra.gmra.mxu0 %vm1251_vm9, %v15964_v32  ;;  %3091 = vmatpush1.bf16.msra.mxu1 %v2792_v4  ;;  %v1724_v16 = vrot.slane %v21339_v1, 4  ;;  %v1816_v9 = vsel %vm222_vm0, %v1800_v57, %v1801_v31  ;;  %v1893_v51 = vsel %vm222_vm0, %v1877_v6, %v1878_v40  ;;  %v2046_v49 = vsel %vm536_vm4, %v21296_v53, %v2045_v18 }
 0x1da   : > { %21338 = vst [vmem:[#allocation16_spill] sm:$0xff] %v16308_v8  ;;  %3050 = vmatpush1.bf16.msra.mxu0 %v2786_v56  ;;  %3092 = vmatprep.subr.bf16.mxu1 %v13831_v46  ;;  %v1723_v54 = vrot.slane %v21340_v25, 4  ;;  %v21341_v58 = vrot.slane %v21304_v63, 4  ;;  %v1971_v12 = vsel %vm458_vm7, %v21329_v10, %v1970_v24  ;;  %v13830_v35 = vcombine.low %v2125_v27, %v2202_v2 }
 0x1db   : > { %3051 = vmatprep.subr.bf16.mxu0 %v13829_v17  ;;  %4769 = vrot.lane.b32.xlu1 %v16214_v0, %s14591_s16  ;;  %v1969_v31 = vsel %vm458_vm7, %v21298_v43, %v1968_v23  ;;  %v13828_v53 = vcombine.low %v2123_v37, %v2200_v13  ;;  %v13815_v40 = vcombine.high %v1971_v12, %v2048_v11  ;;  %v4751_v17 = vld [vmem:[%s14628_s14 + $0x4c] sm:$0xf] }
 0x1dc   : > { %v1891_v4 = vsel %vm222_vm0, %v21341_v58, %v1877_v6  ;;  %4767 = vrot.lane.b32.xlu0 %v16150_v22, %s14591_s16  ;;  %3075 = vmatprep.mubr.bf16.mxu0 %v21288_v55  ;;  %v21342_v6 = vrot.slane %v21297_v7, 4  ;;  %v13813_v27 = vcombine.high %v1969_v31, %v2046_v49  ;;  %v1894_v43 = vsel %vm380_vm5, %v21335_v29, %v1893_v51 }
 0x1dd   : > { %v16336_v10 = vpop.permute.xlu1 %3426  ;;  %v16338_v2 = vpop.permute.xlu0 %3424  ;;  %3093 = vmatpush1.bf16.msra.mxu1 %v13830_v35  ;;  %3116 = vmatprep.mubr.bf16.mxu1 %v21288_v55  ;;  %v1739_v13 = vsel %vm222_vm0, %v1723_v54, %v1724_v16  ;;  %v1892_v24 = vsel %vm380_vm5, %v21304_v63, %v1891_v4  ;;  %v1817_v46 = vsel %vm302_vm6, %v21333_v41, %v1816_v9 }
 0x1de   : > { %v1814_v18 = vsel %vm222_vm0, %v21342_v6, %v1800_v57  ;;  %3052 = vmatpush1.bf16.msra.mxu0 %v13828_v53  ;;  %3094 = vmatprep.subr.bf16.mxu1 %v13815_v40  ;;  %v21343_v57 = vrot.slane %v21309_v3, 4  ;;  %v13814_v23 = vcombine.low %v1971_v12, %v2048_v11  ;;  %v13812_v56 = vcombine.low %v1969_v31, %v2046_v49 }
 0x1df   : > { %3053 = vmatprep.subr.bf16.mxu0 %v13813_v27  ;;  %4773 = vrot.lane.b32.xlu1 %v16240_v47, %s14591_s16  ;;  %v1815_v29 = vsel %vm302_vm6, %v21297_v7, %v1814_v18  ;;  %v13799_v63 = vcombine.high %v1817_v46, %v1894_v43  ;;  %v1740_v11 = vsel %vm224_vm8, %v21340_v25, %v1739_v13  ;;  %v14570_v25 = vld [vmem:[%s14628_s14 + $0x34] sm:$0xff]  ;;  %v3441_v44 = vrot.slane %v16338_v2, 4 }
 0x1e0   : > { %v1737_v37 = vsel %vm222_vm0, %v21343_v57, %v1723_v54  ;;  %4771 = vrot.lane.b32.xlu0 %v16186_v36, %s14591_s16  ;;  %v13797_v41 = vcombine.high %v1815_v29, %v1892_v24  ;;  %v13798_v7 = vcombine.low %v1817_v46, %v1894_v43  ;;  %v13796_v51 = vcombine.low %v1815_v29, %v1892_v24  ;;  %v4828_v43 = vld [vmem:[%s14628_s14 + $0x4c] sm:$0xf] }
 0x1e1   : > { %v16358_v1 = vpop.permute.xlu1 %3430  ;;  %v16360_v16 = vpop.permute.xlu0 %3428  ;;  %3095 = vmatpush1.bf16.msra.mxu1 %v13814_v23  ;;  %v1738_v9 = vsel %vm224_vm8, %v21309_v3, %v1737_v37  ;;  %v13783_v49 = vcombine.high %v16240_v47, %v1740_v11  ;;  %v13782_v3 = vcombine.low %v16240_v47, %v1740_v11  ;;  %v4905_v29 = vld [vmem:[%s14628_s14 + $0x4c] sm:$0xf] }
 0x1e2   : > { %3054 = vmatpush1.bf16.msra.mxu0 %v13812_v56  ;;  %3096 = vmatprep.subr.bf16.mxu1 %v13799_v63  ;;  %v13781_v4 = vcombine.high %v14570_v25, %v1738_v9  ;;  %v13780_v12 = vcombine.low %v14570_v25, %v1738_v9 }
 0x1e3   : > { %3055 = vmatprep.subr.bf16.mxu0 %v13797_v41  ;;  %4777 = vrot.lane.b32.xlu1 %v4751_v17, %s14591_s16 }
 0x1e4   : > { %4775 = vrot.lane.b32.xlu0 %v16221_v62, %s14591_s16 }
 0x1e5   : > { %v16370_v54 = vpop.permute.xlu1 %3434  ;;  %v16372_v58 = vpop.permute.xlu0 %3432  ;;  %3097 = vmatpush1.bf16.msra.mxu1 %v13798_v7 }
 0x1e6   : > { %21344 = vst [vmem:[#allocation34_spill] sm:$0xff] %v16370_v54  ;;  %21345 = vst [vmem:[#allocation28_spill] sm:$0xff] %v16372_v58  ;;  %3056 = vmatpush1.bf16.msra.mxu0 %v13796_v51  ;;  %3098 = vmatprep.subr.bf16.mxu1 %v13783_v49 }
 0x1e7   : > { %3057 = vmatprep.subr.bf16.mxu0 %v13781_v4  ;;  %4840 = vrot.lane.b32.xlu1 %v16111_v26, %s14592_s17 }
 0x1e8   : > { %4838 = vrot.lane.b32.xlu0 %v15904_v42, %s14592_s17 }
 0x1e9   : > { %v16380_v35 = vpop.permute.xlu1 %3438  ;;  %v16382_v31 = vpop.permute.xlu0 %3436  ;;  %3099 = vmatpush1.bf16.msra.mxu1 %v13782_v3  ;;  %v4982_v3 = vld [vmem:[%s14628_s14 + $0x4c] sm:$0xf] }
 0x1ea   : > { %21346 = vst [vmem:[#allocation22_spill] sm:$0xff] %v16380_v35  ;;  %21347 = vst [vmem:[#allocation17_spill] sm:$0xff] %v16382_v31  ;;  %3058 = vmatpush1.bf16.msra.mxu0 %v13780_v12 }
 0x1eb   : > { %4844 = vrot.lane.b32.xlu1 %v16150_v22, %s14592_s17 }
 0x1ec   : > { %4842 = vrot.lane.b32.xlu0 %v16062_v20, %s14592_s17  ;;  %13863 = vmatmul.mubr.msk.bf16.vlgmr.msra.gmra.mxu1 %vm1251_vm9, %v15964_v32 }
 0x1ed   : > { %v16390_v53 = vpop.permute.xlu1 %3501  ;;  %v16392_v40 = vpop.permute.xlu0 %3499  ;;  %13861 = vmatmul.mubr.msk.bf16.vlgmr.msra.gmra.mxu0 %vm1251_vm9, %v15964_v32  ;;  %4363 = vmatprep.mubr.bf16.mxu1 %v21288_v55 }
 0x1ee   : > { %4322 = vmatprep.mubr.bf16.mxu0 %v21288_v55 }
 0x1ef   : > { %4848 = vrot.lane.b32.xlu1 %v16186_v36, %s14592_s17 }
 0x1f0   : > { %4846 = vrot.lane.b32.xlu0 %v16214_v0, %s14592_s17 }
 0x1f1   : > { %v16402_v6 = vpop.permute.xlu1 %3505  ;;  %v16404_v18 = vpop.permute.xlu0 %3503 }
 0x1f2   : > { %21348 = vst [vmem:[#allocation9_spill] sm:$0xff] %v16404_v18  ;;  %v21364_v61 = vrot.slane %v16404_v18, 4  ;;  %v3440_v18 = vrot.slane %v16306_v34, 4 }
 0x1f3   : > { %4852 = vrot.lane.b32.xlu1 %v16221_v62, %s14592_s17 }
 0x1f4   : > { %4850 = vrot.lane.b32.xlu0 %v16240_v47, %s14592_s17 }
 0x1f5   : > { %v16410_v32 = vpop.permute.xlu1 %3509  ;;  %v16412_v27 = vpop.permute.xlu0 %3507 }
 0x1f6   : > { %21349 = vst [vmem:[#allocation20_spill] sm:$0xff] %v16410_v32 }
 0x1f7   : > { %4915 = vrot.lane.b32.xlu1 %v15904_v42, %s14593_s18 }
 0x1f8   : > { %4854 = vrot.lane.b32.xlu0 %v4828_v43, %s14592_s17 }
 0x1f9   : > { %v16418_v13 = vpop.permute.xlu1 %3513  ;;  %v16420_v24 = vpop.permute.xlu0 %3511 }
 0x1fa   : > { %21350 = vst [vmem:[#allocation13_spill] sm:$0xff] %v16418_v13  ;;  %21351 = vst [vmem:[#allocation27_spill] sm:$0xff] %v16420_v24  ;;  %v5059_v24 = vld [vmem:[%s14628_s14 + $0x4c] sm:$0xf] }
 0x1fb   : > { %4919 = vrot.lane.b32.xlu1 %v16062_v20, %s14593_s18 }
 0x1fc   : > { %4917 = vrot.lane.b32.xlu0 %v16111_v26, %s14593_s18 }
 0x1fd   : > { %v16426_v57 = vpop.permute.xlu1 %3576  ;;  %v16428_v37 = vpop.permute.xlu0 %3515 }
 0x1fe   : > { %21352 = vst [vmem:[#allocation29_spill] sm:$0xff] %v16428_v37 }
 0x1ff   : > { %4923 = vrot.lane.b32.xlu1 %v16214_v0, %s14593_s18 }
 0x200   : > { %4921 = vrot.lane.b32.xlu0 %v16150_v22, %s14593_s18 }
 0x201   : > { %v16434_v46 = vpop.permute.xlu1 %3580  ;;  %v16436_v23 = vpop.permute.xlu0 %3578 }
 0x202   : > { %v3595_v13 = vrot.slane %v16436_v23, 4 }
 0x203   : > { %4927 = vrot.lane.b32.xlu1 %v16240_v47, %s14593_s18 }
 0x204   : > { %4925 = vrot.lane.b32.xlu0 %v16186_v36, %s14593_s18 }
 0x205   : > { %v16443_v56 = vpop.permute.xlu1 %3584  ;;  %v16445_v63 = vpop.permute.xlu0 %3582 }
 0x207   : > { %4931 = vrot.lane.b32.xlu1 %v4905_v29, %s14593_s18 }
 0x208   : > { %4929 = vrot.lane.b32.xlu0 %v16221_v62, %s14593_s18 }
 0x209   : > { %v16450_v17 = vpop.permute.xlu1 %3588  ;;  %v16452_v41 = vpop.permute.xlu0 %3586 }
 0x20a   : > { %21353 = vst [vmem:[#allocation32_spill] sm:$0xff] %v16450_v17  ;;  %21354 = vst [vmem:[#allocation36_spill] sm:$0xff] %v16452_v41  ;;  %v21362_v41 = vrot.slane %v16434_v46, 4 }
 0x20b   : > { %4994 = vrot.lane.b32.xlu1 %v16111_v26, %s14594_s19 }
 0x20c   : > { %4992 = vrot.lane.b32.xlu0 %v15904_v42, %s14594_s19  ;;  %v3605_v17 = vsel %vm222_vm0, %v3595_v13, %v21362_v41 }
 0x20d   : > { %v16458_v11 = vpop.permute.xlu1 %3592  ;;  %v16460_v9 = vpop.permute.xlu0 %3590 }
 0x20e   : > { %21355 = vst [vmem:[#allocation19_spill] sm:$0xff] %v16458_v11  ;;  %21356 = vst [vmem:[#allocation35_spill] sm:$0xff] %v16460_v9  ;;  %v3518_v9 = vrot.slane %v16390_v53, 4 }
 0x20f   : > { %4998 = vrot.lane.b32.xlu1 %v16150_v22, %s14594_s19 }
 0x210   : > { %4996 = vrot.lane.b32.xlu0 %v16062_v20, %s14594_s19 }
 0x211   : > { %v3656_v7 = vpop.permute.xlu1 %3655  ;;  %v3654_v51 = vpop.permute.xlu0 %3653 }
 0x212   : > { %v3672_v35 = vrot.slane %v3656_v7, 4  ;;  %v3671_v37 = vrot.slane %v3654_v51, 4 }
 0x213   : > { %5002 = vrot.lane.b32.xlu1 %v16186_v36, %s14594_s19 }
 0x214   : > { %5000 = vrot.lane.b32.xlu0 %v16214_v0, %s14594_s19  ;;  %v3680_v45 = vsel %vm222_vm0, %v3671_v37, %v3672_v35 }
 0x215   : > { %v16470_v49 = vpop.permute.xlu1 %3659  ;;  %v16472_v25 = vpop.permute.xlu0 %3657  ;;  %v3681_v52 = vsel %vm692_vm2, %v3654_v51, %v3680_v45  ;;  %v16568_v51 = vld [vmem:[%s14628_s14 + $0xc] sm:$0xff] }
 0x216   : > { %v21361_v31 = vrot.slane %v16472_v25, 4 }
 0x217   : > { %5006 = vrot.lane.b32.xlu1 %v16221_v62, %s14594_s19 }
 0x218   : > { %5004 = vrot.lane.b32.xlu0 %v16240_v47, %s14594_s19  ;;  %v3682_v54 = vsel %vm222_vm0, %v3672_v35, %v21361_v31  ;;  %v3528_v35 = vsel %vm222_vm0, %v3518_v9, %v21364_v61 }
 0x219   : > { %v16478_v4 = vpop.permute.xlu1 %3663 }
 0x21a   : > { %21357 = vst [vmem:[#allocation4_spill] sm:$0xff] %v16478_v4  ;;  %v16481_v12 = vpop.permute.xlu0 %3661 }
 0x21b   : > { %5069 = vrot.lane.b32.xlu1 %v15904_v42, %s14595_s20  ;;  %v3363_v42 = vrot.slane %v16194_v19, 4 }
 0x21c   : > { %5008 = vrot.lane.b32.xlu0 %v4982_v3, %s14594_s19  ;;  %v3517_v3 = vrot.slane %v16392_v40, 4 }
 0x21d   : > { %v16486_v43 = vpop.permute.xlu1 %3667 }
 0x21e   : > { %21358 = vst [vmem:[#allocation30_spill] sm:$0xff] %v16486_v43  ;;  %v16488_v29 = vpop.permute.xlu0 %3665  ;;  %v3526_v61 = vsel %vm222_vm0, %v3517_v3, %v3518_v9 }
 0x21f   : > { %21359 = vst [vmem:[#allocation10_spill] sm:$0xff] %v16488_v29  ;;  %5073 = vrot.lane.b32.xlu1 %v16062_v20, %s14595_s20 }
 0x220   : > { %5071 = vrot.lane.b32.xlu0 %v16111_v26, %s14595_s20 }
 0x221   : > { %v3731_v33 = vpop.permute.xlu1 %3730 }
 0x222   : > { %v16494_v8 = vpop.permute.xlu0 %3669  ;;  %v3748_v32 = vrot.slane %v3731_v33, 4 }
 0x223   : > { %21360 = vst [vmem:[#allocation26_spill] sm:$0xff] %v16494_v8  ;;  %5077 = vrot.lane.b32.xlu1 %v16214_v0, %s14595_s20  ;;  %v3594_v8 = vrot.slane %v16426_v57, 4 }
 0x224   : > { %5075 = vrot.lane.b32.xlu0 %v16150_v22, %s14595_s20 }
 0x225   : > { %v16508_v43 = vpop.permute.xlu1 %3734  ;;  %v3603_v37 = vsel %vm222_vm0, %v3594_v8, %v3595_v13  ;;  %v3606_v8 = vsel %vm614_vm1, %v16436_v23, %v3605_v17  ;;  %v3449_v23 = vsel %vm222_vm0, %v3440_v18, %v3441_v44  ;;  %v21367_v18 = vrot.slane %v16192_v50, 4 }
 0x226   : > { %v3733_v58 = vpop.permute.xlu0 %3732  ;;  %v21363_v31 = vrot.slane %v16508_v43, 4 }
 0x227   : > { %v3749_v11 = vrot.slane %v3733_v58, 4  ;;  %5081 = vrot.lane.b32.xlu1 %v16240_v47, %s14595_s20 }
 0x228   : > { %5079 = vrot.lane.b32.xlu0 %v16186_v36, %s14595_s20 }
 0x229   : > { %v3757_v4 = vsel %vm222_vm0, %v3748_v32, %v3749_v11  ;;  %v3759_v29 = vsel %vm222_vm0, %v3749_v11, %v21363_v31  ;;  %v16534_v55 = vpop.permute.xlu1 %3738  ;;  %v3683_v32 = vsel %vm692_vm2, %v3656_v7, %v3682_v54  ;;  %v21365_v54 = vrot.slane %v16336_v10, 4 }
 0x22a   : > { %v3760_v48 = vsel %vm770_vm3, %v3733_v58, %v3759_v29  ;;  %v16541_v38 = vpop.permute.xlu0 %3736  ;;  %v3758_v41 = vsel %vm770_vm3, %v3731_v33, %v3757_v4  ;;  %v3209_v4 = vrot.slane %v15901_v21, 4  ;;  %v3211_v29 = vrot.slane %v15930_v15, 4 }
 0x22b   : > { %v13931_v28 = vcombine.low %v3760_v48, %v3760_v48  ;;  %v13932_v11 = vcombine.high %v3760_v48, %v3760_v48  ;;  %5085 = vrot.lane.b32.xlu1 %v5059_v24, %s14595_s20  ;;  %v13930_v31 = vcombine.high %v3758_v41, %v3758_v41  ;;  %v13929_v33 = vcombine.low %v3758_v41, %v3758_v41 }
 0x22c   : > { %5083 = vrot.lane.b32.xlu0 %v16221_v62, %s14595_s20  ;;  %v3451_v45 = vsel %vm222_vm0, %v3441_v44, %v21365_v54  ;;  %v3604_v48 = vsel %vm614_vm1, %v16426_v57, %v3603_v37  ;;  %v13916_v24 = vcombine.high %v3606_v8, %v3683_v32  ;;  %v3529_v57 = vsel %vm536_vm4, %v16390_v53, %v3528_v35 }
 0x22d   : > { %13945 = vmatprep.subr.msk.bf16.mxu0 %vm222_vm0, %v13930_v31  ;;  %13947 = vmatprep.subr.msk.bf16.mxu1 %vm222_vm0, %v13932_v11  ;;  %v16560_v58 = vpop.permute.xlu1 %3742  ;;  %v4249_v13 = vsel %vm222_vm0, %v13931_v28, 0  ;;  %v4243_v9 = vsel %vm222_vm0, %v13929_v33, 0  ;;  %v13914_v7 = vcombine.high %v3604_v48, %v3681_v52  ;;  %v3527_v28 = vsel %vm536_vm4, %v16392_v40, %v3526_v61 }
 0x22e   : > { %v16564_v17 = vpop.permute.xlu0 %3740  ;;  %4338 = vmatpush1.bf16.msra.mxu1 %v4249_v13  ;;  %4297 = vmatpush1.bf16.msra.mxu0 %v4243_v9  ;;  %v21366_v44 = vrot.slane %v16225_v60, 4  ;;  %v3286_v37 = vrot.slane %v16031_v14, 4  ;;  %v21368_v41 = vmov %v21367_v18  ;;  %v3452_v35 = vsel %vm458_vm7, %v16338_v2, %v3451_v45 }
 0x22f   : > { %4339 = vmatprep.subr.bf16.mxu1 %v13916_v24  ;;  %v3372_v53 = vsel %vm222_vm0, %v3363_v42, %v21368_v41  ;;  %4298 = vmatprep.subr.bf16.mxu0 %v13914_v7  ;;  %v13915_v11 = vcombine.low %v3606_v8, %v3683_v32  ;;  %v21369_v40 = vrot.slane %v16056_v5, 4  ;;  %v21370_v31 = vrot.slane %v16058_v59, 4 }
 0x230   : > { %v3374_v3 = vsel %vm222_vm0, %v21367_v18, %v21366_v44  ;;  %5148 = vrot.lane.b32.xlu1 %v16111_v26, %s14596_s21  ;;  %v3450_v33 = vsel %vm458_vm7, %v16306_v34, %v3449_v23  ;;  %v13913_v54 = vcombine.low %v3604_v48, %v3681_v52  ;;  %5146 = vrot.lane.b32.xlu0 %v16568_v51, %s14596_s21  ;;  %v3752_v34 = vrot.slane %v16534_v55, 4 }
 0x231   : > { %v3297_v61 = vsel %vm222_vm0, %v21370_v31, %v21369_v40  ;;  %v16598_v42 = vpop.permute.xlu1 %3746  ;;  %v13900_v2 = vcombine.high %v3452_v35, %v3529_v57  ;;  %v21371_v32 = vmov %v21370_v31  ;;  %v13898_v13 = vcombine.high %v3450_v33, %v3527_v28 }
 0x232   : > { %v3295_v8 = vsel %vm222_vm0, %v3286_v37, %v21371_v32  ;;  %v16603_v45 = vpop.permute.xlu0 %3744  ;;  %4340 = vmatpush1.bf16.msra.mxu1 %v13915_v11  ;;  %v3375_v24 = vsel %vm380_vm5, %v16192_v50, %v3374_v3  ;;  %v3373_v52 = vsel %vm380_vm5, %v16194_v19, %v3372_v53  ;;  %v3751_v48 = vrot.slane %v16541_v38, 4  ;;  %4299 = vmatpush1.bf16.msra.mxu0 %v13913_v54  ;;  %v14571_v54 = vld [vmem:[%s14628_s14 + $0x8] sm:$0xff] }
 0x233   : > { %4341 = vmatprep.subr.bf16.mxu1 %v13900_v2  ;;  %v21372_v23 = vrot.slane %v15899_v30, 4  ;;  %v3298_v19 = vsel %vm302_vm6, %v16058_v59, %v3297_v61  ;;  %4300 = vmatprep.subr.bf16.mxu0 %v13898_v13  ;;  %v13899_v44 = vcombine.low %v3452_v35, %v3529_v57  ;;  %v3296_v18 = vsel %vm302_vm6, %v16031_v14, %v3295_v8  ;;  %v16632_v59 = vld [vmem:[%s14628_s14 + $0x10] sm:$0xff] }
 0x234   : > { %5152 = vrot.lane.b32.xlu1 %v16150_v22, %s14596_s21  ;;  %v13897_v3 = vcombine.low %v3450_v33, %v3527_v28  ;;  %5150 = vrot.lane.b32.xlu0 %v16062_v20, %s14596_s21  ;;  %v13884_v41 = vcombine.high %v3298_v19, %v3375_v24  ;;  %v3675_v14 = vrot.slane %v16481_v12, 4  ;;  %v3763_v20 = vsel %vm222_vm0, %v3751_v48, %v3752_v34 }
 0x235   : > { %v3220_v9 = vsel %vm222_vm0, %v21372_v23, %v3211_v29  ;;  %v21373_v7 = vmov %v21372_v23  ;;  %v16627_v37 = vpop.permute.xlu1 %4686  ;;  %v3674_v28 = vrot.slane %v16470_v49, 4  ;;  %v21374_v35 = vrot.slane %v16508_v43, 4 }
 0x236   : > { %v3218_v50 = vsel %vm222_vm0, %v3209_v4, %v21373_v7  ;;  %v16629_v53 = vpop.permute.xlu0 %4684  ;;  %4342 = vmatpush1.bf16.msra.mxu1 %v13899_v44  ;;  %v13882_v4 = vcombine.high %v3296_v18, %v3373_v52  ;;  %v3221_v57 = vsel %vm224_vm8, %v15899_v30, %v3220_v9  ;;  %4301 = vmatpush1.bf16.msra.mxu0 %v13897_v3  ;;  %v3598_v40 = vrot.slane %v16443_v56, 4 }
 0x237   : > { %v3219_v22 = vsel %vm224_vm8, %v15901_v21, %v3218_v50  ;;  %4343 = vmatprep.subr.bf16.mxu1 %v13884_v41  ;;  %v3761_v11 = vsel %vm222_vm0, %v21374_v35, %v3751_v48  ;;  %v13883_v30 = vcombine.low %v3298_v19, %v3375_v24  ;;  %v13881_v21 = vcombine.low %v3296_v18, %v3373_v52  ;;  %v5207_v41 = vld [vmem:[%s14628_s14 + $0x1c] sm:$0xff] }
 0x238   : > { %4302 = vmatprep.subr.bf16.mxu0 %v13882_v4  ;;  %5156 = vrot.lane.b32.xlu1 %v16186_v36, %s14596_s21  ;;  %v3597_v31 = vrot.slane %v16445_v63, 4  ;;  %v13868_v33 = vcombine.high %v16632_v59, %v3221_v57  ;;  %v13865_v2 = vcombine.low %v14571_v54, %v3219_v22  ;;  %v3764_v32 = vsel %vm770_vm3, %v16541_v38, %v3763_v20  ;;  %v16692_v20 = vld [vmem:[%s20925_s1 + $0x8] sm:$0xf] }
 0x239   : > { %5154 = vrot.lane.b32.xlu0 %v16214_v0, %s14596_s21  ;;  %v16652_v61 = vpop.permute.xlu1 %4690  ;;  %v13866_v36 = vcombine.high %v14571_v54, %v3219_v22  ;;  %v3521_v13 = vrot.slane %v16412_v27, 4  ;;  %v13867_v24 = vcombine.low %v16632_v59, %v3221_v57  ;;  %v3762_v52 = vsel %vm770_vm3, %v16508_v43, %v3761_v11  ;;  %v21379_v11 = vld [vmem:[#allocation14_spill] sm:$0xff] }
 0x23a   : > { %v16658_v8 = vpop.permute.xlu0 %4688  ;;  %4344 = vmatpush1.bf16.msra.mxu1 %v13883_v30  ;;  %4303 = vmatpush1.bf16.msra.mxu0 %v13881_v21  ;;  %v3686_v48 = vsel %vm222_vm0, %v3674_v28, %v3675_v14  ;;  %v21040_v38 = vrot.slane %v16086_v39, 4  ;;  %v21046_v23 = vrot.slane %v16358_v1, 4  ;;  %v3520_v9 = vrot.slane %v16402_v6, 4  ;;  %v21380_v21 = vld [vmem:[#allocation5_spill] sm:$0xff] }
 0x23b   : > { %4345 = vmatprep.subr.bf16.mxu1 %v13868_v33  ;;  %v21375_v7 = vrot.slane %v16472_v25, 4  ;;  %4304 = vmatprep.subr.bf16.mxu0 %v13866_v36  ;;  %v3443_v43 = vrot.slane %v16360_v16, 4  ;;  %v3609_v19 = vsel %vm222_vm0, %v3597_v31, %v3598_v40  ;;  %v13935_v44 = vcombine.low %v3764_v32, %v3764_v32 }
 0x23c   : > { %5223 = vrot.lane.b32.xlu1 %v16568_v51, %s14597_s22  ;;  %v13936_v18 = vcombine.high %v3764_v32, %v3764_v32  ;;  %v21377_v4 = vrot.slane %v16434_v46, 4  ;;  %v13934_v51 = vcombine.high %v3762_v52, %v3762_v52  ;;  %v3687_v35 = vsel %vm692_vm2, %v16470_v49, %v3686_v48  ;;  %v21381_v32 = vld [vmem:[#allocation25_spill] sm:$0xff] }
 0x23d   : > { %v3684_v50 = vsel %vm222_vm0, %v21375_v7, %v3674_v28  ;;  %5158 = vrot.lane.b32.xlu0 %v16240_v47, %s14596_s21  ;;  %v16681_v3 = vpop.permute.xlu1 %4694  ;;  %v13933_v28 = vcombine.low %v3762_v52, %v3762_v52  ;;  %v3289_v30 = vrot.slane %v21379_v11, 4  ;;  %v21041_v33 = vrot.slane %v21380_v21, 4 }
 0x23e   : > { %21376 = vst [vmem:[#allocation21_spill] sm:$0xff] %v16681_v3  ;;  %v3607_v57 = vsel %vm222_vm0, %v21377_v4, %v3597_v31  ;;  %v16687_v22 = vpop.permute.xlu0 %4692  ;;  %4346 = vmatpush1.bf16.msra.mxu1 %v13867_v24  ;;  %v3685_v31 = vsel %vm692_vm2, %v16472_v25, %v3684_v50  ;;  %4305 = vmatpush1.bf16.msra.mxu0 %v13865_v2  ;;  %v3366_v36 = vrot.slane %v21381_v32, 4  ;;  %v21382_v24 = vld [vmem:[#allocation9_spill] sm:$0xff]  ;;  %v5136_v50 = vld [vmem:[%s14628_s14 + $0x4c] sm:$0xf]  ;;  %v21428_v3 = vld [vmem:[#allocation22_spill] sm:$0xff] }
 0x23f   : > { %21378 = vst [vmem:[#allocation15_spill] sm:$0xff] %v16687_v22  ;;  %13951 = vmatprep.subr.msk.bf16.mxu1 %vm222_vm0, %v13936_v18  ;;  %v3532_v54 = vsel %vm222_vm0, %v3520_v9, %v3521_v13  ;;  %v21383_v52 = vrot.slane %v21382_v24, 4  ;;  %v3610_v48 = vsel %vm614_vm1, %v16445_v63, %v3609_v19  ;;  %13949 = vmatprep.subr.msk.bf16.mxu0 %vm222_vm0, %v13934_v51  ;;  %v4261_v63 = vsel %vm222_vm0, %v13935_v44, 0 }
 0x240   : > { %5227 = vrot.lane.b32.xlu1 %v5207_v41, %s14597_s22  ;;  %v3455_v25 = vsel %vm222_vm0, %v3443_v43, %v21046_v23  ;;  %v3608_v2 = vsel %vm614_vm1, %v16434_v46, %v3607_v57  ;;  %v21385_v19 = vrot.slane %v16336_v10, 4  ;;  %v3533_v4 = vsel %vm536_vm4, %v16402_v6, %v3532_v54  ;;  %v21387_v57 = vld [vmem:[#allocation33_spill] sm:$0xff] }
 0x241   : > { %v3530_v49 = vsel %vm222_vm0, %v21383_v52, %v3520_v9  ;;  %5225 = vrot.lane.b32.xlu0 %v16111_v26, %s14597_s22  ;;  %v16719_v7 = vpop.permute.xlu1 %4698  ;;  %13948 = vmatmul.mubr.msk.bf16.vlgmr.msra.gmra.mxu1 %vm1251_vm9, %v16692_v20  ;;  %v13920_v9 = vcombine.high %v3610_v48, %v3687_v35  ;;  %v4255_v26 = vsel %vm222_vm0, %v13933_v28, 0  ;;  %v13918_v46 = vcombine.high %v3608_v2, %v3685_v31  ;;  %v21388_v52 = vld [vmem:[#allocation6_spill] sm:$0xff] }
 0x242   : > { %21384 = vst [vmem:[#allocation14_spill] sm:$0xff] %v16719_v7  ;;  %v3453_v18 = vsel %vm222_vm0, %v21385_v19, %v3443_v43  ;;  %v16728_v41 = vpop.permute.xlu0 %4696  ;;  %13946 = vmatmul.mubr.msk.bf16.vlgmr.msra.gmra.mxu0 %vm1251_vm9, %v16692_v20  ;;  %4420 = vmatpush1.bf16.msra.mxu1 %v4261_v63  ;;  %v21045_v44 = vrot.slane %v21387_v57, 4  ;;  %v3301_v51 = vsel %vm222_vm0, %v3289_v30, %v21040_v38  ;;  %v3212_v63 = vrot.slane %v21388_v52, 4 }
 0x243   : > { %21386 = vst [vmem:[#allocation5_spill] sm:$0xff] %v16728_v41  ;;  %v3531_v43 = vsel %vm536_vm4, %v21382_v24, %v3530_v49  ;;  %4379 = vmatpush1.bf16.msra.mxu0 %v4255_v26  ;;  %4421 = vmatprep.subr.bf16.mxu1 %v13920_v9  ;;  %v3378_v28 = vsel %vm222_vm0, %v3366_v36, %v21041_v33  ;;  %v21389_v19 = vrot.slane %v16225_v60, 4  ;;  %v21390_v33 = vmov 0  }
 0x244   : > { %v3456_v54 = vsel %vm458_vm7, %v16360_v16, %v3455_v25  ;;  %4380 = vmatprep.subr.bf16.mxu0 %v13918_v46  ;;  %v13919_v38 = vcombine.low %v3610_v48, %v3687_v35  ;;  %5162 = vrot.lane.b32.xlu1 %v5136_v50, %s14596_s21  ;;  %v3454_v24 = vsel %vm458_vm7, %v16336_v10, %v3453_v18  ;;  %v5208_v48 = vld [vmem:[%s14628_s14 + $0x24] sm:$0xff] }
 0x245   : > { %v3376_v6 = vsel %vm222_vm0, %v21389_v19, %v3366_v36  ;;  %v13917_v49 = vcombine.low %v3608_v2, %v3685_v31  ;;  %5160 = vrot.lane.b32.xlu0 %v16221_v62, %s14596_s21  ;;  %v16755_v9 = vpop.permute.xlu1 %4761  ;;  %v13904_v26 = vcombine.high %v3456_v54, %v3533_v4  ;;  %4404 = vmatprep.mubr.bf16.mxu0 %v21390_v33  ;;  %v21391_v36 = vrot.slane %v16056_v5, 4 }
 0x246   : > { %v16761_v25 = vpop.permute.xlu0 %4700  ;;  %4422 = vmatpush1.bf16.msra.mxu1 %v13919_v38  ;;  %v13902_v35 = vcombine.high %v3454_v24, %v3531_v43  ;;  %v3379_v10 = vsel %vm380_vm5, %v21381_v32, %v3378_v28  ;;  %4445 = vmatprep.mubr.bf16.mxu1 %v21390_v33  ;;  %v3377_v62 = vsel %vm380_vm5, %v16225_v60, %v3376_v6  ;;  %v21043_v31 = vrot.slane %v16560_v58, 4  ;;  %v21394_v6 = vld [vmem:[#allocation4_spill] sm:$0xff] }
 0x247   : > { %v3299_v16 = vsel %vm222_vm0, %v21391_v36, %v3289_v30  ;;  %21392 = vst [vmem:[#allocation25_spill] sm:$0xff] %v16761_v25  ;;  %v3753_v2 = vrot.slane %v16564_v17, 4  ;;  %4381 = vmatpush1.bf16.msra.mxu0 %v13917_v49  ;;  %4423 = vmatprep.subr.bf16.mxu1 %v13904_v26  ;;  %v3224_v38 = vsel %vm222_vm0, %v3212_v63, %v21045_v44  ;;  %v21395_v49 = vld [vmem:[#allocation32_spill] sm:$0xff]  ;;  %v21404_v44 = vld [vmem:[#allocation18_spill] sm:$0xff] }
 0x248   : > { %v3222_v30 = vsel %vm222_vm0, %v3211_v29, %v3212_v63  ;;  %v3302_v32 = vsel %vm302_vm6, %v21379_v11, %v3301_v51  ;;  %4382 = vmatprep.subr.bf16.mxu0 %v13902_v35  ;;  %v13903_v60 = vcombine.low %v3456_v54, %v3533_v4  ;;  %5231 = vrot.lane.b32.xlu1 %v16214_v0, %s14597_s22  ;;  %v5210_v63 = vld [vmem:[%s14628_s14 + $0x34] sm:$0xff]  ;;  %v16790_v11 = vld [vmem:[%s14628_s14 + $0x20] sm:$0xff]  ;;  %v3676_v54 = vrot.slane %v21394_v6, 4  ;;  %v21396_v36 = vld [vmem:[#allocation36_spill] sm:$0xff] }
 0x249   : > { %v3300_v50 = vsel %vm302_vm6, %v16056_v5, %v3299_v16  ;;  %v13901_v18 = vcombine.low %v3454_v24, %v3531_v43  ;;  %5229 = vrot.lane.b32.xlu0 %v5208_v48, %s14597_s22  ;;  %v16784_v46 = vpop.permute.xlu1 %4765  ;;  %v13888_v28 = vcombine.high %v3302_v32, %v3379_v10  ;;  %v3225_v4 = vsel %vm224_vm8, %v21388_v52, %v3224_v38  ;;  %v21393_v5 = vld [vmem:[#allocation10_spill] sm:$0xff]  ;;  %v5213_v38 = vld [vmem:[%s14628_s14 + $0x4c] sm:$0xf] }
 0x24a   : > { %v16786_v19 = vpop.permute.xlu0 %4763  ;;  %4424 = vmatpush1.bf16.msra.mxu1 %v13903_v60  ;;  %v13886_v29 = vcombine.high %v3300_v50, %v3377_v62  ;;  %v3223_v0 = vsel %vm224_vm8, %v15930_v15, %v3222_v30  ;;  %v21042_v51 = vrot.slane %v21393_v5, 4  ;;  %v3767_v43 = vsel %vm222_vm0, %v3753_v2, %v21043_v31  ;;  %v14572_v30 = vld [vmem:[%s14628_s14 + $0x18] sm:$0xff] }
 0x24b   : > { %4383 = vmatpush1.bf16.msra.mxu0 %v13901_v18  ;;  %4425 = vmatprep.subr.bf16.mxu1 %v13888_v28  ;;  %v3765_v24 = vsel %vm222_vm0, %v3752_v34, %v3753_v2  ;;  %v13887_v52 = vcombine.low %v3302_v32, %v3379_v10  ;;  %v13885_v15 = vcombine.low %v3300_v50, %v3377_v62  ;;  %v21044_v26 = vrot.slane %v21395_v49, 4  ;;  %v5212_v62 = vld [vmem:[%s14628_s14 + $0x44] sm:$0xff]  ;;  %v16841_v31 = vld [vmem:[%s14628_s14 + $0x18] sm:$0xff] }
 0x24c   : > { %4384 = vmatprep.subr.bf16.mxu0 %v13886_v29  ;;  %5235 = vrot.lane.b32.xlu1 %v16240_v47, %s14597_s22  ;;  %v3599_v16 = vrot.slane %v21396_v36, 4  ;;  %v13872_v48 = vcombine.high %v16790_v11, %v3225_v4  ;;  %v13869_v34 = vcombine.low %v14572_v30, %v3223_v0  ;;  %v3768_v10 = vsel %vm770_vm3, %v16564_v17, %v3767_v43  ;;  %v21397_v32 = vld [vmem:[#allocation27_spill] sm:$0xff]  ;;  %v21398_v17 = vld [vmem:[#allocation38_spill] sm:$0xff] }
 0x24d   : > { %5233 = vrot.lane.b32.xlu0 %v5210_v63, %s14597_s22  ;;  %v16809_v35 = vpop.permute.xlu1 %4769  ;;  %v13870_v47 = vcombine.high %v14572_v30, %v3223_v0  ;;  %v21048_v60 = vrot.slane %v21397_v32, 4  ;;  %v13871_v50 = vcombine.low %v16790_v11, %v3225_v4  ;;  %v3766_v18 = vsel %vm770_vm3, %v16534_v55, %v3765_v24  ;;  %v21399_v63 = vld [vmem:[#allocation34_spill] sm:$0xff]  ;;  %v21400_v0 = vld [vmem:[#allocation20_spill] sm:$0xff]  ;;  %v21405_v29 = vld [vmem:[#allocation7_spill] sm:$0xff] }
 0x24e   : > { %v16816_v2 = vpop.permute.xlu0 %4767  ;;  %4426 = vmatpush1.bf16.msra.mxu1 %v13887_v52  ;;  %v3690_v28 = vsel %vm222_vm0, %v3676_v54, %v21042_v51  ;;  %v21047_v43 = vrot.slane %v21399_v63, 4  ;;  %v3522_v52 = vrot.slane %v21400_v0, 4  ;;  %v21401_v4 = vld [vmem:[#allocation28_spill] sm:$0xff]  ;;  %v3613_v55 = vsel %vm222_vm0, %v3599_v16, %v21044_v26 }
 0x24f   : > { %4385 = vmatpush1.bf16.msra.mxu0 %v13885_v15  ;;  %4427 = vmatprep.subr.bf16.mxu1 %v13872_v48  ;;  %v3688_v15 = vsel %vm222_vm0, %v3675_v14, %v3676_v54  ;;  %v3445_v48 = vrot.slane %v21401_v4, 4  ;;  %v13939_v24 = vcombine.low %v3768_v10, %v3768_v10  ;;  %v13940_v30 = vcombine.high %v3768_v10, %v3768_v10 }
 0x250   : > { %4386 = vmatprep.subr.bf16.mxu0 %v13870_v47  ;;  %5239 = vrot.lane.b32.xlu1 %v5213_v38, %s14597_s22  ;;  %v3611_v14 = vsel %vm222_vm0, %v3598_v40, %v3599_v16  ;;  %v13938_v38 = vcombine.high %v3766_v18, %v3766_v18  ;;  %v13937_v47 = vcombine.low %v3766_v18, %v3766_v18  ;;  %v3291_v10 = vrot.slane %v21404_v44, 4  ;;  %v21406_v16 = vld [vmem:[#allocation37_spill] sm:$0xff] }
 0x251   : > { %5237 = vrot.lane.b32.xlu0 %v5212_v62, %s14597_s22  ;;  %v16838_v51 = vpop.permute.xlu1 %4773  ;;  %v3691_v26 = vsel %vm692_vm2, %v21394_v6, %v3690_v28  ;;  %v3689_v23 = vsel %vm692_vm2, %v16481_v12, %v3688_v15  ;;  %v3536_v40 = vsel %vm222_vm0, %v3522_v52, %v21048_v60  ;;  %v3534_v6 = vsel %vm222_vm0, %v3521_v13, %v3522_v52  ;;  %v16880_v52 = vld [vmem:[%s14628_s14 + $0x28] sm:$0xff] }
 0x252   : > { %21402 = vst [vmem:[#allocation9_spill] sm:$0xff] %v16838_v51  ;;  %v16846_v54 = vpop.permute.xlu0 %4771  ;;  %4428 = vmatpush1.bf16.msra.mxu1 %v13871_v50  ;;  %v3368_v50 = vrot.slane %v21406_v16, 4  ;;  %v3614_v18 = vsel %vm614_vm1, %v21396_v36, %v3613_v55  ;;  %v3459_v12 = vsel %vm222_vm0, %v3445_v48, %v21047_v43  ;;  %v4273_v13 = vsel %vm222_vm0, %v13939_v24, 0  ;;  %v21410_v24 = vld [vmem:[#allocation23_spill] sm:$0xff] }
 0x253   : > { %21403 = vst [vmem:[#allocation33_spill] sm:$0xff] %v16846_v54  ;;  %4387 = vmatpush1.bf16.msra.mxu0 %v13869_v34  ;;  %13955 = vmatprep.subr.msk.bf16.mxu1 %vm222_vm0, %v13940_v30  ;;  %v3612_v34 = vsel %vm614_vm1, %v16443_v56, %v3611_v14  ;;  %v13924_v36 = vcombine.high %v3614_v18, %v3691_v26  ;;  %v21408_v15 = vrot.slane %v16358_v1, 4  ;;  %v4267_v56 = vsel %vm222_vm0, %v13937_v47, 0 }
 0x254   : > { %13953 = vmatprep.subr.msk.bf16.mxu0 %vm222_vm0, %v13938_v38  ;;  %6179 = vrot.lane.b32.xlu1 %v16841_v31, %s14590_s15  ;;  %v13922_v14 = vcombine.high %v3612_v34, %v3689_v23  ;;  %v3537_v38 = vsel %vm536_vm4, %v21400_v0, %v3536_v40  ;;  %v21411_v60 = vrot.slane %v21398_v17, 4  ;;  %v21414_v0 = vrot.slane %v21380_v21, 4 }
 0x255   : > { %6177 = vrot.lane.b32.xlu0 %v16632_v59, %s14590_s15  ;;  %v16874_v28 = vpop.permute.xlu1 %4777  ;;  %13952 = vmatmul.mubr.msk.bf16.vlgmr.msra.gmra.mxu1 %vm1251_vm9, %v16692_v20  ;;  %v3457_v55 = vsel %vm222_vm0, %v21408_v15, %v3445_v48  ;;  %v3535_v48 = vsel %vm536_vm4, %v16412_v27, %v3534_v6  ;;  %v21412_v15 = vrot.slane %v21405_v29, 4  ;;  %v3460_v43 = vsel %vm458_vm7, %v21401_v4, %v3459_v12 }
 0x256   : > { %21407 = vst [vmem:[#allocation6_spill] sm:$0xff] %v16874_v28  ;;  %v16885_v30 = vpop.permute.xlu0 %4775  ;;  %13950 = vmatmul.mubr.msk.bf16.vlgmr.msra.gmra.mxu0 %vm1251_vm9, %v16692_v20  ;;  %4502 = vmatpush1.bf16.msra.mxu1 %v4273_v13  ;;  %v3305_v62 = vsel %vm222_vm0, %v3291_v10, %v21411_v60  ;;  %v21413_v13 = vld [vmem:[#allocation8_spill] sm:$0xff]  ;;  %v3380_v40 = vsel %vm222_vm0, %v21414_v0, %v3368_v50  ;;  %v21415_v4 = vrot.slane %v16086_v39, 4  ;;  %v3756_v12 = vrot.slane %v16598_v42, 4  ;;  %v16942_v42 = vld [vmem:[%s14628_s14 + $0x30] sm:$0xff] }
 0x257   : > { %21409 = vst [vmem:[#allocation10_spill] sm:$0xff] %v16885_v30  ;;  %4461 = vmatpush1.bf16.msra.mxu0 %v4267_v56  ;;  %4503 = vmatprep.subr.bf16.mxu1 %v13924_v36  ;;  %v3382_v47 = vsel %vm222_vm0, %v3368_v50, %v21412_v15  ;;  %v3214_v25 = vrot.slane %v21413_v13, 4  ;;  %v13923_v60 = vcombine.low %v3614_v18, %v3691_v26  ;;  %v16916_v15 = vld [vmem:[%s14628_s14 + $0x38] sm:$0xff]  ;;  %v21427_v28 = vld [vmem:[#allocation12_spill] sm:$0xff] }
 0x258   : > { %4462 = vmatprep.subr.bf16.mxu0 %v13922_v14  ;;  %6183 = vrot.lane.b32.xlu1 %v16880_v52, %s14590_s15  ;;  %v3458_v27 = vsel %vm458_vm7, %v16358_v1, %v3457_v55  ;;  %v13921_v6 = vcombine.low %v3612_v34, %v3689_v23  ;;  %v13908_v56 = vcombine.high %v3460_v43, %v3537_v38  ;;  %v3755_v34 = vrot.slane %v16603_v45, 4 }
 0x259   : > { %6181 = vrot.lane.b32.xlu0 %v16790_v11, %s14590_s15  ;;  %v16913_v36 = vpop.permute.xlu1 %4840  ;;  %4486 = vmatprep.mubr.bf16.mxu0 %v21390_v33  ;;  %v3303_v26 = vsel %vm222_vm0, %v21415_v4, %v3291_v10  ;;  %v13906_v1 = vcombine.high %v3458_v27, %v3535_v48  ;;  %v3383_v23 = vsel %vm380_vm5, %v21406_v16, %v3382_v47  ;;  %v21416_v10 = vrot.slane %v21410_v24, 4 }
 0x25a   : > { %v16922_v50 = vpop.permute.xlu0 %4838  ;;  %4504 = vmatpush1.bf16.msra.mxu1 %v13923_v60  ;;  %4527 = vmatprep.mubr.bf16.mxu1 %v21390_v33  ;;  %v3381_v18 = vsel %vm380_vm5, %v21380_v21, %v3380_v40  ;;  %v21417_v14 = vrot.slane %v21387_v57, 4  ;;  %v3306_v47 = vsel %vm302_vm6, %v21404_v44, %v3305_v62  ;;  %v13907_v21 = vcombine.low %v3460_v43, %v3537_v38  ;;  %v21420_v38 = vld [vmem:[#allocation26_spill] sm:$0xff] }
 0x25b   : > { %4463 = vmatpush1.bf16.msra.mxu0 %v13921_v6  ;;  %4505 = vmatprep.subr.bf16.mxu1 %v13908_v56  ;;  %v3228_v55 = vsel %vm222_vm0, %v3214_v25, %v21416_v10  ;;  %v3304_v0 = vsel %vm302_vm6, %v16086_v39, %v3303_v26  ;;  %v13905_v40 = vcombine.low %v3458_v27, %v3535_v48  ;;  %v16951_v6 = vld [vmem:[%s14628_s14 + $0x48] sm:$0xff]  ;;  %v3679_v48 = vrot.slane %v21420_v38, 4  ;;  %v21421_v56 = vld [vmem:[#allocation30_spill] sm:$0xff] }
 0x25c   : > { %v3226_v16 = vsel %vm222_vm0, %v21417_v14, %v3214_v25  ;;  %4464 = vmatprep.subr.bf16.mxu0 %v13906_v1  ;;  %6187 = vrot.lane.b32.xlu1 %v16916_v15, %s14590_s15  ;;  %v13892_v25 = vcombine.high %v3306_v47, %v3383_v23  ;;  %21419 = vst [vmem:[#allocation32_spill] sm:$0xff] %v16951_v6  ;;  %v3678_v4 = vrot.slane %v21421_v56, 4  ;;  %v21422_v26 = vrot.slane %v16560_v58, 4 }
 0x25d   : > { %6185 = vrot.lane.b32.xlu0 %v16942_v42, %s14590_s15  ;;  %v16948_v60 = vpop.permute.xlu1 %4844  ;;  %v13890_v43 = vcombine.high %v3304_v0, %v3381_v18  ;;  %v3229_v62 = vsel %vm224_vm8, %v21413_v13, %v3228_v55  ;;  %v3227_v39 = vsel %vm224_vm8, %v21387_v57, %v3226_v16  ;;  %v3771_v27 = vsel %vm222_vm0, %v3755_v34, %v3756_v12  ;;  %v16968_v57 = vld [vmem:[%s14628_s14 + $0x40] sm:$0xff] }
 0x25e   : > { %21418 = vst [vmem:[#allocation4_spill] sm:$0xff] %v16948_v60  ;;  %v16953_v44 = vpop.permute.xlu0 %4842  ;;  %4506 = vmatpush1.bf16.msra.mxu1 %v13907_v21  ;;  %v3769_v1 = vsel %vm222_vm0, %v21422_v26, %v3755_v34  ;;  %v13891_v10 = vcombine.low %v3306_v47, %v3383_v23  ;;  %v13889_v13 = vcombine.low %v3304_v0, %v3381_v18  ;;  %v21423_v55 = vld [vmem:[#allocation19_spill] sm:$0xff]  ;;  %v6167_v0 = vld [vmem:[%s14628_s14 + $0x50] sm:$0xf]  ;;  %v3294_v7 = vrot.slane %v21427_v28, 4 }
 0x25f   : > { %4465 = vmatpush1.bf16.msra.mxu0 %v13905_v40  ;;  %4507 = vmatprep.subr.bf16.mxu1 %v13892_v25  ;;  %v3602_v14 = vrot.slane %v21423_v55, 4  ;;  %v21424_v12 = vld [vmem:[#allocation35_spill] sm:$0xff]  ;;  %v13876_v34 = vcombine.high %v16942_v42, %v3229_v62  ;;  %v14573_v40 = vld [vmem:[%s14628_s14 + $0x28] sm:$0xff]  ;;  %v3772_v23 = vsel %vm770_vm3, %v16603_v45, %v3771_v27  ;;  %v3694_v26 = vsel %vm222_vm0, %v3678_v4, %v3679_v48  ;;  %v21429_v27 = vld [vmem:[#allocation13_spill] sm:$0xff] }
 0x260   : > { %4466 = vmatprep.subr.bf16.mxu0 %v13890_v43  ;;  %6191 = vrot.lane.b32.xlu1 %v16951_v6, %s14590_s15  ;;  %v3601_v16 = vrot.slane %v21424_v12, 4  ;;  %v13873_v25 = vcombine.low %v14573_v40, %v3227_v39  ;;  %v13874_v18 = vcombine.high %v14573_v40, %v3227_v39  ;;  %v21426_v43 = vld [vmem:[#allocation29_spill] sm:$0xff]  ;;  %v13875_v55 = vcombine.low %v16942_v42, %v3229_v62 }
 0x261   : > { %6189 = vrot.lane.b32.xlu0 %v16968_v57, %s14590_s15  ;;  %v16974_v21 = vpop.permute.xlu1 %4848  ;;  %v3525_v38 = vrot.slane %v21426_v43, 4  ;;  %v3770_v30 = vsel %vm770_vm3, %v16560_v58, %v3769_v1  ;;  %v3448_v45 = vrot.slane %v21428_v3, 4  ;;  %v3524_v41 = vrot.slane %v21429_v27, 4  ;;  %v21431_v48 = vld [vmem:[#allocation17_spill] sm:$0xff] }
 0x262   : > { %21425 = vst [vmem:[#allocation36_spill] sm:$0xff] %v16974_v21  ;;  %v16980_v47 = vpop.permute.xlu0 %4846  ;;  %4508 = vmatpush1.bf16.msra.mxu1 %v13891_v10  ;;  %v21430_v39 = vrot.slane %v21393_v5, 4  ;;  %v3447_v62 = vrot.slane %v21431_v48, 4  ;;  %v13944_v58 = vcombine.high %v3772_v23, %v3772_v23  ;;  %v21433_v3 = vrot.slane %v21395_v49, 4  ;;  %v21436_v21 = vld [vmem:[#allocation16_spill] sm:$0xff] }
 0x263   : > { %4467 = vmatpush1.bf16.msra.mxu0 %v13889_v13  ;;  %4509 = vmatprep.subr.bf16.mxu1 %v13876_v34  ;;  %v3617_v13 = vsel %vm222_vm0, %v3601_v16, %v3602_v14  ;;  %v13943_v34 = vcombine.low %v3772_v23, %v3772_v23  ;;  %v3695_v43 = vsel %vm692_vm2, %v21421_v56, %v3694_v26  ;;  %v3371_v23 = vrot.slane %v21436_v21, 4 }
 0x264   : > { %v3692_v10 = vsel %vm222_vm0, %v21430_v39, %v3678_v4  ;;  %4468 = vmatprep.subr.bf16.mxu0 %v13874_v18  ;;  %6254 = vrot.lane.b32.xlu1 %v16632_v59, %s14591_s16  ;;  %v3615_v1 = vsel %vm222_vm0, %v21433_v3, %v3601_v16  ;;  %v13942_v4 = vcombine.high %v3770_v30, %v3770_v30  ;;  %v21435_v39 = vld [vmem:[#allocation24_spill] sm:$0xff]  ;;  %v21437_v16 = vld [vmem:[#allocation11_spill] sm:$0xff] }
 0x265   : > { %6193 = vrot.lane.b32.xlu0 %v6167_v0, %s14590_s15  ;;  %v16999_v28 = vpop.permute.xlu1 %4852  ;;  %v13941_v18 = vcombine.low %v3770_v30, %v3770_v30  ;;  %v3293_v14 = vrot.slane %v21435_v39, 4  ;;  %v3540_v0 = vsel %vm222_vm0, %v3524_v41, %v3525_v38  ;;  %v3370_v3 = vrot.slane %v21437_v16, 4 }
 0x266   : > { %21432 = vst [vmem:[#allocation27_spill] sm:$0xff] %v16999_v28  ;;  %v17004_v40 = vpop.permute.xlu0 %4850  ;;  %4510 = vmatpush1.bf16.msra.mxu1 %v13875_v55  ;;  %v3693_v28 = vsel %vm692_vm2, %v21393_v5, %v3692_v10  ;;  %v21438_v55 = vrot.slane %v21397_v32, 4  ;;  %v3618_v56 = vsel %vm614_vm1, %v21424_v12, %v3617_v13  ;;  %v3463_v21 = vsel %vm222_vm0, %v3447_v62, %v3448_v45 }
 0x267   : > { %21434 = vst [vmem:[#allocation38_spill] sm:$0xff] %v17004_v40  ;;  %4469 = vmatpush1.bf16.msra.mxu0 %v13873_v25  ;;  %13959 = vmatprep.subr.msk.bf16.mxu1 %vm222_vm0, %v13944_v58  ;;  %v3616_v5 = vsel %vm614_vm1, %v21395_v49, %v3615_v1  ;;  %v13928_v12 = vcombine.high %v3618_v56, %v3695_v43  ;;  %v21439_v38 = vrot.slane %v21399_v63, 4  ;;  %v4279_v49 = vsel %vm222_vm0, %v13941_v18, 0  ;;  %v21441_v58 = vld [vmem:[#allocation31_spill] sm:$0xff] }
 0x268   : > { %v3538_v30 = vsel %vm222_vm0, %v21438_v55, %v3524_v41  ;;  %13957 = vmatprep.subr.msk.bf16.mxu0 %vm222_vm0, %v13942_v4  ;;  %6258 = vrot.lane.b32.xlu1 %v16790_v11, %s14591_s16  ;;  %v4285_v41 = vsel %vm222_vm0, %v13943_v34, 0  ;;  %v13926_v45 = vcombine.high %v3616_v5, %v3693_v28  ;;  %v3541_v13 = vsel %vm536_vm4, %v21429_v27, %v3540_v0  ;;  %v21442_v55 = vld [vmem:[#allocation3_spill] sm:$0xff] }
 0x269   : > { %6256 = vrot.lane.b32.xlu0 %v16841_v31, %s14591_s16  ;;  %v17028_v25 = vpop.permute.xlu1 %4915  ;;  %13956 = vmatmul.mubr.msk.bf16.vlgmr.msra.gmra.mxu1 %vm1251_vm9, %v16692_v20  ;;  %v3461_v26 = vsel %vm222_vm0, %v21439_v38, %v3447_v62  ;;  %v3217_v1 = vrot.slane %v21441_v58, 4  ;;  %v3309_v34 = vsel %vm222_vm0, %v3293_v14, %v3294_v7  ;;  %v3386_v4 = vsel %vm222_vm0, %v3370_v3, %v3371_v23  ;;  %v6244_v58 = vld [vmem:[%s14628_s14 + $0x50] sm:$0xf] }
 0x26a   : > { %v17036_v10 = vpop.permute.xlu0 %4854  ;;  %13954 = vmatmul.mubr.msk.bf16.vlgmr.msra.gmra.mxu0 %vm1251_vm9, %v16692_v20  ;;  %4584 = vmatpush1.bf16.msra.mxu1 %v4285_v41  ;;  %v3539_v62 = vsel %vm536_vm4, %v21397_v32, %v3538_v30  ;;  %v3216_v38 = vrot.slane %v21442_v55, 4  ;;  %v21443_v18 = vrot.slane %v21405_v29, 4  ;;  %v3464_v27 = vsel %vm458_vm7, %v21431_v48, %v3463_v21 }
 0x26b   : > { %21440 = vst [vmem:[#allocation34_spill] sm:$0xff] %v17036_v10  ;;  %4543 = vmatpush1.bf16.msra.mxu0 %v4279_v49  ;;  %4585 = vmatprep.subr.bf16.mxu1 %v13928_v12  ;;  %v13927_v0 = vcombine.low %v3618_v56, %v3695_v43  ;;  %v3462_v7 = vsel %vm458_vm7, %v21399_v63, %v3461_v26 }
 0x26c   : > { %v3384_v41 = vsel %vm222_vm0, %v21443_v18, %v3370_v3  ;;  %4544 = vmatprep.subr.bf16.mxu0 %v13926_v45  ;;  %6262 = vrot.lane.b32.xlu1 %v16942_v42, %s14591_s16  ;;  %v13925_v32 = vcombine.low %v3616_v5, %v3693_v28  ;;  %v13912_v30 = vcombine.high %v3464_v27, %v3541_v13  ;;  %v21444_v3 = vrot.slane %v21398_v17, 4 }
 0x26d   : > { %6260 = vrot.lane.b32.xlu0 %v16880_v52, %s14591_s16  ;;  %v17060_v23 = vpop.permute.xlu1 %4919  ;;  %4568 = vmatprep.mubr.bf16.mxu0 %v21390_v33  ;;  %v13910_v56 = vcombine.high %v3462_v7, %v3539_v62  ;;  %v3387_v63 = vsel %vm380_vm5, %v21437_v16, %v3386_v4  ;;  %v3232_v28 = vsel %vm222_vm0, %v3216_v38, %v3217_v1  ;;  %v21445_v5 = vrot.slane %v21410_v24, 4 }
 0x26e   : > { %v3307_v48 = vsel %vm222_vm0, %v21444_v3, %v3293_v14  ;;  %v17066_v43 = vpop.permute.xlu0 %4917  ;;  %4586 = vmatpush1.bf16.msra.mxu1 %v13927_v0  ;;  %4609 = vmatprep.mubr.bf16.mxu1 %v21390_v33  ;;  %v3385_v21 = vsel %vm380_vm5, %v21405_v29, %v3384_v41  ;;  %v3310_v12 = vsel %vm302_vm6, %v21435_v39, %v3309_v34 }
 0x26f   : > { %4545 = vmatpush1.bf16.msra.mxu0 %v13925_v32  ;;  %4587 = vmatprep.subr.bf16.mxu1 %v13912_v30  ;;  %v3230_v14 = vsel %vm222_vm0, %v21445_v5, %v3216_v38  ;;  %v13911_v26 = vcombine.low %v3464_v27, %v3541_v13  ;;  %v3308_v16 = vsel %vm302_vm6, %v21398_v17, %v3307_v48 }
 0x270   : > { %4546 = vmatprep.subr.bf16.mxu0 %v13910_v56  ;;  %6266 = vrot.lane.b32.xlu1 %v16968_v57, %s14591_s16  ;;  %v13909_v49 = vcombine.low %v3462_v7, %v3539_v62  ;;  %v13896_v45 = vcombine.high %v3310_v12, %v3387_v63  ;;  %v13894_v39 = vcombine.high %v3308_v16, %v3385_v21 }
 0x271   : > { %6264 = vrot.lane.b32.xlu0 %v16916_v15, %s14591_s16  ;;  %v17085_v29 = vpop.permute.xlu1 %4923  ;;  %v3233_v13 = vsel %vm224_vm8, %v21442_v55, %v3232_v28  ;;  %v3231_v34 = vsel %vm224_vm8, %v21410_v24, %v3230_v14  ;;  %v13895_v17 = vcombine.low %v3310_v12, %v3387_v63  ;;  %v13893_v4 = vcombine.low %v3308_v16, %v3385_v21  ;;  %v14574_v55 = vld [vmem:[%s14628_s14 + $0x38] sm:$0xff]  ;;  %v6321_v63 = vld [vmem:[%s14628_s14 + $0x50] sm:$0xf] }
 0x272   : > { %v17088_v1 = vpop.permute.xlu0 %4921  ;;  %4588 = vmatpush1.bf16.msra.mxu1 %v13911_v26  ;;  %v13880_v38 = vcombine.high %v16968_v57, %v3233_v13  ;;  %v13878_v41 = vcombine.high %v14574_v55, %v3231_v34  ;;  %v13879_v24 = vcombine.low %v16968_v57, %v3233_v13  ;;  %v13877_v27 = vcombine.low %v14574_v55, %v3231_v34 }
 0x273   : > { %4547 = vmatpush1.bf16.msra.mxu0 %v13909_v49  ;;  %4589 = vmatprep.subr.bf16.mxu1 %v13896_v45 }
 0x274   : > { %4548 = vmatprep.subr.bf16.mxu0 %v13894_v39  ;;  %6270 = vrot.lane.b32.xlu1 %v6244_v58, %s14591_s16 }
 0x275   : > { %6268 = vrot.lane.b32.xlu0 %v16951_v6, %s14591_s16  ;;  %v17097_v62 = vpop.permute.xlu1 %4927 }
 0x276   : > { %21446 = vst [vmem:[#allocation20_spill] sm:$0xff] %v17097_v62  ;;  %v17100_v18 = vpop.permute.xlu0 %4925  ;;  %4590 = vmatpush1.bf16.msra.mxu1 %v13895_v17  ;;  %v4934_v62 = vrot.slane %v17066_v43, 4 }
 0x277   : > { %21447 = vst [vmem:[#allocation28_spill] sm:$0xff] %v17100_v18  ;;  %4549 = vmatpush1.bf16.msra.mxu0 %v13893_v4  ;;  %4591 = vmatprep.subr.bf16.mxu1 %v13880_v38 }
 0x278   : > { %4550 = vmatprep.subr.bf16.mxu0 %v13878_v41  ;;  %6333 = vrot.lane.b32.xlu1 %v16841_v31, %s14592_s17 }
 0x279   : > { %6331 = vrot.lane.b32.xlu0 %v16632_v59, %s14592_s17  ;;  %v17108_v0 = vpop.permute.xlu1 %4931 }
 0x27a   : > { %21448 = vst [vmem:[#allocation18_spill] sm:$0xff] %v17108_v0  ;;  %v17110_v7 = vpop.permute.xlu0 %4929  ;;  %4592 = vmatpush1.bf16.msra.mxu1 %v13879_v24 }
 0x27b   : > { %21449 = vst [vmem:[#allocation7_spill] sm:$0xff] %v17110_v7  ;;  %4551 = vmatpush1.bf16.msra.mxu0 %v13877_v27 }
 0x27c   : > { %6337 = vrot.lane.b32.xlu1 %v16880_v52, %s14592_s17 }
 0x27d   : > { %6335 = vrot.lane.b32.xlu0 %v16790_v11, %s14592_s17  ;;  %v17116_v32 = vpop.permute.xlu1 %4994  ;;  %13960 = vmatmul.mubr.msk.bf16.vlgmr.msra.gmra.mxu1 %vm1251_vm9, %v16692_v20 }
 0x27e   : > { %v17120_v30 = vpop.permute.xlu0 %4992  ;;  %13958 = vmatmul.mubr.msk.bf16.vlgmr.msra.gmra.mxu0 %vm1251_vm9, %v16692_v20  ;;  %5856 = vmatprep.mubr.bf16.mxu1 %v21390_v33 }
 0x27f   : > { %5815 = vmatprep.mubr.bf16.mxu0 %v21390_v33  ;;  %v5010_v27 = vrot.slane %v17120_v30, 4 }
 0x280   : > { %6341 = vrot.lane.b32.xlu1 %v16916_v15, %s14592_s17 }
 0x281   : > { %6339 = vrot.lane.b32.xlu0 %v16942_v42, %s14592_s17  ;;  %v17130_v3 = vpop.permute.xlu1 %4998 }
 0x282   : > { %v17132_v48 = vpop.permute.xlu0 %4996 }
 0x283   : > { %v21463_v51 = vrot.slane %v17132_v48, 4 }
 0x284   : > { %6345 = vrot.lane.b32.xlu1 %v16951_v6, %s14592_s17 }
 0x285   : > { %6343 = vrot.lane.b32.xlu0 %v16968_v57, %s14592_s17  ;;  %v17138_v20 = vpop.permute.xlu1 %5002 }
 0x286   : > { %21450 = vst [vmem:[#allocation37_spill] sm:$0xff] %v17138_v20  ;;  %v17140_v56 = vpop.permute.xlu0 %5000  ;;  %v5011_v20 = vrot.slane %v17116_v32, 4 }
 0x288   : > { %6408 = vrot.lane.b32.xlu1 %v16632_v59, %s14593_s18  ;;  %v5021_v33 = vsel %vm222_vm0, %v5011_v20, %v21463_v51  ;;  %v4933_v51 = vrot.slane %v17028_v25, 4 }
 0x289   : > { %6347 = vrot.lane.b32.xlu0 %v6321_v63, %s14592_s17  ;;  %v17146_v28 = vpop.permute.xlu1 %5006 }
 0x28a   : > { %21451 = vst [vmem:[#allocation23_spill] sm:$0xff] %v17146_v28  ;;  %v17148_v21 = vpop.permute.xlu0 %5004  ;;  %v4857_v28 = vrot.slane %v16913_v36, 4 }
 0x28b   : > { %21452 = vst [vmem:[#allocation8_spill] sm:$0xff] %v17148_v21 }
 0x28c   : > { %6716 = vrot.lane.b32.xlu1 %v16632_v59, %s14597_s22 }
 0x28d   : > { %6410 = vrot.lane.b32.xlu0 %v16841_v31, %s14593_s18  ;;  %v17154_v5 = vpop.permute.xlu1 %5069 }
 0x28e   : > { %v17156_v14 = vpop.permute.xlu0 %5008  ;;  %v5087_v63 = vrot.slane %v17154_v5, 4 }
 0x28f   : > { %21453 = vst [vmem:[#allocation26_spill] sm:$0xff] %v17156_v14 }
 0x290   : > { %6720 = vrot.lane.b32.xlu1 %v16790_v11, %s14597_s22 }
 0x291   : > { %6718 = vrot.lane.b32.xlu0 %v16841_v31, %s14597_s22  ;;  %v17162_v12 = vpop.permute.xlu1 %5073 }
 0x292   : > { %v17164_v26 = vpop.permute.xlu0 %5071 }
 0x293   : > { %v5088_v24 = vrot.slane %v17164_v26, 4 }
 0x294   : > { %6564 = vrot.lane.b32.xlu1 %v16841_v31, %s14595_s20 }
 0x295   : > { %6562 = vrot.lane.b32.xlu0 %v16632_v59, %s14595_s20  ;;  %v17170_v16 = vpop.permute.xlu1 %5077 }
 0x296   : > { %v17172_v49 = vpop.permute.xlu0 %5075 }
 0x298   : > { %6639 = vrot.lane.b32.xlu1 %v16632_v59, %s14596_s21 }
 0x299   : > { %6566 = vrot.lane.b32.xlu0 %v16790_v11, %s14595_s20  ;;  %v17178_v45 = vpop.permute.xlu1 %5081 }
 0x29a   : > { %21454 = vst [vmem:[#allocation30_spill] sm:$0xff] %v17178_v45  ;;  %v17180_v58 = vpop.permute.xlu0 %5079 }
 0x29b   : > { %21455 = vst [vmem:[#allocation19_spill] sm:$0xff] %v17180_v58  ;;  %v21461_v58 = vrot.slane %v17162_v12, 4 }
 0x29c   : > { %6643 = vrot.lane.b32.xlu1 %v16790_v11, %s14596_s21 }
 0x29d   : > { %6641 = vrot.lane.b32.xlu0 %v16841_v31, %s14596_s21  ;;  %v17186_v39 = vpop.permute.xlu1 %5085  ;;  %v5098_v45 = vsel %vm222_vm0, %v5088_v24, %v21461_v58 }
 0x29e   : > { %21456 = vst [vmem:[#allocation35_spill] sm:$0xff] %v17186_v39  ;;  %v17188_v13 = vpop.permute.xlu0 %5083 }
 0x29f   : > { %21457 = vst [vmem:[#allocation29_spill] sm:$0xff] %v17188_v13  ;;  %v4856_v13 = vrot.slane %v16922_v50, 4 }
 0x2a0   : > { %6485 = vrot.lane.b32.xlu1 %v16632_v59, %s14594_s19 }
 0x2a1   : > { %6412 = vrot.lane.b32.xlu0 %v16790_v11, %s14593_s18 }
 0x2a2   : > { %v5149_v34 = vpop.permute.xlu1 %5148  ;;  %v5147_v17 = vpop.permute.xlu0 %5146 }
 0x2a3   : > { %v5165_v10 = vrot.slane %v5149_v34, 4  ;;  %v5164_v7 = vrot.slane %v5147_v17, 4 }
 0x2a4   : > { %6489 = vrot.lane.b32.xlu1 %v16790_v11, %s14594_s19 }
 0x2a5   : > { %6487 = vrot.lane.b32.xlu0 %v16841_v31, %s14594_s19  ;;  %v5173_v39 = vsel %vm222_vm0, %v5164_v7, %v5165_v10 }
 0x2a6   : > { %v17198_v4 = vpop.permute.xlu1 %5152  ;;  %v17200_v38 = vpop.permute.xlu0 %5150  ;;  %v5174_v22 = vsel %vm692_vm2, %v5147_v17, %v5173_v39 }
 0x2a7   : > { %v21460_v0 = vrot.slane %v17200_v38, 4 }
 0x2a8   : > { %6724 = vrot.lane.b32.xlu1 %v16942_v42, %s14597_s22 }
 0x2a9   : > { %6722 = vrot.lane.b32.xlu0 %v16880_v52, %s14597_s22  ;;  %v5175_v41 = vsel %vm222_vm0, %v5165_v10, %v21460_v0  ;;  %v5096_v10 = vsel %vm222_vm0, %v5087_v63, %v5088_v24  ;;  %v5019_v24 = vsel %vm222_vm0, %v5010_v27, %v5011_v20  ;;  %v4702_v27 = vrot.slane %v16629_v53, 4 }
 0x2aa   : > { %v17206_v59 = vpop.permute.xlu1 %5156  ;;  %v5097_v17 = vsel %vm614_vm1, %v17154_v5, %v5096_v10  ;;  %v5022_v5 = vsel %vm536_vm4, %v17116_v32, %v5021_v33  ;;  %v4704_v63 = vrot.slane %v16658_v8, 4  ;;  %v4779_v10 = vrot.slane %v16755_v9, 4 }
 0x2ab   : > { %21458 = vst [vmem:[#allocation12_spill] sm:$0xff] %v17206_v59  ;;  %v17208_v55 = vpop.permute.xlu0 %5154 }
 0x2ac   : > { %6570 = vrot.lane.b32.xlu1 %v16942_v42, %s14595_s20 }
 0x2ad   : > { %6568 = vrot.lane.b32.xlu0 %v16880_v52, %s14595_s20 }
 0x2ae   : > { %v5224_v31 = vpop.permute.xlu1 %5223 }
 0x2af   : > { %v17214_v11 = vpop.permute.xlu0 %5158  ;;  %v5241_v21 = vrot.slane %v5224_v31, 4 }
 0x2b0   : > { %21459 = vst [vmem:[#allocation22_spill] sm:$0xff] %v17214_v11  ;;  %6647 = vrot.lane.b32.xlu1 %v16942_v42, %s14596_s21 }
 0x2b1   : > { %6645 = vrot.lane.b32.xlu0 %v16880_v52, %s14596_s21 }
 0x2b2   : > { %v17228_v14 = vpop.permute.xlu1 %5227 }
 0x2b3   : > { %v5226_v40 = vpop.permute.xlu0 %5225  ;;  %v21462_v11 = vrot.slane %v17228_v14, 4 }
 0x2b4   : > { %v5242_v18 = vrot.slane %v5226_v40, 4  ;;  %6416 = vrot.lane.b32.xlu1 %v16942_v42, %s14593_s18 }
 0x2b5   : > { %6414 = vrot.lane.b32.xlu0 %v16880_v52, %s14593_s18 }
 0x2b6   : > { %v5250_v59 = vsel %vm222_vm0, %v5241_v21, %v5242_v18  ;;  %v5252_v0 = vsel %vm222_vm0, %v5242_v18, %v21462_v11  ;;  %v17253_v54 = vpop.permute.xlu1 %5162  ;;  %v5176_v21 = vsel %vm692_vm2, %v5149_v34, %v5175_v41  ;;  %v21464_v34 = vrot.slane %v17060_v23, 4 }
 0x2b7   : > { %v5253_v7 = vsel %vm770_vm3, %v5226_v40, %v5252_v0  ;;  %v17260_v6 = vpop.permute.xlu0 %5160  ;;  %v5251_v58 = vsel %vm770_vm3, %v5224_v31, %v5250_v59  ;;  %v5099_v40 = vsel %vm614_vm1, %v17164_v26, %v5098_v45  ;;  %v4942_v45 = vsel %vm222_vm0, %v4933_v51, %v4934_v62 }
 0x2b8   : > { %v14028_v60 = vcombine.low %v5253_v7, %v5253_v7  ;;  %v14029_v18 = vcombine.high %v5253_v7, %v5253_v7  ;;  %6493 = vrot.lane.b32.xlu1 %v16942_v42, %s14594_s19  ;;  %v14027_v11 = vcombine.high %v5251_v58, %v5251_v58  ;;  %v14026_v59 = vcombine.low %v5251_v58, %v5251_v58 }
 0x2b9   : > { %6491 = vrot.lane.b32.xlu0 %v16880_v52, %s14594_s19  ;;  %v4944_v39 = vsel %vm222_vm0, %v4934_v62, %v21464_v34  ;;  %v14013_v26 = vcombine.high %v5099_v40, %v5176_v21  ;;  %v14011_v41 = vcombine.high %v5097_v17, %v5174_v22  ;;  %v5020_v0 = vsel %vm536_vm4, %v17120_v30, %v5019_v24 }
 0x2ba   : > { %14042 = vmatprep.subr.msk.bf16.mxu0 %vm222_vm0, %v14027_v11  ;;  %14044 = vmatprep.subr.msk.bf16.mxu1 %vm222_vm0, %v14029_v18  ;;  %v17280_v42 = vpop.permute.xlu1 %5231  ;;  %v5742_v20 = vsel %vm222_vm0, %v14028_v60, 0  ;;  %v5736_v31 = vsel %vm222_vm0, %v14026_v59, 0  ;;  %v21465_v60 = vrot.slane %v16953_v44, 4  ;;  %v4865_v7 = vsel %vm222_vm0, %v4856_v13, %v4857_v28 }
 0x2bb   : > { %v17284_v52 = vpop.permute.xlu0 %5229  ;;  %5831 = vmatpush1.bf16.msra.mxu1 %v5742_v20  ;;  %5790 = vmatpush1.bf16.msra.mxu0 %v5736_v31  ;;  %v4945_v33 = vsel %vm458_vm7, %v17066_v43, %v4944_v39  ;;  %v14012_v32 = vcombine.low %v5099_v40, %v5176_v21  ;;  %v21466_v30 = vrot.slane %v16784_v46, 4  ;;  %v21467_v58 = vrot.slane %v16786_v19, 4 }
 0x2bc   : > { %5832 = vmatprep.subr.bf16.mxu1 %v14013_v26  ;;  %v4867_v62 = vsel %vm222_vm0, %v4857_v28, %v21465_v60  ;;  %5791 = vmatprep.subr.bf16.mxu0 %v14011_v41  ;;  %v4943_v11 = vsel %vm458_vm7, %v17028_v25, %v4942_v45  ;;  %v14010_v51 = vcombine.low %v5097_v17, %v5174_v22  ;;  %v21081_v25 = vrot.slane %v17280_v42, 4 }
 0x2bd   : > { %6728 = vrot.lane.b32.xlu1 %v16968_v57, %s14597_s22  ;;  %v4790_v18 = vsel %vm222_vm0, %v21467_v58, %v21466_v30  ;;  %6726 = vrot.lane.b32.xlu0 %v16916_v15, %s14597_s22  ;;  %v13997_v43 = vcombine.high %v4945_v33, %v5022_v5  ;;  %v21468_v13 = vmov %v21467_v58  ;;  %v13995_v40 = vcombine.high %v4943_v11, %v5020_v0 }
 0x2be   : > { %v17311_v28 = vpop.permute.xlu1 %5235  ;;  %v4788_v21 = vsel %vm222_vm0, %v4779_v10, %v21468_v13  ;;  %v4868_v59 = vsel %vm380_vm5, %v16913_v36, %v4867_v62  ;;  %v4866_v22 = vsel %vm380_vm5, %v16922_v50, %v4865_v7  ;;  %v5244_v34 = vrot.slane %v17284_v52, 4 }
 0x2bf   : > { %v17316_v24 = vpop.permute.xlu0 %5233  ;;  %5833 = vmatpush1.bf16.msra.mxu1 %v14012_v32  ;;  %5792 = vmatpush1.bf16.msra.mxu0 %v14010_v51  ;;  %v21469_v39 = vrot.slane %v16627_v37, 4  ;;  %v4791_v50 = vsel %vm302_vm6, %v16786_v19, %v4790_v18  ;;  %v13996_v26 = vcombine.low %v4945_v33, %v5022_v5  ;;  %v4789_v45 = vsel %vm302_vm6, %v16755_v9, %v4788_v21  ;;  %v17346_v5 = vld [vmem:[%s14628_s14 + $0x14] sm:$0xff] }
 0x2c0   : > { %5834 = vmatprep.subr.bf16.mxu1 %v13997_v43  ;;  %5793 = vmatprep.subr.bf16.mxu0 %v13995_v40  ;;  %v13994_v31 = vcombine.low %v4943_v11, %v5020_v0  ;;  %v13981_v60 = vcombine.high %v4791_v50, %v4868_v59  ;;  %v13979_v19 = vcombine.high %v4789_v45, %v4866_v22  ;;  %v21079_v0 = vrot.slane %v17208_v55, 4  ;;  %v14575_v43 = vld [vmem:[%s14628_s14 + $0xc] sm:$0xff] }
 0x2c1   : > { %v4713_v17 = vsel %vm222_vm0, %v21469_v39, %v4704_v63  ;;  %v21470_v20 = vmov %v21469_v39  ;;  %6574 = vrot.lane.b32.xlu1 %v16968_v57, %s14595_s20  ;;  %6572 = vrot.lane.b32.xlu0 %v16916_v15, %s14595_s20  ;;  %v5256_v7 = vsel %vm222_vm0, %v5244_v34, %v21081_v25  ;;  %v5167_v33 = vrot.slane %v17198_v4, 4  ;;  %v21496_v25 = vld [vmem:[#allocation12_spill] sm:$0xff] }
 0x2c2   : > { %v4711_v36 = vsel %vm222_vm0, %v4702_v27, %v21470_v20  ;;  %v17340_v41 = vpop.permute.xlu1 %5239  ;;  %v4705_v27 = vrot.slane %v16652_v61, 4  ;;  %v4714_v10 = vsel %vm224_vm8, %v16627_v37, %v4713_v17  ;;  %v21471_v32 = vrot.slane %v17228_v14, 4 }
 0x2c3   : > { %v17343_v62 = vpop.permute.xlu0 %5237  ;;  %5835 = vmatpush1.bf16.msra.mxu1 %v13996_v26  ;;  %v4712_v9 = vsel %vm224_vm8, %v16629_v53, %v4711_v36  ;;  %5794 = vmatpush1.bf16.msra.mxu0 %v13994_v31  ;;  %v13980_v37 = vcombine.low %v4791_v50, %v4868_v59  ;;  %v13978_v53 = vcombine.low %v4789_v45, %v4866_v22  ;;  %v21078_v58 = vrot.slane %v17170_v16, 4  ;;  %v17394_v45 = vpop.f32.mrf.mxu0 }
 0x2c4   : > { %5836 = vmatprep.subr.bf16.mxu1 %v13981_v60  ;;  %v5254_v30 = vsel %vm222_vm0, %v21471_v32, %v5244_v34  ;;  %5795 = vmatprep.subr.bf16.mxu0 %v13979_v19  ;;  %v5090_v18 = vrot.slane %v17172_v49, 4  ;;  %v13965_v51 = vcombine.high %v17346_v5, %v4714_v10  ;;  %v13962_v13 = vcombine.low %v14575_v43, %v4712_v9 }
 0x2c5   : > { %6651 = vrot.lane.b32.xlu1 %v16968_v57, %s14596_s21  ;;  %6649 = vrot.lane.b32.xlu0 %v16916_v15, %s14596_s21  ;;  %v4715_v21 = vsel %vm222_vm0, %v4704_v63, %v4705_v27  ;;  %v5257_v40 = vsel %vm770_vm3, %v17284_v52, %v5256_v7  ;;  %v13963_v22 = vcombine.high %v14575_v43, %v4712_v9  ;;  %v21074_v34 = vrot.slane %v17140_v56, 4  ;;  %v17418_v43 = vpop.f32.mrf.mxu0 }
 0x2c6   : > { %v17366_v11 = vpop.permute.xlu1 %6179  ;;  %v13964_v39 = vcombine.low %v17346_v5, %v4714_v10  ;;  %v5255_v17 = vsel %vm770_vm3, %v17228_v14, %v5254_v30  ;;  %v5179_v63 = vsel %vm222_vm0, %v5167_v33, %v21079_v0  ;;  %v21076_v20 = vrot.slane %v16809_v35, 4  ;;  %v17396_v14 = vpop.f32.mrf.mxu1  ;;  %v21495_v0 = vld [vmem:[#allocation36_spill] sm:$0xff] }
 0x2c7   : > { %v17377_v59 = vpop.permute.xlu0 %6177  ;;  %5837 = vmatpush1.bf16.msra.mxu1 %v13980_v37  ;;  %5796 = vmatpush1.bf16.msra.mxu0 %v13978_v53  ;;  %v21075_v52 = vrot.slane %v17085_v29, 4  ;;  %v5013_v36 = vrot.slane %v17130_v3, 4  ;;  %v21472_v50 = vrot.slane %v17200_v38, 4  ;;  %v4936_v31 = vrot.slane %v17088_v1, 4  ;;  %v17414_v37 = vld [vmem:[%s20925_s1 + $0xc] sm:$0xf] }
 0x2c8   : > { %5838 = vmatprep.subr.bf16.mxu1 %v13965_v51  ;;  %5797 = vmatprep.subr.bf16.mxu0 %v13963_v22  ;;  %v5102_v60 = vsel %vm222_vm0, %v5090_v18, %v21078_v58  ;;  %v14032_v19 = vcombine.low %v5257_v40, %v5257_v40  ;;  %v14033_v10 = vcombine.high %v5257_v40, %v5257_v40  ;;  %v21474_v7 = vrot.slane %v17162_v12, 4  ;;  %v17525_v58 = vld [vmem:[%s14628_s14 + $0x1c] sm:$0xff] }
 0x2c9   : > { %v5177_v26 = vsel %vm222_vm0, %v21472_v50, %v5167_v33  ;;  %6420 = vrot.lane.b32.xlu1 %v16968_v57, %s14593_s18  ;;  %6418 = vrot.lane.b32.xlu0 %v16916_v15, %s14593_s18  ;;  %v14031_v30 = vcombine.high %v5255_v17, %v5255_v17  ;;  %v14030_v53 = vcombine.low %v5255_v17, %v5255_v17  ;;  %v4782_v40 = vrot.slane %v16816_v2, 4  ;;  %v17428_v17 = vpop.f32.mrf.mxu1 }
 0x2ca   : > { %v17404_v9 = vpop.permute.xlu1 %6183  ;;  %v5100_v33 = vsel %vm222_vm0, %v21474_v7, %v5090_v18  ;;  %v5180_v51 = vsel %vm692_vm2, %v17198_v4, %v5179_v63  ;;  %v21080_v22 = vrot.slane %v16980_v47, 4  ;;  %v5178_v18 = vsel %vm692_vm2, %v17200_v38, %v5177_v26  ;;  %v21475_v63 = vld [vmem:[#allocation4_spill] sm:$0xff]  ;;  %v1342_v26 = vpop.f32.mrf.mxu0 }
 0x2cb   : > { %21473 = vst [vmem:[#allocation13_spill] sm:$0xff] %v17404_v9  ;;  %v17409_v32 = vpop.permute.xlu0 %6181  ;;  %5839 = vmatpush1.bf16.msra.mxu1 %v13964_v39  ;;  %5798 = vmatpush1.bf16.msra.mxu0 %v13962_v13  ;;  %v5025_v39 = vsel %vm222_vm0, %v5013_v36, %v21074_v34  ;;  %v17432_v4 = vsel %vm224_vm8, %v16658_v8, %v4715_v21  ;;  %v4859_v50 = vrot.slane %v21475_v63, 4  ;;  %v21476_v7 = vrot.slane %v17132_v48, 4  ;;  %v21480_v34 = vld [vmem:[#allocation15_spill] sm:$0xff] }
 0x2cc   : > { %14048 = vmatprep.subr.msk.bf16.mxu1 %vm222_vm0, %v14033_v10  ;;  %v5103_v13 = vsel %vm614_vm1, %v17172_v49, %v5102_v60  ;;  %14046 = vmatprep.subr.msk.bf16.mxu0 %vm222_vm0, %v14031_v30  ;;  %v4948_v8 = vsel %vm222_vm0, %v4936_v31, %v21075_v52  ;;  %v5101_v21 = vsel %vm614_vm1, %v17162_v12, %v5100_v33  ;;  %v5754_v49 = vsel %vm222_vm0, %v14032_v19, 0  ;;  %v1383_v10 = vpop.f32.mrf.mxu1  ;;  %v1343_v19 = vpop.f32.mrf.mxu0 }
 0x2cd   : > { %v5023_v38 = vsel %vm222_vm0, %v21476_v7, %v5013_v36  ;;  %6497 = vrot.lane.b32.xlu1 %v16968_v57, %s14594_s19  ;;  %6495 = vrot.lane.b32.xlu0 %v16916_v15, %s14594_s19  ;;  %v14017_v60 = vcombine.high %v5103_v13, %v5180_v51  ;;  %v6706_v57 = vld [vmem:[%s14628_s14 + $0x50] sm:$0xf]  ;;  %v21478_v30 = vrot.slane %v17060_v23, 4  ;;  %v5748_v15 = vsel %vm222_vm0, %v14030_v53, 0 }
 0x2ce   : > { %v17450_v36 = vpop.permute.xlu1 %6187  ;;  %14045 = vmatmul.mubr.msk.bf16.vlgmr.msra.gmra.mxu1 %vm1251_vm9, %v17414_v37  ;;  %14043 = vmatmul.mubr.msk.bf16.vlgmr.msra.gmra.mxu0 %vm1251_vm9, %v17414_v37  ;;  %v14015_v12 = vcombine.high %v5101_v21, %v5178_v18  ;;  %v5026_v33 = vsel %vm536_vm4, %v17130_v3, %v5025_v39  ;;  %v21077_v52 = vrot.slane %v21480_v34, 4  ;;  %v4794_v10 = vsel %vm222_vm0, %v4782_v40, %v21076_v20 }
 0x2cf   : > { %21477 = vst [vmem:[#allocation17_spill] sm:$0xff] %v17450_v36  ;;  %v4946_v7 = vsel %vm222_vm0, %v21478_v30, %v4936_v31  ;;  %v17459_v26 = vpop.permute.xlu0 %6185  ;;  %5913 = vmatpush1.bf16.msra.mxu1 %v5754_v49  ;;  %v5024_v31 = vsel %vm536_vm4, %v17132_v48, %v5023_v38  ;;  %5872 = vmatpush1.bf16.msra.mxu0 %v5748_v15  ;;  %v1384_v49 = vpop.f32.mrf.mxu1  ;;  %v21481_v3 = vrot.slane %v16953_v44, 4  ;;  %v21483_v15 = vld [vmem:[#allocation32_spill] sm:$0xff] }
 0x2d0   : > { %21479 = vst [vmem:[#allocation24_spill] sm:$0xff] %v17459_v26  ;;  %5914 = vmatprep.subr.bf16.mxu1 %v14017_v60  ;;  %v4871_v53 = vsel %vm222_vm0, %v4859_v50, %v21080_v22  ;;  %v4949_v30 = vsel %vm458_vm7, %v17088_v1, %v4948_v8  ;;  %5873 = vmatprep.subr.bf16.mxu0 %v14015_v12  ;;  %v17481_v48 = vpop.f32.mrf.mxu0  ;;  %v5246_v12 = vrot.slane %v17316_v24, 4  ;;  %v21505_v36 = vld [vmem:[#allocation8_spill] sm:$0xff] }
 0x2d1   : > { %v4869_v39 = vsel %vm222_vm0, %v21481_v3, %v4859_v50  ;;  %v14016_v19 = vcombine.low %v5103_v13, %v5180_v51  ;;  %6732 = vrot.lane.b32.xlu1 %v6706_v57, %s14597_s22  ;;  %21482 = vst [vmem:[#allocation16_spill] sm:$0xff] %v17481_v48  ;;  %v4947_v38 = vsel %vm458_vm7, %v17060_v23, %v4946_v7  ;;  %v6552_v50 = vld [vmem:[%s14628_s14 + $0x50] sm:$0xf]  ;;  %v21485_v3 = vmov 0   ;;  %v17491_v1 = vpop.f32.mrf.mxu1 }
 0x2d2   : > { %v14014_v60 = vcombine.low %v5101_v21, %v5178_v18  ;;  %6730 = vrot.lane.b32.xlu0 %v21483_v15, %s14597_s22  ;;  %v17487_v49 = vpop.permute.xlu1 %6191  ;;  %v14001_v20 = vcombine.high %v4949_v30, %v5026_v33  ;;  %5897 = vmatprep.mubr.bf16.mxu0 %v21485_v3  ;;  %21486 = vst [vmem:[#allocation31_spill] sm:$0xff] %v17491_v1  ;;  %v21487_v51 = vrot.slane %v16784_v46, 4  ;;  %v17501_v21 = vpop.f32.mrf.mxu0  ;;  %v21082_v7 = vrot.slane %v17311_v28, 4  ;;  %v6475_v1 = vld [vmem:[%s14628_s14 + $0x50] sm:$0xf] }
 0x2d3   : > { %21484 = vst [vmem:[#allocation11_spill] sm:$0xff] %v17487_v49  ;;  %v17496_v8 = vpop.permute.xlu0 %6189  ;;  %5915 = vmatpush1.bf16.msra.mxu1 %v14016_v19  ;;  %v13999_v23 = vcombine.high %v4947_v38, %v5024_v31  ;;  %v4872_v18 = vsel %vm380_vm5, %v21475_v63, %v4871_v53  ;;  %5938 = vmatprep.mubr.bf16.mxu1 %v21485_v3  ;;  %21489 = vst [vmem:[#allocation4_spill] sm:$0xff] %v17501_v21  ;;  %v17512_v63 = vpop.f32.mrf.mxu1  ;;  %v6398_v49 = vld [vmem:[%s14628_s14 + $0x50] sm:$0xf] }
 0x2d4   : > { %v4792_v13 = vsel %vm222_vm0, %v21487_v51, %v4782_v40  ;;  %21488 = vst [vmem:[#allocation3_spill] sm:$0xff] %v17496_v8  ;;  %v4870_v57 = vsel %vm380_vm5, %v16953_v44, %v4869_v39  ;;  %5874 = vmatpush1.bf16.msra.mxu0 %v14014_v60  ;;  %5916 = vmatprep.subr.bf16.mxu1 %v14001_v20  ;;  %21490 = vst [vmem:[#allocation15_spill] sm:$0xff] %v17512_v63  ;;  %v1424_v39 = vpop.f32.mrf.mxu0  ;;  %v6629_v51 = vld [vmem:[%s14628_s14 + $0x50] sm:$0xf] }
 0x2d5   : > { %v4717_v40 = vsel %vm222_vm0, %v4705_v27, %v21077_v52  ;;  %v4795_v53 = vsel %vm302_vm6, %v16816_v2, %v4794_v10  ;;  %5875 = vmatprep.subr.bf16.mxu0 %v13999_v23  ;;  %v14000_v44 = vcombine.low %v4949_v30, %v5026_v33  ;;  %6578 = vrot.lane.b32.xlu1 %v6552_v50, %s14595_s20  ;;  %v1465_v52 = vpop.f32.mrf.mxu1  ;;  %v17532_v30 = vld [vmem:[%s14628_s14 + $0x24] sm:$0xff] }
 0x2d6   : > { %v4793_v20 = vsel %vm302_vm6, %v16784_v46, %v4792_v13  ;;  %v13998_v19 = vcombine.low %v4947_v38, %v5024_v31  ;;  %6576 = vrot.lane.b32.xlu0 %v21483_v15, %s14595_s20  ;;  %v17521_v60 = vpop.permute.xlu1 %6254  ;;  %v13985_v27 = vcombine.high %v4795_v53, %v4872_v18  ;;  %v4718_v46 = vsel %vm224_vm8, %v16652_v61, %v4717_v40  ;;  %v1425_v31 = vpop.f32.mrf.mxu0  ;;  %v21492_v38 = vld [vmem:[#allocation9_spill] sm:$0xff]  ;;  %v21494_v52 = vld [vmem:[#allocation22_spill] sm:$0xff]  ;;  %v21500_v39 = vld [vmem:[#allocation19_spill] sm:$0xff] }
 0x2d7   : > { %v17529_v33 = vpop.permute.xlu0 %6193  ;;  %5917 = vmatpush1.bf16.msra.mxu1 %v14000_v44  ;;  %v13983_v10 = vcombine.high %v4793_v20, %v4870_v57  ;;  %v21493_v13 = vld [vmem:[#allocation33_spill] sm:$0xff]  ;;  %v5260_v2 = vsel %vm222_vm0, %v5246_v12, %v21082_v7  ;;  %v1466_v44 = vpop.f32.mrf.mxu1  ;;  %v21497_v61 = vrot.slane %v17280_v42, 4  ;;  %v13984_v31 = vcombine.low %v4795_v53, %v4872_v18  ;;  %v21499_v7 = vld [vmem:[#allocation30_spill] sm:$0xff]  ;;  %v21502_v18 = vld [vmem:[#allocation20_spill] sm:$0xff] }
 0x2d8   : > { %21491 = vst [vmem:[#allocation32_spill] sm:$0xff] %v17529_v33  ;;  %5876 = vmatpush1.bf16.msra.mxu0 %v13998_v19  ;;  %5918 = vmatprep.subr.bf16.mxu1 %v13985_v27  ;;  %v5169_v33 = vrot.slane %v21496_v25, 4  ;;  %v17548_v23 = vpop.f32.mrf.mxu0  ;;  %v13982_v50 = vcombine.low %v4793_v20, %v4870_v57  ;;  %v5092_v27 = vrot.slane %v21500_v39, 4  ;;  %v13969_v22 = vcombine.high %v17532_v30, %v4718_v46  ;;  %v21504_v19 = vld [vmem:[#allocation28_spill] sm:$0xff] }
 0x2d9   : > { %v5258_v40 = vsel %vm222_vm0, %v21497_v61, %v5246_v12  ;;  %5877 = vmatprep.subr.bf16.mxu0 %v13983_v10  ;;  %6655 = vrot.lane.b32.xlu1 %v6629_v51, %s14596_s21  ;;  %21498 = vst [vmem:[#allocation9_spill] sm:$0xff] %v17548_v23  ;;  %v17558_v12 = vpop.f32.mrf.mxu1  ;;  %v5261_v51 = vsel %vm770_vm3, %v17316_v24, %v5260_v2  ;;  %v4938_v8 = vrot.slane %v21504_v19, 4  ;;  %v21506_v24 = vrot.slane %v21494_v52, 4 }
 0x2da   : > { %6653 = vrot.lane.b32.xlu0 %v21483_v15, %s14596_s21  ;;  %v17554_v44 = vpop.permute.xlu1 %6258  ;;  %21501 = vst [vmem:[#allocation33_spill] sm:$0xff] %v17558_v12  ;;  %v13967_v20 = vcombine.high %v17525_v58, %v17432_v4  ;;  %v13968_v10 = vcombine.low %v17532_v30, %v4718_v46  ;;  %v17568_v61 = vpop.f32.mrf.mxu0  ;;  %v5259_v53 = vsel %vm770_vm3, %v17280_v42, %v5258_v40  ;;  %v21508_v46 = vrot.slane %v21492_v38, 4  ;;  %v21512_v40 = vld [vmem:[#allocation37_spill] sm:$0xff] }
 0x2db   : > { %v17563_v57 = vpop.permute.xlu0 %6256  ;;  %5919 = vmatpush1.bf16.msra.mxu1 %v13984_v31  ;;  %21503 = vst [vmem:[#allocation22_spill] sm:$0xff] %v17568_v61  ;;  %v5183_v2 = vsel %vm222_vm0, %v5169_v33, %v21506_v24  ;;  %v17577_v31 = vpop.f32.mrf.mxu1  ;;  %v21509_v61 = vrot.slane %v21493_v13, 4  ;;  %v5015_v26 = vrot.slane %v21512_v40, 4  ;;  %v21513_v24 = vrot.slane %v17208_v55, 4 }
 0x2dc   : > { %5878 = vmatpush1.bf16.msra.mxu0 %v13982_v50  ;;  %5920 = vmatprep.subr.bf16.mxu1 %v13969_v22  ;;  %21507 = vst [vmem:[#allocation36_spill] sm:$0xff] %v17577_v31  ;;  %v21510_v50 = vrot.slane %v21495_v0, 4  ;;  %v21511_v22 = vrot.slane %v16980_v47, 4  ;;  %v1506_v23 = vpop.f32.mrf.mxu0  ;;  %v21515_v63 = vrot.slane %v21499_v7, 4  ;;  %v14036_v21 = vcombine.low %v5261_v51, %v5261_v51 }
 0x2dd   : > { %v17584_v12 = vsel %vm222_vm0, %v21509_v61, %v21508_v46  ;;  %v5181_v31 = vsel %vm222_vm0, %v21513_v24, %v5169_v33  ;;  %5879 = vmatprep.subr.bf16.mxu0 %v13967_v20  ;;  %6424 = vrot.lane.b32.xlu1 %v6398_v49, %s14593_s18  ;;  %v21514_v61 = vld [vmem:[#allocation38_spill] sm:$0xff]  ;;  %v1547_v33 = vpop.f32.mrf.mxu1  ;;  %v21517_v20 = vrot.slane %v17170_v16, 4  ;;  %v14035_v24 = vcombine.high %v5259_v53, %v5259_v53  ;;  %v6474_v46 = vld [vmem:[%s14628_s14 + $0x48] sm:$0xff] }
 0x2de   : > { %v17591_v42 = vsel %vm222_vm0, %v21511_v22, %v21510_v50  ;;  %v5106_v9 = vsel %vm222_vm0, %v5092_v27, %v21515_v63  ;;  %v14037_v50 = vcombine.high %v5261_v51, %v5261_v51  ;;  %6422 = vrot.lane.b32.xlu0 %v21483_v15, %s14593_s18  ;;  %v17604_v22 = vpop.permute.xlu1 %6262  ;;  %v14034_v48 = vcombine.low %v5259_v53, %v5259_v53  ;;  %v1507_v51 = vpop.f32.mrf.mxu0 }
 0x2df   : > { %21516 = vst [vmem:[#allocation12_spill] sm:$0xff] %v17604_v22  ;;  %v5104_v49 = vsel %vm222_vm0, %v21517_v20, %v5092_v27  ;;  %v17610_v23 = vpop.permute.xlu0 %6260  ;;  %5921 = vmatpush1.bf16.msra.mxu1 %v13968_v10  ;;  %v5184_v63 = vsel %vm692_vm2, %v21496_v25, %v5183_v2  ;;  %v21519_v15 = vrot.slane %v21502_v18, 4  ;;  %v5182_v33 = vsel %vm692_vm2, %v17208_v55, %v5181_v31  ;;  %v1548_v25 = vpop.f32.mrf.mxu1  ;;  %v21522_v2 = vld [vmem:[#allocation5_spill] sm:$0xff] }
 0x2e0   : > { %21518 = vst [vmem:[#allocation30_spill] sm:$0xff] %v17610_v23  ;;  %v21520_v27 = vcombine.low %v17525_v58, %v17432_v4  ;;  %14052 = vmatprep.subr.msk.bf16.mxu1 %vm222_vm0, %v14037_v50  ;;  %v21521_v10 = vrot.slane %v21505_v36, 4  ;;  %v21089_v20 = vrot.slane %v21522_v2, 4  ;;  %v21523_v51 = vrot.slane %v17085_v29, 4  ;;  %v17638_v4 = vpop.f32.mrf.mxu0 }
 0x2e1   : > { %v4952_v22 = vsel %vm222_vm0, %v4938_v8, %v21519_v15  ;;  %v21524_v55 = vrot.slane %v17140_v56, 4  ;;  %v5107_v58 = vsel %vm614_vm1, %v21500_v39, %v5106_v9  ;;  %6501 = vrot.lane.b32.xlu1 %v6475_v1, %s14594_s19  ;;  %21525 = vst [vmem:[#allocation19_spill] sm:$0xff] %v17638_v4  ;;  %v5105_v50 = vsel %vm614_vm1, %v17170_v16, %v5104_v49  ;;  %v17649_v9 = vld [vmem:[%s14628_s14 + $0x1c] sm:$0xff] }
 0x2e2   : > { %5880 = vmatpush1.bf16.msra.mxu0 %v21520_v27  ;;  %v5029_v53 = vsel %vm222_vm0, %v5015_v26, %v21521_v10  ;;  %v4950_v15 = vsel %vm222_vm0, %v21523_v51, %v4938_v8  ;;  %6499 = vrot.lane.b32.xlu0 %v6474_v46, %s14594_s19  ;;  %v17643_v27 = vpop.permute.xlu1 %6266  ;;  %v14021_v8 = vcombine.high %v5107_v58, %v5184_v63  ;;  %v21527_v39 = vrot.slane %v21514_v61, 4  ;;  %v17656_v10 = vpop.f32.mrf.mxu1 }
 0x2e3   : > { %v5027_v31 = vsel %vm222_vm0, %v21524_v55, %v5015_v26  ;;  %14050 = vmatprep.subr.msk.bf16.mxu0 %vm222_vm0, %v14035_v24  ;;  %21526 = vst [vmem:[#allocation20_spill] sm:$0xff] %v17643_v27  ;;  %14049 = vmatmul.mubr.msk.bf16.vlgmr.msra.gmra.mxu1 %vm1251_vm9, %v17414_v37  ;;  %v5766_v26 = vsel %vm222_vm0, %v14036_v21, 0  ;;  %v21528_v1 = vrot.slane %v21495_v0, 4  ;;  %21529 = vst [vmem:[#allocation28_spill] sm:$0xff] %v17656_v10  ;;  %v17660_v46 = vpop.permute.xlu0 %6264  ;;  %v5760_v21 = vsel %vm222_vm0, %v14034_v48, 0  ;;  %v17667_v51 = vpop.f32.mrf.mxu0  ;;  %v21545_v27 = vld [vmem:[#allocation6_spill] sm:$0xff] }
 0x2e4   : > { %v4953_v16 = vsel %vm458_vm7, %v21504_v19, %v4952_v22  ;;  %21530 = vst [vmem:[#allocation8_spill] sm:$0xff] %v17660_v46  ;;  %5995 = vmatpush1.bf16.msra.mxu1 %v5766_v26  ;;  %v14019_v49 = vcombine.high %v5105_v50, %v5182_v33  ;;  %v5030_v25 = vsel %vm536_vm4, %v21512_v40, %v5029_v53  ;;  %21531 = vst [vmem:[#allocation37_spill] sm:$0xff] %v17667_v51  ;;  %v21554_v51 = vld [vmem:[#allocation34_spill] sm:$0xff] }
 0x2e5   : > { %v4875_v24 = vsel %vm222_vm0, %v21528_v1, %v21527_v39  ;;  %14047 = vmatmul.mubr.msk.bf16.vlgmr.msra.gmra.mxu0 %vm1251_vm9, %v17414_v37  ;;  %v4951_v55 = vsel %vm458_vm7, %v17085_v29, %v4950_v15  ;;  %v5028_v19 = vsel %vm536_vm4, %v17140_v56, %v5027_v31  ;;  %v14020_v22 = vcombine.low %v5107_v58, %v5184_v63  ;;  %v17673_v39 = vpop.f32.mrf.mxu1  ;;  %v21533_v1 = vld [vmem:[#allocation21_spill] sm:$0xff]  ;;  %v1588_v40 = vpop.f32.mrf.mxu0 }
 0x2e6   : > { %5954 = vmatpush1.bf16.msra.mxu0 %v5760_v21  ;;  %5996 = vmatprep.subr.bf16.mxu1 %v14021_v8  ;;  %21532 = vst [vmem:[#allocation38_spill] sm:$0xff] %v17673_v39  ;;  %v4707_v48 = vrot.slane %v21533_v1, 4  ;;  %v14018_v53 = vcombine.low %v5105_v50, %v5182_v33  ;;  %v17680_v29 = vpop.permute.xlu1 %6270  ;;  %v14005_v15 = vcombine.high %v4953_v16, %v5030_v25  ;;  %v21535_v63 = vrot.slane %v21493_v13, 4 }
 0x2e7   : > { %5955 = vmatprep.subr.bf16.mxu0 %v14019_v49  ;;  %8211 = vrot.lane.b32.xlu1 %v17649_v9, %s14597_s22  ;;  %21534 = vst [vmem:[#allocation5_spill] sm:$0xff] %v17680_v29  ;;  %v1629_v56 = vpop.f32.mrf.mxu1  ;;  %v21536_v31 = vrot.slane %v16809_v35, 4  ;;  %v17688_v26 = vpop.permute.xlu0 %6268  ;;  %v14003_v8 = vcombine.high %v4951_v55, %v5028_v19  ;;  %v4876_v33 = vsel %vm380_vm5, %v21495_v0, %v4875_v24  ;;  %v5249_v49 = vrot.slane %v17340_v41, 4 }
 0x2e8   : > { %8209 = vrot.lane.b32.xlu0 %v17346_v5, %s14597_s22  ;;  %5979 = vmatprep.mubr.bf16.mxu0 %v21485_v3  ;;  %21537 = vst [vmem:[#allocation21_spill] sm:$0xff] %v17688_v26  ;;  %v1589_v50 = vpop.f32.mrf.mxu0  ;;  %v4874_v21 = vsel %vm380_vm5, %v16980_v47, %v17591_v42  ;;  %v5248_v40 = vrot.slane %v17343_v62, 4  ;;  %v21538_v0 = vrot.slane %v21480_v34, 4  ;;  %v4799_v47 = vsel %vm302_vm6, %v21493_v13, %v17584_v12 }
 0x2e9   : > { %v4796_v58 = vsel %vm222_vm0, %v21536_v31, %v21535_v63  ;;  %5997 = vmatpush1.bf16.msra.mxu1 %v14020_v22  ;;  %6020 = vmatprep.mubr.bf16.mxu1 %v21485_v3  ;;  %v4721_v22 = vsel %vm222_vm0, %v4707_v48, %v21089_v20  ;;  %v1630_v56 = vpop.f32.mrf.mxu1  ;;  %v14004_v41 = vcombine.low %v4953_v16, %v5030_v25  ;;  %v17722_v16 = vld [vmem:[%s14628_s14 + $0x34] sm:$0xff]  ;;  %v4787_v23 = vrot.slane %v21545_v27, 4 }
 0x2ea   : > { %5956 = vmatpush1.bf16.msra.mxu0 %v14018_v53  ;;  %5998 = vmatprep.subr.bf16.mxu1 %v14005_v15  ;;  %v4719_v24 = vsel %vm222_vm0, %v21538_v0, %v4707_v48  ;;  %v17709_v42 = vpop.f32.mrf.mxu0  ;;  %v4797_v53 = vsel %vm302_vm6, %v16809_v35, %v4796_v58  ;;  %v14002_v15 = vcombine.low %v4951_v55, %v5028_v19  ;;  %v17715_v63 = vpop.permute.xlu1 %6333  ;;  %v5172_v55 = vrot.slane %v17253_v54, 4  ;;  %v21540_v0 = vld [vmem:[#allocation35_spill] sm:$0xff] }
 0x2eb   : > { %5957 = vmatprep.subr.bf16.mxu0 %v14003_v8  ;;  %8055 = vrot.lane.b32.xlu1 %v17346_v5, %s14595_s20  ;;  %v13989_v48 = vcombine.high %v4799_v47, %v4876_v33  ;;  %v17717_v31 = vpop.f32.mrf.mxu1  ;;  %v17719_v13 = vpop.permute.xlu0 %6331  ;;  %v13987_v12 = vcombine.high %v4797_v53, %v4874_v21  ;;  %v4722_v25 = vsel %vm224_vm8, %v21533_v1, %v4721_v22  ;;  %v5171_v19 = vrot.slane %v17260_v6, 4 }
 0x2ec   : > { %8213 = vrot.lane.b32.xlu0 %v17532_v30, %s14597_s22  ;;  %v17726_v8 = vpop.f32.mrf.mxu0  ;;  %v4720_v35 = vsel %vm224_vm8, %v21480_v34, %v4719_v24  ;;  %v5264_v58 = vsel %vm222_vm0, %v5248_v40, %v5249_v49  ;;  %v21539_v56 = vrot.slane %v17311_v28, 4  ;;  %v13988_v22 = vcombine.low %v4799_v47, %v4876_v33  ;;  %v21543_v33 = vld [vmem:[#allocation14_spill] sm:$0xff] }
 0x2ed   : > { %5999 = vmatpush1.bf16.msra.mxu1 %v14004_v41  ;;  %v17733_v50 = vpop.f32.mrf.mxu1  ;;  %v13986_v54 = vcombine.low %v4797_v53, %v4874_v21  ;;  %v5095_v24 = vrot.slane %v21540_v0, 4  ;;  %v21541_v41 = vld [vmem:[#allocation29_spill] sm:$0xff]  ;;  %v21544_v0 = vld [vmem:[#allocation26_spill] sm:$0xff]  ;;  %v5187_v29 = vsel %vm222_vm0, %v5171_v19, %v5172_v55  ;;  %v13972_v46 = vcombine.low %v17722_v16, %v4722_v25 }
 0x2ee   : > { %5958 = vmatpush1.bf16.msra.mxu0 %v14002_v15  ;;  %6000 = vmatprep.subr.bf16.mxu1 %v13989_v48  ;;  %v5262_v1 = vsel %vm222_vm0, %v21539_v56, %v5248_v40  ;;  %v2835_v34 = vpop.f32.mrf.mxu0  ;;  %v5094_v49 = vrot.slane %v21541_v41, 4  ;;  %v17744_v15 = vpop.permute.xlu1 %6337  ;;  %v13973_v48 = vcombine.high %v17722_v16, %v4722_v25  ;;  %v14577_v40 = vld [vmem:[%s14628_s14 + $0x2c] sm:$0xff]  ;;  %v5265_v56 = vsel %vm770_vm3, %v17343_v62, %v5264_v58  ;;  %v21546_v62 = vld [vmem:[#allocation18_spill] sm:$0xff] }
 0x2ef   : > { %5959 = vmatprep.subr.bf16.mxu0 %v13987_v12  ;;  %8059 = vrot.lane.b32.xlu1 %v17532_v30, %s14595_s20  ;;  %21542 = vst [vmem:[#allocation35_spill] sm:$0xff] %v17744_v15  ;;  %v2876_v20 = vpop.f32.mrf.mxu1  ;;  %v13970_v12 = vcombine.low %v14577_v40, %v4720_v35  ;;  %v17751_v21 = vpop.permute.xlu0 %6335  ;;  %v13971_v53 = vcombine.high %v14577_v40, %v4720_v35  ;;  %v5018_v26 = vrot.slane %v21544_v0, 4  ;;  %v4941_v58 = vrot.slane %v21546_v62, 4  ;;  %v21547_v15 = vld [vmem:[#allocation23_spill] sm:$0xff] }
 0x2f0   : > { %8057 = vrot.lane.b32.xlu0 %v17649_v9, %s14595_s20  ;;  %v2836_v34 = vpop.f32.mrf.mxu0  ;;  %v5263_v20 = vsel %vm770_vm3, %v17311_v28, %v5262_v1  ;;  %v21548_v35 = vrot.slane %v21494_v52, 4  ;;  %v5110_v28 = vsel %vm222_vm0, %v5094_v49, %v5095_v24  ;;  %v14040_v1 = vcombine.low %v5265_v56, %v5265_v56 }
 0x2f1   : > { %6001 = vmatpush1.bf16.msra.mxu1 %v13988_v22  ;;  %v2877_v47 = vpop.f32.mrf.mxu1  ;;  %v5017_v22 = vrot.slane %v21547_v15, 4  ;;  %v14041_v27 = vcombine.high %v5265_v56, %v5265_v56  ;;  %v14038_v0 = vcombine.low %v5263_v20, %v5263_v20  ;;  %v21552_v62 = vrot.slane %v21499_v7, 4 }
 0x2f2   : > { %5960 = vmatpush1.bf16.msra.mxu0 %v13986_v54  ;;  %6002 = vmatprep.subr.bf16.mxu1 %v13973_v48  ;;  %v5185_v55 = vsel %vm222_vm0, %v21548_v35, %v5171_v19  ;;  %v17766_v25 = vpop.f32.mrf.mxu0  ;;  %v21549_v54 = vld [vmem:[#allocation7_spill] sm:$0xff]  ;;  %v17772_v40 = vpop.permute.xlu1 %6341  ;;  %v14039_v19 = vcombine.high %v5263_v20, %v5263_v20  ;;  %v21553_v35 = vld [vmem:[#allocation10_spill] sm:$0xff] }
 0x2f3   : > { %5961 = vmatprep.subr.bf16.mxu0 %v13971_v53  ;;  %8134 = vrot.lane.b32.xlu1 %v17649_v9, %s14596_s21  ;;  %v4940_v48 = vrot.slane %v21549_v54, 4  ;;  %21550 = vst [vmem:[#allocation29_spill] sm:$0xff] %v17772_v40  ;;  %v17774_v47 = vpop.f32.mrf.mxu1  ;;  %v5188_v53 = vsel %vm692_vm2, %v17260_v6, %v5187_v29  ;;  %v17778_v34 = vpop.permute.xlu0 %6339  ;;  %v5108_v24 = vsel %vm222_vm0, %v21552_v62, %v5094_v49  ;;  %v4786_v39 = vrot.slane %v21553_v35, 4  ;;  %v21557_v62 = vld [vmem:[#allocation27_spill] sm:$0xff] }
 0x2f4   : > { %8132 = vrot.lane.b32.xlu0 %v17346_v5, %s14596_s21  ;;  %21551 = vst [vmem:[#allocation14_spill] sm:$0xff] %v17778_v34  ;;  %v17783_v56 = vpop.f32.mrf.mxu0  ;;  %v4864_v40 = vrot.slane %v21554_v51, 4  ;;  %v5033_v10 = vsel %vm222_vm0, %v5017_v22, %v5018_v26  ;;  %v5186_v6 = vsel %vm692_vm2, %v21494_v52, %v5185_v55  ;;  %v21555_v29 = vrot.slane %v21543_v33, 4 }
 0x2f5   : > { %6003 = vmatpush1.bf16.msra.mxu1 %v13972_v46  ;;  %v17791_v46 = vpop.f32.mrf.mxu1  ;;  %v21556_v49 = vrot.slane %v21522_v2, 4  ;;  %v4863_v34 = vrot.slane %v21557_v62, 4  ;;  %v21558_v51 = vrot.slane %v21505_v36, 4  ;;  %v4956_v55 = vsel %vm222_vm0, %v4940_v48, %v4941_v58 }
 0x2f6   : > { %5962 = vmatpush1.bf16.msra.mxu0 %v13970_v12  ;;  %14056 = vmatprep.subr.msk.bf16.mxu1 %vm222_vm0, %v14041_v27  ;;  %v5111_v12 = vsel %vm614_vm1, %v21541_v41, %v5110_v28  ;;  %v2917_v52 = vpop.f32.mrf.mxu0  ;;  %v17810_v27 = vpop.permute.xlu1 %6345  ;;  %v5109_v41 = vsel %vm614_vm1, %v21499_v7, %v5108_v24  ;;  %v21562_v7 = vld [vmem:[#allocation25_spill] sm:$0xff] }
 0x2f7   : > { %v4723_v20 = vsel %vm222_vm0, %v21556_v49, %v21555_v29  ;;  %v5031_v26 = vsel %vm222_vm0, %v21558_v51, %v5017_v22  ;;  %14054 = vmatprep.subr.msk.bf16.mxu0 %vm222_vm0, %v14039_v19  ;;  %7901 = vrot.lane.b32.xlu1 %v17346_v5, %s14593_s18  ;;  %21559 = vst [vmem:[#allocation26_spill] sm:$0xff] %v17810_v27  ;;  %v5778_v22 = vsel %vm222_vm0, %v14040_v1, 0  ;;  %v2958_v19 = vpop.f32.mrf.mxu1  ;;  %v21560_v29 = vrot.slane %v21502_v18, 4  ;;  %v17820_v58 = vpop.permute.xlu0 %6343 }
 0x2f8   : > { %8136 = vrot.lane.b32.xlu0 %v17532_v30, %s14596_s21  ;;  %14053 = vmatmul.mubr.msk.bf16.vlgmr.msra.gmra.mxu1 %vm1251_vm9, %v17414_v37  ;;  %v14025_v28 = vcombine.high %v5111_v12, %v5188_v53  ;;  %21561 = vst [vmem:[#allocation6_spill] sm:$0xff] %v17820_v58  ;;  %v5772_v51 = vsel %vm222_vm0, %v14038_v0, 0  ;;  %v14023_v52 = vcombine.high %v5109_v41, %v5186_v6  ;;  %v2918_v27 = vpop.f32.mrf.mxu0  ;;  %v4710_v24 = vrot.slane %v21562_v7, 4 }
 0x2f9   : > { %v4954_v49 = vsel %vm222_vm0, %v21560_v29, %v4940_v48  ;;  %14051 = vmatmul.mubr.msk.bf16.vlgmr.msra.gmra.mxu0 %vm1251_vm9, %v17414_v37  ;;  %6077 = vmatpush1.bf16.msra.mxu1 %v5778_v22  ;;  %v5034_v1 = vsel %vm536_vm4, %v21547_v15, %v5033_v10  ;;  %v4802_v19 = vsel %vm222_vm0, %v4786_v39, %v4787_v23  ;;  %v2959_v29 = vpop.f32.mrf.mxu1  ;;  %v21563_v0 = vrot.slane %v21514_v61, 4 }
 0x2fa   : > { %v4879_v4 = vsel %vm222_vm0, %v4863_v34, %v4864_v40  ;;  %v5032_v48 = vsel %vm536_vm4, %v21505_v36, %v5031_v26  ;;  %6036 = vmatpush1.bf16.msra.mxu0 %v5772_v51  ;;  %6078 = vmatprep.subr.bf16.mxu1 %v14025_v28  ;;  %v4957_v10 = vsel %vm458_vm7, %v21549_v54, %v4956_v55  ;;  %v17843_v36 = vpop.permute.xlu1 %6408  ;;  %v21564_v54 = vrot.slane %v21492_v38, 4 }
 0x2fb   : > { %v4877_v22 = vsel %vm222_vm0, %v21563_v0, %v4863_v34  ;;  %v14024_v15 = vcombine.low %v5111_v12, %v5188_v53  ;;  %6037 = vmatprep.subr.bf16.mxu0 %v14023_v52  ;;  %7905 = vrot.lane.b32.xlu1 %v17532_v30, %s14593_s18  ;;  %v4955_v23 = vsel %vm458_vm7, %v21502_v18, %v4954_v49  ;;  %v17846_v34 = vpop.f32.mrf.mxu0  ;;  %v17851_v12 = vpop.permute.xlu0 %6347  ;;  %v21566_v27 = vrot.slane %v21543_v33, 4 }
 0x2fc   : > { %v14022_v40 = vcombine.low %v5109_v41, %v5186_v6  ;;  %7903 = vrot.lane.b32.xlu0 %v17649_v9, %s14593_s18  ;;  %v14009_v26 = vcombine.high %v4957_v10, %v5034_v1  ;;  %6061 = vmatprep.mubr.bf16.mxu0 %v21485_v3  ;;  %v4800_v53 = vsel %vm222_vm0, %v21564_v54, %v4786_v39  ;;  %v17856_v6 = vpop.f32.mrf.mxu1 }
 0x2fd   : > { %21565 = vst [vmem:[#allocation18_spill] sm:$0xff] %v17851_v12  ;;  %6079 = vmatpush1.bf16.msra.mxu1 %v14024_v15  ;;  %v14007_v55 = vcombine.high %v4955_v23, %v5032_v48  ;;  %v4880_v18 = vsel %vm380_vm5, %v21557_v62, %v4879_v4  ;;  %6102 = vmatprep.mubr.bf16.mxu1 %v21485_v3  ;;  %v17863_v39 = vpop.f32.mrf.mxu0 }
 0x2fe   : > { %v4725_v41 = vsel %vm222_vm0, %v21566_v27, %v4710_v24  ;;  %v4878_v28 = vsel %vm380_vm5, %v21514_v61, %v4877_v22  ;;  %6038 = vmatpush1.bf16.msra.mxu0 %v14022_v40  ;;  %6080 = vmatprep.subr.bf16.mxu1 %v14009_v26  ;;  %v4803_v49 = vsel %vm302_vm6, %v21553_v35, %v4802_v19  ;;  %v17869_v62 = vpop.f32.mrf.mxu1  ;;  %v6717_v35 = vpop.permute.xlu1 %6716  ;;  %v6195_v19 = vrot.slane %v17377_v59, 4  ;;  %v14578_v26 = vld [vmem:[%s14628_s14 + $0x3c] sm:$0xff] }
 0x2ff   : > { %6039 = vmatprep.subr.bf16.mxu0 %v14007_v55  ;;  %v14008_v4 = vcombine.low %v4957_v10, %v5034_v1  ;;  %7980 = vrot.lane.b32.xlu1 %v17649_v9, %s14594_s19  ;;  %v17873_v51 = vsel %vm224_vm8, %v21522_v2, %v4723_v20  ;;  %v4801_v61 = vsel %vm302_vm6, %v21492_v38, %v4800_v53  ;;  %v2999_v24 = vpop.f32.mrf.mxu0  ;;  %v6196_v1 = vrot.slane %v17366_v11, 4  ;;  %v17881_v29 = vpop.permute.xlu0 %6410  ;;  %v17884_v2 = vld [vmem:[%s14628_s14 + $0x44] sm:$0xff] }
 0x300   : > { %v14006_v52 = vcombine.low %v4955_v23, %v5032_v48  ;;  %7978 = vrot.lane.b32.xlu0 %v17346_v5, %s14594_s19  ;;  %v13993_v7 = vcombine.high %v4803_v49, %v4880_v18  ;;  %v13991_v0 = vcombine.high %v4801_v61, %v4878_v28  ;;  %21567 = vst [vmem:[#allocation23_spill] sm:$0xff] %v17884_v2  ;;  %v3040_v20 = vpop.f32.mrf.mxu1  ;;  %v21101_v24 = vrot.slane %v17409_v32, 4 }
 0x301   : > { %6081 = vmatpush1.bf16.msra.mxu1 %v14008_v4  ;;  %v4726_v38 = vsel %vm224_vm8, %v21543_v33, %v4725_v41  ;;  %v3000_v48 = vpop.f32.mrf.mxu0  ;;  %v13992_v22 = vcombine.low %v4803_v49, %v4880_v18  ;;  %v17892_v10 = vadd.f32 %v17709_v42, %v17394_v45  ;;  %v17896_v15 = vadd.f32 %v17717_v31, %v17396_v14  ;;  %v17948_v20 = vld [vmem:[%s14628_s14 + $0x10] sm:$0xff] }
 0x302   : > { %6040 = vmatpush1.bf16.msra.mxu0 %v14006_v52  ;;  %6082 = vmatprep.subr.bf16.mxu1 %v13993_v7  ;;  %v3041_v23 = vpop.f32.mrf.mxu1  ;;  %v13990_v40 = vcombine.low %v4801_v61, %v4878_v28  ;;  %v17900_v33 = vpop.permute.xlu1 %6720  ;;  %v13975_v54 = vcombine.high %v14578_v26, %v17873_v51  ;;  %v13977_v53 = vcombine.high %v17884_v2, %v4726_v38  ;;  %v6734_v41 = vrot.slane %v6717_v35, 4 }
 0x303   : > { %6041 = vmatprep.subr.bf16.mxu0 %v13991_v0  ;;  %7747 = vrot.lane.b32.xlu1 %v17346_v5, %s14591_s16  ;;  %v17905_v55 = vpop.f32.mrf.mxu0  ;;  %v6204_v45 = vsel %vm222_vm0, %v6195_v19, %v6196_v1  ;;  %v21098_v14 = vrot.slane %v17900_v33, 4  ;;  %v6719_v42 = vpop.permute.xlu0 %6718  ;;  %v17913_v31 = vadd.f32 %v17726_v8, %v17418_v43  ;;  %v17917_v18 = vadd.f32 %v17733_v50, %v17428_v17 }
 0x304   : > { %7982 = vrot.lane.b32.xlu0 %v17532_v30, %s14594_s19  ;;  %v17919_v27 = vpop.f32.mrf.mxu1  ;;  %v6735_v28 = vrot.slane %v6719_v42, 4  ;;  %v13976_v4 = vcombine.low %v17884_v2, %v4726_v38  ;;  %v13974_v17 = vcombine.low %v14578_v26, %v17873_v51  ;;  %v17931_v8 = vsel %vm224_vm8, %v17377_v59, %v6204_v45 }
 0x305   : > { %6083 = vmatpush1.bf16.msra.mxu1 %v13992_v22  ;;  %v17921_v49 = vpop.f32.mrf.mxu0  ;;  %v21100_v51 = vrot.slane %v17715_v63, 4  ;;  %v6349_v48 = vrot.slane %v17719_v13, 4  ;;  %v21099_v45 = vrot.slane %v17554_v44, 4 }
 0x306   : > { %6042 = vmatpush1.bf16.msra.mxu0 %v13990_v40  ;;  %6084 = vmatprep.subr.bf16.mxu1 %v13977_v53  ;;  %v17926_v43 = vpop.f32.mrf.mxu1  ;;  %v6743_v50 = vsel %vm222_vm0, %v6734_v41, %v6735_v28  ;;  %v6745_v61 = vsel %vm222_vm0, %v6735_v28, %v21098_v14  ;;  %v17939_v52 = vpop.permute.xlu1 %6564 }
 0x307   : > { %6043 = vmatprep.subr.bf16.mxu0 %v13975_v54  ;;  %7751 = vrot.lane.b32.xlu1 %v17532_v30, %s14591_s16  ;;  %v3081_v7 = vpop.f32.mrf.mxu0  ;;  %v6746_v19 = vsel %vm770_vm3, %v6719_v42, %v6745_v61  ;;  %v17944_v59 = vpop.permute.xlu0 %6562  ;;  %v6744_v0 = vsel %vm770_vm3, %v6717_v35, %v6743_v50  ;;  %v6273_v42 = vrot.slane %v17563_v57, 4  ;;  %v21571_v61 = vld [vmem:[#allocation13_spill] sm:$0xff] }
 0x308   : > { %7749 = vrot.lane.b32.xlu0 %v17649_v9, %s14591_s16  ;;  %v3122_v38 = vpop.f32.mrf.mxu1  ;;  %v14125_v22 = vcombine.low %v6746_v19, %v6746_v19  ;;  %v14126_v23 = vcombine.high %v6746_v19, %v6746_v19  ;;  %v14124_v40 = vcombine.high %v6744_v0, %v6744_v0  ;;  %v14123_v54 = vcombine.low %v6744_v0, %v6744_v0 }
 0x309   : > { %6085 = vmatpush1.bf16.msra.mxu1 %v13976_v4  ;;  %v3082_v26 = vpop.f32.mrf.mxu0  ;;  %v6358_v19 = vsel %vm222_vm0, %v6349_v48, %v21100_v51  ;;  %v6581_v0 = vrot.slane %v17939_v52, 4  ;;  %v6580_v38 = vrot.slane %v17944_v59, 4  ;;  %v21570_v4 = vld [vmem:[#allocation4_spill] sm:$0xff] }
 0x30a   : > { %6044 = vmatpush1.bf16.msra.mxu0 %v13974_v17  ;;  %v3123_v53 = vpop.f32.mrf.mxu1  ;;  %v6640_v35 = vpop.permute.xlu1 %6639  ;;  %v7235_v41 = vsel %vm222_vm0, %v14125_v22, 0  ;;  %14141 = vmatprep.subr.msk.bf16.mxu1 %vm222_vm0, %v14126_v23  ;;  %v7229_v50 = vsel %vm222_vm0, %v14123_v54, 0  ;;  %v21568_v26 = vld [vmem:[#allocation16_spill] sm:$0xff]  ;;  %v21569_v54 = vld [vmem:[#allocation31_spill] sm:$0xff] }
 0x30b   : > { %7826 = vrot.lane.b32.xlu1 %v17649_v9, %s14592_s17  ;;  %14139 = vmatprep.subr.msk.bf16.mxu0 %vm222_vm0, %v14124_v40  ;;  %v17959_v28 = vpop.f32.mrf.mxu0  ;;  %v17964_v17 = vpop.permute.xlu0 %6566  ;;  %v6272_v40 = vrot.slane %v17521_v60, 4  ;;  %v17988_v48 = vadd.f32 %v17766_v25, %v21568_v26  ;;  %v17992_v53 = vadd.f32 %v17774_v47, %v21569_v54  ;;  %v6206_v47 = vsel %vm222_vm0, %v6196_v1, %v21101_v24 }
 0x30c   : > { %7824 = vrot.lane.b32.xlu0 %v17346_v5, %s14592_s17  ;;  %v17971_v7 = vpop.f32.mrf.mxu1  ;;  %14057 = vmatmul.mubr.msk.bf16.vlgmr.msra.gmra.mxu1 %vm1251_vm9, %v17414_v37  ;;  %v18021_v54 = vsel %vm380_vm5, %v17719_v13, %v6358_v19  ;;  %v6589_v24 = vsel %vm222_vm0, %v6580_v38, %v6581_v0  ;;  %v6657_v22 = vrot.slane %v6640_v35, 4  ;;  %v6426_v19 = vrot.slane %v17843_v36, 4 }
 0x30d   : > { %14055 = vmatmul.mubr.msk.bf16.vlgmr.msra.gmra.mxu0 %vm1251_vm9, %v17414_v37  ;;  %v17981_v23 = vpop.f32.mrf.mxu0  ;;  %7324 = vmatpush1.bf16.msra.mxu1 %v7235_v41  ;;  %v17996_v37 = vadd.f32 %v17783_v56, %v21570_v4  ;;  %v21572_v56 = vld [vmem:[#allocation15_spill] sm:$0xff]  ;;  %v6281_v26 = vsel %vm222_vm0, %v6272_v40, %v6273_v42 }
 0x30e   : > { %7283 = vmatpush1.bf16.msra.mxu0 %v7229_v50  ;;  %v17998_v50 = vpop.f32.mrf.mxu1  ;;  %v18006_v25 = vpop.permute.xlu1 %6643  ;;  %7308 = vmatprep.mubr.bf16.mxu0 %v21485_v3  ;;  %v18016_v41 = vadd.f32 %v17791_v46, %v21572_v56  ;;  %v21573_v46 = vrot.slane %v17964_v17, 4 }
 0x30f   : > { %7670 = vrot.lane.b32.xlu1 %v17346_v5, %s14590_s15  ;;  %v6283_v5 = vsel %vm222_vm0, %v6273_v42, %v21099_v45  ;;  %v4328_v4 = vpop.f32.mrf.mxu0  ;;  %v21102_v14 = vrot.slane %v18006_v25, 4  ;;  %v6642_v51 = vpop.permute.xlu0 %6641  ;;  %7349 = vmatprep.mubr.bf16.mxu1 %v21485_v3  ;;  %v18048_v45 = vld [vmem:[%s14628_s14 + $0x2c] sm:$0xff] }
 0x310   : > { %7828 = vrot.lane.b32.xlu0 %v17532_v30, %s14592_s17  ;;  %v4369_v1 = vpop.f32.mrf.mxu1  ;;  %v6591_v42 = vsel %vm222_vm0, %v6581_v0, %v21573_v46  ;;  %v6658_v40 = vrot.slane %v6642_v51, 4  ;;  %v6427_v4 = vrot.slane %v17881_v29, 4  ;;  %v6590_v46 = vsel %vm614_vm1, %v17944_v59, %v6589_v24  ;;  %v21574_v59 = vld [vmem:[#allocation9_spill] sm:$0xff] }
 0x311   : > { %v4329_v56 = vpop.f32.mrf.mxu0 }
 0x312   : > { %v4370_v13 = vpop.f32.mrf.mxu1  ;;  %v6668_v38 = vsel %vm222_vm0, %v6658_v40, %v21102_v14  ;;  %v6486_v1 = vpop.permute.xlu1 %6485  ;;  %v6666_v0 = vsel %vm222_vm0, %v6657_v22, %v6658_v40 }
 0x313   : > { %7674 = vrot.lane.b32.xlu1 %v17532_v30, %s14590_s15  ;;  %v6592_v30 = vsel %vm614_vm1, %v17939_v52, %v6591_v42  ;;  %v6669_v56 = vsel %vm692_vm2, %v6642_v51, %v6668_v38  ;;  %v18045_v13 = vpop.permute.xlu0 %6412  ;;  %v6667_v14 = vsel %vm692_vm2, %v6640_v35, %v6666_v0  ;;  %v18056_v52 = vadd.f32 %v17846_v34, %v21574_v59  ;;  %v21576_v51 = vld [vmem:[#allocation33_spill] sm:$0xff]  ;;  %v21578_v42 = vld [vmem:[#allocation22_spill] sm:$0xff]  ;;  %v21580_v38 = vld [vmem:[#allocation24_spill] sm:$0xff] }
 0x314   : > { %7672 = vrot.lane.b32.xlu0 %v17649_v9, %s14590_s15  ;;  %v14109_v12 = vcombine.low %v6592_v30, %v6669_v56  ;;  %v21107_v9 = vrot.slane %v18045_v13, 4  ;;  %v14107_v58 = vcombine.low %v6590_v46, %v6667_v14  ;;  %v14108_v2 = vcombine.high %v6590_v46, %v6667_v14 }
 0x315   : > { %v14110_v24 = vcombine.high %v6592_v30, %v6669_v56  ;;  %21575 = vst [vmem:[#allocation7_spill] sm:$0xff] %v18056_v52  ;;  %v18060_v22 = vadd.f32 %v17856_v6, %v21576_v51  ;;  %v18064_v35 = vadd.f32 %v17863_v39, %v21578_v42  ;;  %v18066_v40 = vpop.f32.mrf.mxu1  ;;  %v21581_v34 = vrot.slane %v17751_v21, 4  ;;  %v21583_v30 = vld [vmem:[#allocation36_spill] sm:$0xff] }
 0x316   : > { %7284 = vmatprep.subr.bf16.mxu0 %v14108_v2  ;;  %v18071_v0 = vpop.permute.xlu1 %6489  ;;  %v21582_v46 = vrot.slane %v17715_v63, 4  ;;  %v18080_v39 = vsel %vm224_vm8, %v17366_v11, %v6206_v47  ;;  %v18084_v56 = vadd.f32 %v17869_v62, %v21583_v30  ;;  %v18086_v59 = vpop.f32.mrf.mxu0  ;;  %v18090_v2 = vsel %vm302_vm6, %v17563_v57, %v6283_v5 }
 0x317   : > { %8217 = vrot.lane.b32.xlu1 %v17722_v16, %s14597_s22  ;;  %21577 = vst [vmem:[#allocation10_spill] sm:$0xff] %v18060_v22  ;;  %21579 = vst [vmem:[#allocation34_spill] sm:$0xff] %v18064_v35  ;;  %v18094_v51 = vsel %vm302_vm6, %v17521_v60, %v6281_v26  ;;  %7325 = vmatprep.subr.bf16.mxu1 %v14110_v24  ;;  %v21106_v42 = vrot.slane %v18071_v0, 4  ;;  %v6435_v11 = vsel %vm222_vm0, %v6426_v19, %v6427_v4  ;;  %v18098_v47 = vpop.f32.mrf.mxu1 }
 0x318   : > { %8215 = vrot.lane.b32.xlu0 %v18048_v45, %s14597_s22  ;;  %v6360_v6 = vsel %vm222_vm0, %v21582_v46, %v21581_v34  ;;  %21584 = vst [vmem:[#allocation27_spill] sm:$0xff] %v18084_v56  ;;  %v6488_v34 = vpop.permute.xlu0 %6487  ;;  %7285 = vmatpush1.bf16.msra.mxu0 %v14107_v58  ;;  %v6503_v62 = vrot.slane %v6486_v1, 4  ;;  %v6437_v46 = vsel %vm222_vm0, %v6427_v4, %v21107_v9  ;;  %v18105_v5 = vpop.f32.mrf.mxu0 }
 0x319   : > { %v6504_v57 = vrot.slane %v6488_v34, 4  ;;  %7326 = vmatpush1.bf16.msra.mxu1 %v14109_v12  ;;  %v14076_v60 = vcombine.high %v18094_v51, %v18021_v54  ;;  %v6361_v58 = vsel %vm380_vm5, %v17715_v63, %v6360_v6  ;;  %v4451_v26 = vpop.f32.mrf.mxu1  ;;  %v6436_v4 = vsel %vm458_vm7, %v17843_v36, %v6435_v11 }
 0x31a   : > { %v18116_v12 = vpop.permute.xlu1 %6724  ;;  %v4410_v30 = vpop.f32.mrf.mxu0  ;;  %v6438_v63 = vsel %vm458_vm7, %v17881_v29, %v6437_v46  ;;  %v21586_v29 = vld [vmem:[#allocation19_spill] sm:$0xff]  ;;  %v21587_v46 = vld [vmem:[#allocation28_spill] sm:$0xff] }
 0x31b   : > { %8063 = vrot.lane.b32.xlu1 %v17722_v16, %s14595_s20  ;;  %v6514_v19 = vsel %vm222_vm0, %v6504_v57, %v21106_v42  ;;  %v6512_v24 = vsel %vm222_vm0, %v6503_v62, %v6504_v57  ;;  %v21108_v26 = vrot.slane %v18116_v12, 4  ;;  %v4452_v14 = vpop.f32.mrf.mxu1  ;;  %v18129_v62 = vld [vmem:[%s14628_s14 + $0x18] sm:$0xff]  ;;  %v18137_v57 = vadd.f32 %v17919_v27, %v21587_v46 }
 0x31c   : > { %8061 = vrot.lane.b32.xlu0 %v18048_v45, %s14595_s20  ;;  %v6515_v6 = vsel %vm536_vm4, %v6488_v34, %v6514_v19  ;;  %v6723_v42 = vpop.permute.xlu0 %6722  ;;  %v6513_v9 = vsel %vm536_vm4, %v6486_v1, %v6512_v24  ;;  %v4411_v36 = vpop.f32.mrf.mxu0  ;;  %21585 = vst [vmem:[#allocation25_spill] sm:$0xff] %v18129_v62  ;;  %v18133_v34 = vadd.f32 %v17905_v55, %v21586_v29  ;;  %v21588_v1 = vld [vmem:[#allocation37_spill] sm:$0xff]  ;;  %v21590_v27 = vld [vmem:[#allocation38_spill] sm:$0xff]  ;;  %v21592_v30 = vrot.slane %v17409_v32, 4 }
 0x31d   : > { %v14093_v56 = vcombine.low %v6438_v63, %v6515_v6  ;;  %v6737_v35 = vrot.slane %v6723_v42, 4  ;;  %v14091_v22 = vcombine.low %v6436_v4, %v6513_v9  ;;  %v14092_v52 = vcombine.high %v6436_v4, %v6513_v9 }
 0x31e   : > { %v14094_v11 = vcombine.high %v6438_v63, %v6515_v6  ;;  %v18141_v14 = vadd.f32 %v17921_v49, %v21588_v1  ;;  %v21589_v9 = vrot.slane %v17900_v33, 4  ;;  %v18151_v55 = vpop.permute.xlu1 %6570  ;;  %v18155_v24 = vadd.f32 %v17926_v43, %v21590_v27  ;;  %v21593_v6 = vld [vmem:[#allocation35_spill] sm:$0xff] }
 0x31f   : > { %8140 = vrot.lane.b32.xlu1 %v17722_v16, %s14596_s21  ;;  %v6749_v4 = vsel %vm222_vm0, %v6737_v35, %v21108_v26  ;;  %7286 = vmatprep.subr.bf16.mxu0 %v14092_v52  ;;  %v21591_v49 = vrot.slane %v21571_v61, 4  ;;  %v6352_v36 = vrot.slane %v21593_v6, 4  ;;  %v14078_v52 = vcombine.high %v18090_v2, %v6361_v58 }
 0x320   : > { %v6747_v19 = vsel %vm222_vm0, %v21589_v9, %v6737_v35  ;;  %8138 = vrot.lane.b32.xlu0 %v18048_v45, %s14596_s21  ;;  %v21594_v35 = vld [vmem:[#allocation14_spill] sm:$0xff]  ;;  %7327 = vmatprep.subr.bf16.mxu1 %v14094_v11  ;;  %v6569_v46 = vpop.permute.xlu0 %6568  ;;  %v14061_v43 = vcombine.low %v18129_v62, %v18080_v39  ;;  %v14062_v1 = vcombine.high %v18129_v62, %v18080_v39  ;;  %v21595_v9 = vrot.slane %v21580_v38, 4 }
 0x321   : > { %v18162_v63 = vsel %vm222_vm0, %v21592_v30, %v21591_v49  ;;  %7287 = vmatpush1.bf16.msra.mxu0 %v14091_v22  ;;  %7328 = vmatpush1.bf16.msra.mxu1 %v14093_v56  ;;  %v21596_v27 = vmov %v21591_v49  ;;  %v14075_v22 = vcombine.low %v18094_v51, %v18021_v54  ;;  %v18181_v11 = vsel %vm770_vm3, %v6723_v42, %v6749_v4  ;;  %v21597_v56 = vld [vmem:[#allocation12_spill] sm:$0xff]  ;;  %v21598_v30 = vld [vmem:[#allocation30_spill] sm:$0xff] }
 0x322   : > { %7288 = vmatprep.subr.bf16.mxu0 %v14076_v60  ;;  %v18176_v49 = vsel %vm222_vm0, %v21596_v27, %v21595_v9  ;;  %7329 = vmatprep.subr.bf16.mxu1 %v14078_v52  ;;  %v6748_v39 = vsel %vm770_vm3, %v17900_v33, %v6747_v19  ;;  %v6275_v26 = vrot.slane %v21598_v30, 4  ;;  %v6583_v29 = vrot.slane %v6569_v46, 4  ;;  %v18192_v54 = vpop.permute.xlu1 %6647 }
 0x323   : > { %7909 = vrot.lane.b32.xlu1 %v17722_v16, %s14593_s18  ;;  %v14077_v9 = vcombine.low %v18090_v2, %v6361_v58  ;;  %v21599_v51 = vrot.slane %v17751_v21, 4  ;;  %v21113_v4 = vrot.slane %v18151_v55, 4  ;;  %v21111_v33 = vrot.slane %v18192_v54, 4 }
 0x324   : > { %7907 = vrot.lane.b32.xlu0 %v18048_v45, %s14593_s18  ;;  %v6646_v19 = vpop.permute.xlu0 %6645  ;;  %v21600_v52 = vrot.slane %v21594_v35, 4  ;;  %v14129_v2 = vcombine.low %v18181_v11, %v18181_v11  ;;  %v21601_v60 = vcombine.high %v17948_v20, %v17931_v8  ;;  %v14127_v62 = vcombine.low %v6748_v39, %v6748_v39 }
 0x325   : > { %v6362_v42 = vsel %vm222_vm0, %v21599_v51, %v6352_v36  ;;  %7289 = vmatpush1.bf16.msra.mxu0 %v14075_v22  ;;  %v6660_v58 = vrot.slane %v6646_v19, 4  ;;  %7330 = vmatpush1.bf16.msra.mxu1 %v14077_v9  ;;  %v14128_v51 = vcombine.high %v6748_v39, %v6748_v39  ;;  %v18211_v22 = vadd.f32 %v17959_v28, %v17892_v10 }
 0x326   : > { %v6364_v27 = vsel %vm222_vm0, %v6352_v36, %v21600_v52  ;;  %7290 = vmatprep.subr.bf16.mxu0 %v21601_v60  ;;  %7331 = vmatprep.subr.bf16.mxu1 %v14062_v1  ;;  %v18215_v36 = vadd.f32 %v17971_v7, %v17896_v15  ;;  %v18219_v9 = vadd.f32 %v17981_v23, %v17913_v31  ;;  %v18226_v1 = vpop.permute.xlu1 %6416  ;;  %v21602_v10 = vrot.slane %v17964_v17, 4 }
 0x327   : > { %7986 = vrot.lane.b32.xlu1 %v17722_v16, %s14594_s19  ;;  %v6672_v39 = vsel %vm222_vm0, %v6660_v58, %v21111_v33  ;;  %v21603_v15 = vrot.slane %v18006_v25, 4  ;;  %v18236_v31 = vadd.f32 %v17998_v50, %v17917_v18  ;;  %v14130_v23 = vcombine.high %v18181_v11, %v18181_v11 }
 0x328   : > { %7984 = vrot.lane.b32.xlu0 %v18048_v45, %s14594_s19  ;;  %v6593_v28 = vsel %vm222_vm0, %v21602_v10, %v6583_v29  ;;  %v6595_v60 = vsel %vm222_vm0, %v6583_v29, %v21113_v4  ;;  %v21112_v52 = vrot.slane %v18226_v1, 4  ;;  %v6415_v33 = vpop.permute.xlu0 %6414  ;;  %v21604_v10 = vcombine.low %v17948_v20, %v17931_v8 }
 0x329   : > { %v6670_v7 = vsel %vm222_vm0, %v21603_v15, %v6660_v58  ;;  %v18250_v58 = vld [vmem:[%s20925_s1 + $0x10] sm:$0xf]  ;;  %v21605_v50 = vrot.slane %v21597_v56, 4  ;;  %v21606_v29 = vrot.slane %v17554_v44, 4  ;;  %v6673_v8 = vsel %vm692_vm2, %v6646_v19, %v6672_v39  ;;  %7332 = vmatpush1.bf16.msra.mxu1 %v14061_v43  ;;  %v18277_v19 = vpop.f32.mrf.mxu1 }
 0x32a   : > { %7291 = vmatpush1.bf16.msra.mxu0 %v21604_v10  ;;  %v6671_v18 = vsel %vm692_vm2, %v18006_v25, %v6670_v7  ;;  %v6429_v20 = vrot.slane %v6415_v33, 4  ;;  %v18266_v10 = vsel %vm380_vm5, %v17751_v21, %v6362_v42  ;;  %14145 = vmatprep.subr.msk.bf16.mxu1 %vm222_vm0, %v14130_v23  ;;  %v6594_v25 = vsel %vm614_vm1, %v17964_v17, %v6593_v28  ;;  %v18287_v42 = vpop.permute.xlu1 %6493 }
 0x32b   : > { %v18257_v11 = vsel %vm222_vm0, %v6275_v26, %v21605_v50  ;;  %v6285_v15 = vsel %vm222_vm0, %v21606_v29, %v6275_v26  ;;  %14143 = vmatprep.subr.msk.bf16.mxu0 %vm222_vm0, %v14128_v51  ;;  %7755 = vrot.lane.b32.xlu1 %v17722_v16, %s14591_s16  ;;  %v18275_v26 = vsel %vm380_vm5, %v21593_v6, %v6364_v27  ;;  %v7241_v17 = vsel %vm222_vm0, %v14127_v62, 0  ;;  %v18290_v27 = vpop.f32.mrf.mxu0  ;;  %v18296_v23 = vpop.f32.mrf.mxu1 }
 0x32c   : > { %v6596_v43 = vsel %vm614_vm1, %v6569_v46, %v6595_v60  ;;  %v6441_v21 = vsel %vm222_vm0, %v6429_v20, %v21112_v52  ;;  %7753 = vrot.lane.b32.xlu0 %v18048_v45, %s14591_s16  ;;  %v14112_v6 = vcombine.high %v6594_v25, %v6671_v18  ;;  %14142 = vmatmul.mubr.msk.bf16.vlgmr.msra.gmra.mxu1 %vm1251_vm9, %v18250_v58  ;;  %v6507_v46 = vrot.slane %v18287_v42, 4  ;;  %v6492_v39 = vpop.permute.xlu0 %6491 }
 0x32d   : > { %14140 = vmatmul.mubr.msk.bf16.vlgmr.msra.gmra.mxu0 %vm1251_vm9, %v18250_v58  ;;  %v14113_v51 = vcombine.low %v6596_v43, %v6673_v8  ;;  %v7247_v28 = vsel %vm222_vm0, %v14129_v2, 0  ;;  %v14114_v7 = vcombine.high %v6596_v43, %v6673_v8  ;;  %v6442_v60 = vsel %vm458_vm7, %v6415_v33, %v6441_v21  ;;  %v4490_v4 = vpop.f32.mrf.mxu0  ;;  %v4533_v8 = vpop.f32.mrf.mxu1  ;;  %7431 = vmatprep.mubr.bf16.mxu1 %v21485_v3 }
 0x32e   : > { %7365 = vmatpush1.bf16.msra.mxu0 %v7241_v17  ;;  %v6506_v50 = vrot.slane %v6492_v39, 4  ;;  %7406 = vmatpush1.bf16.msra.mxu1 %v7247_v28  ;;  %v14111_v62 = vcombine.low %v6594_v25, %v6671_v18  ;;  %v21607_v29 = vrot.slane %v18045_v13, 4  ;;  %v18306_v2 = vadd.f32 %v18086_v59, %v17988_v48 }
 0x32f   : > { %7366 = vmatprep.subr.bf16.mxu0 %v14112_v6  ;;  %7407 = vmatprep.subr.bf16.mxu1 %v14114_v7  ;;  %v18310_v33 = vadd.f32 %v18066_v40, %v17992_v53  ;;  %v18314_v18 = vadd.f32 %v18105_v5, %v17996_v37  ;;  %v21608_v25 = vrot.slane %v18071_v0, 4  ;;  %v18327_v53 = vadd.f32 %v18098_v47, %v18016_v41  ;;  %v4492_v37 = vpop.f32.mrf.mxu0  ;;  %v18330_v59 = vpop.permute.xlu1 %6728 }
 0x330   : > { %v6439_v52 = vsel %vm222_vm0, %v21607_v29, %v6429_v20  ;;  %7832 = vrot.lane.b32.xlu1 %v17722_v16, %s14592_s17  ;;  %v6518_v20 = vsel %vm222_vm0, %v6506_v50, %v6507_v46  ;;  %7830 = vrot.lane.b32.xlu0 %v18048_v45, %s14592_s17  ;;  %v4534_v21 = vpop.f32.mrf.mxu1  ;;  %v21117_v41 = vrot.slane %v18330_v59, 4  ;;  %v6727_v47 = vpop.permute.xlu0 %6726 }
 0x331   : > { %v6516_v48 = vsel %vm222_vm0, %v21608_v25, %v6506_v50  ;;  %7390 = vmatprep.mubr.bf16.mxu0 %v21485_v3  ;;  %v6519_v40 = vsel %vm536_vm4, %v6492_v39, %v6518_v20  ;;  %v6440_v5 = vsel %vm458_vm7, %v18045_v13, %v6439_v52  ;;  %v4493_v28 = vpop.f32.mrf.mxu0  ;;  %v6209_v13 = vsel %vm224_vm8, %v17409_v32, %v18162_v63  ;;  %v18352_v32 = vld [vmem:[%s14628_s14 + $0x28] sm:$0xff]  ;;  %v21611_v25 = vld [vmem:[#allocation23_spill] sm:$0xff] }
 0x332   : > { %7367 = vmatpush1.bf16.msra.mxu0 %v14111_v62  ;;  %v6517_v43 = vsel %vm536_vm4, %v18071_v0, %v6516_v48  ;;  %v14097_v17 = vcombine.low %v6442_v60, %v6519_v40  ;;  %7408 = vmatpush1.bf16.msra.mxu1 %v14113_v51  ;;  %v6286_v0 = vsel %vm302_vm6, %v17554_v44, %v6285_v15  ;;  %v6739_v52 = vrot.slane %v6727_v47, 4  ;;  %v21610_v62 = vld [vmem:[#allocation17_spill] sm:$0xff] }
 0x333   : > { %v14095_v6 = vcombine.low %v6440_v5, %v6517_v43  ;;  %v14096_v39 = vcombine.high %v6440_v5, %v6517_v43  ;;  %v14098_v7 = vcombine.high %v6442_v60, %v6519_v40  ;;  %v6288_v51 = vsel %vm302_vm6, %v21598_v30, %v18257_v11  ;;  %v18361_v30 = vld [vmem:[%s14628_s14 + $0x3c] sm:$0xff] }
 0x334   : > { %7678 = vrot.lane.b32.xlu1 %v17722_v16, %s14590_s15  ;;  %7676 = vrot.lane.b32.xlu0 %v18048_v45, %s14590_s15  ;;  %v14080_v50 = vcombine.high %v6286_v0, %v18266_v10  ;;  %v6211_v44 = vsel %vm224_vm8, %v21571_v61, %v18176_v49  ;;  %v18357_v16 = vpop.permute.xlu1 %6574  ;;  %v14082_v63 = vcombine.high %v6288_v51, %v18275_v26  ;;  %v21609_v11 = vrot.slane %v18116_v12, 4  ;;  %v6573_v60 = vpop.permute.xlu0 %6572  ;;  %v14579_v61 = vld [vmem:[%s14628_s14 + $0x20] sm:$0xff]  ;;  %v21613_v43 = vld [vmem:[#allocation10_spill] sm:$0xff] }
 0x335   : > { %7368 = vmatprep.subr.bf16.mxu0 %v14096_v39  ;;  %7409 = vmatprep.subr.bf16.mxu1 %v14098_v7  ;;  %v6753_v15 = vsel %vm222_vm0, %v6739_v52, %v21117_v41  ;;  %v14064_v49 = vcombine.high %v14579_v61, %v6209_v13  ;;  %v6200_v29 = vrot.slane %v21610_v62, 4  ;;  %v14079_v8 = vcombine.low %v6286_v0, %v18266_v10  ;;  %v21612_v40 = vld [vmem:[#allocation7_spill] sm:$0xff]  ;;  %v21614_v10 = vld [vmem:[#allocation34_spill] sm:$0xff] }
 0x336   : > { %7369 = vmatpush1.bf16.msra.mxu0 %v14095_v6  ;;  %v6751_v45 = vsel %vm222_vm0, %v21609_v11, %v6739_v52  ;;  %7410 = vmatpush1.bf16.msra.mxu1 %v14097_v17  ;;  %v14081_v20 = vcombine.low %v6288_v51, %v18275_v26  ;;  %v14066_v48 = vcombine.high %v18352_v32, %v6211_v44  ;;  %v6585_v37 = vrot.slane %v6573_v60, 4  ;;  %v21615_v0 = vld [vmem:[#allocation27_spill] sm:$0xff]  ;;  %v21618_v11 = vld [vmem:[#allocation29_spill] sm:$0xff] }
 0x337   : > { %7370 = vmatprep.subr.bf16.mxu0 %v14080_v50  ;;  %7411 = vmatprep.subr.bf16.mxu1 %v14082_v63  ;;  %v18380_v5 = vadd.f32 %v18290_v27, %v21612_v40  ;;  %v18384_v21 = vadd.f32 %v18277_v19, %v21613_v43  ;;  %v18387_v26 = vadd.f32 %v4490_v4, %v21614_v10  ;;  %v21114_v6 = vrot.slane %v18357_v16, 4  ;;  %v21616_v19 = vld [vmem:[#allocation20_spill] sm:$0xff] }
 0x338   : > { %8221 = vrot.lane.b32.xlu1 %v21611_v25, %s14597_s22  ;;  %8219 = vrot.lane.b32.xlu0 %v18361_v30, %s14597_s22  ;;  %v6754_v17 = vsel %vm770_vm3, %v6727_v47, %v6753_v15  ;;  %v18391_v39 = vpop.permute.xlu1 %6651  ;;  %v6752_v28 = vsel %vm770_vm3, %v18116_v12, %v6751_v45  ;;  %v18397_v27 = vadd.f32 %v18296_v23, %v21615_v0  ;;  %v21116_v7 = vrot.slane %v21616_v19, 4  ;;  %v6650_v51 = vpop.permute.xlu0 %6649  ;;  %v21617_v50 = vld [vmem:[#allocation8_spill] sm:$0xff] }
 0x339   : > { %v14063_v52 = vcombine.low %v14579_v61, %v6209_v13  ;;  %v21115_v4 = vrot.slane %v18391_v39, 4  ;;  %v14065_v47 = vcombine.low %v18352_v32, %v6211_v44  ;;  %v6277_v63 = vrot.slane %v21617_v50, 4 }
 0x33a   : > { %7371 = vmatpush1.bf16.msra.mxu0 %v14079_v8  ;;  %7412 = vmatpush1.bf16.msra.mxu1 %v14081_v20  ;;  %v6354_v15 = vrot.slane %v21618_v11, 4  ;;  %v21619_v8 = vld [vmem:[#allocation6_spill] sm:$0xff]  ;;  %v6662_v45 = vrot.slane %v6650_v51, 4  ;;  %v14133_v23 = vcombine.low %v6754_v17, %v6754_v17  ;;  %v14132_v13 = vcombine.high %v6752_v28, %v6752_v28 }
 0x33b   : > { %7372 = vmatprep.subr.bf16.mxu0 %v14064_v49  ;;  %v21119_v12 = vrot.slane %v21619_v8, 4  ;;  %7413 = vmatprep.subr.bf16.mxu1 %v14066_v48  ;;  %v14131_v61 = vcombine.low %v6752_v28, %v6752_v28  ;;  %v21620_v49 = vrot.slane %v18151_v55, 4  ;;  %v14134_v20 = vcombine.high %v6754_v17, %v6754_v17 }
 0x33c   : > { %8067 = vrot.lane.b32.xlu1 %v21611_v25, %s14595_s20  ;;  %8065 = vrot.lane.b32.xlu0 %v18361_v30, %s14595_s20  ;;  %v6599_v40 = vsel %vm222_vm0, %v6585_v37, %v21114_v6  ;;  %v6676_v48 = vsel %vm222_vm0, %v6662_v45, %v21115_v4  ;;  %v18418_v43 = vpop.permute.xlu1 %6420  ;;  %v21621_v10 = vrot.slane %v18192_v54, 4  ;;  %v21622_v0 = vrot.slane %v21580_v38, 4  ;;  %v6419_v6 = vpop.permute.xlu0 %6418 }
 0x33d   : > { %v6597_v44 = vsel %vm222_vm0, %v21620_v49, %v6585_v37  ;;  %v6677_v37 = vsel %vm692_vm2, %v6650_v51, %v6676_v48  ;;  %v21118_v49 = vrot.slane %v18418_v43, 4  ;;  %v6431_v4 = vrot.slane %v6419_v6, 4 }
 0x33e   : > { %7373 = vmatpush1.bf16.msra.mxu0 %v14063_v52  ;;  %v6674_v28 = vsel %vm222_vm0, %v21621_v10, %v6662_v45  ;;  %v18428_v17 = vsel %vm222_vm0, %v21622_v0, %v6200_v29  ;;  %7414 = vmatpush1.bf16.msra.mxu1 %v14065_v47  ;;  %v18438_v45 = vsel %vm222_vm0, %v6277_v63, %v21116_v7  ;;  %v21623_v10 = vrot.slane %v21594_v35, 4  ;;  %v4611_v47 = vpop.f32.mrf.mxu1 }
 0x33f   : > { %14147 = vmatprep.subr.msk.bf16.mxu0 %vm222_vm0, %v14132_v13  ;;  %v6675_v52 = vsel %vm692_vm2, %v18192_v54, %v6674_v28  ;;  %14149 = vmatprep.subr.msk.bf16.mxu1 %vm222_vm0, %v14134_v20  ;;  %v6598_v51 = vsel %vm614_vm1, %v18151_v55, %v6597_v44  ;;  %v6600_v54 = vsel %vm614_vm1, %v6573_v60, %v6599_v40  ;;  %v7253_v13 = vsel %vm222_vm0, %v14131_v61, 0  ;;  %v4570_v28 = vpop.f32.mrf.mxu0 }
 0x340   : > { %v6366_v0 = vsel %vm222_vm0, %v21623_v10, %v6354_v15  ;;  %8144 = vrot.lane.b32.xlu1 %v21611_v25, %s14596_s21  ;;  %8142 = vrot.lane.b32.xlu0 %v18361_v30, %s14596_s21  ;;  %v14116_v48 = vcombine.high %v6598_v51, %v6675_v52  ;;  %v18455_v20 = vadd.f32 %v4611_v47, %v18137_v57  ;;  %v18459_v55 = vpop.permute.xlu1 %6497  ;;  %v7259_v60 = vsel %vm222_vm0, %v14133_v23, 0  ;;  %v4613_v10 = vpop.f32.mrf.mxu1 }
 0x341   : > { %14144 = vmatmul.mubr.msk.bf16.vlgmr.msra.gmra.mxu0 %vm1251_vm9, %v18250_v58  ;;  %14146 = vmatmul.mubr.msk.bf16.vlgmr.msra.gmra.mxu1 %vm1251_vm9, %v18250_v58  ;;  %v14118_v44 = vcombine.high %v6600_v54, %v6677_v37  ;;  %v6368_v40 = vsel %vm222_vm0, %v6354_v15, %v21119_v12  ;;  %v18466_v61 = vadd.f32 %v4570_v28, %v18133_v34  ;;  %v21624_v57 = vrot.slane %v21597_v56, 4  ;;  %v6496_v23 = vpop.permute.xlu0 %6495  ;;  %v4572_v41 = vpop.f32.mrf.mxu0 }
 0x342   : > { %7447 = vmatpush1.bf16.msra.mxu0 %v7253_v13  ;;  %v6445_v7 = vsel %vm222_vm0, %v6431_v4, %v21118_v49  ;;  %v6509_v13 = vrot.slane %v18459_v55, 4  ;;  %7488 = vmatpush1.bf16.msra.mxu1 %v7259_v60  ;;  %v18476_v15 = vadd.f32 %v4613_v10, %v18155_v24  ;;  %v6508_v34 = vrot.slane %v6496_v23, 4  ;;  %v4615_v12 = vpop.f32.mrf.mxu1  ;;  %v21626_v60 = vld [vmem:[#allocation3_spill] sm:$0xff] }
 0x343   : > { %v6289_v47 = vsel %vm222_vm0, %v21624_v57, %v6277_v63  ;;  %7448 = vmatprep.subr.bf16.mxu0 %v14116_v48  ;;  %v14115_v28 = vcombine.low %v6598_v51, %v6675_v52  ;;  %7489 = vmatprep.subr.bf16.mxu1 %v14118_v44  ;;  %v21625_v63 = vrot.slane %v18226_v1, 4  ;;  %v18484_v49 = vadd.f32 %v4572_v41, %v18141_v14  ;;  %v4574_v51 = vpop.f32.mrf.mxu0 }
 0x344   : > { %7913 = vrot.lane.b32.xlu1 %v21611_v25, %s14593_s18  ;;  %v6201_v48 = vrot.slane %v21626_v60, 4  ;;  %v6367_v24 = vsel %vm380_vm5, %v21594_v35, %v6366_v0  ;;  %v14117_v10 = vcombine.low %v6600_v54, %v6677_v37  ;;  %7911 = vrot.lane.b32.xlu0 %v18361_v30, %s14593_s18  ;;  %v6369_v52 = vsel %vm380_vm5, %v21618_v11, %v6368_v40  ;;  %v6733_v41 = vpop.permute.xlu1 %6732  ;;  %v4616_v12 = vpop.f32.mrf.mxu1 }
 0x345   : > { %v6443_v57 = vsel %vm222_vm0, %v21625_v63, %v6431_v4  ;;  %7472 = vmatprep.mubr.bf16.mxu0 %v21485_v3  ;;  %v6446_v4 = vsel %vm458_vm7, %v6419_v6, %v6445_v7  ;;  %v6522_v14 = vsel %vm222_vm0, %v6508_v34, %v6509_v13  ;;  %v6520_v35 = vsel %vm222_vm0, %v6507_v46, %v6508_v34  ;;  %v6731_v0 = vpop.permute.xlu0 %6730  ;;  %v4575_v54 = vpop.f32.mrf.mxu0 }
 0x346   : > { %7449 = vmatpush1.bf16.msra.mxu0 %v14115_v28  ;;  %7513 = vmatprep.mubr.bf16.mxu1 %v21485_v3  ;;  %v6523_v11 = vsel %vm536_vm4, %v6496_v23, %v6522_v14  ;;  %v6742_v37 = vrot.slane %v6733_v41, 4  ;;  %v6444_v6 = vsel %vm458_vm7, %v18226_v1, %v6443_v57  ;;  %v6521_v7 = vsel %vm536_vm4, %v18287_v42, %v6520_v35  ;;  %v14580_v41 = vld [vmem:[%s14628_s14 + $0x30] sm:$0xff] }
 0x347   : > { %7490 = vmatpush1.bf16.msra.mxu1 %v14117_v10  ;;  %v14101_v44 = vcombine.low %v6446_v4, %v6523_v11  ;;  %v6741_v40 = vrot.slane %v6731_v0, 4  ;;  %v14099_v46 = vcombine.low %v6444_v6, %v6521_v7  ;;  %v14100_v34 = vcombine.high %v6444_v6, %v6521_v7 }
 0x348   : > { %7990 = vrot.lane.b32.xlu1 %v21611_v25, %s14594_s19  ;;  %v6290_v23 = vsel %vm302_vm6, %v21597_v56, %v6289_v47  ;;  %7988 = vrot.lane.b32.xlu0 %v18361_v30, %s14594_s19  ;;  %v14102_v28 = vcombine.high %v6446_v4, %v6523_v11  ;;  %v6214_v1 = vsel %vm222_vm0, %v6200_v29, %v6201_v48  ;;  %v6579_v56 = vpop.permute.xlu1 %6578  ;;  %v21627_v57 = vrot.slane %v18330_v59, 4 }
 0x349   : > { %v6213_v42 = vsel %vm224_vm8, %v21580_v38, %v18428_v17  ;;  %v6292_v63 = vsel %vm302_vm6, %v21617_v50, %v18438_v45  ;;  %7450 = vmatprep.subr.bf16.mxu0 %v14100_v34  ;;  %v14084_v47 = vcombine.high %v6290_v23, %v6367_v24  ;;  %v6757_v51 = vsel %vm222_vm0, %v6741_v40, %v6742_v37  ;;  %v6577_v29 = vpop.permute.xlu0 %6576  ;;  %v6148_v38 = vld [vmem:[%s14628_s14 + $0x38] sm:$0xff]  ;;  %v21628_v17 = vld [vmem:[#allocation11_spill] sm:$0xff] }
 0x34a   : > { %v6755_v10 = vsel %vm222_vm0, %v21627_v57, %v6741_v40  ;;  %7491 = vmatprep.subr.bf16.mxu1 %v14102_v28  ;;  %7451 = vmatpush1.bf16.msra.mxu0 %v14099_v46  ;;  %v14086_v4 = vcombine.high %v6292_v63, %v6369_v52  ;;  %v6215_v50 = vsel %vm224_vm8, %v21610_v62, %v6214_v1  ;;  %v6202_v45 = vrot.slane %v21628_v17, 4  ;;  %v21629_v46 = vld [vmem:[#allocation5_spill] sm:$0xff]  ;;  %v21631_v1 = vld [vmem:[#allocation26_spill] sm:$0xff] }
 0x34b   : > { %7492 = vmatpush1.bf16.msra.mxu1 %v14101_v44  ;;  %7452 = vmatprep.subr.bf16.mxu0 %v14084_v47  ;;  %v14083_v14 = vcombine.low %v6290_v23, %v6367_v24  ;;  %v14068_v35 = vcombine.high %v14580_v41, %v6213_v42  ;;  %v6758_v12 = vsel %vm770_vm3, %v6731_v0, %v6757_v51  ;;  %v6587_v11 = vrot.slane %v6577_v29, 4  ;;  %v21630_v23 = vld [vmem:[#allocation21_spill] sm:$0xff]  ;;  %v21632_v47 = vld [vmem:[#allocation18_spill] sm:$0xff] }
 0x34c   : > { %7493 = vmatprep.subr.bf16.mxu1 %v14086_v4  ;;  %7759 = vrot.lane.b32.xlu1 %v21611_v25, %s14591_s16  ;;  %v14085_v37 = vcombine.low %v6292_v63, %v6369_v52  ;;  %v6656_v6 = vpop.permute.xlu1 %6655  ;;  %v6756_v62 = vsel %vm770_vm3, %v18330_v59, %v6755_v10  ;;  %v14067_v7 = vcombine.low %v14580_v41, %v6213_v42  ;;  %v6588_v54 = vrot.slane %v6579_v56, 4 }
 0x34d   : > { %7757 = vrot.lane.b32.xlu0 %v18361_v30, %s14591_s16  ;;  %v6665_v24 = vrot.slane %v6656_v6, 4  ;;  %v6654_v44 = vpop.permute.xlu0 %6653  ;;  %v14070_v40 = vcombine.high %v6148_v38, %v6215_v50  ;;  %v6280_v34 = vrot.slane %v21629_v46, 4  ;;  %v6279_v28 = vrot.slane %v21630_v23, 4 }
 0x34e   : > { %7453 = vmatpush1.bf16.msra.mxu0 %v14083_v14  ;;  %v6664_v0 = vrot.slane %v6654_v44, 4  ;;  %v14069_v52 = vcombine.low %v6148_v38, %v6215_v50  ;;  %v6356_v63 = vrot.slane %v21631_v1, 4  ;;  %v6357_v57 = vrot.slane %v21632_v47, 4 }
 0x34f   : > { %7494 = vmatpush1.bf16.msra.mxu1 %v14085_v37  ;;  %7454 = vmatprep.subr.bf16.mxu0 %v14068_v35  ;;  %v14137_v51 = vcombine.low %v6758_v12, %v6758_v12  ;;  %v14136_v59 = vcombine.high %v6756_v62, %v6756_v62  ;;  %v14135_v10 = vcombine.low %v6756_v62, %v6756_v62  ;;  %v21633_v4 = vrot.slane %v18357_v16, 4 }
 0x350   : > { %7495 = vmatprep.subr.bf16.mxu1 %v14070_v40  ;;  %7836 = vrot.lane.b32.xlu1 %v21611_v25, %s14592_s17  ;;  %v6680_v42 = vsel %vm222_vm0, %v6664_v0, %v6665_v24  ;;  %v6425_v56 = vpop.permute.xlu1 %6424  ;;  %v21634_v50 = vrot.slane %v18391_v39, 4  ;;  %v14138_v41 = vcombine.high %v6758_v12, %v6758_v12  ;;  %v6603_v35 = vsel %vm222_vm0, %v6587_v11, %v6588_v54 }
 0x351   : > { %7834 = vrot.lane.b32.xlu0 %v18361_v30, %s14592_s17  ;;  %v6601_v38 = vsel %vm222_vm0, %v21633_v4, %v6587_v11  ;;  %v6434_v37 = vrot.slane %v6425_v56, 4  ;;  %v6423_v6 = vpop.permute.xlu0 %6422  ;;  %v18563_v62 = vsel %vm222_vm0, %v6201_v48, %v6202_v45  ;;  %v6681_v40 = vsel %vm692_vm2, %v6654_v44, %v6680_v42 }
 0x352   : > { %v6678_v14 = vsel %vm222_vm0, %v21634_v50, %v6664_v0  ;;  %7455 = vmatpush1.bf16.msra.mxu0 %v14067_v7  ;;  %v6433_v46 = vrot.slane %v6423_v6, 4  ;;  %v6295_v12 = vsel %vm222_vm0, %v6279_v28, %v6280_v34  ;;  %v21635_v11 = vrot.slane %v21619_v8, 4 }
 0x353   : > { %v6679_v24 = vsel %vm692_vm2, %v18391_v39, %v6678_v14  ;;  %7496 = vmatpush1.bf16.msra.mxu1 %v14069_v52  ;;  %14151 = vmatprep.subr.msk.bf16.mxu0 %vm222_vm0, %v14136_v59  ;;  %v6602_v48 = vsel %vm614_vm1, %v18357_v16, %v6601_v38  ;;  %v6372_v7 = vsel %vm222_vm0, %v6356_v63, %v6357_v57  ;;  %v7265_v34 = vsel %vm222_vm0, %v14135_v10, 0  ;;  %v8199_v52 = vld [vmem:[%s14628_s14 + $0x54] sm:$0xf] }
 0x354   : > { %v6370_v39 = vsel %vm222_vm0, %v21635_v11, %v6356_v63  ;;  %14153 = vmatprep.subr.msk.bf16.mxu1 %vm222_vm0, %v14138_v41  ;;  %7682 = vrot.lane.b32.xlu1 %v21611_v25, %s14590_s15  ;;  %v6604_v54 = vsel %vm614_vm1, %v6577_v29, %v6603_v35  ;;  %v6502_v44 = vpop.permute.xlu1 %6501  ;;  %v14120_v0 = vcombine.high %v6602_v48, %v6679_v24  ;;  %v7271_v29 = vsel %vm222_vm0, %v14137_v51, 0  ;;  %v21638_v51 = vld [vmem:[#allocation32_spill] sm:$0xff] }
 0x355   : > { %7680 = vrot.lane.b32.xlu0 %v18361_v30, %s14590_s15  ;;  %14148 = vmatmul.mubr.msk.bf16.vlgmr.msra.gmra.mxu0 %vm1251_vm9, %v18250_v58  ;;  %v6449_v25 = vsel %vm222_vm0, %v6433_v46, %v6434_v37  ;;  %v6511_v16 = vrot.slane %v6502_v44, 4  ;;  %v6500_v63 = vpop.permute.xlu0 %6499  ;;  %v14122_v47 = vcombine.high %v6604_v54, %v6681_v40  ;;  %v18589_v30 = vld [vmem:[%s14628_s14 + $0x4c] sm:$0xff]  ;;  %v21636_v57 = vrot.slane %v21616_v19, 4  ;;  %v8045_v37 = vld [vmem:[%s14628_s14 + $0x54] sm:$0xf] }
 0x356   : > { %14150 = vmatmul.mubr.msk.bf16.vlgmr.msra.gmra.mxu1 %vm1251_vm9, %v18250_v58  ;;  %7529 = vmatpush1.bf16.msra.mxu0 %v7265_v34  ;;  %v18596_v42 = vsel %vm380_vm5, %v21619_v8, %v6370_v39  ;;  %v6510_v56 = vrot.slane %v6500_v63, 4  ;;  %v21637_v10 = vrot.slane %v18418_v43, 4  ;;  %v6203_v38 = vrot.slane %v21638_v51, 4 }
 0x357   : > { %v6293_v59 = vsel %vm222_vm0, %v21636_v57, %v6279_v28  ;;  %7570 = vmatpush1.bf16.msra.mxu1 %v7271_v29  ;;  %7530 = vmatprep.subr.bf16.mxu0 %v14120_v0  ;;  %v14121_v50 = vcombine.low %v6604_v54, %v6681_v40  ;;  %v14119_v14 = vcombine.low %v6602_v48, %v6679_v24  ;;  %v14581_v57 = vld [vmem:[%s14628_s14 + $0x40] sm:$0xff] }
 0x358   : > { %v6447_v4 = vsel %vm222_vm0, %v21637_v10, %v6433_v46  ;;  %7571 = vmatprep.subr.bf16.mxu1 %v14122_v47  ;;  %8225 = vrot.lane.b32.xlu1 %v8199_v52, %s14597_s22  ;;  %v6373_v28 = vsel %vm380_vm5, %v21631_v1, %v6372_v7  ;;  %v6450_v8 = vsel %vm458_vm7, %v6423_v6, %v6449_v25  ;;  %v8122_v52 = vld [vmem:[%s14628_s14 + $0x54] sm:$0xf] }
 0x359   : > { %v6526_v41 = vsel %vm222_vm0, %v6510_v56, %v6511_v16  ;;  %8223 = vrot.lane.b32.xlu0 %v18589_v30, %s14597_s22  ;;  %v8212_v35 = vpop.permute.xlu1 %8211  ;;  %v6524_v40 = vsel %vm222_vm0, %v6509_v13, %v6510_v56  ;;  %7554 = vmatprep.mubr.bf16.mxu0 %v21485_v3  ;;  %v6448_v1 = vsel %vm458_vm7, %v18418_v43, %v6447_v4  ;;  %v6150_v16 = vld [vmem:[%s14628_s14 + $0x48] sm:$0xff]  ;;  %v7891_v56 = vld [vmem:[%s14628_s14 + $0x54] sm:$0xf] }
 0x35a   : > { %v6527_v24 = vsel %vm536_vm4, %v6500_v63, %v6526_v41  ;;  %v8228_v46 = vrot.slane %v8212_v35, 4  ;;  %v8210_v11 = vpop.permute.xlu0 %8209  ;;  %7531 = vmatpush1.bf16.msra.mxu0 %v14119_v14  ;;  %v6525_v6 = vsel %vm536_vm4, %v18459_v55, %v6524_v40  ;;  %7595 = vmatprep.mubr.bf16.mxu1 %v21485_v3  ;;  %v6218_v54 = vsel %vm222_vm0, %v6202_v45, %v6203_v38 }
 0x35b   : > { %v14105_v39 = vcombine.low %v6450_v8, %v6527_v24  ;;  %v8227_v48 = vrot.slane %v8210_v11, 4  ;;  %7572 = vmatpush1.bf16.msra.mxu1 %v14121_v50  ;;  %v14103_v13 = vcombine.low %v6448_v1, %v6525_v6  ;;  %v14104_v7 = vcombine.high %v6448_v1, %v6525_v6 }
 0x35c   : > { %v6294_v44 = vsel %vm302_vm6, %v21616_v19, %v6293_v59  ;;  %8071 = vrot.lane.b32.xlu1 %v8045_v37, %s14595_s20  ;;  %v14106_v43 = vcombine.high %v6450_v8, %v6527_v24  ;;  %v6296_v55 = vsel %vm302_vm6, %v21630_v23, %v6295_v12  ;;  %v6217_v45 = vsel %vm224_vm8, %v21626_v60, %v18563_v62  ;;  %v7968_v37 = vld [vmem:[%s14628_s14 + $0x54] sm:$0xf] }
 0x35d   : > { %8069 = vrot.lane.b32.xlu0 %v18589_v30, %s14595_s20  ;;  %7532 = vmatprep.subr.bf16.mxu0 %v14104_v7  ;;  %v8056_v34 = vpop.permute.xlu1 %8055  ;;  %v14088_v0 = vcombine.high %v6294_v44, %v18596_v42  ;;  %v14090_v25 = vcombine.high %v6296_v55, %v6373_v28  ;;  %v8236_v23 = vsel %vm222_vm0, %v8227_v48, %v8228_v46  ;;  %v7737_v7 = vld [vmem:[%s14628_s14 + $0x54] sm:$0xf] }
 0x35e   : > { %7573 = vmatprep.subr.bf16.mxu1 %v14106_v43  ;;  %v18635_v19 = vpop.permute.xlu0 %8213  ;;  %7533 = vmatpush1.bf16.msra.mxu0 %v14103_v13  ;;  %v6219_v63 = vsel %vm224_vm8, %v21628_v17, %v6218_v54  ;;  %v14087_v29 = vcombine.low %v6294_v44, %v18596_v42  ;;  %v14089_v62 = vcombine.low %v6296_v55, %v6373_v28  ;;  %v8073_v28 = vrot.slane %v8056_v34, 4 }
 0x35f   : > { %v8229_v12 = vrot.slane %v18635_v19, 4  ;;  %7574 = vmatpush1.bf16.msra.mxu1 %v14105_v39  ;;  %7534 = vmatprep.subr.bf16.mxu0 %v14088_v0  ;;  %v14072_v59 = vcombine.high %v14581_v57, %v6217_v45  ;;  %v8237_v17 = vsel %vm770_vm3, %v8210_v11, %v8236_v23  ;;  %v14074_v42 = vcombine.high %v6150_v16, %v6219_v63 }
 0x360   : > { %7575 = vmatprep.subr.bf16.mxu1 %v14090_v25  ;;  %8148 = vrot.lane.b32.xlu1 %v8122_v52, %s14596_s21  ;;  %v14071_v38 = vcombine.low %v14581_v57, %v6217_v45  ;;  %v14220_v50 = vcombine.low %v8237_v17, %v8237_v17  ;;  %v14221_v14 = vcombine.high %v8237_v17, %v8237_v17  ;;  %v7814_v25 = vld [vmem:[%s14628_s14 + $0x54] sm:$0xf] }
 0x361   : > { %v8238_v60 = vsel %vm222_vm0, %v8228_v46, %v8229_v12  ;;  %8146 = vrot.lane.b32.xlu0 %v18589_v30, %s14596_s21  ;;  %v18649_v47 = vpop.permute.xlu1 %8059  ;;  %v14073_v8 = vcombine.low %v6150_v16, %v6219_v63  ;;  %v7660_v17 = vld [vmem:[%s14628_s14 + $0x54] sm:$0xf] }
 0x362   : > { %v8058_v10 = vpop.permute.xlu0 %8057  ;;  %7535 = vmatpush1.bf16.msra.mxu0 %v14087_v29  ;;  %v8239_v51 = vsel %vm770_vm3, %v8212_v35, %v8238_v60  ;;  %v8075_v35 = vrot.slane %v18649_v47, 4  ;;  %v8722_v13 = vsel %vm222_vm0, %v14220_v50, 0 }
 0x363   : > { %v8074_v4 = vrot.slane %v8058_v10, 4  ;;  %7576 = vmatpush1.bf16.msra.mxu1 %v14089_v62  ;;  %7536 = vmatprep.subr.bf16.mxu0 %v14072_v59  ;;  %v14223_v46 = vcombine.high %v8239_v51, %v8239_v51  ;;  %v14222_v11 = vcombine.low %v8239_v51, %v8239_v51 }
 0x364   : > { %7577 = vmatprep.subr.bf16.mxu1 %v14074_v42  ;;  %7917 = vrot.lane.b32.xlu1 %v7891_v56, %s14593_s18 }
 0x365   : > { %7915 = vrot.lane.b32.xlu0 %v18589_v30, %s14593_s18  ;;  %v8135_v41 = vpop.permute.xlu1 %8134  ;;  %v8082_v1 = vsel %vm222_vm0, %v8073_v28, %v8074_v4  ;;  %v8728_v55 = vsel %vm222_vm0, %v14222_v11, 0  ;;  %v8084_v0 = vsel %vm222_vm0, %v8074_v4, %v8075_v35  ;;  %v18706_v28 = vld [vmem:[%s14628_s14 + $0x20] sm:$0xff] }
 0x366   : > { %v8151_v40 = vrot.slane %v8135_v41, 4  ;;  %v8133_v24 = vpop.permute.xlu0 %8132  ;;  %7537 = vmatpush1.bf16.msra.mxu0 %v14071_v38  ;;  %v8083_v54 = vsel %vm614_vm1, %v8056_v34, %v8082_v1  ;;  %v8085_v16 = vsel %vm614_vm1, %v8058_v10, %v8084_v0 }
 0x367   : > { %v8150_v6 = vrot.slane %v8133_v24, 4  ;;  %7578 = vmatpush1.bf16.msra.mxu1 %v14073_v8  ;;  %14236 = vmatprep.subr.msk.bf16.mxu0 %vm222_vm0, %v14221_v14 }
 0x368   : > { %14238 = vmatprep.subr.msk.bf16.mxu1 %vm222_vm0, %v14223_v46  ;;  %7994 = vrot.lane.b32.xlu1 %v7968_v37, %s14594_s19 }
 0x369   : > { %v8159_v39 = vsel %vm222_vm0, %v8150_v6, %v8151_v40  ;;  %7992 = vrot.lane.b32.xlu0 %v18589_v30, %s14594_s19  ;;  %14152 = vmatmul.mubr.msk.bf16.vlgmr.msra.gmra.mxu0 %vm1251_vm9, %v18250_v58  ;;  %v7902_v48 = vpop.permute.xlu1 %7901 }
 0x36a   : > { %v8160_v44 = vsel %vm692_vm2, %v8133_v24, %v8159_v39  ;;  %14154 = vmatmul.mubr.msk.bf16.vlgmr.msra.gmra.mxu1 %vm1251_vm9, %v18250_v58  ;;  %v18675_v43 = vpop.permute.xlu0 %8136  ;;  %8776 = vmatpush1.bf16.msra.mxu0 %v8722_v13  ;;  %v7919_v59 = vrot.slane %v7902_v48, 4 }
 0x36b   : > { %v14204_v52 = vcombine.low %v8083_v54, %v8160_v44  ;;  %v8152_v45 = vrot.slane %v18675_v43, 4  ;;  %8817 = vmatpush1.bf16.msra.mxu1 %v8728_v55  ;;  %v14205_v34 = vcombine.high %v8083_v54, %v8160_v44  ;;  %8801 = vmatprep.mubr.bf16.mxu0 %v21485_v3 }
 0x36c   : > { %7763 = vrot.lane.b32.xlu1 %v7737_v7, %s14591_s16  ;;  %8842 = vmatprep.mubr.bf16.mxu1 %v21485_v3 }
 0x36d   : > { %7761 = vrot.lane.b32.xlu0 %v18589_v30, %s14591_s16  ;;  %8777 = vmatprep.subr.bf16.mxu0 %v14205_v34  ;;  %v18687_v58 = vpop.permute.xlu1 %7905  ;;  %v8161_v23 = vsel %vm222_vm0, %v8151_v40, %v8152_v45 }
 0x36e   : > { %v7904_v63 = vpop.permute.xlu0 %7903  ;;  %8778 = vmatpush1.bf16.msra.mxu0 %v14204_v52  ;;  %v8162_v29 = vsel %vm692_vm2, %v8135_v41, %v8161_v23  ;;  %v7921_v10 = vrot.slane %v18687_v58, 4 }
 0x36f   : > { %v7920_v60 = vrot.slane %v7904_v63, 4  ;;  %v14206_v62 = vcombine.low %v8085_v16, %v8162_v29  ;;  %v14207_v57 = vcombine.high %v8085_v16, %v8162_v29 }
 0x370   : > { %7840 = vrot.lane.b32.xlu1 %v7814_v25, %s14592_s17 }
 0x371   : > { %7838 = vrot.lane.b32.xlu0 %v18589_v30, %s14592_s17  ;;  %8818 = vmatprep.subr.bf16.mxu1 %v14207_v57  ;;  %v7981_v56 = vpop.permute.xlu1 %7980  ;;  %v7928_v51 = vsel %vm222_vm0, %v7919_v59, %v7920_v60  ;;  %v7930_v40 = vsel %vm222_vm0, %v7920_v60, %v7921_v10  ;;  %v18743_v59 = vld [vmem:[%s14628_s14 + $0x18] sm:$0xff] }
 0x372   : > { %v7997_v42 = vrot.slane %v7981_v56, 4  ;;  %v7979_v4 = vpop.permute.xlu0 %7978  ;;  %8819 = vmatpush1.bf16.msra.mxu1 %v14206_v62  ;;  %v7929_v8 = vsel %vm458_vm7, %v7902_v48, %v7928_v51  ;;  %v7931_v39 = vsel %vm458_vm7, %v7904_v63, %v7930_v40 }
 0x373   : > { %v7996_v38 = vrot.slane %v7979_v4, 4 }
 0x374   : > { %7686 = vrot.lane.b32.xlu1 %v7660_v17, %s14590_s15 }
 0x375   : > { %v8005_v50 = vsel %vm222_vm0, %v7996_v38, %v7997_v42  ;;  %7684 = vrot.lane.b32.xlu0 %v18589_v30, %s14590_s15  ;;  %v7748_v14 = vpop.permute.xlu1 %7747  ;;  %v21639_v30 = vld [vmem:[#allocation25_spill] sm:$0xff] }
 0x376   : > { %v8006_v41 = vsel %vm536_vm4, %v7979_v4, %v8005_v50  ;;  %v18710_v37 = vpop.permute.xlu0 %7982  ;;  %v7765_v55 = vrot.slane %v7748_v14, 4 }
 0x377   : > { %v14188_v24 = vcombine.low %v7929_v8, %v8006_v41  ;;  %v7998_v46 = vrot.slane %v18710_v37, 4  ;;  %v14189_v11 = vcombine.high %v7929_v8, %v8006_v41 }
 0x378   : > { %9704 = vrot.lane.b32.xlu1 %v18706_v28, %s14597_s22 }
 0x379   : > { %9702 = vrot.lane.b32.xlu0 %v21639_v30, %s14597_s22  ;;  %8779 = vmatprep.subr.bf16.mxu0 %v14189_v11  ;;  %v18720_v1 = vpop.permute.xlu1 %7751  ;;  %v8007_v6 = vsel %vm222_vm0, %v7997_v42, %v7998_v46 }
 0x37a   : > { %v7750_v48 = vpop.permute.xlu0 %7749  ;;  %8780 = vmatpush1.bf16.msra.mxu0 %v14188_v24  ;;  %v8008_v13 = vsel %vm536_vm4, %v7981_v56, %v8007_v6  ;;  %v7767_v25 = vrot.slane %v18720_v1, 4  ;;  %v7637_v6 = vld [vmem:[%s14628_s14 + $0x1c] sm:$0xff] }
 0x37b   : > { %v7766_v7 = vrot.slane %v7750_v48, 4  ;;  %v14190_v54 = vcombine.low %v7931_v39, %v8008_v13  ;;  %v14191_v44 = vcombine.high %v7931_v39, %v8008_v13  ;;  %v7636_v39 = vld [vmem:[%s14628_s14 + $0x14] sm:$0xff] }
 0x37c   : > { %9548 = vrot.lane.b32.xlu1 %v21639_v30, %s14595_s20 }
 0x37d   : > { %9706 = vrot.lane.b32.xlu0 %v18352_v32, %s14597_s22  ;;  %8820 = vmatprep.subr.bf16.mxu1 %v14191_v44  ;;  %v7827_v0 = vpop.permute.xlu1 %7826  ;;  %v7774_v23 = vsel %vm222_vm0, %v7765_v55, %v7766_v7  ;;  %v7776_v56 = vsel %vm222_vm0, %v7766_v7, %v7767_v25 }
 0x37e   : > { %v7843_v52 = vrot.slane %v7827_v0, 4  ;;  %v7825_v34 = vpop.permute.xlu0 %7824  ;;  %8821 = vmatpush1.bf16.msra.mxu1 %v14190_v54  ;;  %v7775_v60 = vsel %vm302_vm6, %v7748_v14, %v7774_v23  ;;  %v7777_v50 = vsel %vm302_vm6, %v7750_v48, %v7776_v56 }
 0x37f   : > { %v7842_v16 = vrot.slane %v7825_v34, 4 }
 0x380   : > { %9552 = vrot.lane.b32.xlu1 %v18352_v32, %s14595_s20 }
 0x381   : > { %v7851_v63 = vsel %vm222_vm0, %v7842_v16, %v7843_v52  ;;  %9550 = vrot.lane.b32.xlu0 %v18706_v28, %s14595_s20  ;;  %v7671_v29 = vpop.permute.xlu1 %7670 }
 0x382   : > { %v7852_v62 = vsel %vm380_vm5, %v7825_v34, %v7851_v63  ;;  %v18740_v57 = vpop.permute.xlu0 %7828  ;;  %v7688_v40 = vrot.slane %v7671_v29, 4 }
 0x383   : > { %v14172_v17 = vcombine.low %v7775_v60, %v7852_v62  ;;  %v7844_v42 = vrot.slane %v18740_v57, 4  ;;  %v14173_v4 = vcombine.high %v7775_v60, %v7852_v62 }
 0x384   : > { %9627 = vrot.lane.b32.xlu1 %v18706_v28, %s14596_s21 }
 0x385   : > { %9625 = vrot.lane.b32.xlu0 %v18743_v59, %s14596_s21  ;;  %8781 = vmatprep.subr.bf16.mxu0 %v14173_v4  ;;  %v18753_v51 = vpop.permute.xlu1 %7674  ;;  %v7853_v38 = vsel %vm222_vm0, %v7843_v52, %v7844_v42 }
 0x386   : > { %v7690_v14 = vrot.slane %v18753_v51, 4  ;;  %v7673_v8 = vpop.permute.xlu0 %7672  ;;  %8782 = vmatpush1.bf16.msra.mxu0 %v14172_v17  ;;  %v7854_v41 = vsel %vm380_vm5, %v7827_v0, %v7853_v38 }
 0x387   : > { %v7689_v24 = vrot.slane %v7673_v8, 4  ;;  %v14174_v11 = vcombine.low %v7777_v50, %v7854_v41  ;;  %v14175_v30 = vcombine.high %v7777_v50, %v7854_v41 }
 0x388   : > { %9394 = vrot.lane.b32.xlu1 %v18743_v59, %s14593_s18 }
 0x389   : > { %v7699_v13 = vsel %vm222_vm0, %v7689_v24, %v7690_v14  ;;  %9629 = vrot.lane.b32.xlu0 %v18352_v32, %s14596_s21  ;;  %8822 = vmatprep.subr.bf16.mxu1 %v14175_v30  ;;  %v18770_v48 = vpop.permute.xlu1 %8217  ;;  %v7697_v7 = vsel %vm222_vm0, %v7688_v40, %v7689_v24 }
 0x38a   : > { %v7700_v54 = vsel %vm224_vm8, %v7673_v8, %v7699_v13  ;;  %v8231_v44 = vrot.slane %v18770_v48, 4  ;;  %v8216_v55 = vpop.permute.xlu0 %8215  ;;  %8823 = vmatpush1.bf16.msra.mxu1 %v14174_v11  ;;  %v7698_v0 = vsel %vm224_vm8, %v7671_v29, %v7697_v7 }
 0x38b   : > { %v14158_v52 = vcombine.low %v7637_v6, %v7700_v54  ;;  %v8230_v34 = vrot.slane %v8216_v55, 4  ;;  %v14156_v23 = vcombine.low %v7636_v39, %v7698_v0  ;;  %v14157_v16 = vcombine.high %v7636_v39, %v7698_v0 }
 0x38c   : > { %9398 = vrot.lane.b32.xlu1 %v18352_v32, %s14593_s18  ;;  %v14159_v63 = vcombine.high %v7637_v6, %v7700_v54 }
 0x38d   : > { %v8240_v60 = vsel %vm222_vm0, %v8229_v12, %v8230_v34  ;;  %v8242_v62 = vsel %vm222_vm0, %v8230_v34, %v8231_v44  ;;  %9396 = vrot.lane.b32.xlu0 %v18706_v28, %s14593_s18  ;;  %8783 = vmatprep.subr.bf16.mxu0 %v14157_v16  ;;  %v18786_v29 = vpop.permute.xlu1 %8063  ;;  %v18793_v12 = vld [vmem:[%s20925_s1 + $0x14] sm:$0xf] }
 0x38e   : > { %v8243_v56 = vsel %vm770_vm3, %v8216_v55, %v8242_v62  ;;  %8824 = vmatprep.subr.bf16.mxu1 %v14159_v63  ;;  %v8077_v32 = vrot.slane %v18786_v29, 4  ;;  %v8062_v17 = vpop.permute.xlu0 %8061  ;;  %8784 = vmatpush1.bf16.msra.mxu0 %v14156_v23  ;;  %v8241_v4 = vsel %vm770_vm3, %v18635_v19, %v8240_v60  ;;  %v5858_v24 = vpop.f32.mrf.mxu1  ;;  %v18818_v55 = vld [vmem:[%s14628_s14 + $0x28] sm:$0xff] }
 0x38f   : > { %v14226_v38 = vcombine.low %v8243_v56, %v8243_v56  ;;  %v14227_v50 = vcombine.high %v8243_v56, %v8243_v56  ;;  %v8076_v8 = vrot.slane %v8062_v17, 4  ;;  %8825 = vmatpush1.bf16.msra.mxu1 %v14158_v52  ;;  %v14225_v41 = vcombine.high %v8241_v4, %v8241_v4  ;;  %v5817_v30 = vpop.f32.mrf.mxu0 }
 0x390   : > { %9473 = vrot.lane.b32.xlu1 %v18706_v28, %s14594_s19  ;;  %v14224_v40 = vcombine.low %v8241_v4, %v8241_v4  ;;  %v18807_v6 = vadd.f32 %v5858_v24, %v18215_v36  ;;  %v5860_v0 = vpop.f32.mrf.mxu1  ;;  %v18825_v34 = vadd.f32 %v5817_v30, %v18211_v22 }
 0x391   : > { %9471 = vrot.lane.b32.xlu0 %v18743_v59, %s14594_s19  ;;  %14237 = vmatmul.mubr.msk.bf16.vlgmr.msra.gmra.mxu0 %vm1251_vm9, %v18793_v12  ;;  %v18803_v11 = vpop.permute.xlu1 %8140  ;;  %v8740_v19 = vsel %vm222_vm0, %v14226_v38, 0  ;;  %v8088_v39 = vsel %vm222_vm0, %v8076_v8, %v8077_v32  ;;  %v8086_v52 = vsel %vm222_vm0, %v8075_v35, %v8076_v8  ;;  %v5819_v23 = vpop.f32.mrf.mxu0  ;;  %v18828_v16 = vadd.f32 %v5860_v0, %v18236_v31 }
 0x392   : > { %14239 = vmatmul.mubr.msk.bf16.vlgmr.msra.gmra.mxu1 %vm1251_vm9, %v18793_v12  ;;  %14240 = vmatprep.subr.msk.bf16.mxu0 %vm222_vm0, %v14225_v41  ;;  %v8154_v13 = vrot.slane %v18803_v11, 4  ;;  %v8139_v7 = vpop.permute.xlu0 %8138  ;;  %v8734_v54 = vsel %vm222_vm0, %v14224_v40, 0  ;;  %v18833_v63 = vadd.f32 %v5819_v23, %v18219_v9  ;;  %v5862_v60 = vpop.f32.mrf.mxu1  ;;  %v8089_v62 = vsel %vm614_vm1, %v8062_v17, %v8088_v39 }
 0x393   : > { %14242 = vmatprep.subr.msk.bf16.mxu1 %vm222_vm0, %v14227_v50  ;;  %v8153_v36 = vrot.slane %v8139_v7, 4  ;;  %8858 = vmatpush1.bf16.msra.mxu0 %v8734_v54  ;;  %v5821_v9 = vpop.f32.mrf.mxu0  ;;  %v8087_v38 = vsel %vm614_vm1, %v18649_v47, %v8086_v52 }
 0x394   : > { %8899 = vmatpush1.bf16.msra.mxu1 %v8740_v19  ;;  %9240 = vrot.lane.b32.xlu1 %v18743_v59, %s14591_s16  ;;  %v5863_v8 = vpop.f32.mrf.mxu1 }
 0x395   : > { %v8165_v35 = vsel %vm222_vm0, %v8153_v36, %v8154_v13  ;;  %9475 = vrot.lane.b32.xlu0 %v18818_v55, %s14594_s19  ;;  %v18841_v22 = vpop.permute.xlu1 %7909  ;;  %v8163_v31 = vsel %vm222_vm0, %v8152_v45, %v8153_v36  ;;  %8883 = vmatprep.mubr.bf16.mxu0 %v21485_v3  ;;  %v5822_v19 = vpop.f32.mrf.mxu0 }
 0x396   : > { %v8166_v56 = vsel %vm692_vm2, %v8139_v7, %v8165_v35  ;;  %v7923_v17 = vrot.slane %v18841_v22, 4  ;;  %v7908_v4 = vpop.permute.xlu0 %7907  ;;  %v8164_v50 = vsel %vm692_vm2, %v18675_v43, %v8163_v31  ;;  %8924 = vmatprep.mubr.bf16.mxu1 %v21485_v3 }
 0x397   : > { %v14210_v41 = vcombine.low %v8089_v62, %v8166_v56  ;;  %v7922_v40 = vrot.slane %v7908_v4, 4  ;;  %v14208_v45 = vcombine.low %v8087_v38, %v8164_v50  ;;  %v14209_v24 = vcombine.high %v8087_v38, %v8164_v50 }
 0x398   : > { %9244 = vrot.lane.b32.xlu1 %v18818_v55, %s14591_s16  ;;  %v14211_v30 = vcombine.high %v8089_v62, %v8166_v56 }
 0x399   : > { %9242 = vrot.lane.b32.xlu0 %v18706_v28, %s14591_s16  ;;  %8859 = vmatprep.subr.bf16.mxu0 %v14209_v24  ;;  %v18858_v47 = vpop.permute.xlu1 %7986  ;;  %v7934_v43 = vsel %vm222_vm0, %v7922_v40, %v7923_v17  ;;  %v7932_v0 = vsel %vm222_vm0, %v7921_v10, %v7922_v40 }
 0x39a   : > { %8900 = vmatprep.subr.bf16.mxu1 %v14211_v30  ;;  %v8000_v39 = vrot.slane %v18858_v47, 4  ;;  %v7985_v7 = vpop.permute.xlu0 %7984  ;;  %8860 = vmatpush1.bf16.msra.mxu0 %v14208_v45  ;;  %v7935_v36 = vsel %vm458_vm7, %v7908_v4, %v7934_v43  ;;  %v7933_v31 = vsel %vm458_vm7, %v18687_v58, %v7932_v0  ;;  %v18910_v43 = vld [vmem:[%s14628_s14 + $0x38] sm:$0xff] }
 0x39b   : > { %v7999_v54 = vrot.slane %v7985_v7, 4  ;;  %8901 = vmatpush1.bf16.msra.mxu1 %v14210_v41 }
 0x39c   : > { %9319 = vrot.lane.b32.xlu1 %v18706_v28, %s14592_s17 }
 0x39d   : > { %v8011_v52 = vsel %vm222_vm0, %v7999_v54, %v8000_v39  ;;  %9317 = vrot.lane.b32.xlu0 %v18743_v59, %s14592_s17  ;;  %v18875_v23 = vpop.permute.xlu1 %7755  ;;  %v8009_v60 = vsel %vm222_vm0, %v7998_v46, %v7999_v54 }
 0x39e   : > { %v8012_v10 = vsel %vm536_vm4, %v7985_v7, %v8011_v52  ;;  %v7769_v62 = vrot.slane %v18875_v23, 4  ;;  %v7754_v35 = vpop.permute.xlu0 %7753  ;;  %v8010_v9 = vsel %vm536_vm4, %v18710_v37, %v8009_v60  ;;  %v18923_v52 = vld [vmem:[%s14628_s14 + $0x30] sm:$0xff] }
 0x39f   : > { %v14194_v56 = vcombine.low %v7935_v36, %v8012_v10  ;;  %v7768_v4 = vrot.slane %v7754_v35, 4  ;;  %v14192_v38 = vcombine.low %v7933_v31, %v8010_v9  ;;  %v14193_v50 = vcombine.high %v7933_v31, %v8010_v9 }
 0x3a0   : > { %9163 = vrot.lane.b32.xlu1 %v18743_v59, %s14590_s15  ;;  %v14195_v8 = vcombine.high %v7935_v36, %v8012_v10 }
 0x3a1   : > { %v7780_v46 = vsel %vm222_vm0, %v7768_v4, %v7769_v62  ;;  %9321 = vrot.lane.b32.xlu0 %v18818_v55, %s14592_s17  ;;  %8861 = vmatprep.subr.bf16.mxu0 %v14193_v50  ;;  %v7778_v59 = vsel %vm222_vm0, %v7767_v25, %v7768_v4 }
 0x3a2   : > { %v18893_v58 = vpop.permute.xlu1 %7832  ;;  %8902 = vmatprep.subr.bf16.mxu1 %v14195_v8  ;;  %v7831_v41 = vpop.permute.xlu0 %7830  ;;  %8862 = vmatpush1.bf16.msra.mxu0 %v14192_v38  ;;  %v7781_v45 = vsel %vm302_vm6, %v7754_v35, %v7780_v46  ;;  %v7779_v25 = vsel %vm302_vm6, %v18720_v1, %v7778_v59  ;;  %v7638_v38 = vld [vmem:[%s14628_s14 + $0x24] sm:$0xff] }
 0x3a3   : > { %v7846_v37 = vrot.slane %v18893_v58, 4  ;;  %v7845_v40 = vrot.slane %v7831_v41, 4  ;;  %8903 = vmatpush1.bf16.msra.mxu1 %v14194_v56  ;;  %v5940_v24 = vpop.f32.mrf.mxu1  ;;  %v7639_v56 = vld [vmem:[%s14628_s14 + $0x2c] sm:$0xff] }
 0x3a4   : > { %9167 = vrot.lane.b32.xlu1 %v18818_v55, %s14590_s15  ;;  %v18918_v54 = vadd.f32 %v5940_v24, %v18310_v33 }
 0x3a5   : > { %v7857_v19 = vsel %vm222_vm0, %v7845_v40, %v7846_v37  ;;  %9165 = vrot.lane.b32.xlu0 %v18706_v28, %s14590_s15  ;;  %v7855_v55 = vsel %vm222_vm0, %v7844_v42, %v7845_v40  ;;  %v5899_v7 = vpop.f32.mrf.mxu0  ;;  %v5942_v10 = vpop.f32.mrf.mxu1 }
 0x3a6   : > { %v18907_v30 = vpop.permute.xlu1 %7678  ;;  %v7858_v0 = vsel %vm380_vm5, %v7831_v41, %v7857_v19  ;;  %v7677_v36 = vpop.permute.xlu0 %7676  ;;  %v7856_v1 = vsel %vm380_vm5, %v18740_v57, %v7855_v55  ;;  %v18928_v60 = vadd.f32 %v5899_v7, %v18306_v2  ;;  %v18938_v57 = vadd.f32 %v5942_v10, %v18327_v53 }
 0x3a7   : > { %v7692_v28 = vrot.slane %v18907_v30, 4  ;;  %v14178_v42 = vcombine.low %v7781_v45, %v7858_v0  ;;  %v7691_v35 = vrot.slane %v7677_v36, 4  ;;  %v14176_v31 = vcombine.low %v7779_v25, %v7856_v1  ;;  %v5901_v9 = vpop.f32.mrf.mxu0  ;;  %v5944_v2 = vpop.f32.mrf.mxu1 }
 0x3a8   : > { %v14177_v33 = vcombine.high %v7779_v25, %v7856_v1  ;;  %9710 = vrot.lane.b32.xlu1 %v18910_v43, %s14597_s22  ;;  %v14179_v4 = vcombine.high %v7781_v45, %v7858_v0  ;;  %v18935_v50 = vadd.f32 %v5901_v9, %v18314_v18 }
 0x3a9   : > { %v7703_v8 = vsel %vm222_vm0, %v7691_v35, %v7692_v28  ;;  %9708 = vrot.lane.b32.xlu0 %v18923_v52, %s14597_s22  ;;  %v7701_v41 = vsel %vm222_vm0, %v7690_v14, %v7691_v35  ;;  %v5903_v18 = vpop.f32.mrf.mxu0  ;;  %v5945_v24 = vpop.f32.mrf.mxu1 }
 0x3aa   : > { %8863 = vmatprep.subr.bf16.mxu0 %v14177_v33  ;;  %v18945_v46 = vpop.permute.xlu1 %8221  ;;  %v7704_v59 = vsel %vm224_vm8, %v7677_v36, %v7703_v8  ;;  %8904 = vmatprep.subr.bf16.mxu1 %v14179_v4  ;;  %v8220_v40 = vpop.permute.xlu0 %8219  ;;  %v7702_v45 = vsel %vm224_vm8, %v18753_v51, %v7701_v41 }
 0x3ab   : > { %v8233_v53 = vrot.slane %v18945_v46, 4  ;;  %8864 = vmatpush1.bf16.msra.mxu0 %v14176_v31  ;;  %v14162_v19 = vcombine.low %v7639_v56, %v7704_v59  ;;  %v8232_v25 = vrot.slane %v8220_v40, 4  ;;  %8905 = vmatpush1.bf16.msra.mxu1 %v14178_v42  ;;  %v14160_v55 = vcombine.low %v7638_v38, %v7702_v45  ;;  %v5904_v0 = vpop.f32.mrf.mxu0 }
 0x3ac   : > { %v14161_v7 = vcombine.high %v7638_v38, %v7702_v45  ;;  %9556 = vrot.lane.b32.xlu1 %v18910_v43, %s14595_s20  ;;  %v14163_v14 = vcombine.high %v7639_v56, %v7704_v59 }
 0x3ad   : > { %v8244_v36 = vsel %vm222_vm0, %v8231_v44, %v8232_v25  ;;  %v8246_v1 = vsel %vm222_vm0, %v8232_v25, %v8233_v53  ;;  %9554 = vrot.lane.b32.xlu0 %v18923_v52, %s14595_s20 }
 0x3ae   : > { %8865 = vmatprep.subr.bf16.mxu0 %v14161_v7  ;;  %v18964_v51 = vpop.permute.xlu1 %8067  ;;  %v8247_v10 = vsel %vm770_vm3, %v8220_v40, %v8246_v1  ;;  %8906 = vmatprep.subr.bf16.mxu1 %v14163_v14  ;;  %v8066_v35 = vpop.permute.xlu0 %8065  ;;  %v8245_v44 = vsel %vm770_vm3, %v18770_v48, %v8244_v36 }
 0x3af   : > { %v8079_v42 = vrot.slane %v18964_v51, 4  ;;  %8866 = vmatpush1.bf16.msra.mxu0 %v14160_v55  ;;  %v14230_v31 = vcombine.low %v8247_v10, %v8247_v10  ;;  %v14231_v33 = vcombine.high %v8247_v10, %v8247_v10  ;;  %v8078_v9 = vrot.slane %v8066_v35, 4  ;;  %8907 = vmatpush1.bf16.msra.mxu1 %v14162_v19 }
 0x3b0   : > { %v14229_v56 = vcombine.high %v8245_v44, %v8245_v44  ;;  %9633 = vrot.lane.b32.xlu1 %v18910_v43, %s14596_s21  ;;  %v14228_v4 = vcombine.low %v8245_v44, %v8245_v44 }
 0x3b1   : > { %9631 = vrot.lane.b32.xlu0 %v18923_v52, %s14596_s21  ;;  %v8752_v2 = vsel %vm222_vm0, %v14230_v31, 0  ;;  %v8092_v48 = vsel %vm222_vm0, %v8078_v9, %v8079_v42  ;;  %14246 = vmatprep.subr.msk.bf16.mxu1 %vm222_vm0, %v14231_v33  ;;  %v8090_v40 = vsel %vm222_vm0, %v8077_v32, %v8078_v9 }
 0x3b2   : > { %14241 = vmatmul.mubr.msk.bf16.vlgmr.msra.gmra.mxu0 %vm1251_vm9, %v18793_v12  ;;  %v18976_v38 = vpop.permute.xlu1 %8144  ;;  %14243 = vmatmul.mubr.msk.bf16.vlgmr.msra.gmra.mxu1 %vm1251_vm9, %v18793_v12  ;;  %v8143_v41 = vpop.permute.xlu0 %8142  ;;  %v8746_v18 = vsel %vm222_vm0, %v14228_v4, 0  ;;  %v8093_v45 = vsel %vm614_vm1, %v8066_v35, %v8092_v48  ;;  %v8091_v0 = vsel %vm614_vm1, %v18786_v29, %v8090_v40 }
 0x3b3   : > { %14244 = vmatprep.subr.msk.bf16.mxu0 %vm222_vm0, %v14229_v56  ;;  %v8156_v8 = vrot.slane %v18976_v38, 4  ;;  %v8155_v59 = vrot.slane %v8143_v41, 4  ;;  %8981 = vmatpush1.bf16.msra.mxu1 %v8752_v2 }
 0x3b4   : > { %8940 = vmatpush1.bf16.msra.mxu0 %v8746_v18  ;;  %9402 = vrot.lane.b32.xlu1 %v18910_v43, %s14593_s18 }
 0x3b5   : > { %v8169_v24 = vsel %vm222_vm0, %v8155_v59, %v8156_v8  ;;  %9400 = vrot.lane.b32.xlu0 %v18923_v52, %s14593_s18  ;;  %v8167_v25 = vsel %vm222_vm0, %v8154_v13, %v8155_v59  ;;  %8965 = vmatprep.mubr.bf16.mxu0 %v21485_v3 }
 0x3b6   : > { %v18999_v19 = vpop.permute.xlu1 %7913  ;;  %v8170_v32 = vsel %vm692_vm2, %v8143_v41, %v8169_v24  ;;  %v7912_v7 = vpop.permute.xlu0 %7911  ;;  %v8168_v14 = vsel %vm692_vm2, %v18803_v11, %v8167_v25  ;;  %9006 = vmatprep.mubr.bf16.mxu1 %v21485_v3 }
 0x3b7   : > { %v7925_v55 = vrot.slane %v18999_v19, 4  ;;  %v14214_v36 = vcombine.low %v8093_v45, %v8170_v32  ;;  %v7924_v1 = vrot.slane %v7912_v7, 4  ;;  %v14212_v10 = vcombine.low %v8091_v0, %v8168_v14 }
 0x3b8   : > { %v14213_v35 = vcombine.high %v8091_v0, %v8168_v14  ;;  %9479 = vrot.lane.b32.xlu1 %v18910_v43, %s14594_s19  ;;  %v14215_v13 = vcombine.high %v8093_v45, %v8170_v32  ;;  %v6022_v44 = vpop.f32.mrf.mxu1 }
 0x3b9   : > { %9477 = vrot.lane.b32.xlu0 %v18923_v52, %s14594_s19  ;;  %v5981_v29 = vpop.f32.mrf.mxu0  ;;  %v19019_v11 = vadd.f32 %v6022_v44, %v18384_v21  ;;  %v7938_v2 = vsel %vm222_vm0, %v7924_v1, %v7925_v55  ;;  %v7936_v21 = vsel %vm222_vm0, %v7923_v17, %v7924_v1 }
 0x3ba   : > { %8941 = vmatprep.subr.bf16.mxu0 %v14213_v35  ;;  %v19016_v31 = vpop.permute.xlu1 %7990  ;;  %8982 = vmatprep.subr.bf16.mxu1 %v14215_v13  ;;  %v7989_v9 = vpop.permute.xlu0 %7988  ;;  %v19023_v56 = vadd.f32 %v5981_v29, %v18380_v5  ;;  %v7939_v45 = vsel %vm458_vm7, %v7912_v7, %v7938_v2  ;;  %v19074_v2 = vld [vmem:[%s14628_s14 + $0x48] sm:$0xff] }
 0x3bb   : > { %v8002_v33 = vrot.slane %v19016_v31, 4  ;;  %8942 = vmatpush1.bf16.msra.mxu0 %v14212_v10  ;;  %v6024_v4 = vpop.f32.mrf.mxu1  ;;  %v8001_v48 = vrot.slane %v7989_v9, 4  ;;  %8983 = vmatpush1.bf16.msra.mxu1 %v14214_v36  ;;  %v5983_v41 = vpop.f32.mrf.mxu0 }
 0x3bc   : > { %v19032_v18 = vadd.f32 %v6024_v4, %v18397_v27  ;;  %9248 = vrot.lane.b32.xlu1 %v18910_v43, %s14591_s16  ;;  %v19037_v5 = vadd.f32 %v5983_v41, %v18387_v26  ;;  %v7937_v26 = vsel %vm458_vm7, %v18841_v22, %v7936_v21 }
 0x3bd   : > { %v6026_v59 = vpop.f32.mrf.mxu1  ;;  %v8015_v40 = vsel %vm222_vm0, %v8001_v48, %v8002_v33  ;;  %9246 = vrot.lane.b32.xlu0 %v18923_v52, %s14591_s16  ;;  %v8013_v17 = vsel %vm222_vm0, %v8000_v39, %v8001_v48  ;;  %v5985_v27 = vpop.f32.mrf.mxu0 }
 0x3be   : > { %v8016_v24 = vsel %vm536_vm4, %v7989_v9, %v8015_v40  ;;  %v19049_v25 = vpop.permute.xlu1 %7759  ;;  %v8014_v32 = vsel %vm536_vm4, %v18858_v47, %v8013_v17 }
 0x3bf   : > { %v6027_v0 = vpop.f32.mrf.mxu1  ;;  %v14198_v14 = vcombine.low %v7939_v45, %v8016_v24  ;;  %v7771_v36 = vrot.slane %v19049_v25, 4  ;;  %v7758_v1 = vpop.permute.xlu0 %7757  ;;  %v14196_v10 = vcombine.low %v7937_v26, %v8014_v32  ;;  %v14197_v39 = vcombine.high %v7937_v26, %v8014_v32 }
 0x3c0   : > { %v5986_v35 = vpop.f32.mrf.mxu0  ;;  %v7770_v13 = vrot.slane %v7758_v1, 4  ;;  %9325 = vrot.lane.b32.xlu1 %v18910_v43, %s14592_s17  ;;  %v14199_v7 = vcombine.high %v7939_v45, %v8016_v24  ;;  %v7641_v0 = vld [vmem:[%s14628_s14 + $0x3c] sm:$0xff] }
 0x3c1   : > { %9323 = vrot.lane.b32.xlu0 %v18923_v52, %s14592_s17  ;;  %8943 = vmatprep.subr.bf16.mxu0 %v14197_v39 }
 0x3c2   : > { %8984 = vmatprep.subr.bf16.mxu1 %v14199_v7  ;;  %v19060_v22 = vpop.permute.xlu1 %7836  ;;  %8944 = vmatpush1.bf16.msra.mxu0 %v14196_v10  ;;  %v7784_v47 = vsel %vm222_vm0, %v7770_v13, %v7771_v36  ;;  %v7782_v4 = vsel %vm222_vm0, %v7769_v62, %v7770_v13 }
 0x3c3   : > { %v7848_v44 = vrot.slane %v19060_v22, 4  ;;  %v7835_v29 = vpop.permute.xlu0 %7834  ;;  %8985 = vmatpush1.bf16.msra.mxu1 %v14198_v14  ;;  %v7785_v48 = vsel %vm302_vm6, %v7758_v1, %v7784_v47  ;;  %v7783_v17 = vsel %vm302_vm6, %v18875_v23, %v7782_v4  ;;  %v7640_v14 = vld [vmem:[%s14628_s14 + $0x34] sm:$0xff] }
 0x3c4   : > { %v7847_v9 = vrot.slane %v7835_v29, 4  ;;  %9171 = vrot.lane.b32.xlu1 %v18910_v43, %s14590_s15  ;;  %v19083_v43 = vld [vmem:[%s14628_s14 + $0x40] sm:$0xff] }
 0x3c5   : > { %9169 = vrot.lane.b32.xlu0 %v18923_v52, %s14590_s15 }
 0x3c6   : > { %v7861_v21 = vsel %vm222_vm0, %v7847_v9, %v7848_v44  ;;  %v19080_v41 = vpop.permute.xlu1 %7682  ;;  %v7859_v62 = vsel %vm222_vm0, %v7846_v37, %v7847_v9 }
 0x3c7   : > { %v7862_v52 = vsel %vm380_vm5, %v7835_v29, %v7861_v21  ;;  %v7694_v59 = vrot.slane %v19080_v41, 4  ;;  %v7681_v40 = vpop.permute.xlu0 %7680  ;;  %v7860_v27 = vsel %vm380_vm5, %v18893_v58, %v7859_v62 }
 0x3c8   : > { %v14182_v45 = vcombine.low %v7785_v48, %v7862_v52  ;;  %v7693_v24 = vrot.slane %v7681_v40, 4  ;;  %9714 = vrot.lane.b32.xlu1 %v19074_v2, %s14597_s22  ;;  %v14180_v26 = vcombine.low %v7783_v17, %v7860_v27  ;;  %v14181_v32 = vcombine.high %v7783_v17, %v7860_v27 }
 0x3c9   : > { %9712 = vrot.lane.b32.xlu0 %v19083_v43, %s14597_s22  ;;  %v14183_v37 = vcombine.high %v7785_v48, %v7862_v52 }
 0x3ca   : > { %v7707_v23 = vsel %vm222_vm0, %v7693_v24, %v7694_v59  ;;  %8945 = vmatprep.subr.bf16.mxu0 %v14181_v32  ;;  %v8226_v1 = vpop.permute.xlu1 %8225  ;;  %v7705_v58 = vsel %vm222_vm0, %v7692_v28, %v7693_v24 }
 0x3cb   : > { %v7708_v10 = vsel %vm224_vm8, %v7681_v40, %v7707_v23  ;;  %8986 = vmatprep.subr.bf16.mxu1 %v14183_v37  ;;  %v8235_v39 = vrot.slane %v8226_v1, 4  ;;  %v8224_v35 = vpop.permute.xlu0 %8223  ;;  %8946 = vmatpush1.bf16.msra.mxu0 %v14180_v26  ;;  %v7706_v13 = vsel %vm224_vm8, %v18907_v30, %v7705_v58 }
 0x3cc   : > { %v14166_v7 = vcombine.low %v7641_v0, %v7708_v10  ;;  %v8234_v47 = vrot.slane %v8224_v35, 4  ;;  %8987 = vmatpush1.bf16.msra.mxu1 %v14182_v45  ;;  %9560 = vrot.lane.b32.xlu1 %v19074_v2, %s14595_s20  ;;  %v14164_v29 = vcombine.low %v7640_v14, %v7706_v13  ;;  %v14165_v9 = vcombine.high %v7640_v14, %v7706_v13  ;;  %v6104_v52 = vpop.f32.mrf.mxu1 }
 0x3cd   : > { %9558 = vrot.lane.b32.xlu0 %v19083_v43, %s14595_s20  ;;  %v14167_v28 = vcombine.high %v7641_v0, %v7708_v10  ;;  %v6063_v4 = vpop.f32.mrf.mxu0  ;;  %v19124_v24 = vadd.f32 %v6104_v52, %v18455_v20 }
 0x3ce   : > { %v8248_v48 = vsel %vm222_vm0, %v8233_v53, %v8234_v47  ;;  %v8250_v21 = vsel %vm222_vm0, %v8234_v47, %v8235_v39  ;;  %8947 = vmatprep.subr.bf16.mxu0 %v14165_v9  ;;  %v8072_v30 = vpop.permute.xlu1 %8071  ;;  %v19118_v62 = vadd.f32 %v6063_v4, %v18466_v61  ;;  %v6106_v37 = vpop.f32.mrf.mxu1 }
 0x3cf   : > { %v8251_v40 = vsel %vm770_vm3, %v8224_v35, %v8250_v21  ;;  %8988 = vmatprep.subr.bf16.mxu1 %v14167_v28  ;;  %v8081_v17 = vrot.slane %v8072_v30, 4  ;;  %v8070_v27 = vpop.permute.xlu0 %8069  ;;  %8948 = vmatpush1.bf16.msra.mxu0 %v14164_v29  ;;  %v8249_v45 = vsel %vm770_vm3, %v18945_v46, %v8248_v48  ;;  %v6065_v53 = vpop.f32.mrf.mxu0  ;;  %v19134_v20 = vadd.f32 %v6106_v37, %v18476_v15 }
 0x3d0   : > { %v14234_v26 = vcombine.low %v8251_v40, %v8251_v40  ;;  %v14235_v32 = vcombine.high %v8251_v40, %v8251_v40  ;;  %v8080_v0 = vrot.slane %v8070_v27, 4  ;;  %8989 = vmatpush1.bf16.msra.mxu1 %v14166_v7  ;;  %9637 = vrot.lane.b32.xlu1 %v19074_v2, %s14596_s21  ;;  %v14233_v61 = vcombine.high %v8249_v45, %v8249_v45  ;;  %v6108_v10 = vpop.f32.mrf.mxu1 }
 0x3d1   : > { %9635 = vrot.lane.b32.xlu0 %v19083_v43, %s14596_s21  ;;  %v14232_v14 = vcombine.low %v8249_v45, %v8249_v45  ;;  %v19131_v23 = vadd.f32 %v6065_v53, %v18484_v49  ;;  %v6067_v46 = vpop.f32.mrf.mxu0 }
 0x3d2   : > { %14245 = vmatmul.mubr.msk.bf16.vlgmr.msra.gmra.mxu0 %vm1251_vm9, %v18793_v12  ;;  %14248 = vmatprep.subr.msk.bf16.mxu0 %vm222_vm0, %v14233_v61  ;;  %v8149_v1 = vpop.permute.xlu1 %8148  ;;  %v8764_v58 = vsel %vm222_vm0, %v14234_v26, 0  ;;  %v8096_v39 = vsel %vm222_vm0, %v8080_v0, %v8081_v17  ;;  %v8094_v47 = vsel %vm222_vm0, %v8079_v42, %v8080_v0  ;;  %v6109_v29 = vpop.f32.mrf.mxu1 }
 0x3d3   : > { %14247 = vmatmul.mubr.msk.bf16.vlgmr.msra.gmra.mxu1 %vm1251_vm9, %v18793_v12  ;;  %14250 = vmatprep.subr.msk.bf16.mxu1 %vm222_vm0, %v14235_v32  ;;  %v8158_v49 = vrot.slane %v8149_v1, 4  ;;  %v8147_v15 = vpop.permute.xlu0 %8146  ;;  %v8758_v35 = vsel %vm222_vm0, %v14232_v14, 0  ;;  %v6068_v13 = vpop.f32.mrf.mxu0  ;;  %v8097_v9 = vsel %vm614_vm1, %v8070_v27, %v8096_v39  ;;  %v8095_v52 = vsel %vm614_vm1, %v18964_v51, %v8094_v47 }
 0x3d4   : > { %v8157_v7 = vrot.slane %v8147_v15, 4  ;;  %9022 = vmatpush1.bf16.msra.mxu0 %v8758_v35  ;;  %9063 = vmatpush1.bf16.msra.mxu1 %v8764_v58 }
 0x3d5   : > { %9406 = vrot.lane.b32.xlu1 %v19074_v2, %s14593_s18  ;;  %9404 = vrot.lane.b32.xlu0 %v19083_v43, %s14593_s18 }
 0x3d6   : > { %v8173_v28 = vsel %vm222_vm0, %v8157_v7, %v8158_v49  ;;  %v7918_v4 = vpop.permute.xlu1 %7917  ;;  %v8171_v48 = vsel %vm222_vm0, %v8156_v8, %v8157_v7  ;;  %9047 = vmatprep.mubr.bf16.mxu0 %v21485_v3  ;;  %9088 = vmatprep.mubr.bf16.mxu1 %v21485_v3 }
 0x3d7   : > { %v8174_v42 = vsel %vm692_vm2, %v8147_v15, %v8173_v28  ;;  %v7927_v21 = vrot.slane %v7918_v4, 4  ;;  %v7916_v30 = vpop.permute.xlu0 %7915  ;;  %v8172_v40 = vsel %vm692_vm2, %v18976_v38, %v8171_v48 }
 0x3d8   : > { %v14218_v17 = vcombine.low %v8097_v9, %v8174_v42  ;;  %v7926_v27 = vrot.slane %v7916_v30, 4  ;;  %v14216_v45 = vcombine.low %v8095_v52, %v8172_v40  ;;  %v14217_v53 = vcombine.high %v8095_v52, %v8172_v40 }
 0x3d9   : > { %9483 = vrot.lane.b32.xlu1 %v19074_v2, %s14594_s19  ;;  %9481 = vrot.lane.b32.xlu0 %v19083_v43, %s14594_s19  ;;  %v14219_v8 = vcombine.high %v8097_v9, %v8174_v42 }
 0x3da   : > { %9023 = vmatprep.subr.bf16.mxu0 %v14217_v53  ;;  %v7995_v26 = vpop.permute.xlu1 %7994  ;;  %v7942_v32 = vsel %vm222_vm0, %v7926_v27, %v7927_v21  ;;  %v7940_v61 = vsel %vm222_vm0, %v7925_v55, %v7926_v27  ;;  %v9692_v21 = vld [vmem:[%s14628_s14 + $0x58] sm:$0xf] }
 0x3db   : > { %9064 = vmatprep.subr.bf16.mxu1 %v14219_v8  ;;  %v8004_v51 = vrot.slane %v7995_v26, 4  ;;  %v7993_v0 = vpop.permute.xlu0 %7992  ;;  %9024 = vmatpush1.bf16.msra.mxu0 %v14216_v45  ;;  %v7943_v37 = vsel %vm458_vm7, %v7916_v30, %v7942_v32  ;;  %v7941_v55 = vsel %vm458_vm7, %v18999_v19, %v7940_v61  ;;  %v19202_v30 = vld [vmem:[%s14628_s14 + $0x50] sm:$0xff]  ;;  %v7642_v32 = vld [vmem:[%s14628_s14 + $0x44] sm:$0xff] }
 0x3dc   : > { %v8003_v38 = vrot.slane %v7993_v0, 4  ;;  %9065 = vmatpush1.bf16.msra.mxu1 %v14218_v17  ;;  %v7643_v26 = vld [vmem:[%s14628_s14 + $0x4c] sm:$0xff] }
 0x3dd   : > { %9252 = vrot.lane.b32.xlu1 %v19074_v2, %s14591_s16  ;;  %9250 = vrot.lane.b32.xlu0 %v19083_v43, %s14591_s16 }
 0x3de   : > { %v8019_v14 = vsel %vm222_vm0, %v8003_v38, %v8004_v51  ;;  %v7764_v46 = vpop.permute.xlu1 %7763  ;;  %v8017_v1 = vsel %vm222_vm0, %v8002_v33, %v8003_v38 }
 0x3df   : > { %v8020_v58 = vsel %vm536_vm4, %v7993_v0, %v8019_v14  ;;  %v7773_v10 = vrot.slane %v7764_v46, 4  ;;  %v7762_v39 = vpop.permute.xlu0 %7761  ;;  %v8018_v49 = vsel %vm536_vm4, %v19016_v31, %v8017_v1 }
 0x3e0   : > { %v14202_v15 = vcombine.low %v7943_v37, %v8020_v58  ;;  %v7772_v35 = vrot.slane %v7762_v39, 4  ;;  %v14200_v13 = vcombine.low %v7941_v55, %v8018_v49  ;;  %v14201_v7 = vcombine.high %v7941_v55, %v8018_v49 }
 0x3e1   : > { %9329 = vrot.lane.b32.xlu1 %v19074_v2, %s14592_s17  ;;  %9327 = vrot.lane.b32.xlu0 %v19083_v43, %s14592_s17  ;;  %v14203_v33 = vcombine.high %v7943_v37, %v8020_v58 }
 0x3e2   : > { %9025 = vmatprep.subr.bf16.mxu0 %v14201_v7  ;;  %v7841_v47 = vpop.permute.xlu1 %7840  ;;  %v7788_v19 = vsel %vm222_vm0, %v7772_v35, %v7773_v10  ;;  %v7786_v28 = vsel %vm222_vm0, %v7771_v36, %v7772_v35  ;;  %v9615_v7 = vld [vmem:[%s14628_s14 + $0x58] sm:$0xf] }
 0x3e3   : > { %9066 = vmatprep.subr.bf16.mxu1 %v14203_v33  ;;  %v7850_v29 = vrot.slane %v7841_v47, 4  ;;  %v7839_v31 = vpop.permute.xlu0 %7838  ;;  %9026 = vmatpush1.bf16.msra.mxu0 %v14200_v13  ;;  %v7789_v4 = vsel %vm302_vm6, %v7762_v39, %v7788_v19 }
 0x3e4   : > { %v7849_v9 = vrot.slane %v7839_v31, 4  ;;  %9067 = vmatpush1.bf16.msra.mxu1 %v14202_v15 }
 0x3e5   : > { %9175 = vrot.lane.b32.xlu1 %v19074_v2, %s14590_s15  ;;  %9173 = vrot.lane.b32.xlu0 %v19083_v43, %s14590_s15  ;;  %v7787_v43 = vsel %vm302_vm6, %v19049_v25, %v7786_v28  ;;  %v9538_v25 = vld [vmem:[%s14628_s14 + $0x58] sm:$0xf] }
 0x3e6   : > { %v7865_v48 = vsel %vm222_vm0, %v7849_v9, %v7850_v29  ;;  %v7687_v42 = vpop.permute.xlu1 %7686  ;;  %v7863_v36 = vsel %vm222_vm0, %v7848_v44, %v7849_v9 }
 0x3e7   : > { %v7866_v52 = vsel %vm380_vm5, %v7839_v31, %v7865_v48  ;;  %v7696_v2 = vrot.slane %v7687_v42, 4  ;;  %v7685_v40 = vpop.permute.xlu0 %7684  ;;  %v7864_v17 = vsel %vm380_vm5, %v19060_v22, %v7863_v36  ;;  %v9384_v42 = vld [vmem:[%s14628_s14 + $0x58] sm:$0xf] }
 0x3e8   : > { %v14186_v27 = vcombine.low %v7789_v4, %v7866_v52  ;;  %v7695_v45 = vrot.slane %v7685_v40, 4  ;;  %v14184_v53 = vcombine.low %v7787_v43, %v7864_v17  ;;  %v14185_v8 = vcombine.high %v7787_v43, %v7864_v17 }
 0x3e9   : > { %9718 = vrot.lane.b32.xlu1 %v9692_v21, %s14597_s22  ;;  %9716 = vrot.lane.b32.xlu0 %v19202_v30, %s14597_s22  ;;  %v14187_v44 = vcombine.high %v7789_v4, %v7866_v52 }
 0x3ea   : > { %v7711_v51 = vsel %vm222_vm0, %v7695_v45, %v7696_v2  ;;  %9027 = vmatprep.subr.bf16.mxu0 %v14185_v8  ;;  %v9705_v0 = vpop.permute.xlu1 %9704  ;;  %v7709_v22 = vsel %vm222_vm0, %v7694_v59, %v7695_v45 }
 0x3eb   : > { %v7712_v38 = vsel %vm224_vm8, %v7685_v40, %v7711_v51  ;;  %9068 = vmatprep.subr.bf16.mxu1 %v14187_v44  ;;  %v9721_v61 = vrot.slane %v9705_v0, 4  ;;  %v9703_v37 = vpop.permute.xlu0 %9702  ;;  %9028 = vmatpush1.bf16.msra.mxu0 %v14184_v53  ;;  %v7710_v14 = vsel %vm224_vm8, %v19080_v41, %v7709_v22  ;;  %v9461_v53 = vld [vmem:[%s14628_s14 + $0x58] sm:$0xf] }
 0x3ec   : > { %v14170_v46 = vcombine.low %v7643_v26, %v7712_v38  ;;  %v9720_v1 = vrot.slane %v9703_v37, 4  ;;  %9069 = vmatpush1.bf16.msra.mxu1 %v14186_v27  ;;  %v14168_v10 = vcombine.low %v7642_v32, %v7710_v14  ;;  %v14169_v39 = vcombine.high %v7642_v32, %v7710_v14  ;;  %v7351_v55 = vpop.f32.mrf.mxu1  ;;  %v9230_v22 = vld [vmem:[%s14628_s14 + $0x58] sm:$0xf] }
 0x3ed   : > { %v7310_v58 = vpop.f32.mrf.mxu0  ;;  %9564 = vrot.lane.b32.xlu1 %v9538_v25, %s14595_s20  ;;  %9562 = vrot.lane.b32.xlu0 %v19202_v30, %s14595_s20  ;;  %v14171_v49 = vcombine.high %v7643_v26, %v7712_v38  ;;  %v19233_v41 = vadd.f32 %v7351_v55, %v18807_v6 }
 0x3ee   : > { %v19229_v59 = vadd.f32 %v7310_v58, %v18825_v34  ;;  %v9729_v15 = vsel %vm222_vm0, %v9720_v1, %v9721_v61  ;;  %9029 = vmatprep.subr.bf16.mxu0 %v14169_v39  ;;  %v9549_v35 = vpop.permute.xlu1 %9548  ;;  %v7353_v19 = vpop.f32.mrf.mxu1  ;;  %v9307_v39 = vld [vmem:[%s14628_s14 + $0x58] sm:$0xf] }
 0x3ef   : > { %v7312_v13 = vpop.f32.mrf.mxu0  ;;  %v9730_v33 = vsel %vm770_vm3, %v9703_v37, %v9729_v15  ;;  %9070 = vmatprep.subr.bf16.mxu1 %v14171_v49  ;;  %v19237_v47 = vpop.permute.xlu0 %9706  ;;  %9030 = vmatpush1.bf16.msra.mxu0 %v14168_v10  ;;  %v19244_v9 = vadd.f32 %v7353_v19, %v18828_v16 }
 0x3f0   : > { %v19240_v34 = vadd.f32 %v7312_v13, %v18833_v63  ;;  %v14317_v29 = vcombine.low %v9730_v33, %v9730_v33  ;;  %v14318_v31 = vcombine.high %v9730_v33, %v9730_v33  ;;  %v9722_v6 = vrot.slane %v19237_v47, 4  ;;  %9071 = vmatpush1.bf16.msra.mxu1 %v14170_v46  ;;  %v7355_v4 = vpop.f32.mrf.mxu1 }
 0x3f1   : > { %v7314_v28 = vpop.f32.mrf.mxu0  ;;  %9641 = vrot.lane.b32.xlu1 %v9615_v7, %s14596_s21  ;;  %9639 = vrot.lane.b32.xlu0 %v19202_v30, %s14596_s21 }
 0x3f2   : > { %v9731_v63 = vsel %vm222_vm0, %v9721_v61, %v9722_v6  ;;  %14249 = vmatmul.mubr.msk.bf16.vlgmr.msra.gmra.mxu0 %vm1251_vm9, %v18793_v12  ;;  %14333 = vmatprep.subr.msk.bf16.mxu0 %vm222_vm0, %v14318_v31  ;;  %v19255_v48 = vpop.permute.xlu1 %9552  ;;  %v10215_v16 = vsel %vm222_vm0, %v14317_v29, 0  ;;  %v7356_v2 = vpop.f32.mrf.mxu1 }
 0x3f3   : > { %v7315_v21 = vpop.f32.mrf.mxu0  ;;  %14251 = vmatmul.mubr.msk.bf16.vlgmr.msra.gmra.mxu1 %vm1251_vm9, %v18793_v12  ;;  %v9551_v36 = vpop.permute.xlu0 %9550  ;;  %10269 = vmatpush1.bf16.msra.mxu0 %v10215_v16  ;;  %v9732_v52 = vsel %vm770_vm3, %v9705_v0, %v9731_v63  ;;  %v9566_v12 = vrot.slane %v9549_v35, 4  ;;  %v9568_v44 = vrot.slane %v19255_v48, 4 }
 0x3f4   : > { %v9567_v40 = vrot.slane %v9551_v36, 4  ;;  %v14320_v43 = vcombine.high %v9732_v52, %v9732_v52  ;;  %v14319_v17 = vcombine.low %v9732_v52, %v9732_v52  ;;  %10294 = vmatprep.mubr.bf16.mxu0 %v21485_v3  ;;  %10335 = vmatprep.mubr.bf16.mxu1 %v21485_v3 }
 0x3f5   : > { %9410 = vrot.lane.b32.xlu1 %v9384_v42, %s14593_s18  ;;  %9408 = vrot.lane.b32.xlu0 %v19202_v30, %s14593_s18  ;;  %v9153_v42 = vld [vmem:[%s14628_s14 + $0x58] sm:$0xf] }
 0x3f6   : > { %14335 = vmatprep.subr.msk.bf16.mxu1 %vm222_vm0, %v14320_v43  ;;  %v9628_v27 = vpop.permute.xlu1 %9627  ;;  %v10221_v45 = vsel %vm222_vm0, %v14319_v17, 0  ;;  %v9575_v32 = vsel %vm222_vm0, %v9566_v12, %v9567_v40  ;;  %v9577_v14 = vsel %vm222_vm0, %v9567_v40, %v9568_v44 }
 0x3f7   : > { %v9644_v8 = vrot.slane %v9628_v27, 4  ;;  %v9626_v26 = vpop.permute.xlu0 %9625  ;;  %10310 = vmatpush1.bf16.msra.mxu1 %v10221_v45  ;;  %v9576_v38 = vsel %vm614_vm1, %v9549_v35, %v9575_v32  ;;  %v9578_v49 = vsel %vm614_vm1, %v9551_v36, %v9577_v14  ;;  %v19321_v45 = vld [vmem:[%s14628_s14 + $0x24] sm:$0xff] }
 0x3f8   : > { %v9643_v51 = vrot.slane %v9626_v26, 4 }
 0x3f9   : > { %9487 = vrot.lane.b32.xlu1 %v9461_v53, %s14594_s19  ;;  %9485 = vrot.lane.b32.xlu0 %v19202_v30, %s14594_s19  ;;  %v19324_v53 = vld [vmem:[%s14628_s14 + $0x1c] sm:$0xff] }
 0x3fa   : > { %v9652_v0 = vsel %vm222_vm0, %v9643_v51, %v9644_v8  ;;  %v9395_v25 = vpop.permute.xlu1 %9394 }
 0x3fb   : > { %v9653_v61 = vsel %vm692_vm2, %v9626_v26, %v9652_v0  ;;  %v19279_v37 = vpop.permute.xlu0 %9629  ;;  %v9412_v28 = vrot.slane %v9395_v25, 4 }
 0x3fc   : > { %v14301_v46 = vcombine.low %v9576_v38, %v9653_v61  ;;  %v9645_v1 = vrot.slane %v19279_v37, 4  ;;  %v14302_v58 = vcombine.high %v9576_v38, %v9653_v61  ;;  %v19341_v61 = vld [vmem:[%s14628_s14 + $0x2c] sm:$0xff] }
 0x3fd   : > { %9256 = vrot.lane.b32.xlu1 %v9230_v22, %s14591_s16  ;;  %9254 = vrot.lane.b32.xlu0 %v19202_v30, %s14591_s16 }
 0x3fe   : > { %10270 = vmatprep.subr.bf16.mxu0 %v14302_v58  ;;  %v19289_v10 = vpop.permute.xlu1 %9398  ;;  %v9654_v55 = vsel %vm222_vm0, %v9644_v8, %v9645_v1 }
 0x3ff   : > { %v9397_v15 = vpop.permute.xlu0 %9396  ;;  %10271 = vmatpush1.bf16.msra.mxu0 %v14301_v46  ;;  %v9655_v35 = vsel %vm692_vm2, %v9628_v27, %v9654_v55 }
 0x400   : > { %v9413_v13 = vrot.slane %v9397_v15, 4  ;;  %v14303_v33 = vcombine.low %v9578_v49, %v9655_v35  ;;  %v14304_v19 = vcombine.high %v9578_v49, %v9655_v35 }
 0x401   : > { %v7392_v7 = vpop.f32.mrf.mxu0  ;;  %9333 = vrot.lane.b32.xlu1 %v9307_v39, %s14592_s17  ;;  %9331 = vrot.lane.b32.xlu0 %v19202_v30, %s14592_s17  ;;  %v7433_v31 = vpop.f32.mrf.mxu1 }
 0x402   : > { %v7608_v29 = vadd.f32 %v7392_v7, %v18928_v60  ;;  %v7610_v4 = vadd.f32 %v7433_v31, %v18918_v54  ;;  %10311 = vmatprep.subr.bf16.mxu1 %v14304_v19  ;;  %v9474_v63 = vpop.permute.xlu1 %9473  ;;  %v9414_v60 = vrot.slane %v19289_v10, 4  ;;  %v9421_v54 = vsel %vm222_vm0, %v9412_v28, %v9413_v13 }
 0x403   : > { %v7394_v16 = vpop.f32.mrf.mxu0  ;;  %v9490_v21 = vrot.slane %v9474_v63, 4  ;;  %v9472_v36 = vpop.permute.xlu0 %9471  ;;  %10312 = vmatpush1.bf16.msra.mxu1 %v14303_v33 }
 0x404   : > { %7624 = vst [vmem:[%s19300_s11 + $0x20] sm:$0xff] %v7608_v29  ;;  %v7609_v52 = vadd.f32 %v7394_v16, %v18935_v50  ;;  %v7435_v2 = vpop.f32.mrf.mxu1  ;;  %7626 = vst [vmem:[%s19300_s11 + $0x30] sm:$0xff] %v7610_v4  ;;  %v9489_v40 = vrot.slane %v9472_v36, 4 }
 0x405   : > { %v7611_v43 = vadd.f32 %v7435_v2, %v18938_v57  ;;  %v7396_v17 = vpop.f32.mrf.mxu0  ;;  %9179 = vrot.lane.b32.xlu1 %v9153_v42, %s14590_s15  ;;  %9177 = vrot.lane.b32.xlu0 %v19202_v30, %s14590_s15  ;;  %v9422_v57 = vsel %vm458_vm7, %v9395_v25, %v9421_v54  ;;  %v9423_v30 = vsel %vm222_vm0, %v9413_v13, %v9414_v60 }
 0x406   : > { %7625 = vst [vmem:[%s19300_s11 + $0x28] sm:$0xff] %v7609_v52  ;;  %v7437_v12 = vpop.f32.mrf.mxu1  ;;  %v9498_v50 = vsel %vm222_vm0, %v9489_v40, %v9490_v21  ;;  %v9241_v27 = vpop.permute.xlu1 %9240  ;;  %v9424_v46 = vsel %vm458_vm7, %v9397_v15, %v9423_v30 }
 0x407   : > { %7627 = vst [vmem:[%s19300_s11 + $0x38] sm:$0xff] %v7611_v43  ;;  %v7397_v8 = vpop.f32.mrf.mxu0  ;;  %v9499_v26 = vsel %vm536_vm4, %v9472_v36, %v9498_v50  ;;  %v19328_v32 = vpop.permute.xlu0 %9475  ;;  %v9258_v13 = vrot.slane %v9241_v27, 4 }
 0x408   : > { %v7438_v51 = vpop.f32.mrf.mxu1  ;;  %v14285_v0 = vcombine.low %v9422_v57, %v9499_v26  ;;  %v9491_v22 = vrot.slane %v19328_v32, 4  ;;  %v14286_v38 = vcombine.high %v9422_v57, %v9499_v26 }
 0x409   : > { %11197 = vrot.lane.b32.xlu1 %v19321_v45, %s14597_s22  ;;  %11195 = vrot.lane.b32.xlu0 %v19324_v53, %s14597_s22 }
 0x40a   : > { %10272 = vmatprep.subr.bf16.mxu0 %v14286_v38  ;;  %v19338_v25 = vpop.permute.xlu1 %9244  ;;  %v9500_v14 = vsel %vm222_vm0, %v9490_v21, %v9491_v22 }
 0x40b   : > { %v9243_v58 = vpop.permute.xlu0 %9242  ;;  %10273 = vmatpush1.bf16.msra.mxu0 %v14285_v0  ;;  %v9501_v39 = vsel %vm536_vm4, %v9474_v63, %v9500_v14  ;;  %v9260_v33 = vrot.slane %v19338_v25, 4 }
 0x40c   : > { %v9259_v55 = vrot.slane %v9243_v58, 4  ;;  %v14287_v49 = vcombine.low %v9424_v46, %v9501_v39  ;;  %v14288_v35 = vcombine.high %v9424_v46, %v9501_v39  ;;  %v9129_v39 = vld [vmem:[%s14628_s14 + $0x18] sm:$0xff] }
 0x40d   : > { %11041 = vrot.lane.b32.xlu1 %v19324_v53, %s14595_s20  ;;  %11199 = vrot.lane.b32.xlu0 %v19341_v61, %s14597_s22 }
 0x40e   : > { %10313 = vmatprep.subr.bf16.mxu1 %v14288_v35  ;;  %v9320_v7 = vpop.permute.xlu1 %9319  ;;  %v9267_v29 = vsel %vm222_vm0, %v9258_v13, %v9259_v55  ;;  %v9269_v63 = vsel %vm222_vm0, %v9259_v55, %v9260_v33 }
 0x40f   : > { %v9336_v19 = vrot.slane %v9320_v7, 4  ;;  %v9318_v15 = vpop.permute.xlu0 %9317  ;;  %10314 = vmatpush1.bf16.msra.mxu1 %v14287_v49  ;;  %v9268_v16 = vsel %vm302_vm6, %v9241_v27, %v9267_v29  ;;  %v9270_v40 = vsel %vm302_vm6, %v9243_v58, %v9269_v63  ;;  %v9130_v58 = vld [vmem:[%s14628_s14 + $0x20] sm:$0xff] }
 0x410   : > { %v9335_v31 = vrot.slane %v9318_v15, 4 }
 0x411   : > { %11045 = vrot.lane.b32.xlu1 %v19341_v61, %s14595_s20  ;;  %11043 = vrot.lane.b32.xlu0 %v19321_v45, %s14595_s20 }
 0x412   : > { %v9344_v28 = vsel %vm222_vm0, %v9335_v31, %v9336_v19  ;;  %v9164_v4 = vpop.permute.xlu1 %9163 }
 0x413   : > { %v9345_v42 = vsel %vm380_vm5, %v9318_v15, %v9344_v28  ;;  %v19364_v21 = vpop.permute.xlu0 %9321  ;;  %v9181_v27 = vrot.slane %v9164_v4, 4 }
 0x414   : > { %v14269_v36 = vcombine.low %v9268_v16, %v9345_v42  ;;  %v9337_v52 = vrot.slane %v19364_v21, 4  ;;  %v14270_v2 = vcombine.high %v9268_v16, %v9345_v42 }
 0x415   : > { %11120 = vrot.lane.b32.xlu1 %v19321_v45, %s14596_s21  ;;  %11118 = vrot.lane.b32.xlu0 %v19324_v53, %s14596_s21  ;;  %v7474_v54 = vpop.f32.mrf.mxu0 }
 0x416   : > { %v7612_v43 = vadd.f32 %v7474_v54, %v19023_v56  ;;  %v7515_v17 = vpop.f32.mrf.mxu1  ;;  %10274 = vmatprep.subr.bf16.mxu0 %v14270_v2  ;;  %v19373_v12 = vpop.permute.xlu1 %9167  ;;  %v9346_v50 = vsel %vm222_vm0, %v9336_v19, %v9337_v52 }
 0x417   : > { %v7614_v8 = vadd.f32 %v7515_v17, %v19019_v11  ;;  %v9183_v57 = vrot.slane %v19373_v12, 4  ;;  %v9166_v26 = vpop.permute.xlu0 %9165  ;;  %10275 = vmatpush1.bf16.msra.mxu0 %v14269_v36  ;;  %v7476_v51 = vpop.f32.mrf.mxu0  ;;  %v9347_v56 = vsel %vm380_vm5, %v9320_v7, %v9346_v50  ;;  %v19419_v50 = vld [vmem:[%s20925_s1 + $0x18] sm:$0xf] }
 0x418   : > { %7628 = vst [vmem:[%s19300_s11 + $0x40] sm:$0xff] %v7612_v43  ;;  %v9182_v30 = vrot.slane %v9166_v26, 4  ;;  %v7613_v0 = vadd.f32 %v7476_v51, %v19037_v5  ;;  %v7517_v38 = vpop.f32.mrf.mxu1  ;;  %v14271_v14 = vcombine.low %v9270_v40, %v9347_v56  ;;  %v14272_v46 = vcombine.high %v9270_v40, %v9347_v56 }
 0x419   : > { %7630 = vst [vmem:[%s19300_s11 + $0x50] sm:$0xff] %v7614_v8  ;;  %v7615_v11 = vadd.f32 %v7517_v38, %v19032_v18  ;;  %10887 = vrot.lane.b32.xlu1 %v19324_v53, %s14593_s18  ;;  %11122 = vrot.lane.b32.xlu0 %v19341_v61, %s14596_s21  ;;  %v7478_v55 = vpop.f32.mrf.mxu0 }
 0x41a   : > { %v9192_v5 = vsel %vm222_vm0, %v9182_v30, %v9183_v57  ;;  %7629 = vst [vmem:[%s19300_s11 + $0x48] sm:$0xff] %v7613_v0  ;;  %10315 = vmatprep.subr.bf16.mxu1 %v14272_v46  ;;  %v19395_v49 = vpop.permute.xlu1 %9710  ;;  %v9190_v35 = vsel %vm222_vm0, %v9181_v27, %v9182_v30  ;;  %v7519_v13 = vpop.f32.mrf.mxu1 }
 0x41b   : > { %v9193_v18 = vsel %vm224_vm8, %v9166_v26, %v9192_v5  ;;  %7631 = vst [vmem:[%s19300_s11 + $0x58] sm:$0xff] %v7615_v11  ;;  %v9724_v7 = vrot.slane %v19395_v49, 4  ;;  %v9709_v19 = vpop.permute.xlu0 %9708  ;;  %10316 = vmatpush1.bf16.msra.mxu1 %v14271_v14  ;;  %v9191_v15 = vsel %vm224_vm8, %v9164_v4, %v9190_v35  ;;  %v7479_v29 = vpop.f32.mrf.mxu0 }
 0x41c   : > { %v14255_v31 = vcombine.low %v9130_v58, %v9193_v18  ;;  %v9723_v28 = vrot.slane %v9709_v19, 4  ;;  %v14253_v63 = vcombine.low %v9129_v39, %v9191_v15  ;;  %v14254_v16 = vcombine.high %v9129_v39, %v9191_v15  ;;  %v7520_v42 = vpop.f32.mrf.mxu1 }
 0x41d   : > { %10891 = vrot.lane.b32.xlu1 %v19341_v61, %s14593_s18  ;;  %10889 = vrot.lane.b32.xlu0 %v19321_v45, %s14593_s18  ;;  %v14256_v36 = vcombine.high %v9130_v58, %v9193_v18 }
 0x41e   : > { %v9733_v2 = vsel %vm222_vm0, %v9722_v6, %v9723_v28  ;;  %v9735_v4 = vsel %vm222_vm0, %v9723_v28, %v9724_v7  ;;  %10276 = vmatprep.subr.bf16.mxu0 %v14254_v16  ;;  %v19412_v54 = vpop.permute.xlu1 %9556 }
 0x41f   : > { %v9736_v40 = vsel %vm770_vm3, %v9709_v19, %v9735_v4  ;;  %10317 = vmatprep.subr.bf16.mxu1 %v14256_v36  ;;  %v9570_v43 = vrot.slane %v19412_v54, 4  ;;  %v9555_v17 = vpop.permute.xlu0 %9554  ;;  %10277 = vmatpush1.bf16.msra.mxu0 %v14253_v63  ;;  %v9734_v6 = vsel %vm770_vm3, %v19237_v47, %v9733_v2 }
 0x420   : > { %v14323_v27 = vcombine.low %v9736_v40, %v9736_v40  ;;  %v14324_v8 = vcombine.high %v9736_v40, %v9736_v40  ;;  %v9569_v26 = vrot.slane %v9555_v17, 4  ;;  %10318 = vmatpush1.bf16.msra.mxu1 %v14255_v31  ;;  %v14322_v51 = vcombine.high %v9734_v6, %v9734_v6 }
 0x421   : > { %10966 = vrot.lane.b32.xlu1 %v19321_v45, %s14594_s19  ;;  %10964 = vrot.lane.b32.xlu0 %v19324_v53, %s14594_s19  ;;  %v14321_v56 = vcombine.low %v9734_v6, %v9734_v6 }
 0x422   : > { %14334 = vmatmul.mubr.msk.bf16.vlgmr.msra.gmra.mxu0 %vm1251_vm9, %v19419_v50  ;;  %14337 = vmatprep.subr.msk.bf16.mxu0 %vm222_vm0, %v14322_v51  ;;  %v19430_v30 = vpop.permute.xlu1 %9633  ;;  %v10233_v47 = vsel %vm222_vm0, %v14323_v27, 0  ;;  %v9581_v0 = vsel %vm222_vm0, %v9569_v26, %v9570_v43  ;;  %v9579_v11 = vsel %vm222_vm0, %v9568_v44, %v9569_v26 }
 0x423   : > { %14336 = vmatmul.mubr.msk.bf16.vlgmr.msra.gmra.mxu1 %vm1251_vm9, %v19419_v50  ;;  %14339 = vmatprep.subr.msk.bf16.mxu1 %vm222_vm0, %v14324_v8  ;;  %v9647_v38 = vrot.slane %v19430_v30, 4  ;;  %v9632_v14 = vpop.permute.xlu0 %9631  ;;  %v10227_v46 = vsel %vm222_vm0, %v14321_v56, 0  ;;  %v9582_v39 = vsel %vm614_vm1, %v9555_v17, %v9581_v0  ;;  %v9580_v19 = vsel %vm614_vm1, %v19255_v48, %v9579_v11 }
 0x424   : > { %v9646_v58 = vrot.slane %v9632_v14, 4  ;;  %10351 = vmatpush1.bf16.msra.mxu0 %v10227_v46  ;;  %10392 = vmatpush1.bf16.msra.mxu1 %v10233_v47 }
 0x425   : > { %10733 = vrot.lane.b32.xlu1 %v19324_v53, %s14591_s16  ;;  %10968 = vrot.lane.b32.xlu0 %v19341_v61, %s14594_s19 }
 0x426   : > { %v9658_v55 = vsel %vm222_vm0, %v9646_v58, %v9647_v38  ;;  %v19452_v5 = vpop.permute.xlu1 %9402  ;;  %v9656_v35 = vsel %vm222_vm0, %v9645_v1, %v9646_v58  ;;  %10376 = vmatprep.mubr.bf16.mxu0 %v21485_v3  ;;  %10417 = vmatprep.mubr.bf16.mxu1 %v21485_v3 }
 0x427   : > { %v9659_v44 = vsel %vm692_vm2, %v9632_v14, %v9658_v55  ;;  %v9416_v13 = vrot.slane %v19452_v5, 4  ;;  %v9401_v18 = vpop.permute.xlu0 %9400  ;;  %v9657_v15 = vsel %vm692_vm2, %v19279_v37, %v9656_v35 }
 0x428   : > { %v14307_v29 = vcombine.low %v9582_v39, %v9659_v44  ;;  %v9415_v31 = vrot.slane %v9401_v18, 4  ;;  %v14305_v28 = vcombine.low %v9580_v19, %v9657_v15  ;;  %v14306_v63 = vcombine.high %v9580_v19, %v9657_v15 }
 0x429   : > { %10737 = vrot.lane.b32.xlu1 %v19341_v61, %s14591_s16  ;;  %10735 = vrot.lane.b32.xlu0 %v19321_v45, %s14591_s16  ;;  %v7556_v1 = vpop.f32.mrf.mxu0  ;;  %v14308_v16 = vcombine.high %v9582_v39, %v9659_v44 }
 0x42a   : > { %v7616_v42 = vadd.f32 %v7556_v1, %v19118_v62  ;;  %v7597_v36 = vpop.f32.mrf.mxu1  ;;  %10352 = vmatprep.subr.bf16.mxu0 %v14306_v63  ;;  %v19470_v48 = vpop.permute.xlu1 %9479  ;;  %v9427_v37 = vsel %vm222_vm0, %v9415_v31, %v9416_v13  ;;  %v9425_v8 = vsel %vm222_vm0, %v9414_v60, %v9415_v31  ;;  %v19529_v1 = vld [vmem:[%s14628_s14 + $0x3c] sm:$0xff] }
 0x42b   : > { %v7618_v2 = vadd.f32 %v7597_v36, %v19124_v24  ;;  %10393 = vmatprep.subr.bf16.mxu1 %v14308_v16  ;;  %v9493_v4 = vrot.slane %v19470_v48, 4  ;;  %v9478_v40 = vpop.permute.xlu0 %9477  ;;  %10353 = vmatpush1.bf16.msra.mxu0 %v14305_v28  ;;  %v7558_v17 = vpop.f32.mrf.mxu0  ;;  %v9428_v51 = vsel %vm458_vm7, %v9401_v18, %v9427_v37  ;;  %v9426_v46 = vsel %vm458_vm7, %v19289_v10, %v9425_v8  ;;  %v19532_v16 = vld [vmem:[%s14628_s14 + $0x34] sm:$0xff] }
 0x42c   : > { %7632 = vst [vmem:[%s19300_s11 + $0x60] sm:$0xff] %v7616_v42  ;;  %v9492_v62 = vrot.slane %v9478_v40, 4  ;;  %10394 = vmatpush1.bf16.msra.mxu1 %v14307_v29  ;;  %v7617_v6 = vadd.f32 %v7558_v17, %v19131_v23  ;;  %v7599_v27 = vpop.f32.mrf.mxu1 }
 0x42d   : > { %7634 = vst [vmem:[%s19300_s11 + $0x70] sm:$0xff] %v7618_v2  ;;  %v7619_v24 = vadd.f32 %v7599_v27, %v19134_v20  ;;  %10812 = vrot.lane.b32.xlu1 %v19321_v45, %s14592_s17  ;;  %10810 = vrot.lane.b32.xlu0 %v19324_v53, %s14592_s17  ;;  %v7560_v26 = vpop.f32.mrf.mxu0  ;;  %v19551_v27 = vld [vmem:[%s14628_s14 + $0x28] sm:$0xff] }
 0x42e   : > { %v9504_v23 = vsel %vm222_vm0, %v9492_v62, %v9493_v4  ;;  %7633 = vst [vmem:[%s19300_s11 + $0x68] sm:$0xff] %v7617_v6  ;;  %v19493_v56 = vpop.permute.xlu1 %9248  ;;  %v9502_v20 = vsel %vm222_vm0, %v9491_v22, %v9492_v62  ;;  %v7601_v60 = vpop.f32.mrf.mxu1  ;;  %v19544_v6 = vld [vmem:[%s14628_s14 + $0x30] sm:$0xff] }
 0x42f   : > { %v9505_v47 = vsel %vm536_vm4, %v9478_v40, %v9504_v23  ;;  %7635 = vst [vmem:[%s19300_s11 + $0x78] sm:$0xff] %v7619_v24  ;;  %v9262_v0 = vrot.slane %v19493_v56, 4  ;;  %v9247_v14 = vpop.permute.xlu0 %9246  ;;  %v9503_v58 = vsel %vm536_vm4, %v19328_v32, %v9502_v20  ;;  %v7561_v11 = vpop.f32.mrf.mxu0 }
 0x430   : > { %v14291_v39 = vcombine.low %v9428_v51, %v9505_v47  ;;  %v9261_v55 = vrot.slane %v9247_v14, 4  ;;  %v14289_v35 = vcombine.low %v9426_v46, %v9503_v58  ;;  %v14290_v44 = vcombine.high %v9426_v46, %v9503_v58  ;;  %v7602_v18 = vpop.f32.mrf.mxu1 }
 0x431   : > { %10656 = vrot.lane.b32.xlu1 %v19324_v53, %s14590_s15  ;;  %10814 = vrot.lane.b32.xlu0 %v19341_v61, %s14592_s17  ;;  %v14292_v22 = vcombine.high %v9428_v51, %v9505_v47 }
 0x432   : > { %10354 = vmatprep.subr.bf16.mxu0 %v14290_v44  ;;  %v19509_v10 = vpop.permute.xlu1 %9325  ;;  %v9273_v32 = vsel %vm222_vm0, %v9261_v55, %v9262_v0  ;;  %v9271_v53 = vsel %vm222_vm0, %v9260_v33, %v9261_v55 }
 0x433   : > { %10395 = vmatprep.subr.bf16.mxu1 %v14292_v22  ;;  %v9339_v19 = vrot.slane %v19509_v10, 4  ;;  %v9324_v15 = vpop.permute.xlu0 %9323  ;;  %10355 = vmatpush1.bf16.msra.mxu0 %v14289_v35  ;;  %v9274_v31 = vsel %vm302_vm6, %v9247_v14, %v9273_v32  ;;  %v9272_v36 = vsel %vm302_vm6, %v19338_v25, %v9271_v53 }
 0x434   : > { %v9338_v29 = vrot.slane %v9324_v15, 4  ;;  %10396 = vmatpush1.bf16.msra.mxu1 %v14291_v39 }
 0x435   : > { %10660 = vrot.lane.b32.xlu1 %v19341_v61, %s14590_s15  ;;  %10658 = vrot.lane.b32.xlu0 %v19321_v45, %s14590_s15 }
 0x436   : > { %v9350_v28 = vsel %vm222_vm0, %v9338_v29, %v9339_v19  ;;  %v19526_v63 = vpop.permute.xlu1 %9171  ;;  %v9348_v61 = vsel %vm222_vm0, %v9337_v52, %v9338_v29 }
 0x437   : > { %v9351_v45 = vsel %vm380_vm5, %v9324_v15, %v9350_v28  ;;  %v9185_v33 = vrot.slane %v19526_v63, 4  ;;  %v9170_v42 = vpop.permute.xlu0 %9169  ;;  %v9349_v37 = vsel %vm380_vm5, %v19364_v21, %v9348_v61 }
 0x438   : > { %v14275_v2 = vcombine.low %v9274_v31, %v9351_v45  ;;  %v9184_v40 = vrot.slane %v9170_v42, 4  ;;  %v14273_v17 = vcombine.low %v9272_v36, %v9349_v37  ;;  %v14274_v62 = vcombine.high %v9272_v36, %v9349_v37 }
 0x439   : > { %11203 = vrot.lane.b32.xlu1 %v19529_v1, %s14597_s22  ;;  %11201 = vrot.lane.b32.xlu0 %v19532_v16, %s14597_s22  ;;  %v14276_v52 = vcombine.high %v9274_v31, %v9351_v45 }
 0x43a   : > { %v9196_v25 = vsel %vm222_vm0, %v9184_v40, %v9185_v33  ;;  %10356 = vmatprep.subr.bf16.mxu0 %v14274_v62  ;;  %v19556_v21 = vpop.permute.xlu1 %9714  ;;  %v9194_v8 = vsel %vm222_vm0, %v9183_v57, %v9184_v40 }
 0x43b   : > { %v9197_v24 = vsel %vm224_vm8, %v9170_v42, %v9196_v25  ;;  %10397 = vmatprep.subr.bf16.mxu1 %v14276_v52  ;;  %v9726_v26 = vrot.slane %v19556_v21, 4  ;;  %v9713_v51 = vpop.permute.xlu0 %9712  ;;  %10357 = vmatpush1.bf16.msra.mxu0 %v14273_v17  ;;  %v9195_v23 = vsel %vm224_vm8, %v19373_v12, %v9194_v8 }
 0x43c   : > { %v14259_v20 = vcombine.low %v19544_v6, %v9197_v24  ;;  %v9725_v60 = vrot.slane %v9713_v51, 4  ;;  %10398 = vmatpush1.bf16.msra.mxu1 %v14275_v2  ;;  %v14257_v47 = vcombine.low %v19551_v27, %v9195_v23  ;;  %v14258_v14 = vcombine.high %v19551_v27, %v9195_v23 }
 0x43d   : > { %11049 = vrot.lane.b32.xlu1 %v19529_v1, %s14595_s20  ;;  %11047 = vrot.lane.b32.xlu0 %v19532_v16, %s14595_s20  ;;  %v14260_v57 = vcombine.high %v19544_v6, %v9197_v24 }
 0x43e   : > { %v9737_v12 = vsel %vm222_vm0, %v9724_v7, %v9725_v60  ;;  %v9739_v46 = vsel %vm222_vm0, %v9725_v60, %v9726_v26  ;;  %10358 = vmatprep.subr.bf16.mxu0 %v14258_v14  ;;  %v19579_v58 = vpop.permute.xlu1 %9560 }
 0x43f   : > { %v9740_v11 = vsel %vm770_vm3, %v9713_v51, %v9739_v46  ;;  %10399 = vmatprep.subr.bf16.mxu1 %v14260_v57  ;;  %v9572_v39 = vrot.slane %v19579_v58, 4  ;;  %v9559_v55 = vpop.permute.xlu0 %9558  ;;  %10359 = vmatpush1.bf16.msra.mxu0 %v14257_v47  ;;  %v9738_v35 = vsel %vm770_vm3, %v19395_v49, %v9737_v12 }
 0x440   : > { %v14327_v44 = vcombine.low %v9740_v11, %v9740_v11  ;;  %v14328_v18 = vcombine.high %v9740_v11, %v9740_v11  ;;  %v9571_v7 = vrot.slane %v9559_v55, 4  ;;  %10400 = vmatpush1.bf16.msra.mxu1 %v14259_v20  ;;  %v14326_v22 = vcombine.high %v9738_v35, %v9738_v35 }
 0x441   : > { %11126 = vrot.lane.b32.xlu1 %v19529_v1, %s14596_s21  ;;  %11124 = vrot.lane.b32.xlu0 %v19532_v16, %s14596_s21  ;;  %v14325_v32 = vcombine.low %v9738_v35, %v9738_v35 }
 0x442   : > { %14338 = vmatmul.mubr.msk.bf16.vlgmr.msra.gmra.mxu0 %vm1251_vm9, %v19419_v50  ;;  %14341 = vmatprep.subr.msk.bf16.mxu0 %vm222_vm0, %v14326_v22  ;;  %v19592_v15 = vpop.permute.xlu1 %9637  ;;  %v10245_v49 = vsel %vm222_vm0, %v14327_v44, 0  ;;  %v9585_v28 = vsel %vm222_vm0, %v9571_v7, %v9572_v39  ;;  %v9583_v45 = vsel %vm222_vm0, %v9570_v43, %v9571_v7 }
 0x443   : > { %14340 = vmatmul.mubr.msk.bf16.vlgmr.msra.gmra.mxu1 %vm1251_vm9, %v19419_v50  ;;  %14343 = vmatprep.subr.msk.bf16.mxu1 %vm222_vm0, %v14328_v18  ;;  %v9649_v29 = vrot.slane %v19592_v15, 4  ;;  %v9636_v53 = vpop.permute.xlu0 %9635  ;;  %v10239_v31 = vsel %vm222_vm0, %v14325_v32, 0  ;;  %v9586_v43 = vsel %vm614_vm1, %v9559_v55, %v9585_v28  ;;  %v9584_v17 = vsel %vm614_vm1, %v19412_v54, %v9583_v45 }
 0x444   : > { %v9648_v61 = vrot.slane %v9636_v53, 4  ;;  %10433 = vmatpush1.bf16.msra.mxu0 %v10239_v31  ;;  %10474 = vmatpush1.bf16.msra.mxu1 %v10245_v49 }
 0x445   : > { %10895 = vrot.lane.b32.xlu1 %v19529_v1, %s14593_s18  ;;  %10893 = vrot.lane.b32.xlu0 %v19532_v16, %s14593_s18 }
 0x446   : > { %v9662_v42 = vsel %vm222_vm0, %v9648_v61, %v9649_v29  ;;  %v9660_v36 = vsel %vm222_vm0, %v9647_v38, %v9648_v61  ;;  %10458 = vmatprep.mubr.bf16.mxu0 %v21485_v3  ;;  %10499 = vmatprep.mubr.bf16.mxu1 %v21485_v3 }
 0x447   : > { %v9663_v37 = vsel %vm692_vm2, %v9636_v53, %v9662_v42  ;;  %v19620_v2 = vpop.permute.xlu1 %9406  ;;  %v9405_v40 = vpop.permute.xlu0 %9404  ;;  %v9661_v62 = vsel %vm692_vm2, %v19430_v30, %v9660_v36 }
 0x448   : > { %v14311_v52 = vcombine.low %v9586_v43, %v9663_v37  ;;  %v9418_v38 = vrot.slane %v19620_v2, 4  ;;  %v9417_v25 = vrot.slane %v9405_v40, 4  ;;  %v14309_v8 = vcombine.low %v9584_v17, %v9661_v62 }
 0x449   : > { %10972 = vrot.lane.b32.xlu1 %v19529_v1, %s14594_s19  ;;  %10970 = vrot.lane.b32.xlu0 %v19532_v16, %s14594_s19  ;;  %v14310_v24 = vcombine.high %v9584_v17, %v9661_v62  ;;  %v14312_v51 = vcombine.high %v9586_v43, %v9663_v37  ;;  %v19686_v17 = vld [vmem:[%s14628_s14 + $0x4c] sm:$0xff]  ;;  %v19689_v62 = vld [vmem:[%s14628_s14 + $0x44] sm:$0xff] }
 0x44a   : > { %v9431_v30 = vsel %vm222_vm0, %v9417_v25, %v9418_v38  ;;  %v9429_v47 = vsel %vm222_vm0, %v9416_v13, %v9417_v25 }
 0x44b   : > { %10434 = vmatprep.subr.bf16.mxu0 %v14310_v24  ;;  %10475 = vmatprep.subr.bf16.mxu1 %v14312_v51  ;;  %v19631_v23 = vpop.permute.xlu1 %9483  ;;  %v9482_v54 = vpop.permute.xlu0 %9481  ;;  %v9432_v12 = vsel %vm458_vm7, %v9405_v40, %v9431_v30  ;;  %v9430_v55 = vsel %vm458_vm7, %v19452_v5, %v9429_v47 }
 0x44c   : > { %v9495_v20 = vrot.slane %v19631_v23, 4  ;;  %v9494_v60 = vrot.slane %v9482_v54, 4  ;;  %10435 = vmatpush1.bf16.msra.mxu0 %v14309_v8  ;;  %10476 = vmatpush1.bf16.msra.mxu1 %v14311_v52 }
 0x44d   : > { %10741 = vrot.lane.b32.xlu1 %v19529_v1, %s14591_s16  ;;  %10739 = vrot.lane.b32.xlu0 %v19532_v16, %s14591_s16 }
 0x44e   : > { %v9508_v14 = vsel %vm222_vm0, %v9494_v60, %v9495_v20  ;;  %v9506_v57 = vsel %vm222_vm0, %v9493_v4, %v9494_v60 }
 0x44f   : > { %v9509_v46 = vsel %vm536_vm4, %v9482_v54, %v9508_v14  ;;  %v19652_v11 = vpop.permute.xlu1 %9252  ;;  %v9251_v13 = vpop.permute.xlu0 %9250  ;;  %v9507_v35 = vsel %vm536_vm4, %v19470_v48, %v9506_v57  ;;  %v9134_v14 = vld [vmem:[%s14628_s14 + $0x40] sm:$0xff] }
 0x450   : > { %v14295_v44 = vcombine.low %v9432_v12, %v9509_v46  ;;  %v9264_v18 = vrot.slane %v19652_v11, 4  ;;  %v9263_v7 = vrot.slane %v9251_v13, 4  ;;  %v14293_v22 = vcombine.low %v9430_v55, %v9507_v35 }
 0x451   : > { %10818 = vrot.lane.b32.xlu1 %v19529_v1, %s14592_s17  ;;  %10816 = vrot.lane.b32.xlu0 %v19532_v16, %s14592_s17  ;;  %v8803_v4 = vpop.f32.mrf.mxu0  ;;  %v14294_v32 = vcombine.high %v9430_v55, %v9507_v35  ;;  %v14296_v49 = vcombine.high %v9432_v12, %v9509_v46 }
 0x452   : > { %v9097_v5 = vadd.f32 %v8803_v4, %v19229_v59  ;;  %v8844_v53 = vpop.f32.mrf.mxu1  ;;  %v9277_v61 = vsel %vm222_vm0, %v9263_v7, %v9264_v18  ;;  %v9275_v36 = vsel %vm222_vm0, %v9262_v0, %v9263_v7 }
 0x453   : > { %v9099_v48 = vadd.f32 %v8844_v53, %v19233_v41  ;;  %10436 = vmatprep.subr.bf16.mxu0 %v14294_v32  ;;  %10477 = vmatprep.subr.bf16.mxu1 %v14296_v49  ;;  %v19665_v31 = vpop.permute.xlu1 %9329  ;;  %v9328_v28 = vpop.permute.xlu0 %9327  ;;  %v9276_v8 = vsel %vm302_vm6, %v19493_v56, %v9275_v36  ;;  %v19711_v56 = vld [vmem:[%s14628_s14 + $0x38] sm:$0xff] }
 0x454   : > { %9113 = vst [vmem:[%s19300_s11] sm:$0xff] %v9097_v5  ;;  %v9341_v45 = vrot.slane %v19665_v31, 4  ;;  %v9340_v42 = vrot.slane %v9328_v28, 4  ;;  %10437 = vmatpush1.bf16.msra.mxu0 %v14293_v22  ;;  %10478 = vmatpush1.bf16.msra.mxu1 %v14295_v44  ;;  %v8805_v59 = vpop.f32.mrf.mxu0  ;;  %v8846_v41 = vpop.f32.mrf.mxu1 }
 0x455   : > { %9115 = vst [vmem:[%s19300_s11 + $0x10] sm:$0xff] %v9099_v48  ;;  %v9098_v43 = vadd.f32 %v8805_v59, %v19240_v34  ;;  %v9100_v37 = vadd.f32 %v8846_v41, %v19244_v9  ;;  %10664 = vrot.lane.b32.xlu1 %v19529_v1, %s14590_s15  ;;  %10662 = vrot.lane.b32.xlu0 %v19532_v16, %s14590_s15 }
 0x456   : > { %v9354_v40 = vsel %vm222_vm0, %v9340_v42, %v9341_v45  ;;  %v9352_v34 = vsel %vm222_vm0, %v9339_v19, %v9340_v42  ;;  %v8807_v0 = vpop.f32.mrf.mxu0  ;;  %v8848_v9 = vpop.f32.mrf.mxu1  ;;  %v9278_v1 = vsel %vm302_vm6, %v9251_v13, %v9277_v61 }
 0x457   : > { %v9355_v52 = vsel %vm380_vm5, %v9328_v28, %v9354_v40  ;;  %9114 = vst [vmem:[%s19300_s11 + $0x8] sm:$0xff] %v9098_v43  ;;  %9116 = vst [vmem:[%s19300_s11 + $0x18] sm:$0xff] %v9100_v37  ;;  %v19698_v16 = vpop.permute.xlu1 %9175  ;;  %v9174_v25 = vpop.permute.xlu0 %9173  ;;  %v9353_v24 = vsel %vm380_vm5, %v19509_v10, %v9352_v34 }
 0x458   : > { %v14279_v19 = vcombine.low %v9278_v1, %v9355_v52  ;;  %v9187_v51 = vrot.slane %v19698_v16, 4  ;;  %v9186_v54 = vrot.slane %v9174_v25, 4  ;;  %v14277_v30 = vcombine.low %v9276_v8, %v9353_v24  ;;  %v8808_v60 = vpop.f32.mrf.mxu0  ;;  %v8849_v47 = vpop.f32.mrf.mxu1 }
 0x459   : > { %11207 = vrot.lane.b32.xlu1 %v19686_v17, %s14597_s22  ;;  %11205 = vrot.lane.b32.xlu0 %v19689_v62, %s14597_s22  ;;  %v14278_v57 = vcombine.high %v9276_v8, %v9353_v24  ;;  %v14280_v12 = vcombine.high %v9278_v1, %v9355_v52 }
 0x45a   : > { %v9200_v10 = vsel %vm222_vm0, %v9186_v54, %v9187_v51  ;;  %v9198_v46 = vsel %vm222_vm0, %v9185_v33, %v9186_v54 }
 0x45b   : > { %v9201_v13 = vsel %vm224_vm8, %v9174_v25, %v9200_v10  ;;  %10438 = vmatprep.subr.bf16.mxu0 %v14278_v57  ;;  %10479 = vmatprep.subr.bf16.mxu1 %v14280_v12  ;;  %v9719_v55 = vpop.permute.xlu1 %9718  ;;  %v9717_v35 = vpop.permute.xlu0 %9716  ;;  %v9199_v44 = vsel %vm224_vm8, %v19526_v63, %v9198_v46 }
 0x45c   : > { %v14263_v7 = vcombine.low %v9134_v14, %v9201_v13  ;;  %v9728_v22 = vrot.slane %v9719_v55, 4  ;;  %v9727_v4 = vrot.slane %v9717_v35, 4  ;;  %10439 = vmatpush1.bf16.msra.mxu0 %v14277_v30  ;;  %10480 = vmatpush1.bf16.msra.mxu1 %v14279_v19  ;;  %v14261_v32 = vcombine.low %v19711_v56, %v9199_v44 }
 0x45d   : > { %11053 = vrot.lane.b32.xlu1 %v19686_v17, %s14595_s20  ;;  %11051 = vrot.lane.b32.xlu0 %v19689_v62, %s14595_s20  ;;  %v14262_v33 = vcombine.high %v19711_v56, %v9199_v44  ;;  %v14264_v49 = vcombine.high %v9134_v14, %v9201_v13 }
 0x45e   : > { %v9741_v63 = vsel %vm222_vm0, %v9726_v26, %v9727_v4  ;;  %v9743_v5 = vsel %vm222_vm0, %v9727_v4, %v9728_v22 }
 0x45f   : > { %v9744_v53 = vsel %vm770_vm3, %v9717_v35, %v9743_v5  ;;  %10440 = vmatprep.subr.bf16.mxu0 %v14262_v33  ;;  %10481 = vmatprep.subr.bf16.mxu1 %v14264_v49  ;;  %v9565_v48 = vpop.permute.xlu1 %9564  ;;  %v9563_v28 = vpop.permute.xlu0 %9562  ;;  %v9742_v61 = vsel %vm770_vm3, %v19556_v21, %v9741_v63 }
 0x460   : > { %v14331_v42 = vcombine.low %v9744_v53, %v9744_v53  ;;  %v14332_v59 = vcombine.high %v9744_v53, %v9744_v53  ;;  %v9574_v41 = vrot.slane %v9565_v48, 4  ;;  %v9573_v36 = vrot.slane %v9563_v28, 4  ;;  %10441 = vmatpush1.bf16.msra.mxu0 %v14261_v32  ;;  %10482 = vmatpush1.bf16.msra.mxu1 %v14263_v7 }
 0x461   : > { %11130 = vrot.lane.b32.xlu1 %v19686_v17, %s14596_s21  ;;  %11128 = vrot.lane.b32.xlu0 %v19689_v62, %s14596_s21  ;;  %v14330_v26 = vcombine.high %v9742_v61, %v9742_v61  ;;  %v14329_v43 = vcombine.low %v9742_v61, %v9742_v61 }
 0x462   : > { %14347 = vmatprep.subr.msk.bf16.mxu1 %vm222_vm0, %v14332_v59  ;;  %v10257_v37 = vsel %vm222_vm0, %v14331_v42, 0  ;;  %v9589_v0 = vsel %vm222_vm0, %v9573_v36, %v9574_v41  ;;  %v9587_v52 = vsel %vm222_vm0, %v9572_v39, %v9573_v36  ;;  %v8274_v59 = vld [vmem:[%s19300_s11 + $0x30] sm:$0xff] }
 0x463   : > { %14342 = vmatmul.mubr.msk.bf16.vlgmr.msra.gmra.mxu0 %vm1251_vm9, %v19419_v50  ;;  %14344 = vmatmul.mubr.msk.bf16.vlgmr.msra.gmra.mxu1 %vm1251_vm9, %v19419_v50  ;;  %v9642_v21 = vpop.permute.xlu1 %9641  ;;  %v9640_v40 = vpop.permute.xlu0 %9639  ;;  %v10251_v34 = vsel %vm222_vm0, %v14329_v43, 0  ;;  %v9590_v24 = vsel %vm614_vm1, %v9563_v28, %v9589_v0  ;;  %v9588_v30 = vsel %vm614_vm1, %v19579_v58, %v9587_v52  ;;  %v8275_v0 = vld [vmem:[%s19300_s11 + $0x38] sm:$0xff] }
 0x464   : > { %14345 = vmatprep.subr.msk.bf16.mxu0 %vm222_vm0, %v14330_v26  ;;  %v9651_v9 = vrot.slane %v9642_v21, 4  ;;  %v9650_v1 = vrot.slane %v9640_v40, 4  ;;  %10556 = vmatpush1.bf16.msra.mxu1 %v10257_v37 }
 0x465   : > { %10515 = vmatpush1.bf16.msra.mxu0 %v10251_v34  ;;  %10899 = vrot.lane.b32.xlu1 %v19686_v17, %s14593_s18 }
 0x466   : > { %v9666_v25 = vsel %vm222_vm0, %v9650_v1, %v9651_v9  ;;  %10897 = vrot.lane.b32.xlu0 %v19689_v62, %s14593_s18  ;;  %v9664_v8 = vsel %vm222_vm0, %v9649_v29, %v9650_v1  ;;  %10540 = vmatprep.mubr.bf16.mxu0 %v21485_v3 }
 0x467   : > { %v9667_v19 = vsel %vm692_vm2, %v9640_v40, %v9666_v25  ;;  %v9411_v39 = vpop.permute.xlu1 %9410  ;;  %v9409_v54 = vpop.permute.xlu0 %9408  ;;  %v9665_v60 = vsel %vm692_vm2, %v19592_v15, %v9664_v8  ;;  %10581 = vmatprep.mubr.bf16.mxu1 %v21485_v3  ;;  %v8273_v40 = vld [vmem:[%s19300_s11 + $0x28] sm:$0xff] }
 0x468   : > { %v14315_v47 = vcombine.low %v9590_v24, %v9667_v19  ;;  %v9420_v14 = vrot.slane %v9411_v39, 4  ;;  %v9419_v57 = vrot.slane %v9409_v54, 4  ;;  %v14313_v29 = vcombine.low %v9588_v30, %v9665_v60 }
 0x469   : > { %10976 = vrot.lane.b32.xlu1 %v19686_v17, %s14594_s19  ;;  %v14314_v12 = vcombine.high %v9588_v30, %v9665_v60  ;;  %v14316_v10 = vcombine.high %v9590_v24, %v9667_v19  ;;  %v11185_v24 = vld [vmem:[%s14628_s14 + $0x5c] sm:$0xf] }
 0x46a   : > { %10974 = vrot.lane.b32.xlu0 %v19689_v62, %s14594_s19  ;;  %v9435_v15 = vsel %vm222_vm0, %v9419_v57, %v9420_v14  ;;  %v9433_v35 = vsel %vm222_vm0, %v9418_v38, %v9419_v57 }
 0x46b   : > { %10516 = vmatprep.subr.bf16.mxu0 %v14314_v12  ;;  %10557 = vmatprep.subr.bf16.mxu1 %v14316_v10  ;;  %v9488_v58 = vpop.permute.xlu1 %9487  ;;  %v9486_v46 = vpop.permute.xlu0 %9485  ;;  %v9436_v22 = vsel %vm458_vm7, %v9409_v54, %v9435_v15  ;;  %v9434_v33 = vsel %vm458_vm7, %v19620_v2, %v9433_v35 }
 0x46c   : > { %v9497_v13 = vrot.slane %v9488_v58, 4  ;;  %v9496_v55 = vrot.slane %v9486_v46, 4  ;;  %10517 = vmatpush1.bf16.msra.mxu0 %v14313_v29  ;;  %10558 = vmatpush1.bf16.msra.mxu1 %v14315_v47  ;;  %v19817_v47 = vld [vmem:[%s14628_s14 + $0x54] sm:$0xff] }
 0x46d   : > { %10745 = vrot.lane.b32.xlu1 %v19686_v17, %s14591_s16 }
 0x46e   : > { %v9512_v44 = vsel %vm222_vm0, %v9496_v55, %v9497_v13  ;;  %10743 = vrot.lane.b32.xlu0 %v19689_v62, %s14591_s16  ;;  %v9510_v7 = vsel %vm222_vm0, %v9495_v20, %v9496_v55  ;;  %v8272_v20 = vld [vmem:[%s19300_s11 + $0x20] sm:$0xff]  ;;  %v19826_v55 = vld [vmem:[%s14628_s14 + $0x48] sm:$0xff] }
 0x46f   : > { %v9513_v4 = vsel %vm536_vm4, %v9486_v46, %v9512_v44  ;;  %v9257_v32 = vpop.permute.xlu1 %9256  ;;  %v9255_v38 = vpop.permute.xlu0 %9254  ;;  %v9511_v49 = vsel %vm536_vm4, %v19631_v23, %v9510_v7  ;;  %v9136_v46 = vld [vmem:[%s14628_s14 + $0x50] sm:$0xff] }
 0x470   : > { %v14299_v63 = vcombine.low %v9436_v22, %v9513_v4  ;;  %v9266_v5 = vrot.slane %v9257_v32, 4  ;;  %v9265_v53 = vrot.slane %v9255_v38, 4  ;;  %v14297_v48 = vcombine.low %v9434_v33, %v9511_v49 }
 0x471   : > { %10822 = vrot.lane.b32.xlu1 %v19686_v17, %s14592_s17  ;;  %v14298_v61 = vcombine.high %v9434_v33, %v9511_v49  ;;  %v14300_v42 = vcombine.high %v9436_v22, %v9513_v4 }
 0x472   : > { %v8885_v28 = vpop.f32.mrf.mxu0  ;;  %10820 = vrot.lane.b32.xlu0 %v19689_v62, %s14592_s17  ;;  %v8926_v23 = vpop.f32.mrf.mxu1  ;;  %v9281_v43 = vsel %vm222_vm0, %v9265_v53, %v9266_v5  ;;  %v9279_v1 = vsel %vm222_vm0, %v9264_v18, %v9265_v53  ;;  %v11108_v53 = vld [vmem:[%s14628_s14 + $0x5c] sm:$0xf] }
 0x473   : > { %v9101_v2 = vadd.f32 %v8885_v28, %v8272_v20  ;;  %v9103_v41 = vadd.f32 %v8926_v23, %v8274_v59  ;;  %10518 = vmatprep.subr.bf16.mxu0 %v14298_v61  ;;  %10559 = vmatprep.subr.bf16.mxu1 %v14300_v42  ;;  %v9334_v36 = vpop.permute.xlu1 %9333  ;;  %v9332_v26 = vpop.permute.xlu0 %9331  ;;  %v9282_v18 = vsel %vm302_vm6, %v9255_v38, %v9281_v43  ;;  %v10877_v23 = vld [vmem:[%s14628_s14 + $0x5c] sm:$0xf] }
 0x474   : > { %v9343_v37 = vrot.slane %v9334_v36, 4  ;;  %v9342_v21 = vrot.slane %v9332_v26, 4  ;;  %10519 = vmatpush1.bf16.msra.mxu0 %v14297_v48  ;;  %10560 = vmatpush1.bf16.msra.mxu1 %v14299_v63  ;;  %v8887_v34 = vpop.f32.mrf.mxu0  ;;  %v8928_v9 = vpop.f32.mrf.mxu1 }
 0x475   : > { %9117 = vst [vmem:[%s19300_s11 + $0x20] sm:$0xff] %v9101_v2  ;;  %9119 = vst [vmem:[%s19300_s11 + $0x30] sm:$0xff] %v9103_v41  ;;  %v9102_v52 = vadd.f32 %v8887_v34, %v8273_v40  ;;  %v9104_v25 = vadd.f32 %v8928_v9, %v8275_v0  ;;  %10668 = vrot.lane.b32.xlu1 %v19686_v17, %s14590_s15  ;;  %v10954_v34 = vld [vmem:[%s14628_s14 + $0x5c] sm:$0xf] }
 0x476   : > { %v9358_v8 = vsel %vm222_vm0, %v9342_v21, %v9343_v37  ;;  %10666 = vrot.lane.b32.xlu0 %v19689_v62, %s14590_s15  ;;  %v9356_v19 = vsel %vm222_vm0, %v9341_v45, %v9342_v21  ;;  %v8889_v39 = vpop.f32.mrf.mxu0  ;;  %v8930_v54 = vpop.f32.mrf.mxu1  ;;  %v9280_v62 = vsel %vm302_vm6, %v19652_v11, %v9279_v1  ;;  %v11031_v11 = vld [vmem:[%s14628_s14 + $0x5c] sm:$0xf] }
 0x477   : > { %v9359_v30 = vsel %vm380_vm5, %v9332_v26, %v9358_v8  ;;  %9118 = vst [vmem:[%s19300_s11 + $0x28] sm:$0xff] %v9102_v52  ;;  %9120 = vst [vmem:[%s19300_s11 + $0x38] sm:$0xff] %v9104_v25  ;;  %v9180_v17 = vpop.permute.xlu1 %9179  ;;  %v9178_v60 = vpop.permute.xlu0 %9177  ;;  %v9357_v45 = vsel %vm380_vm5, %v19665_v31, %v9356_v19  ;;  %v10723_v19 = vld [vmem:[%s14628_s14 + $0x5c] sm:$0xf] }
 0x478   : > { %v14283_v14 = vcombine.low %v9282_v18, %v9359_v30  ;;  %v9189_v57 = vrot.slane %v9180_v17, 4  ;;  %v9188_v29 = vrot.slane %v9178_v60, 4  ;;  %v14281_v12 = vcombine.low %v9280_v62, %v9357_v45  ;;  %v8890_v10 = vpop.f32.mrf.mxu0  ;;  %v8931_v58 = vpop.f32.mrf.mxu1 }
 0x479   : > { %11211 = vrot.lane.b32.xlu1 %v11185_v24, %s14597_s22  ;;  %v14282_v15 = vcombine.high %v9280_v62, %v9357_v45  ;;  %v14284_v13 = vcombine.high %v9282_v18, %v9359_v30 }
 0x47a   : > { %v9204_v35 = vsel %vm222_vm0, %v9188_v29, %v9189_v57  ;;  %11209 = vrot.lane.b32.xlu0 %v19817_v47, %s14597_s22  ;;  %v9202_v31 = vsel %vm222_vm0, %v9187_v51, %v9188_v29 }
 0x47b   : > { %v9205_v44 = vsel %vm224_vm8, %v9178_v60, %v9204_v35  ;;  %10520 = vmatprep.subr.bf16.mxu0 %v14282_v15  ;;  %10561 = vmatprep.subr.bf16.mxu1 %v14284_v13  ;;  %v11198_v7 = vpop.permute.xlu1 %11197  ;;  %v11196_v22 = vpop.permute.xlu0 %11195  ;;  %v9203_v4 = vsel %vm224_vm8, %v19698_v16, %v9202_v31  ;;  %v8276_v35 = vld [vmem:[%s19300_s11 + $0x40] sm:$0xff]  ;;  %v10646_v31 = vld [vmem:[%s14628_s14 + $0x5c] sm:$0xf] }
 0x47c   : > { %v14267_v32 = vcombine.low %v9136_v46, %v9205_v44  ;;  %v11214_v38 = vrot.slane %v11198_v7, 4  ;;  %v11213_v33 = vrot.slane %v11196_v22, 4  ;;  %10521 = vmatpush1.bf16.msra.mxu0 %v14281_v12  ;;  %10562 = vmatpush1.bf16.msra.mxu1 %v14283_v14  ;;  %v14265_v49 = vcombine.low %v19826_v55, %v9203_v4  ;;  %v10800_v14 = vld [vmem:[%s14628_s14 + $0x5c] sm:$0xf] }
 0x47d   : > { %11057 = vrot.lane.b32.xlu1 %v11031_v11, %s14595_s20  ;;  %v14266_v51 = vcombine.high %v19826_v55, %v9203_v4  ;;  %v14268_v63 = vcombine.high %v9136_v46, %v9205_v44 }
 0x47e   : > { %v11222_v5 = vsel %vm222_vm0, %v11213_v33, %v11214_v38  ;;  %11055 = vrot.lane.b32.xlu0 %v19817_v47, %s14595_s20 }
 0x47f   : > { %v11223_v16 = vsel %vm770_vm3, %v11196_v22, %v11222_v5  ;;  %10522 = vmatprep.subr.bf16.mxu0 %v14266_v51  ;;  %10563 = vmatprep.subr.bf16.mxu1 %v14268_v63  ;;  %v11042_v48 = vpop.permute.xlu1 %11041  ;;  %v19846_v20 = vpop.permute.xlu0 %11199  ;;  %v8278_v22 = vld [vmem:[%s19300_s11 + $0x50] sm:$0xff]  ;;  %v8277_v51 = vld [vmem:[%s19300_s11 + $0x48] sm:$0xff] }
 0x480   : > { %v14414_v28 = vcombine.low %v11223_v16, %v11223_v16  ;;  %v14415_v61 = vcombine.high %v11223_v16, %v11223_v16  ;;  %v11215_v42 = vrot.slane %v19846_v20, 4  ;;  %10523 = vmatpush1.bf16.msra.mxu0 %v14265_v49  ;;  %10564 = vmatpush1.bf16.msra.mxu1 %v14267_v32  ;;  %v11059_v40 = vrot.slane %v11042_v48, 4 }
 0x481   : > { %11134 = vrot.lane.b32.xlu1 %v11108_v53, %s14596_s21 }
 0x482   : > { %v11224_v2 = vsel %vm222_vm0, %v11214_v38, %v11215_v42  ;;  %11132 = vrot.lane.b32.xlu0 %v19817_v47, %s14596_s21  ;;  %14430 = vmatprep.subr.msk.bf16.mxu0 %vm222_vm0, %v14415_v61  ;;  %v11708_v59 = vsel %vm222_vm0, %v14414_v28, 0  ;;  %v8279_v28 = vld [vmem:[%s19300_s11 + $0x58] sm:$0xff] }
 0x483   : > { %14346 = vmatmul.mubr.msk.bf16.vlgmr.msra.gmra.mxu0 %vm1251_vm9, %v19419_v50  ;;  %14348 = vmatmul.mubr.msk.bf16.vlgmr.msra.gmra.mxu1 %vm1251_vm9, %v19419_v50  ;;  %v19862_v41 = vpop.permute.xlu1 %11045  ;;  %v11044_v36 = vpop.permute.xlu0 %11043  ;;  %v11225_v26 = vsel %vm770_vm3, %v11198_v7, %v11224_v2 }
 0x484   : > { %v11060_v43 = vrot.slane %v11044_v36, 4  ;;  %11762 = vmatpush1.bf16.msra.mxu0 %v11708_v59  ;;  %v14417_v37 = vcombine.high %v11225_v26, %v11225_v26  ;;  %v14416_v21 = vcombine.low %v11225_v26, %v11225_v26  ;;  %11787 = vmatprep.mubr.bf16.mxu0 %v21485_v3  ;;  %v11061_v1 = vrot.slane %v19862_v41, 4  ;;  %v19917_v26 = vld [vmem:[%s14628_s14 + $0x20] sm:$0xff] }
 0x485   : > { %10903 = vrot.lane.b32.xlu1 %v10877_v23, %s14593_s18  ;;  %11828 = vmatprep.mubr.bf16.mxu1 %v21485_v3 }
 0x486   : > { %10901 = vrot.lane.b32.xlu0 %v19817_v47, %s14593_s18  ;;  %14432 = vmatprep.subr.msk.bf16.mxu1 %vm222_vm0, %v14417_v37  ;;  %v11714_v50 = vsel %vm222_vm0, %v14416_v21, 0  ;;  %v11068_v25 = vsel %vm222_vm0, %v11059_v40, %v11060_v43  ;;  %v11070_v17 = vsel %vm222_vm0, %v11060_v43, %v11061_v1 }
 0x487   : > { %v11121_v0 = vpop.permute.xlu1 %11120  ;;  %v11119_v9 = vpop.permute.xlu0 %11118  ;;  %11803 = vmatpush1.bf16.msra.mxu1 %v11714_v50  ;;  %v11069_v39 = vsel %vm614_vm1, %v11042_v48, %v11068_v25  ;;  %v11071_v29 = vsel %vm614_vm1, %v11044_v36, %v11070_v17 }
 0x488   : > { %v11137_v52 = vrot.slane %v11121_v0, 4  ;;  %v11136_v8 = vrot.slane %v11119_v9, 4 }
 0x489   : > { %10980 = vrot.lane.b32.xlu1 %v10954_v34, %s14594_s19 }
 0x48a   : > { %v11145_v24 = vsel %vm222_vm0, %v11136_v8, %v11137_v52  ;;  %10978 = vrot.lane.b32.xlu0 %v19817_v47, %s14594_s19 }
 0x48b   : > { %v11146_v54 = vsel %vm692_vm2, %v11119_v9, %v11145_v24  ;;  %v10888_v18 = vpop.permute.xlu1 %10887  ;;  %v19882_v30 = vpop.permute.xlu0 %11122 }
 0x48c   : > { %v14398_v60 = vcombine.low %v11069_v39, %v11146_v54  ;;  %v11138_v62 = vrot.slane %v19882_v30, 4  ;;  %v14399_v45 = vcombine.high %v11069_v39, %v11146_v54  ;;  %v10905_v44 = vrot.slane %v10888_v18, 4 }
 0x48d   : > { %10749 = vrot.lane.b32.xlu1 %v10723_v19, %s14591_s16 }
 0x48e   : > { %10747 = vrot.lane.b32.xlu0 %v19817_v47, %s14591_s16  ;;  %11763 = vmatprep.subr.bf16.mxu0 %v14399_v45  ;;  %v11147_v57 = vsel %vm222_vm0, %v11137_v52, %v11138_v62 }
 0x48f   : > { %v19896_v12 = vpop.permute.xlu1 %10891  ;;  %v10890_v10 = vpop.permute.xlu0 %10889  ;;  %11764 = vmatpush1.bf16.msra.mxu0 %v14398_v60  ;;  %v11148_v58 = vsel %vm692_vm2, %v11121_v0, %v11147_v57 }
 0x490   : > { %v14400_v46 = vcombine.low %v11071_v29, %v11148_v58  ;;  %v14401_v15 = vcombine.high %v11071_v29, %v11148_v58  ;;  %v10906_v13 = vrot.slane %v10890_v10, 4  ;;  %v10907_v5 = vrot.slane %v19896_v12, 4 }
 0x491   : > { %10826 = vrot.lane.b32.xlu1 %v10800_v14, %s14592_s17 }
 0x492   : > { %10824 = vrot.lane.b32.xlu0 %v19817_v47, %s14592_s17  ;;  %v8967_v11 = vpop.f32.mrf.mxu0  ;;  %11804 = vmatprep.subr.bf16.mxu1 %v14401_v15  ;;  %v10914_v53 = vsel %vm222_vm0, %v10905_v44, %v10906_v13 }
 0x493   : > { %v9105_v7 = vadd.f32 %v8967_v11, %v8276_v35  ;;  %v9008_v4 = vpop.f32.mrf.mxu1  ;;  %v10967_v32 = vpop.permute.xlu1 %10966  ;;  %11805 = vmatpush1.bf16.msra.mxu1 %v14400_v46  ;;  %v10915_v37 = vsel %vm458_vm7, %v10888_v18, %v10914_v53 }
 0x494   : > { %v9107_v38 = vadd.f32 %v9008_v4, %v8278_v22  ;;  %v10983_v33 = vrot.slane %v10967_v32, 4  ;;  %v10965_v49 = vpop.permute.xlu0 %10964  ;;  %v8969_v63 = vpop.f32.mrf.mxu0  ;;  %v19965_v4 = vld [vmem:[%s14628_s14 + $0x30] sm:$0xff] }
 0x495   : > { %9121 = vst [vmem:[%s19300_s11 + $0x40] sm:$0xff] %v9105_v7  ;;  %v10982_v16 = vrot.slane %v10965_v49, 4  ;;  %v9106_v48 = vadd.f32 %v8969_v63, %v8277_v51  ;;  %v9010_v61 = vpop.f32.mrf.mxu1  ;;  %10672 = vrot.lane.b32.xlu1 %v10646_v31, %s14590_s15 }
 0x496   : > { %9123 = vst [vmem:[%s19300_s11 + $0x50] sm:$0xff] %v9107_v38  ;;  %v9108_v2 = vadd.f32 %v9010_v61, %v8279_v28  ;;  %10670 = vrot.lane.b32.xlu0 %v19817_v47, %s14590_s15  ;;  %v8971_v59 = vpop.f32.mrf.mxu0  ;;  %v10916_v47 = vsel %vm222_vm0, %v10906_v13, %v10907_v5  ;;  %v10622_v28 = vld [vmem:[%s14628_s14 + $0x1c] sm:$0xff] }
 0x497   : > { %v10991_v23 = vsel %vm222_vm0, %v10982_v16, %v10983_v33  ;;  %9122 = vst [vmem:[%s19300_s11 + $0x48] sm:$0xff] %v9106_v48  ;;  %v10734_v36 = vpop.permute.xlu1 %10733  ;;  %v9012_v43 = vpop.f32.mrf.mxu1  ;;  %v10917_v24 = vsel %vm458_vm7, %v10890_v10, %v10916_v47  ;;  %v10623_v48 = vld [vmem:[%s14628_s14 + $0x24] sm:$0xff] }
 0x498   : > { %v10992_v21 = vsel %vm536_vm4, %v10965_v49, %v10991_v23  ;;  %9124 = vst [vmem:[%s19300_s11 + $0x58] sm:$0xff] %v9108_v2  ;;  %v19922_v40 = vpop.permute.xlu0 %10968  ;;  %v8972_v50 = vpop.f32.mrf.mxu0  ;;  %v10751_v60 = vrot.slane %v10734_v36, 4  ;;  %v19985_v59 = vld [vmem:[%s14628_s14 + $0x28] sm:$0xff] }
 0x499   : > { %v14382_v34 = vcombine.low %v10915_v37, %v10992_v21  ;;  %v10984_v0 = vrot.slane %v19922_v40, 4  ;;  %12690 = vrot.lane.b32.xlu1 %v19551_v27, %s14597_s22  ;;  %v14383_v9 = vcombine.high %v10915_v37, %v10992_v21  ;;  %v9013_v52 = vpop.f32.mrf.mxu1 }
 0x49a   : > { %12688 = vrot.lane.b32.xlu0 %v19917_v26, %s14597_s22 }
 0x49b   : > { %11765 = vmatprep.subr.bf16.mxu0 %v14383_v9  ;;  %v19932_v25 = vpop.permute.xlu1 %10737  ;;  %v10993_v8 = vsel %vm222_vm0, %v10983_v33, %v10984_v0 }
 0x49c   : > { %v10736_v19 = vpop.permute.xlu0 %10735  ;;  %11766 = vmatpush1.bf16.msra.mxu0 %v14382_v34  ;;  %v10994_v39 = vsel %vm536_vm4, %v10967_v32, %v10993_v8  ;;  %v10753_v29 = vrot.slane %v19932_v25, 4 }
 0x49d   : > { %v10752_v54 = vrot.slane %v10736_v19, 4  ;;  %12534 = vrot.lane.b32.xlu1 %v19917_v26, %s14595_s20  ;;  %v14384_v18 = vcombine.low %v10917_v24, %v10994_v39  ;;  %v14385_v17 = vcombine.high %v10917_v24, %v10994_v39 }
 0x49e   : > { %12692 = vrot.lane.b32.xlu0 %v19544_v6, %s14597_s22 }
 0x49f   : > { %11806 = vmatprep.subr.bf16.mxu1 %v14385_v17  ;;  %v10813_v45 = vpop.permute.xlu1 %10812  ;;  %v10760_v10 = vsel %vm222_vm0, %v10751_v60, %v10752_v54  ;;  %v10762_v31 = vsel %vm222_vm0, %v10752_v54, %v10753_v29 }
 0x4a0   : > { %v10829_v14 = vrot.slane %v10813_v45, 4  ;;  %v10811_v57 = vpop.permute.xlu0 %10810  ;;  %11807 = vmatpush1.bf16.msra.mxu1 %v14384_v18  ;;  %v10761_v13 = vsel %vm302_vm6, %v10734_v36, %v10760_v10  ;;  %v10763_v38 = vsel %vm302_vm6, %v10736_v19, %v10762_v31  ;;  %v8280_v10 = vld [vmem:[%s19300_s11 + $0x60] sm:$0xff] }
 0x4a1   : > { %v10828_v58 = vrot.slane %v10811_v57, 4  ;;  %12538 = vrot.lane.b32.xlu1 %v19544_v6, %s14595_s20 }
 0x4a2   : > { %12536 = vrot.lane.b32.xlu0 %v19551_v27, %s14595_s20 }
 0x4a3   : > { %v10837_v46 = vsel %vm222_vm0, %v10828_v58, %v10829_v14  ;;  %v10657_v15 = vpop.permute.xlu1 %10656 }
 0x4a4   : > { %v10838_v35 = vsel %vm380_vm5, %v10811_v57, %v10837_v46  ;;  %v19952_v11 = vpop.permute.xlu0 %10814  ;;  %v10674_v51 = vrot.slane %v10657_v15, 4 }
 0x4a5   : > { %v14366_v44 = vcombine.low %v10761_v13, %v10838_v35  ;;  %v10830_v7 = vrot.slane %v19952_v11, 4  ;;  %12613 = vrot.lane.b32.xlu1 %v19551_v27, %s14596_s21  ;;  %v14367_v6 = vcombine.high %v10761_v13, %v10838_v35  ;;  %v8282_v13 = vld [vmem:[%s19300_s11 + $0x70] sm:$0xff] }
 0x4a6   : > { %12611 = vrot.lane.b32.xlu0 %v19917_v26, %s14596_s21 }
 0x4a7   : > { %11767 = vmatprep.subr.bf16.mxu0 %v14367_v6  ;;  %v19962_v22 = vpop.permute.xlu1 %10660  ;;  %v10839_v32 = vsel %vm222_vm0, %v10829_v14, %v10830_v7 }
 0x4a8   : > { %v10676_v27 = vrot.slane %v19962_v22, 4  ;;  %v10659_v33 = vpop.permute.xlu0 %10658  ;;  %11768 = vmatpush1.bf16.msra.mxu0 %v14366_v44  ;;  %v10840_v49 = vsel %vm380_vm5, %v10813_v45, %v10839_v32 }
 0x4a9   : > { %v10675_v63 = vrot.slane %v10659_v33, 4  ;;  %12380 = vrot.lane.b32.xlu1 %v19917_v26, %s14593_s18  ;;  %v14368_v53 = vcombine.low %v10763_v38, %v10840_v49  ;;  %v14369_v16 = vcombine.high %v10763_v38, %v10840_v49  ;;  %v8281_v49 = vld [vmem:[%s19300_s11 + $0x68] sm:$0xff] }
 0x4aa   : > { %12615 = vrot.lane.b32.xlu0 %v19965_v4, %s14596_s21 }
 0x4ab   : > { %v10685_v61 = vsel %vm222_vm0, %v10675_v63, %v10676_v27  ;;  %11808 = vmatprep.subr.bf16.mxu1 %v14369_v16  ;;  %v19982_v2 = vpop.permute.xlu1 %11203  ;;  %v10683_v23 = vsel %vm222_vm0, %v10674_v51, %v10675_v63  ;;  %v8283_v16 = vld [vmem:[%s19300_s11 + $0x78] sm:$0xff] }
 0x4ac   : > { %v10686_v36 = vsel %vm224_vm8, %v10659_v33, %v10685_v61  ;;  %v11217_v43 = vrot.slane %v19982_v2, 4  ;;  %v11202_v37 = vpop.permute.xlu0 %11201  ;;  %11809 = vmatpush1.bf16.msra.mxu1 %v14368_v53  ;;  %v10684_v21 = vsel %vm224_vm8, %v10657_v15, %v10683_v23 }
 0x4ad   : > { %v14352_v50 = vcombine.low %v10623_v48, %v10686_v36  ;;  %v11216_v47 = vrot.slane %v11202_v37, 4  ;;  %12384 = vrot.lane.b32.xlu1 %v19965_v4, %s14593_s18  ;;  %v14350_v34 = vcombine.low %v10622_v28, %v10684_v21  ;;  %v14351_v9 = vcombine.high %v10622_v28, %v10684_v21 }
 0x4ae   : > { %12382 = vrot.lane.b32.xlu0 %v19985_v59, %s14593_s18  ;;  %v14353_v52 = vcombine.high %v10623_v48, %v10686_v36 }
 0x4af   : > { %v11226_v8 = vsel %vm222_vm0, %v11215_v42, %v11216_v47  ;;  %v11228_v24 = vsel %vm222_vm0, %v11216_v47, %v11217_v43  ;;  %11769 = vmatprep.subr.bf16.mxu0 %v14351_v9  ;;  %v20001_v19 = vpop.permute.xlu1 %11049  ;;  %v20008_v42 = vld [vmem:[%s20925_s1 + $0x1c] sm:$0xf] }
 0x4b0   : > { %v11229_v39 = vsel %vm770_vm3, %v11202_v37, %v11228_v24  ;;  %11810 = vmatprep.subr.bf16.mxu1 %v14353_v52  ;;  %v11063_v54 = vrot.slane %v20001_v19, 4  ;;  %v11048_v18 = vpop.permute.xlu0 %11047  ;;  %11770 = vmatpush1.bf16.msra.mxu0 %v14350_v34  ;;  %v11227_v17 = vsel %vm770_vm3, %v19846_v20, %v11226_v8 }
 0x4b1   : > { %v14420_v60 = vcombine.low %v11229_v39, %v11229_v39  ;;  %v14421_v45 = vcombine.high %v11229_v39, %v11229_v39  ;;  %v11062_v14 = vrot.slane %v11048_v18, 4  ;;  %11811 = vmatpush1.bf16.msra.mxu1 %v14352_v50  ;;  %12459 = vrot.lane.b32.xlu1 %v19985_v59, %s14594_s19  ;;  %v14419_v57 = vcombine.high %v11227_v17, %v11227_v17 }
 0x4b2   : > { %12457 = vrot.lane.b32.xlu0 %v19917_v26, %s14594_s19  ;;  %v9049_v58 = vpop.f32.mrf.mxu0  ;;  %v14418_v46 = vcombine.low %v11227_v17, %v11227_v17 }
 0x4b3   : > { %v9109_v15 = vadd.f32 %v9049_v58, %v8280_v10  ;;  %v9090_v35 = vpop.f32.mrf.mxu1  ;;  %14431 = vmatmul.mubr.msk.bf16.vlgmr.msra.gmra.mxu0 %vm1251_vm9, %v20008_v42  ;;  %14434 = vmatprep.subr.msk.bf16.mxu0 %vm222_vm0, %v14419_v57  ;;  %v20021_v20 = vpop.permute.xlu1 %11126  ;;  %v11726_v31 = vsel %vm222_vm0, %v14420_v60, 0  ;;  %v11074_v44 = vsel %vm222_vm0, %v11062_v14, %v11063_v54  ;;  %v11072_v28 = vsel %vm222_vm0, %v11061_v1, %v11062_v14 }
 0x4b4   : > { %v9111_v6 = vadd.f32 %v9090_v35, %v8282_v13  ;;  %14433 = vmatmul.mubr.msk.bf16.vlgmr.msra.gmra.mxu1 %vm1251_vm9, %v20008_v42  ;;  %14436 = vmatprep.subr.msk.bf16.mxu1 %vm222_vm0, %v14421_v45  ;;  %v11140_v32 = vrot.slane %v20021_v20, 4  ;;  %v11125_v38 = vpop.permute.xlu0 %11124  ;;  %v11720_v33 = vsel %vm222_vm0, %v14418_v46, 0  ;;  %v9051_v51 = vpop.f32.mrf.mxu0  ;;  %v11075_v36 = vsel %vm614_vm1, %v11048_v18, %v11074_v44 }
 0x4b5   : > { %9125 = vst [vmem:[%s19300_s11 + $0x60] sm:$0xff] %v9109_v15  ;;  %v11139_v63 = vrot.slane %v11125_v38, 4  ;;  %11844 = vmatpush1.bf16.msra.mxu0 %v11720_v33  ;;  %11885 = vmatpush1.bf16.msra.mxu1 %v11726_v31  ;;  %v9110_v53 = vadd.f32 %v9051_v51, %v8281_v49  ;;  %v9092_v48 = vpop.f32.mrf.mxu1  ;;  %v11073_v52 = vsel %vm614_vm1, %v19862_v41, %v11072_v28 }
 0x4b6   : > { %9127 = vst [vmem:[%s19300_s11 + $0x70] sm:$0xff] %v9111_v6  ;;  %v9112_v61 = vadd.f32 %v9092_v48, %v8283_v16  ;;  %12226 = vrot.lane.b32.xlu1 %v19917_v26, %s14591_s16  ;;  %12461 = vrot.lane.b32.xlu0 %v19965_v4, %s14594_s19  ;;  %v9053_v23 = vpop.f32.mrf.mxu0 }
 0x4b7   : > { %v11151_v37 = vsel %vm222_vm0, %v11139_v63, %v11140_v32  ;;  %9126 = vst [vmem:[%s19300_s11 + $0x68] sm:$0xff] %v9110_v53  ;;  %v20048_v21 = vpop.permute.xlu1 %10895  ;;  %v11149_v1 = vsel %vm222_vm0, %v11138_v62, %v11139_v63  ;;  %11869 = vmatprep.mubr.bf16.mxu0 %v21485_v3  ;;  %11910 = vmatprep.mubr.bf16.mxu1 %v21485_v3  ;;  %v9094_v50 = vpop.f32.mrf.mxu1 }
 0x4b8   : > { %v11152_v47 = vsel %vm692_vm2, %v11125_v38, %v11151_v37  ;;  %9128 = vst [vmem:[%s19300_s11 + $0x78] sm:$0xff] %v9112_v61  ;;  %v10909_v34 = vrot.slane %v20048_v21, 4  ;;  %v10894_v9 = vpop.permute.xlu0 %10893  ;;  %v11150_v8 = vsel %vm692_vm2, %v19882_v30, %v11149_v1  ;;  %v9054_v24 = vpop.f32.mrf.mxu0 }
 0x4b9   : > { %v14404_v39 = vcombine.low %v11075_v36, %v11152_v47  ;;  %v10908_v62 = vrot.slane %v10894_v9, 4  ;;  %v14402_v18 = vcombine.low %v11073_v52, %v11150_v8  ;;  %v14403_v17 = vcombine.high %v11073_v52, %v11150_v8  ;;  %v9095_v60 = vpop.f32.mrf.mxu1  ;;  %v10625_v24 = vld [vmem:[%s14628_s14 + $0x34] sm:$0xff] }
 0x4ba   : > { %12230 = vrot.lane.b32.xlu1 %v19965_v4, %s14591_s16  ;;  %12228 = vrot.lane.b32.xlu0 %v19985_v59, %s14591_s16  ;;  %v14405_v45 = vcombine.high %v11075_v36, %v11152_v47  ;;  %v20118_v36 = vld [vmem:[%s14628_s14 + $0x40] sm:$0xff] }
 0x4bb   : > { %11845 = vmatprep.subr.bf16.mxu0 %v14403_v17  ;;  %v20066_v14 = vpop.permute.xlu1 %10972  ;;  %v10920_v41 = vsel %vm222_vm0, %v10908_v62, %v10909_v34  ;;  %v10918_v58 = vsel %vm222_vm0, %v10907_v5, %v10908_v62 }
 0x4bc   : > { %11886 = vmatprep.subr.bf16.mxu1 %v14405_v45  ;;  %v10986_v30 = vrot.slane %v20066_v14, 4  ;;  %v10971_v57 = vpop.permute.xlu0 %10970  ;;  %11846 = vmatpush1.bf16.msra.mxu0 %v14402_v18  ;;  %v10921_v46 = vsel %vm458_vm7, %v10894_v9, %v10920_v41  ;;  %v10919_v6 = vsel %vm458_vm7, %v19896_v12, %v10918_v58 }
 0x4bd   : > { %v10985_v10 = vrot.slane %v10971_v57, 4  ;;  %11887 = vmatpush1.bf16.msra.mxu1 %v14404_v39  ;;  %v10624_v39 = vld [vmem:[%s14628_s14 + $0x2c] sm:$0xff] }
 0x4be   : > { %12305 = vrot.lane.b32.xlu1 %v19985_v59, %s14592_s17  ;;  %12303 = vrot.lane.b32.xlu0 %v19917_v26, %s14592_s17 }
 0x4bf   : > { %v10997_v15 = vsel %vm222_vm0, %v10985_v10, %v10986_v30  ;;  %v20083_v13 = vpop.permute.xlu1 %10741  ;;  %v10995_v35 = vsel %vm222_vm0, %v10984_v0, %v10985_v10 }
 0x4c0   : > { %v10998_v5 = vsel %vm536_vm4, %v10971_v57, %v10997_v15  ;;  %v10755_v31 = vrot.slane %v20083_v13, 4  ;;  %v10740_v44 = vpop.permute.xlu0 %10739  ;;  %v10996_v38 = vsel %vm536_vm4, %v19922_v40, %v10995_v35 }
 0x4c1   : > { %v14388_v33 = vcombine.low %v10921_v46, %v10998_v5  ;;  %v10754_v49 = vrot.slane %v10740_v44, 4  ;;  %v14386_v51 = vcombine.low %v10919_v6, %v10996_v38  ;;  %v14387_v63 = vcombine.high %v10919_v6, %v10996_v38 }
 0x4c2   : > { %12149 = vrot.lane.b32.xlu1 %v19917_v26, %s14590_s15  ;;  %12307 = vrot.lane.b32.xlu0 %v19965_v4, %s14592_s17  ;;  %v14389_v0 = vcombine.high %v10921_v46, %v10998_v5 }
 0x4c3   : > { %11847 = vmatprep.subr.bf16.mxu0 %v14387_v63  ;;  %v20098_v53 = vpop.permute.xlu1 %10818  ;;  %v10766_v12 = vsel %vm222_vm0, %v10754_v49, %v10755_v31  ;;  %v10764_v26 = vsel %vm222_vm0, %v10753_v29, %v10754_v49 }
 0x4c4   : > { %11888 = vmatprep.subr.bf16.mxu1 %v14389_v0  ;;  %v10832_v40 = vrot.slane %v20098_v53, 4  ;;  %v10817_v16 = vpop.permute.xlu0 %10816  ;;  %11848 = vmatpush1.bf16.msra.mxu0 %v14386_v51  ;;  %v10767_v28 = vsel %vm302_vm6, %v10740_v44, %v10766_v12  ;;  %v10765_v1 = vsel %vm302_vm6, %v19932_v25, %v10764_v26 }
 0x4c5   : > { %v10831_v48 = vrot.slane %v10817_v16, 4  ;;  %11889 = vmatpush1.bf16.msra.mxu1 %v14388_v33 }
 0x4c6   : > { %12153 = vrot.lane.b32.xlu1 %v19965_v4, %s14590_s15  ;;  %12151 = vrot.lane.b32.xlu0 %v19985_v59, %s14590_s15 }
 0x4c7   : > { %v10843_v61 = vsel %vm222_vm0, %v10831_v48, %v10832_v40  ;;  %v20115_v23 = vpop.permute.xlu1 %10664  ;;  %v10841_v29 = vsel %vm222_vm0, %v10830_v7, %v10831_v48 }
 0x4c8   : > { %v10844_v4 = vsel %vm380_vm5, %v10817_v16, %v10843_v61  ;;  %v10678_v37 = vrot.slane %v20115_v23, 4  ;;  %v10663_v59 = vpop.permute.xlu0 %10662  ;;  %v10842_v50 = vsel %vm380_vm5, %v19952_v11, %v10841_v29  ;;  %v20141_v11 = vld [vmem:[%s14628_s14 + $0x38] sm:$0xff] }
 0x4c9   : > { %v14372_v47 = vcombine.low %v10767_v28, %v10844_v4  ;;  %v10677_v9 = vrot.slane %v10663_v59, 4  ;;  %v14370_v52 = vcombine.low %v10765_v1, %v10842_v50  ;;  %v14371_v8 = vcombine.high %v10765_v1, %v10842_v50 }
 0x4ca   : > { %12696 = vrot.lane.b32.xlu1 %v20118_v36, %s14597_s22  ;;  %12694 = vrot.lane.b32.xlu0 %v19711_v56, %s14597_s22  ;;  %v14373_v7 = vcombine.high %v10767_v28, %v10844_v4 }
 0x4cb   : > { %v10689_v25 = vsel %vm222_vm0, %v10677_v9, %v10678_v37  ;;  %11849 = vmatprep.subr.bf16.mxu0 %v14371_v8  ;;  %v20138_v62 = vpop.permute.xlu1 %11207  ;;  %v10687_v18 = vsel %vm222_vm0, %v10676_v27, %v10677_v9 }
 0x4cc   : > { %v10690_v17 = vsel %vm224_vm8, %v10663_v59, %v10689_v25  ;;  %11890 = vmatprep.subr.bf16.mxu1 %v14373_v7  ;;  %v11219_v56 = vrot.slane %v20138_v62, 4  ;;  %v11206_v60 = vpop.permute.xlu0 %11205  ;;  %11850 = vmatpush1.bf16.msra.mxu0 %v14370_v52  ;;  %v10688_v45 = vsel %vm224_vm8, %v19962_v22, %v10687_v18 }
 0x4cd   : > { %v14356_v41 = vcombine.low %v10625_v24, %v10690_v17  ;;  %v11218_v57 = vrot.slane %v11206_v60, 4  ;;  %11891 = vmatpush1.bf16.msra.mxu1 %v14372_v47  ;;  %v14354_v10 = vcombine.low %v10624_v39, %v10688_v45  ;;  %v14355_v58 = vcombine.high %v10624_v39, %v10688_v45 }
 0x4ce   : > { %12542 = vrot.lane.b32.xlu1 %v20118_v36, %s14595_s20  ;;  %12540 = vrot.lane.b32.xlu0 %v20141_v11, %s14595_s20  ;;  %v14357_v27 = vcombine.high %v10625_v24, %v10690_v17 }
 0x4cf   : > { %v11230_v46 = vsel %vm222_vm0, %v11217_v43, %v11218_v57  ;;  %v11232_v22 = vsel %vm222_vm0, %v11218_v57, %v11219_v56  ;;  %11851 = vmatprep.subr.bf16.mxu0 %v14355_v58  ;;  %v20160_v15 = vpop.permute.xlu1 %11053 }
 0x4d0   : > { %v11233_v35 = vsel %vm770_vm3, %v11206_v60, %v11232_v22  ;;  %11892 = vmatprep.subr.bf16.mxu1 %v14357_v27  ;;  %v11065_v5 = vrot.slane %v20160_v15, 4  ;;  %v11052_v44 = vpop.permute.xlu0 %11051  ;;  %11852 = vmatpush1.bf16.msra.mxu0 %v14354_v10  ;;  %v11231_v6 = vsel %vm770_vm3, %v19982_v2, %v11230_v46 }
 0x4d1   : > { %v14424_v38 = vcombine.low %v11233_v35, %v11233_v35  ;;  %v14425_v33 = vcombine.high %v11233_v35, %v11233_v35  ;;  %v11064_v43 = vrot.slane %v11052_v44, 4  ;;  %11893 = vmatpush1.bf16.msra.mxu1 %v14356_v41  ;;  %v14423_v49 = vcombine.high %v11231_v6, %v11231_v6 }
 0x4d2   : > { %12619 = vrot.lane.b32.xlu1 %v20118_v36, %s14596_s21  ;;  %12617 = vrot.lane.b32.xlu0 %v20141_v11, %s14596_s21  ;;  %v14422_v51 = vcombine.low %v11231_v6, %v11231_v6  ;;  %v9761_v6 = vld [vmem:[%s19300_s11] sm:$0xff] }
 0x4d3   : > { %14435 = vmatmul.mubr.msk.bf16.vlgmr.msra.gmra.mxu0 %vm1251_vm9, %v20008_v42  ;;  %14438 = vmatprep.subr.msk.bf16.mxu0 %vm222_vm0, %v14423_v49  ;;  %v20173_v63 = vpop.permute.xlu1 %11130  ;;  %v11738_v2 = vsel %vm222_vm0, %v14424_v38, 0  ;;  %v11078_v0 = vsel %vm222_vm0, %v11064_v43, %v11065_v5  ;;  %v11076_v28 = vsel %vm222_vm0, %v11063_v54, %v11064_v43 }
 0x4d4   : > { %14437 = vmatmul.mubr.msk.bf16.vlgmr.msra.gmra.mxu1 %vm1251_vm9, %v20008_v42  ;;  %14440 = vmatprep.subr.msk.bf16.mxu1 %vm222_vm0, %v14425_v33  ;;  %v11142_v12 = vrot.slane %v20173_v63, 4  ;;  %v11129_v16 = vpop.permute.xlu0 %11128  ;;  %v11732_v48 = vsel %vm222_vm0, %v14422_v51, 0  ;;  %v11079_v61 = vsel %vm614_vm1, %v11052_v44, %v11078_v0  ;;  %v11077_v47 = vsel %vm614_vm1, %v20001_v19, %v11076_v28 }
 0x4d5   : > { %v11141_v26 = vrot.slane %v11129_v16, 4  ;;  %11926 = vmatpush1.bf16.msra.mxu0 %v11732_v48  ;;  %11967 = vmatpush1.bf16.msra.mxu1 %v11738_v2  ;;  %v9762_v48 = vld [vmem:[%s19300_s11 + $0x8] sm:$0xff] }
 0x4d6   : > { %12388 = vrot.lane.b32.xlu1 %v20118_v36, %s14593_s18  ;;  %12386 = vrot.lane.b32.xlu0 %v20141_v11, %s14593_s18 }
 0x4d7   : > { %v11155_v29 = vsel %vm222_vm0, %v11141_v26, %v11142_v12  ;;  %v20195_v4 = vpop.permute.xlu1 %10899  ;;  %v11153_v59 = vsel %vm222_vm0, %v11140_v32, %v11141_v26  ;;  %11951 = vmatprep.mubr.bf16.mxu0 %v21485_v3  ;;  %11992 = vmatprep.mubr.bf16.mxu1 %v21485_v3 }
 0x4d8   : > { %v11156_v54 = vsel %vm692_vm2, %v11129_v16, %v11155_v29  ;;  %v10911_v1 = vrot.slane %v20195_v4, 4  ;;  %v10898_v50 = vpop.permute.xlu0 %10897  ;;  %v11154_v9 = vsel %vm692_vm2, %v20021_v20, %v11153_v59  ;;  %v9764_v59 = vld [vmem:[%s19300_s11 + $0x18] sm:$0xff] }
 0x4d9   : > { %v14408_v52 = vcombine.low %v11079_v61, %v11156_v54  ;;  %v10910_v8 = vrot.slane %v10898_v50, 4  ;;  %v14406_v24 = vcombine.low %v11077_v47, %v11154_v9  ;;  %v14407_v7 = vcombine.high %v11077_v47, %v11154_v9 }
 0x4da   : > { %12465 = vrot.lane.b32.xlu1 %v20118_v36, %s14594_s19  ;;  %12463 = vrot.lane.b32.xlu0 %v20141_v11, %s14594_s19  ;;  %v14409_v32 = vcombine.high %v11079_v61, %v11156_v54 }
 0x4db   : > { %11927 = vmatprep.subr.bf16.mxu0 %v14407_v7  ;;  %v20212_v39 = vpop.permute.xlu1 %10976  ;;  %v10924_v19 = vsel %vm222_vm0, %v10910_v8, %v10911_v1  ;;  %v10922_v18 = vsel %vm222_vm0, %v10909_v34, %v10910_v8 }
 0x4dc   : > { %11968 = vmatprep.subr.bf16.mxu1 %v14409_v32  ;;  %v10988_v20 = vrot.slane %v20212_v39, 4  ;;  %v10975_v25 = vpop.permute.xlu0 %10974  ;;  %11928 = vmatpush1.bf16.msra.mxu0 %v14406_v24  ;;  %v10925_v60 = vsel %vm458_vm7, %v10898_v50, %v10924_v19  ;;  %v10923_v27 = vsel %vm458_vm7, %v20048_v21, %v10922_v18  ;;  %v9763_v21 = vld [vmem:[%s19300_s11 + $0x10] sm:$0xff] }
 0x4dd   : > { %v10987_v17 = vrot.slane %v10975_v25, 4  ;;  %11969 = vmatpush1.bf16.msra.mxu1 %v14408_v52  ;;  %v20274_v24 = vld [vmem:[%s14628_s14 + $0x50] sm:$0xff] }
 0x4de   : > { %12234 = vrot.lane.b32.xlu1 %v20118_v36, %s14591_s16  ;;  %12232 = vrot.lane.b32.xlu0 %v20141_v11, %s14591_s16 }
 0x4df   : > { %v10999_v45 = vsel %vm222_vm0, %v10986_v30, %v10987_v17  ;;  %v11001_v41 = vsel %vm222_vm0, %v10987_v17, %v10988_v20  ;;  %v20232_v34 = vpop.permute.xlu1 %10745 }
 0x4e0   : > { %v11002_v57 = vsel %vm536_vm4, %v10975_v25, %v11001_v41  ;;  %v10757_v10 = vrot.slane %v20232_v34, 4  ;;  %v10744_v58 = vpop.permute.xlu0 %10743  ;;  %v11000_v46 = vsel %vm536_vm4, %v20066_v14, %v10999_v45 }
 0x4e1   : > { %v14392_v22 = vcombine.low %v10925_v60, %v11002_v57  ;;  %v14393_v30 = vcombine.high %v10925_v60, %v11002_v57  ;;  %v10756_v35 = vrot.slane %v10744_v58, 4  ;;  %v14390_v44 = vcombine.low %v10923_v27, %v11000_v46  ;;  %v10627_v57 = vld [vmem:[%s14628_s14 + $0x44] sm:$0xff] }
 0x4e2   : > { %12311 = vrot.lane.b32.xlu1 %v20118_v36, %s14592_s17  ;;  %12309 = vrot.lane.b32.xlu0 %v20141_v11, %s14592_s17  ;;  %v10296_v38 = vpop.f32.mrf.mxu0  ;;  %v14391_v33 = vcombine.high %v10923_v27, %v11000_v46  ;;  %v10626_v27 = vld [vmem:[%s14628_s14 + $0x3c] sm:$0xff] }
 0x4e3   : > { %v10590_v43 = vadd.f32 %v10296_v38, %v9761_v6  ;;  %v10337_v49 = vpop.f32.mrf.mxu1  ;;  %11970 = vmatprep.subr.bf16.mxu1 %v14393_v30  ;;  %v20246_v14 = vpop.permute.xlu1 %10822  ;;  %v10770_v51 = vsel %vm222_vm0, %v10756_v35, %v10757_v10  ;;  %v10768_v28 = vsel %vm222_vm0, %v10755_v31, %v10756_v35 }
 0x4e4   : > { %v10592_v2 = vadd.f32 %v10337_v49, %v9763_v21  ;;  %11929 = vmatprep.subr.bf16.mxu0 %v14391_v33  ;;  %v10834_v0 = vrot.slane %v20246_v14, 4  ;;  %v10821_v16 = vpop.permute.xlu0 %10820  ;;  %11971 = vmatpush1.bf16.msra.mxu1 %v14392_v22  ;;  %v10298_v26 = vpop.f32.mrf.mxu0  ;;  %v10771_v9 = vsel %vm302_vm6, %v10744_v58, %v10770_v51  ;;  %v20296_v22 = vld [vmem:[%s14628_s14 + $0x48] sm:$0xff] }
 0x4e5   : > { %10606 = vst [vmem:[%s19300_s11] sm:$0xff] %v10590_v43  ;;  %v10833_v61 = vrot.slane %v10821_v16, 4  ;;  %11930 = vmatpush1.bf16.msra.mxu0 %v14390_v44  ;;  %v10591_v29 = vadd.f32 %v10298_v26, %v9762_v48  ;;  %v10339_v54 = vpop.f32.mrf.mxu1 }
 0x4e6   : > { %10608 = vst [vmem:[%s19300_s11 + $0x10] sm:$0xff] %v10592_v2  ;;  %v10593_v50 = vadd.f32 %v10339_v54, %v9764_v59  ;;  %12157 = vrot.lane.b32.xlu1 %v20118_v36, %s14590_s15  ;;  %12155 = vrot.lane.b32.xlu0 %v20141_v11, %s14590_s15  ;;  %v10300_v47 = vpop.f32.mrf.mxu0 }
 0x4e7   : > { %v10845_v31 = vsel %vm222_vm0, %v10832_v40, %v10833_v61  ;;  %v10847_v52 = vsel %vm222_vm0, %v10833_v61, %v10834_v0  ;;  %10607 = vst [vmem:[%s19300_s11 + $0x8] sm:$0xff] %v10591_v29  ;;  %v20271_v8 = vpop.permute.xlu1 %10668  ;;  %v10341_v36 = vpop.f32.mrf.mxu1  ;;  %v10769_v40 = vsel %vm302_vm6, %v20083_v13, %v10768_v28 }
 0x4e8   : > { %v10848_v11 = vsel %vm380_vm5, %v10821_v16, %v10847_v52  ;;  %10609 = vst [vmem:[%s19300_s11 + $0x18] sm:$0xff] %v10593_v50  ;;  %v10680_v7 = vrot.slane %v20271_v8, 4  ;;  %v10667_v32 = vpop.permute.xlu0 %10666  ;;  %v10846_v19 = vsel %vm380_vm5, %v20098_v53, %v10845_v31  ;;  %v10301_v25 = vpop.f32.mrf.mxu0 }
 0x4e9   : > { %v14376_v18 = vcombine.low %v10771_v9, %v10848_v11  ;;  %v14377_v17 = vcombine.high %v10771_v9, %v10848_v11  ;;  %v10679_v60 = vrot.slane %v10667_v32, 4  ;;  %v14374_v45 = vcombine.low %v10769_v40, %v10846_v19  ;;  %v10342_v41 = vpop.f32.mrf.mxu1 }
 0x4ea   : > { %12700 = vrot.lane.b32.xlu1 %v20274_v24, %s14597_s22  ;;  %12698 = vrot.lane.b32.xlu0 %v19826_v55, %s14597_s22  ;;  %v14375_v58 = vcombine.high %v10769_v40, %v10846_v19 }
 0x4eb   : > { %v10691_v13 = vsel %vm222_vm0, %v10678_v37, %v10679_v60  ;;  %v10693_v53 = vsel %vm222_vm0, %v10679_v60, %v10680_v7  ;;  %11972 = vmatprep.subr.bf16.mxu1 %v14377_v17  ;;  %v11212_v46 = vpop.permute.xlu1 %11211 }
 0x4ec   : > { %v10694_v30 = vsel %vm224_vm8, %v10667_v32, %v10693_v53  ;;  %11931 = vmatprep.subr.bf16.mxu0 %v14375_v58  ;;  %v11221_v35 = vrot.slane %v11212_v46, 4  ;;  %v11210_v44 = vpop.permute.xlu0 %11209  ;;  %11973 = vmatpush1.bf16.msra.mxu1 %v14376_v18  ;;  %v10692_v55 = vsel %vm224_vm8, %v20115_v23, %v10691_v13 }
 0x4ed   : > { %v14360_v6 = vcombine.low %v10627_v57, %v10694_v30  ;;  %v14361_v38 = vcombine.high %v10627_v57, %v10694_v30  ;;  %v11220_v37 = vrot.slane %v11210_v44, 4  ;;  %11932 = vmatpush1.bf16.msra.mxu0 %v14374_v45  ;;  %v14358_v33 = vcombine.low %v10626_v27, %v10692_v55 }
 0x4ee   : > { %12546 = vrot.lane.b32.xlu1 %v20274_v24, %s14595_s20  ;;  %12544 = vrot.lane.b32.xlu0 %v20296_v22, %s14595_s20  ;;  %v14359_v43 = vcombine.high %v10626_v27, %v10692_v55 }
 0x4ef   : > { %v11234_v21 = vsel %vm222_vm0, %v11219_v56, %v11220_v37  ;;  %v11236_v49 = vsel %vm222_vm0, %v11220_v37, %v11221_v35  ;;  %11974 = vmatprep.subr.bf16.mxu1 %v14361_v38  ;;  %v11058_v23 = vpop.permute.xlu1 %11057 }
 0x4f0   : > { %v11237_v51 = vsel %vm770_vm3, %v11210_v44, %v11236_v49  ;;  %11933 = vmatprep.subr.bf16.mxu0 %v14359_v43  ;;  %v11067_v2 = vrot.slane %v11058_v23, 4  ;;  %v11056_v16 = vpop.permute.xlu0 %11055  ;;  %11975 = vmatpush1.bf16.msra.mxu1 %v14360_v6  ;;  %v11235_v48 = vsel %vm770_vm3, %v20138_v62, %v11234_v21 }
 0x4f1   : > { %v14428_v26 = vcombine.low %v11237_v51, %v11237_v51  ;;  %v14429_v28 = vcombine.high %v11237_v51, %v11237_v51  ;;  %v11066_v61 = vrot.slane %v11056_v16, 4  ;;  %11934 = vmatpush1.bf16.msra.mxu0 %v14358_v33  ;;  %v14427_v29 = vcombine.high %v11235_v48, %v11235_v48 }
 0x4f2   : > { %12623 = vrot.lane.b32.xlu1 %v20274_v24, %s14596_s21  ;;  %12621 = vrot.lane.b32.xlu0 %v20296_v22, %s14596_s21  ;;  %v14426_v56 = vcombine.low %v11235_v48, %v11235_v48 }
 0x4f3   : > { %14441 = vmatmul.mubr.msk.bf16.vlgmr.msra.gmra.mxu1 %vm1251_vm9, %v20008_v42  ;;  %14442 = vmatprep.subr.msk.bf16.mxu0 %vm222_vm0, %v14427_v29  ;;  %v11135_v59 = vpop.permute.xlu1 %11134  ;;  %v11750_v62 = vsel %vm222_vm0, %v14428_v26, 0  ;;  %v11082_v54 = vsel %vm222_vm0, %v11066_v61, %v11067_v2  ;;  %v11080_v31 = vsel %vm222_vm0, %v11065_v5, %v11066_v61  ;;  %v9766_v29 = vld [vmem:[%s19300_s11 + $0x28] sm:$0xff] }
 0x4f4   : > { %14439 = vmatmul.mubr.msk.bf16.vlgmr.msra.gmra.mxu0 %vm1251_vm9, %v20008_v42  ;;  %14444 = vmatprep.subr.msk.bf16.mxu1 %vm222_vm0, %v14429_v28  ;;  %v11144_v50 = vrot.slane %v11135_v59, 4  ;;  %v11133_v47 = vpop.permute.xlu0 %11132  ;;  %v11744_v9 = vsel %vm222_vm0, %v14426_v56, 0  ;;  %v11083_v36 = vsel %vm614_vm1, %v11056_v16, %v11082_v54  ;;  %v11081_v18 = vsel %vm614_vm1, %v20160_v15, %v11080_v31 }
 0x4f5   : > { %v11143_v52 = vrot.slane %v11133_v47, 4  ;;  %12008 = vmatpush1.bf16.msra.mxu0 %v11744_v9  ;;  %12049 = vmatpush1.bf16.msra.mxu1 %v11750_v62 }
 0x4f6   : > { %12392 = vrot.lane.b32.xlu1 %v20274_v24, %s14593_s18  ;;  %12390 = vrot.lane.b32.xlu0 %v20296_v22, %s14593_s18 }
 0x4f7   : > { %v11157_v11 = vsel %vm222_vm0, %v11142_v12, %v11143_v52  ;;  %v11159_v32 = vsel %vm222_vm0, %v11143_v52, %v11144_v50  ;;  %v10904_v40 = vpop.permute.xlu1 %10903  ;;  %12033 = vmatprep.mubr.bf16.mxu0 %v21485_v3  ;;  %12074 = vmatprep.mubr.bf16.mxu1 %v21485_v3  ;;  %v9768_v50 = vld [vmem:[%s19300_s11 + $0x38] sm:$0xff] }
 0x4f8   : > { %v11160_v5 = vsel %vm692_vm2, %v11133_v47, %v11159_v32  ;;  %v10913_v19 = vrot.slane %v10904_v40, 4  ;;  %v10902_v25 = vpop.permute.xlu0 %10901  ;;  %v11158_v17 = vsel %vm692_vm2, %v20173_v63, %v11157_v11  ;;  %v12678_v32 = vld [vmem:[%s14628_s14 + $0x60] sm:$0xf]  ;;  %v20392_v40 = vld [vmem:[%s14628_s14 + $0x58] sm:$0xff] }
 0x4f9   : > { %v14412_v60 = vcombine.low %v11083_v36, %v11160_v5  ;;  %v14413_v45 = vcombine.high %v11083_v36, %v11160_v5  ;;  %v10912_v12 = vrot.slane %v10902_v25, 4  ;;  %v14410_v41 = vcombine.low %v11081_v18, %v11158_v17 }
 0x4fa   : > { %12469 = vrot.lane.b32.xlu1 %v20274_v24, %s14594_s19  ;;  %12467 = vrot.lane.b32.xlu0 %v20296_v22, %s14594_s19  ;;  %v14411_v57 = vcombine.high %v11081_v18, %v11158_v17 }
 0x4fb   : > { %12050 = vmatprep.subr.bf16.mxu1 %v14413_v45  ;;  %v10981_v58 = vpop.permute.xlu1 %10980  ;;  %v10928_v27 = vsel %vm222_vm0, %v10912_v12, %v10913_v19  ;;  %v10926_v63 = vsel %vm222_vm0, %v10911_v1, %v10912_v12 }
 0x4fc   : > { %12009 = vmatprep.subr.bf16.mxu0 %v14411_v57  ;;  %v10990_v15 = vrot.slane %v10981_v58, 4  ;;  %v10979_v13 = vpop.permute.xlu0 %10978  ;;  %12051 = vmatpush1.bf16.msra.mxu1 %v14412_v60  ;;  %v10929_v46 = vsel %vm458_vm7, %v10902_v25, %v10928_v27  ;;  %v10927_v38 = vsel %vm458_vm7, %v20195_v4, %v10926_v63  ;;  %v9767_v4 = vld [vmem:[%s19300_s11 + $0x30] sm:$0xff] }
 0x4fd   : > { %v10989_v53 = vrot.slane %v10979_v13, 4  ;;  %12010 = vmatpush1.bf16.msra.mxu0 %v14410_v41  ;;  %v10629_v57 = vld [vmem:[%s14628_s14 + $0x54] sm:$0xff]  ;;  %v10628_v27 = vld [vmem:[%s14628_s14 + $0x4c] sm:$0xff] }
 0x4fe   : > { %12238 = vrot.lane.b32.xlu1 %v20274_v24, %s14591_s16  ;;  %12236 = vrot.lane.b32.xlu0 %v20296_v22, %s14591_s16 }
 0x4ff   : > { %v11003_v30 = vsel %vm222_vm0, %v10988_v20, %v10989_v53  ;;  %v11005_v35 = vsel %vm222_vm0, %v10989_v53, %v10990_v15  ;;  %v10750_v44 = vpop.permute.xlu1 %10749  ;;  %v9765_v20 = vld [vmem:[%s19300_s11 + $0x20] sm:$0xff] }
 0x500   : > { %v11006_v1 = vsel %vm536_vm4, %v10979_v13, %v11005_v35  ;;  %v10759_v55 = vrot.slane %v10750_v44, 4  ;;  %v10748_v6 = vpop.permute.xlu0 %10747  ;;  %v11004_v37 = vsel %vm536_vm4, %v20212_v39, %v11003_v30  ;;  %v12524_v13 = vld [vmem:[%s14628_s14 + $0x60] sm:$0xf] }
 0x501   : > { %v14396_v33 = vcombine.low %v10929_v46, %v11006_v1  ;;  %v14397_v43 = vcombine.high %v10929_v46, %v11006_v1  ;;  %v10758_v21 = vrot.slane %v10748_v6, 4  ;;  %v14394_v49 = vcombine.low %v10927_v38, %v11004_v37 }
 0x502   : > { %12315 = vrot.lane.b32.xlu1 %v20274_v24, %s14592_s17  ;;  %12313 = vrot.lane.b32.xlu0 %v20296_v22, %s14592_s17  ;;  %v10378_v23 = vpop.f32.mrf.mxu0  ;;  %v14395_v51 = vcombine.high %v10927_v38, %v11004_v37  ;;  %v12601_v37 = vld [vmem:[%s14628_s14 + $0x60] sm:$0xf] }
 0x503   : > { %v10594_v2 = vadd.f32 %v10378_v23, %v9765_v20  ;;  %v10419_v16 = vpop.f32.mrf.mxu1  ;;  %12052 = vmatprep.subr.bf16.mxu1 %v14397_v43  ;;  %v10827_v39 = vpop.permute.xlu1 %10826  ;;  %v10774_v48 = vsel %vm222_vm0, %v10758_v21, %v10759_v55  ;;  %v10772_v59 = vsel %vm222_vm0, %v10757_v10, %v10758_v21 }
 0x504   : > { %v10596_v26 = vadd.f32 %v10419_v16, %v9767_v4  ;;  %12011 = vmatprep.subr.bf16.mxu0 %v14395_v51  ;;  %v10836_v28 = vrot.slane %v10827_v39, 4  ;;  %v10825_v61 = vpop.permute.xlu0 %10824  ;;  %12053 = vmatpush1.bf16.msra.mxu1 %v14396_v33  ;;  %v10380_v56 = vpop.f32.mrf.mxu0  ;;  %v10775_v10 = vsel %vm302_vm6, %v10748_v6, %v10774_v48  ;;  %v10773_v25 = vsel %vm302_vm6, %v20232_v34, %v10772_v59 }
 0x505   : > { %10610 = vst [vmem:[%s19300_s11 + $0x20] sm:$0xff] %v10594_v2  ;;  %v10835_v62 = vrot.slane %v10825_v61, 4  ;;  %12012 = vmatpush1.bf16.msra.mxu0 %v14394_v49  ;;  %v10595_v54 = vadd.f32 %v10380_v56, %v9766_v29  ;;  %v10421_v47 = vpop.f32.mrf.mxu1  ;;  %v12370_v2 = vld [vmem:[%s14628_s14 + $0x60] sm:$0xf] }
 0x506   : > { %10612 = vst [vmem:[%s19300_s11 + $0x30] sm:$0xff] %v10596_v26  ;;  %v10597_v9 = vadd.f32 %v10421_v47, %v9768_v50  ;;  %12161 = vrot.lane.b32.xlu1 %v20274_v24, %s14590_s15  ;;  %12159 = vrot.lane.b32.xlu0 %v20296_v22, %s14590_s15  ;;  %v10382_v31 = vpop.f32.mrf.mxu0  ;;  %v12447_v29 = vld [vmem:[%s14628_s14 + $0x60] sm:$0xf] }
 0x507   : > { %v10849_v52 = vsel %vm222_vm0, %v10834_v0, %v10835_v62  ;;  %v10851_v36 = vsel %vm222_vm0, %v10835_v62, %v10836_v28  ;;  %10611 = vst [vmem:[%s19300_s11 + $0x28] sm:$0xff] %v10595_v54  ;;  %v10673_v11 = vpop.permute.xlu1 %10672  ;;  %v10423_v5 = vpop.f32.mrf.mxu1  ;;  %v12216_v31 = vld [vmem:[%s14628_s14 + $0x60] sm:$0xf] }
 0x508   : > { %v10852_v24 = vsel %vm380_vm5, %v10825_v61, %v10851_v36  ;;  %10613 = vst [vmem:[%s19300_s11 + $0x38] sm:$0xff] %v10597_v9  ;;  %v10682_v22 = vrot.slane %v10673_v11, 4  ;;  %v10671_v19 = vpop.permute.xlu0 %10670  ;;  %v10850_v0 = vsel %vm380_vm5, %v20246_v14, %v10849_v52  ;;  %v10383_v18 = vpop.f32.mrf.mxu0 }
 0x509   : > { %v14380_v17 = vcombine.low %v10775_v10, %v10852_v24  ;;  %v14381_v60 = vcombine.high %v10775_v10, %v10852_v24  ;;  %v10681_v45 = vrot.slane %v10671_v19, 4  ;;  %v14378_v12 = vcombine.low %v10773_v25, %v10850_v0  ;;  %v10424_v41 = vpop.f32.mrf.mxu1 }
 0x50a   : > { %12704 = vrot.lane.b32.xlu1 %v12678_v32, %s14597_s22  ;;  %12702 = vrot.lane.b32.xlu0 %v20392_v40, %s14597_s22  ;;  %v14379_v58 = vcombine.high %v10773_v25, %v10850_v0  ;;  %v12293_v25 = vld [vmem:[%s14628_s14 + $0x60] sm:$0xf] }
 0x50b   : > { %v10695_v34 = vsel %vm222_vm0, %v10680_v7, %v10681_v45  ;;  %v10697_v14 = vsel %vm222_vm0, %v10681_v45, %v10682_v22  ;;  %12054 = vmatprep.subr.bf16.mxu1 %v14381_v60  ;;  %v12691_v15 = vpop.permute.xlu1 %12690 }
 0x50c   : > { %v10698_v63 = vsel %vm224_vm8, %v10671_v19, %v10697_v14  ;;  %12013 = vmatprep.subr.bf16.mxu0 %v14379_v58  ;;  %v12707_v53 = vrot.slane %v12691_v15, 4  ;;  %v12689_v46 = vpop.permute.xlu0 %12688  ;;  %12055 = vmatpush1.bf16.msra.mxu1 %v14380_v17  ;;  %v10696_v30 = vsel %vm224_vm8, %v20271_v8, %v10695_v34 }
 0x50d   : > { %v14364_v35 = vcombine.low %v10629_v57, %v10698_v63  ;;  %v14365_v44 = vcombine.high %v10629_v57, %v10698_v63  ;;  %v12706_v1 = vrot.slane %v12689_v46, 4  ;;  %12014 = vmatpush1.bf16.msra.mxu0 %v14378_v12  ;;  %v14362_v7 = vcombine.low %v10628_v27, %v10696_v30 }
 0x50e   : > { %12550 = vrot.lane.b32.xlu1 %v12524_v13, %s14595_s20  ;;  %12548 = vrot.lane.b32.xlu0 %v20392_v40, %s14595_s20  ;;  %v14363_v55 = vcombine.high %v10628_v27, %v10696_v30  ;;  %v12139_v27 = vld [vmem:[%s14628_s14 + $0x60] sm:$0xf] }
 0x50f   : > { %v12715_v6 = vsel %vm222_vm0, %v12706_v1, %v12707_v53  ;;  %12056 = vmatprep.subr.bf16.mxu1 %v14365_v44  ;;  %v12535_v38 = vpop.permute.xlu1 %12534 }
 0x510   : > { %v12716_v33 = vsel %vm770_vm3, %v12689_v46, %v12715_v6  ;;  %12015 = vmatprep.subr.bf16.mxu0 %v14363_v55  ;;  %v20419_v8 = vpop.permute.xlu0 %12692  ;;  %12057 = vmatpush1.bf16.msra.mxu1 %v14364_v35  ;;  %v12552_v28 = vrot.slane %v12535_v38, 4 }
 0x511   : > { %v14511_v43 = vcombine.low %v12716_v33, %v12716_v33  ;;  %v14512_v21 = vcombine.high %v12716_v33, %v12716_v33  ;;  %v12708_v49 = vrot.slane %v20419_v8, 4  ;;  %12016 = vmatpush1.bf16.msra.mxu0 %v14362_v7 }
 0x512   : > { %12627 = vrot.lane.b32.xlu1 %v12601_v37, %s14596_s21  ;;  %12625 = vrot.lane.b32.xlu0 %v20392_v40, %s14596_s21 }
 0x513   : > { %v12717_v20 = vsel %vm222_vm0, %v12707_v53, %v12708_v49  ;;  %14445 = vmatmul.mubr.msk.bf16.vlgmr.msra.gmra.mxu1 %vm1251_vm9, %v20008_v42  ;;  %14527 = vmatprep.subr.msk.bf16.mxu0 %vm222_vm0, %v14512_v21  ;;  %v20431_v23 = vpop.permute.xlu1 %12538  ;;  %v13201_v51 = vsel %vm222_vm0, %v14511_v43, 0 }
 0x514   : > { %14443 = vmatmul.mubr.msk.bf16.vlgmr.msra.gmra.mxu0 %vm1251_vm9, %v20008_v42  ;;  %v12537_v4 = vpop.permute.xlu0 %12536  ;;  %v12718_v16 = vsel %vm770_vm3, %v12691_v15, %v12717_v20  ;;  %13321 = vmatprep.mubr.bf16.mxu1 %v21485_v3  ;;  %v12554_v62 = vrot.slane %v20431_v23, 4 }
 0x515   : > { %v12553_v39 = vrot.slane %v12537_v4, 4  ;;  %13255 = vmatpush1.bf16.msra.mxu0 %v13201_v51  ;;  %v14514_v48 = vcombine.high %v12718_v16, %v12718_v16  ;;  %v14513_v26 = vcombine.low %v12718_v16, %v12718_v16  ;;  %13280 = vmatprep.mubr.bf16.mxu0 %v21485_v3 }
 0x516   : > { %12396 = vrot.lane.b32.xlu1 %v12370_v2, %s14593_s18  ;;  %12394 = vrot.lane.b32.xlu0 %v20392_v40, %s14593_s18 }
 0x517   : > { %14529 = vmatprep.subr.msk.bf16.mxu1 %vm222_vm0, %v14514_v48  ;;  %v12614_v42 = vpop.permute.xlu1 %12613  ;;  %v13207_v61 = vsel %vm222_vm0, %v14513_v26, 0  ;;  %v12561_v54 = vsel %vm222_vm0, %v12552_v28, %v12553_v39  ;;  %v12563_v11 = vsel %vm222_vm0, %v12553_v39, %v12554_v62 }
 0x518   : > { %v12630_v56 = vrot.slane %v12614_v42, 4  ;;  %v12612_v59 = vpop.permute.xlu0 %12611  ;;  %13296 = vmatpush1.bf16.msra.mxu1 %v13207_v61  ;;  %v12562_v10 = vsel %vm614_vm1, %v12535_v38, %v12561_v54  ;;  %v12564_v0 = vsel %vm614_vm1, %v12537_v4, %v12563_v11 }
 0x519   : > { %v12629_v50 = vrot.slane %v12612_v59, 4 }
 0x51a   : > { %12473 = vrot.lane.b32.xlu1 %v12447_v29, %s14594_s19  ;;  %12471 = vrot.lane.b32.xlu0 %v20392_v40, %s14594_s19 }
 0x51b   : > { %v12638_v47 = vsel %vm222_vm0, %v12629_v50, %v12630_v56  ;;  %v12381_v9 = vpop.permute.xlu1 %12380 }
 0x51c   : > { %v12639_v52 = vsel %vm692_vm2, %v12612_v59, %v12638_v47  ;;  %v20455_v36 = vpop.permute.xlu0 %12615  ;;  %v12398_v41 = vrot.slane %v12381_v9, 4 }
 0x51d   : > { %v14495_v32 = vcombine.low %v12562_v10, %v12639_v52  ;;  %v14496_v5 = vcombine.high %v12562_v10, %v12639_v52  ;;  %v12631_v24 = vrot.slane %v20455_v36, 4 }
 0x51e   : > { %12242 = vrot.lane.b32.xlu1 %v12216_v31, %s14591_s16  ;;  %12240 = vrot.lane.b32.xlu0 %v20392_v40, %s14591_s16 }
 0x51f   : > { %v12640_v22 = vsel %vm222_vm0, %v12630_v56, %v12631_v24  ;;  %13256 = vmatprep.subr.bf16.mxu0 %v14496_v5  ;;  %v20467_v19 = vpop.permute.xlu1 %12384 }
 0x520   : > { %v12383_v18 = vpop.permute.xlu0 %12382  ;;  %13257 = vmatpush1.bf16.msra.mxu0 %v14495_v32  ;;  %v12641_v17 = vsel %vm692_vm2, %v12614_v42, %v12640_v22  ;;  %v12400_v15 = vrot.slane %v20467_v19, 4 }
 0x521   : > { %v12399_v60 = vrot.slane %v12383_v18, 4  ;;  %v14497_v45 = vcombine.low %v12564_v0, %v12641_v17  ;;  %v14498_v12 = vcombine.high %v12564_v0, %v12641_v17 }
 0x522   : > { %12319 = vrot.lane.b32.xlu1 %v12293_v25, %s14592_s17  ;;  %12317 = vrot.lane.b32.xlu0 %v20392_v40, %s14592_s17 }
 0x523   : > { %v20475_v57 = vpop.f32.mrf.mxu0  ;;  %v20477_v58 = vpop.f32.mrf.mxu1  ;;  %13297 = vmatprep.subr.bf16.mxu1 %v14498_v12  ;;  %v12407_v63 = vsel %vm222_vm0, %v12398_v41, %v12399_v60  ;;  %v12409_v37 = vsel %vm222_vm0, %v12399_v60, %v12400_v15 }
 0x524   : > { %v12460_v34 = vpop.permute.xlu1 %12459  ;;  %v12458_v14 = vpop.permute.xlu0 %12457  ;;  %13298 = vmatpush1.bf16.msra.mxu1 %v14497_v45  ;;  %v12408_v7 = vsel %vm458_vm7, %v12381_v9, %v12407_v63  ;;  %v12410_v2 = vsel %vm458_vm7, %v12383_v18, %v12409_v37 }
 0x525   : > { %v12476_v13 = vrot.slane %v12460_v34, 4  ;;  %v12475_v53 = vrot.slane %v12458_v14, 4  ;;  %v20482_v46 = vpop.f32.mrf.mxu0  ;;  %v20484_v30 = vpop.f32.mrf.mxu1 }
 0x526   : > { %12165 = vrot.lane.b32.xlu1 %v12139_v27, %s14590_s15  ;;  %12163 = vrot.lane.b32.xlu0 %v20392_v40, %s14590_s15 }
 0x527   : > { %v12484_v35 = vsel %vm222_vm0, %v12475_v53, %v12476_v13  ;;  %v10464_v44 = vpop.f32.mrf.mxu0  ;;  %v10505_v1 = vpop.f32.mrf.mxu1  ;;  %v12115_v53 = vld [vmem:[%s14628_s14 + $0x20] sm:$0xff] }
 0x528   : > { %v12485_v55 = vsel %vm536_vm4, %v12458_v14, %v12484_v35  ;;  %v12227_v6 = vpop.permute.xlu1 %12226  ;;  %v20492_v38 = vpop.permute.xlu0 %12461  ;;  %v12116_v14 = vld [vmem:[%s14628_s14 + $0x28] sm:$0xff] }
 0x529   : > { %v14479_v33 = vcombine.low %v12408_v7, %v12485_v55  ;;  %v14480_v43 = vcombine.high %v12408_v7, %v12485_v55  ;;  %v12477_v21 = vrot.slane %v20492_v38, 4  ;;  %v10465_v40 = vpop.f32.mrf.mxu0  ;;  %v10506_v20 = vpop.f32.mrf.mxu1  ;;  %v12244_v42 = vrot.slane %v12227_v6, 4 }
 0x52b   : > { %v12486_v51 = vsel %vm222_vm0, %v12476_v13, %v12477_v21  ;;  %13258 = vmatprep.subr.bf16.mxu0 %v14480_v43 }
 0x52c   : > { %v20502_v4 = vpop.permute.xlu1 %12230  ;;  %v12229_v16 = vpop.permute.xlu0 %12228  ;;  %13259 = vmatpush1.bf16.msra.mxu0 %v14479_v33  ;;  %v12487_v39 = vsel %vm536_vm4, %v12460_v34, %v12486_v51 }
 0x52d   : > { %v12245_v48 = vrot.slane %v12229_v16, 4  ;;  %v14481_v26 = vcombine.low %v12410_v2, %v12487_v39  ;;  %v14482_v28 = vcombine.high %v12410_v2, %v12487_v39  ;;  %v12246_v56 = vrot.slane %v20502_v4, 4 }
 0x52f   : > { %13299 = vmatprep.subr.bf16.mxu1 %v14482_v28  ;;  %v12253_v54 = vsel %vm222_vm0, %v12244_v42, %v12245_v48  ;;  %v12255_v11 = vsel %vm222_vm0, %v12245_v48, %v12246_v56  ;;  %v20547_v48 = vld [vmem:[%s20925_s1 + $0x20] sm:$0xf] }
 0x530   : > { %v12306_v61 = vpop.permute.xlu1 %12305  ;;  %v12304_v29 = vpop.permute.xlu0 %12303  ;;  %13300 = vmatpush1.bf16.msra.mxu1 %v14481_v26  ;;  %v12254_v9 = vsel %vm302_vm6, %v12227_v6, %v12253_v54  ;;  %v12256_v0 = vsel %vm302_vm6, %v12229_v16, %v12255_v11 }
 0x531   : > { %v12322_v59 = vrot.slane %v12306_v61, 4  ;;  %v12321_v50 = vrot.slane %v12304_v29, 4 }
 0x533   : > { %v12330_v47 = vsel %vm222_vm0, %v12321_v50, %v12322_v59 }
 0x534   : > { %v12331_v31 = vsel %vm380_vm5, %v12304_v29, %v12330_v47  ;;  %v12150_v10 = vpop.permute.xlu1 %12149  ;;  %v20510_v52 = vpop.permute.xlu0 %12307 }
 0x535   : > { %v14463_v32 = vcombine.low %v12254_v9, %v12331_v31  ;;  %v14464_v5 = vcombine.high %v12254_v9, %v12331_v31  ;;  %v12323_v22 = vrot.slane %v20510_v52, 4  ;;  %v12167_v18 = vrot.slane %v12150_v10, 4 }
 0x537   : > { %v12332_v25 = vsel %vm222_vm0, %v12322_v59, %v12323_v22  ;;  %13260 = vmatprep.subr.bf16.mxu0 %v14464_v5 }
 0x538   : > { %v20520_v17 = vpop.permute.xlu1 %12153  ;;  %v12152_v60 = vpop.permute.xlu0 %12151  ;;  %13261 = vmatpush1.bf16.msra.mxu0 %v14463_v32  ;;  %v12333_v45 = vsel %vm380_vm5, %v12306_v61, %v12332_v25 }
 0x539   : > { %v12169_v12 = vrot.slane %v20520_v17, 4  ;;  %v12168_v41 = vrot.slane %v12152_v60, 4  ;;  %v14465_v27 = vcombine.low %v12256_v0, %v12333_v45  ;;  %v14466_v34 = vcombine.high %v12256_v0, %v12333_v45 }
 0x53b   : > { %v12176_v13 = vsel %vm222_vm0, %v12167_v18, %v12168_v41  ;;  %v12178_v63 = vsel %vm222_vm0, %v12168_v41, %v12169_v12  ;;  %13301 = vmatprep.subr.bf16.mxu1 %v14466_v34 }
 0x53c   : > { %v12179_v35 = vsel %vm224_vm8, %v12152_v60, %v12178_v63  ;;  %v20531_v44 = vpop.permute.xlu1 %12696  ;;  %v12695_v1 = vpop.permute.xlu0 %12694  ;;  %13302 = vmatpush1.bf16.msra.mxu1 %v14465_v27  ;;  %v12177_v7 = vsel %vm224_vm8, %v12150_v10, %v12176_v13 }
 0x53d   : > { %v14449_v55 = vcombine.low %v12116_v14, %v12179_v35  ;;  %v14450_v6 = vcombine.high %v12116_v14, %v12179_v35  ;;  %v12710_v37 = vrot.slane %v20531_v44, 4  ;;  %v12709_v33 = vrot.slane %v12695_v1, 4 }
 0x53e   : > { %v14447_v43 = vcombine.low %v12115_v53, %v12177_v7  ;;  %v14448_v40 = vcombine.high %v12115_v53, %v12177_v7 }
 0x53f   : > { %v12719_v20 = vsel %vm222_vm0, %v12708_v49, %v12709_v33  ;;  %v12721_v51 = vsel %vm222_vm0, %v12709_v33, %v12710_v37  ;;  %13303 = vmatprep.subr.bf16.mxu1 %v14450_v6 }
 0x540   : > { %v12722_v2 = vsel %vm770_vm3, %v12695_v1, %v12721_v51  ;;  %13262 = vmatprep.subr.bf16.mxu0 %v14448_v40  ;;  %v20542_v16 = vpop.permute.xlu1 %12542  ;;  %v12541_v39 = vpop.permute.xlu0 %12540  ;;  %13304 = vmatpush1.bf16.msra.mxu1 %v14449_v55  ;;  %v12720_v49 = vsel %vm770_vm3, %v20419_v8, %v12719_v20 }
 0x541   : > { %v14517_v26 = vcombine.low %v12722_v2, %v12722_v2  ;;  %v14518_v28 = vcombine.high %v12722_v2, %v12722_v2  ;;  %v12556_v42 = vrot.slane %v20542_v16, 4  ;;  %v12555_v61 = vrot.slane %v12541_v39, 4  ;;  %13263 = vmatpush1.bf16.msra.mxu0 %v14447_v43 }
 0x542   : > { %v14516_v29 = vcombine.high %v12720_v49, %v12720_v49  ;;  %v14515_v59 = vcombine.low %v12720_v49, %v12720_v49 }
 0x543   : > { %v20552_v54 = vpop.f32.mrf.mxu0  ;;  %v20554_v50 = vpop.f32.mrf.mxu1  ;;  %14530 = vmatmul.mubr.msk.bf16.vlgmr.msra.gmra.mxu1 %vm1251_vm9, %v20547_v48  ;;  %14533 = vmatprep.subr.msk.bf16.mxu1 %vm222_vm0, %v14518_v28  ;;  %v13219_v47 = vsel %vm222_vm0, %v14517_v26, 0  ;;  %v12565_v10 = vsel %vm222_vm0, %v12554_v62, %v12555_v61  ;;  %v12567_v11 = vsel %vm222_vm0, %v12555_v61, %v12556_v42 }
 0x544   : > { %14528 = vmatmul.mubr.msk.bf16.vlgmr.msra.gmra.mxu0 %vm1251_vm9, %v20547_v48  ;;  %14531 = vmatprep.subr.msk.bf16.mxu0 %vm222_vm0, %v14516_v29  ;;  %v20563_v8 = vpop.permute.xlu1 %12619  ;;  %v12618_v9 = vpop.permute.xlu0 %12617  ;;  %v13213_v31 = vsel %vm222_vm0, %v14515_v59, 0  ;;  %v12568_v41 = vsel %vm614_vm1, %v12541_v39, %v12567_v11  ;;  %v12566_v13 = vsel %vm614_vm1, %v20431_v23, %v12565_v10 }
 0x545   : > { %v12633_v32 = vrot.slane %v20563_v8, 4  ;;  %v12632_v5 = vrot.slane %v12618_v9, 4  ;;  %13337 = vmatpush1.bf16.msra.mxu0 %v13213_v31  ;;  %13378 = vmatpush1.bf16.msra.mxu1 %v13219_v47  ;;  %v20573_v25 = vpop.f32.mrf.mxu0  ;;  %v20575_v0 = vpop.f32.mrf.mxu1 }
 0x546   : > { %13362 = vmatprep.mubr.bf16.mxu0 %v21485_v3  ;;  %13403 = vmatprep.mubr.bf16.mxu1 %v21485_v3 }
 0x547   : > { %v12642_v62 = vsel %vm222_vm0, %v12631_v24, %v12632_v5  ;;  %v12644_v18 = vsel %vm222_vm0, %v12632_v5, %v12633_v32  ;;  %v10546_v60 = vpop.f32.mrf.mxu0  ;;  %v10587_v45 = vpop.f32.mrf.mxu1 }
 0x548   : > { %v12645_v27 = vsel %vm692_vm2, %v12618_v9, %v12644_v18  ;;  %v20587_v34 = vpop.permute.xlu1 %12388  ;;  %v12387_v14 = vpop.permute.xlu0 %12386  ;;  %v12643_v63 = vsel %vm692_vm2, %v20455_v36, %v12642_v62 }
 0x549   : > { %v14501_v24 = vcombine.low %v12568_v41, %v12645_v27  ;;  %v14502_v53 = vcombine.high %v12568_v41, %v12645_v27  ;;  %v12402_v35 = vrot.slane %v20587_v34, 4  ;;  %v12401_v1 = vrot.slane %v12387_v14, 4  ;;  %v10547_v7 = vpop.f32.mrf.mxu0  ;;  %v10588_v55 = vpop.f32.mrf.mxu1 }
 0x54a   : > { %v14499_v6 = vcombine.low %v12566_v13, %v12643_v63  ;;  %v14500_v33 = vcombine.high %v12566_v13, %v12643_v63  ;;  %v12118_v7 = vld [vmem:[%s14628_s14 + $0x38] sm:$0xff] }
 0x54b   : > { %13379 = vmatprep.subr.bf16.mxu1 %v14502_v53  ;;  %v12411_v23 = vsel %vm222_vm0, %v12400_v15, %v12401_v1  ;;  %v12413_v36 = vsel %vm222_vm0, %v12401_v1, %v12402_v35 }
 0x54c   : > { %13338 = vmatprep.subr.bf16.mxu0 %v14500_v33  ;;  %v20594_v43 = vpop.permute.xlu1 %12465  ;;  %v12464_v40 = vpop.permute.xlu0 %12463  ;;  %13380 = vmatpush1.bf16.msra.mxu1 %v14501_v24  ;;  %v12414_v49 = vsel %vm458_vm7, %v12387_v14, %v12413_v36  ;;  %v12412_v61 = vsel %vm458_vm7, %v20467_v19, %v12411_v23 }
 0x54d   : > { %v12479_v20 = vrot.slane %v20594_v43, 4  ;;  %v12478_v51 = vrot.slane %v12464_v40, 4  ;;  %13339 = vmatpush1.bf16.msra.mxu0 %v14499_v6 }
 0x54f   : > { %v12488_v2 = vsel %vm222_vm0, %v12477_v21, %v12478_v51  ;;  %v12490_v39 = vsel %vm222_vm0, %v12478_v51, %v12479_v20 }
 0x550   : > { %v12491_v15 = vsel %vm536_vm4, %v12464_v40, %v12490_v39  ;;  %v20611_v26 = vpop.permute.xlu1 %12234  ;;  %v12233_v28 = vpop.permute.xlu0 %12232  ;;  %v12489_v29 = vsel %vm536_vm4, %v20492_v38, %v12488_v2 }
 0x551   : > { %v14485_v59 = vcombine.low %v12414_v49, %v12491_v15  ;;  %v14486_v47 = vcombine.high %v12414_v49, %v12491_v15  ;;  %v12248_v21 = vrot.slane %v20611_v26, 4  ;;  %v12247_v9 = vrot.slane %v12233_v28, 4 }
 0x552   : > { %v14483_v31 = vcombine.low %v12412_v61, %v12489_v29  ;;  %v14484_v10 = vcombine.high %v12412_v61, %v12489_v29 }
 0x553   : > { %13381 = vmatprep.subr.bf16.mxu1 %v14486_v47  ;;  %v12257_v19 = vsel %vm222_vm0, %v12246_v56, %v12247_v9  ;;  %v12259_v38 = vsel %vm222_vm0, %v12247_v9, %v12248_v21 }
 0x554   : > { %13340 = vmatprep.subr.bf16.mxu0 %v14484_v10  ;;  %v20618_v11 = vpop.permute.xlu1 %12311  ;;  %v12310_v5 = vpop.permute.xlu0 %12309  ;;  %13382 = vmatpush1.bf16.msra.mxu1 %v14485_v59  ;;  %v12260_v41 = vsel %vm302_vm6, %v12233_v28, %v12259_v38  ;;  %v12258_v13 = vsel %vm302_vm6, %v20502_v4, %v12257_v19  ;;  %v12117_v4 = vld [vmem:[%s14628_s14 + $0x30] sm:$0xff] }
 0x555   : > { %v12325_v62 = vrot.slane %v20618_v11, 4  ;;  %v12324_v18 = vrot.slane %v12310_v5, 4  ;;  %13341 = vmatpush1.bf16.msra.mxu0 %v14483_v31 }
 0x557   : > { %v12334_v60 = vsel %vm222_vm0, %v12323_v22, %v12324_v18  ;;  %v12336_v45 = vsel %vm222_vm0, %v12324_v18, %v12325_v62 }
 0x558   : > { %v12337_v56 = vsel %vm380_vm5, %v12310_v5, %v12336_v45  ;;  %v20635_v27 = vpop.permute.xlu1 %12157  ;;  %v12156_v14 = vpop.permute.xlu0 %12155  ;;  %v12335_v63 = vsel %vm380_vm5, %v20510_v52, %v12334_v60 }
 0x559   : > { %v14469_v24 = vcombine.low %v12260_v41, %v12337_v56  ;;  %v14470_v22 = vcombine.high %v12260_v41, %v12337_v56  ;;  %v12171_v53 = vrot.slane %v20635_v27, 4  ;;  %v12170_v1 = vrot.slane %v12156_v14, 4 }
 0x55a   : > { %v14467_v55 = vcombine.low %v12258_v13, %v12335_v63  ;;  %v14468_v6 = vcombine.high %v12258_v13, %v12335_v63 }
 0x55b   : > { %v12180_v33 = vsel %vm222_vm0, %v12169_v12, %v12170_v1  ;;  %v12182_v40 = vsel %vm222_vm0, %v12170_v1, %v12171_v53  ;;  %13383 = vmatprep.subr.bf16.mxu1 %v14470_v22 }
 0x55c   : > { %v12183_v52 = vsel %vm224_vm8, %v12156_v14, %v12182_v40  ;;  %13342 = vmatprep.subr.bf16.mxu0 %v14468_v6  ;;  %v20651_v23 = vpop.permute.xlu1 %12700  ;;  %v12699_v36 = vpop.permute.xlu0 %12698  ;;  %13384 = vmatpush1.bf16.msra.mxu1 %v14469_v24  ;;  %v12181_v51 = vsel %vm224_vm8, %v20520_v17, %v12180_v33 }
 0x55d   : > { %v14453_v2 = vcombine.low %v12118_v7, %v12183_v52  ;;  %v14454_v39 = vcombine.high %v12118_v7, %v12183_v52  ;;  %v12712_v12 = vrot.slane %v20651_v23, 4  ;;  %v12711_v49 = vrot.slane %v12699_v36, 4  ;;  %13343 = vmatpush1.bf16.msra.mxu0 %v14467_v55 }
 0x55e   : > { %v14451_v15 = vcombine.low %v12117_v4, %v12181_v51  ;;  %v14452_v28 = vcombine.high %v12117_v4, %v12181_v51 }
 0x55f   : > { %v12723_v61 = vsel %vm222_vm0, %v12710_v37, %v12711_v49  ;;  %v12725_v29 = vsel %vm222_vm0, %v12711_v49, %v12712_v12  ;;  %13385 = vmatprep.subr.bf16.mxu1 %v14454_v39 }
 0x560   : > { %v12726_v59 = vsel %vm770_vm3, %v12699_v36, %v12725_v29  ;;  %13344 = vmatprep.subr.bf16.mxu0 %v14452_v28  ;;  %v20663_v17 = vpop.permute.xlu1 %12546  ;;  %v12545_v47 = vpop.permute.xlu0 %12544  ;;  %13386 = vmatpush1.bf16.msra.mxu1 %v14453_v2  ;;  %v12724_v9 = vsel %vm770_vm3, %v20531_v44, %v12723_v61 }
 0x561   : > { %v14521_v31 = vcombine.low %v12726_v59, %v12726_v59  ;;  %v14522_v10 = vcombine.high %v12726_v59, %v12726_v59  ;;  %v12558_v5 = vrot.slane %v20663_v17, 4  ;;  %v12557_v37 = vrot.slane %v12545_v47, 4  ;;  %13345 = vmatpush1.bf16.msra.mxu0 %v14451_v15 }
 0x562   : > { %v14520_v19 = vcombine.high %v12724_v9, %v12724_v9  ;;  %v14519_v38 = vcombine.low %v12724_v9, %v12724_v9 }
 0x563   : > { %14534 = vmatmul.mubr.msk.bf16.vlgmr.msra.gmra.mxu1 %vm1251_vm9, %v20547_v48  ;;  %14537 = vmatprep.subr.msk.bf16.mxu1 %vm222_vm0, %v14522_v10  ;;  %v13231_v18 = vsel %vm222_vm0, %v14521_v31, 0  ;;  %v12569_v41 = vsel %vm222_vm0, %v12556_v42, %v12557_v37  ;;  %v12571_v56 = vsel %vm222_vm0, %v12557_v37, %v12558_v5 }
 0x564   : > { %14532 = vmatmul.mubr.msk.bf16.vlgmr.msra.gmra.mxu0 %vm1251_vm9, %v20547_v48  ;;  %14535 = vmatprep.subr.msk.bf16.mxu0 %vm222_vm0, %v14520_v19  ;;  %v20675_v44 = vpop.permute.xlu1 %12623  ;;  %v12622_v60 = vpop.permute.xlu0 %12621  ;;  %v13225_v45 = vsel %vm222_vm0, %v14519_v38, 0  ;;  %v12572_v24 = vsel %vm614_vm1, %v12545_v47, %v12571_v56  ;;  %v12570_v55 = vsel %vm614_vm1, %v20542_v16, %v12569_v41 }
 0x565   : > { %v12635_v14 = vrot.slane %v20675_v44, 4  ;;  %v12634_v13 = vrot.slane %v12622_v60, 4  ;;  %13419 = vmatpush1.bf16.msra.mxu0 %v13225_v45  ;;  %13460 = vmatpush1.bf16.msra.mxu1 %v13231_v18 }
 0x566   : > { %13444 = vmatprep.mubr.bf16.mxu0 %v21485_v3  ;;  %13485 = vmatprep.mubr.bf16.mxu1 %v21485_v3 }
 0x567   : > { %v12646_v63 = vsel %vm222_vm0, %v12633_v32, %v12634_v13  ;;  %v12648_v42 = vsel %vm222_vm0, %v12634_v13, %v12635_v14 }
 0x568   : > { %v12649_v22 = vsel %vm692_vm2, %v12622_v60, %v12648_v42  ;;  %v20695_v1 = vpop.permute.xlu1 %12392  ;;  %v12391_v7 = vpop.permute.xlu0 %12390  ;;  %v12647_v6 = vsel %vm692_vm2, %v20563_v8, %v12646_v63 }
 0x569   : > { %v14505_v33 = vcombine.low %v12572_v24, %v12649_v22  ;;  %v14506_v40 = vcombine.high %v12572_v24, %v12649_v22  ;;  %v12404_v32 = vrot.slane %v20695_v1, 4  ;;  %v12403_v4 = vrot.slane %v12391_v7, 4 }
 0x56a   : > { %v14503_v52 = vcombine.low %v12570_v55, %v12647_v6  ;;  %v14504_v36 = vcombine.high %v12570_v55, %v12647_v6 }
 0x56b   : > { %13461 = vmatprep.subr.bf16.mxu1 %v14506_v40  ;;  %v12415_v16 = vsel %vm222_vm0, %v12402_v35, %v12403_v4  ;;  %v12417_v8 = vsel %vm222_vm0, %v12403_v4, %v12404_v32 }
 0x56c   : > { %13420 = vmatprep.subr.bf16.mxu0 %v14504_v36  ;;  %v20702_v51 = vpop.permute.xlu1 %12469  ;;  %v12468_v2 = vpop.permute.xlu0 %12467  ;;  %13462 = vmatpush1.bf16.msra.mxu1 %v14505_v33  ;;  %v12418_v61 = vsel %vm458_vm7, %v12391_v7, %v12417_v8  ;;  %v12416_v47 = vsel %vm458_vm7, %v20587_v34, %v12415_v16 }
 0x56d   : > { %v12481_v39 = vrot.slane %v20702_v51, 4  ;;  %v12480_v49 = vrot.slane %v12468_v2, 4  ;;  %13421 = vmatpush1.bf16.msra.mxu0 %v14503_v52 }
 0x56f   : > { %v12492_v15 = vsel %vm222_vm0, %v12479_v20, %v12480_v49  ;;  %v12494_v28 = vsel %vm222_vm0, %v12480_v49, %v12481_v39 }
 0x570   : > { %v12495_v35 = vsel %vm536_vm4, %v12468_v2, %v12494_v28  ;;  %v20719_v29 = vpop.permute.xlu1 %12238  ;;  %v12237_v59 = vpop.permute.xlu0 %12236  ;;  %v12493_v9 = vsel %vm536_vm4, %v20594_v43, %v12492_v15  ;;  %v12120_v28 = vld [vmem:[%s14628_s14 + $0x48] sm:$0xff] }
 0x571   : > { %v14489_v31 = vcombine.low %v12418_v61, %v12495_v35  ;;  %v14490_v10 = vcombine.high %v12418_v61, %v12495_v35  ;;  %v12250_v20 = vrot.slane %v20719_v29, 4  ;;  %v12249_v37 = vrot.slane %v12237_v59, 4  ;;  %v12119_v35 = vld [vmem:[%s14628_s14 + $0x40] sm:$0xff] }
 0x572   : > { %v14487_v19 = vcombine.low %v12416_v47, %v12493_v9  ;;  %v14488_v38 = vcombine.high %v12416_v47, %v12493_v9 }
 0x573   : > { %v20726_v18 = vpop.f32.mrf.mxu0  ;;  %13463 = vmatprep.subr.bf16.mxu1 %v14490_v10  ;;  %v12263_v34 = vsel %vm222_vm0, %v12249_v37, %v12250_v20  ;;  %v12261_v13 = vsel %vm222_vm0, %v12248_v21, %v12249_v37 }
 0x574   : > { %v20728_v60 = vpop.f32.mrf.mxu1  ;;  %13422 = vmatprep.subr.bf16.mxu0 %v14488_v38  ;;  %v20730_v45 = vpop.permute.xlu1 %12315  ;;  %13464 = vmatpush1.bf16.msra.mxu1 %v14489_v31  ;;  %v12264_v22 = vsel %vm302_vm6, %v12237_v59, %v12263_v34  ;;  %v12262_v52 = vsel %vm302_vm6, %v20611_v26, %v12261_v13 }
 0x575   : > { %v12327_v43 = vrot.slane %v20730_v45, 4  ;;  %v12314_v41 = vpop.permute.xlu0 %12313  ;;  %13423 = vmatpush1.bf16.msra.mxu0 %v14487_v19  ;;  %v20736_v56 = vpop.f32.mrf.mxu0 }
 0x576   : > { %v12326_v63 = vrot.slane %v12314_v41, 4  ;;  %v20741_v42 = vpop.f32.mrf.mxu1 }
 0x577   : > { %v11793_v24 = vpop.f32.mrf.mxu0 }
 0x578   : > { %v12338_v7 = vsel %vm222_vm0, %v12325_v62, %v12326_v63  ;;  %v12340_v55 = vsel %vm222_vm0, %v12326_v63, %v12327_v43  ;;  %v20750_v6 = vpop.permute.xlu1 %12161  ;;  %v11834_v33 = vpop.f32.mrf.mxu1 }
 0x579   : > { %v12341_v21 = vsel %vm380_vm5, %v12314_v41, %v12340_v55  ;;  %v12173_v40 = vrot.slane %v20750_v6, 4  ;;  %v12160_v4 = vpop.permute.xlu0 %12159  ;;  %v12339_v36 = vsel %vm380_vm5, %v20618_v11, %v12338_v7  ;;  %v11794_v62 = vpop.f32.mrf.mxu0 }
 0x57a   : > { %v14473_v2 = vcombine.low %v12264_v22, %v12341_v21  ;;  %v14474_v16 = vcombine.high %v12264_v22, %v12341_v21  ;;  %v12172_v8 = vrot.slane %v12160_v4, 4  ;;  %v14471_v49 = vcombine.low %v12262_v52, %v12339_v36  ;;  %v11835_v15 = vpop.f32.mrf.mxu1 }
 0x57b   : > { %v14472_v61 = vcombine.high %v12262_v52, %v12339_v36 }
 0x57c   : > { %v12184_v59 = vsel %vm222_vm0, %v12171_v53, %v12172_v8  ;;  %v12186_v26 = vsel %vm222_vm0, %v12172_v8, %v12173_v40  ;;  %13465 = vmatprep.subr.bf16.mxu1 %v14474_v16  ;;  %v12705_v47 = vpop.permute.xlu1 %12704 }
 0x57d   : > { %v12187_v11 = vsel %vm224_vm8, %v12160_v4, %v12186_v26  ;;  %13424 = vmatprep.subr.bf16.mxu0 %v14472_v61  ;;  %v12714_v9 = vrot.slane %v12705_v47, 4  ;;  %v12703_v31 = vpop.permute.xlu0 %12702  ;;  %13466 = vmatpush1.bf16.msra.mxu1 %v14473_v2  ;;  %v12185_v10 = vsel %vm224_vm8, %v20635_v27, %v12184_v59 }
 0x57e   : > { %v14457_v37 = vcombine.low %v12120_v28, %v12187_v11  ;;  %v14458_v19 = vcombine.high %v12120_v28, %v12187_v11  ;;  %v12713_v38 = vrot.slane %v12703_v31, 4  ;;  %13425 = vmatpush1.bf16.msra.mxu0 %v14471_v49  ;;  %v14455_v53 = vcombine.low %v12119_v35, %v12185_v10 }
 0x57f   : > { %v14456_v34 = vcombine.high %v12119_v35, %v12185_v10 }
 0x580   : > { %v12727_v41 = vsel %vm222_vm0, %v12712_v12, %v12713_v38  ;;  %v12729_v13 = vsel %vm222_vm0, %v12713_v38, %v12714_v9  ;;  %13467 = vmatprep.subr.bf16.mxu1 %v14458_v19  ;;  %v12551_v63 = vpop.permute.xlu1 %12550 }
 0x581   : > { %v12730_v24 = vsel %vm770_vm3, %v12703_v31, %v12729_v13  ;;  %13426 = vmatprep.subr.bf16.mxu0 %v14456_v34  ;;  %v12560_v22 = vrot.slane %v12551_v63, 4  ;;  %v12549_v7 = vpop.permute.xlu0 %12548  ;;  %13468 = vmatpush1.bf16.msra.mxu1 %v14457_v37  ;;  %v12728_v27 = vsel %vm770_vm3, %v20651_v23, %v12727_v41 }
 0x582   : > { %v14525_v55 = vcombine.low %v12730_v24, %v12730_v24  ;;  %v14526_v33 = vcombine.high %v12730_v24, %v12730_v24  ;;  %v12559_v21 = vrot.slane %v12549_v7, 4  ;;  %13427 = vmatpush1.bf16.msra.mxu0 %v14455_v53  ;;  %v14524_v4 = vcombine.high %v12728_v27, %v12728_v27 }
 0x583   : > { %v14523_v52 = vcombine.low %v12728_v27, %v12728_v27 }
 0x584   : > { %14538 = vmatmul.mubr.msk.bf16.vlgmr.msra.gmra.mxu1 %vm1251_vm9, %v20547_v48  ;;  %14539 = vmatprep.subr.msk.bf16.mxu0 %vm222_vm0, %v14524_v4  ;;  %v12628_v12 = vpop.permute.xlu1 %12627  ;;  %v13243_v36 = vsel %vm222_vm0, %v14525_v55, 0  ;;  %v12575_v62 = vsel %vm222_vm0, %v12559_v21, %v12560_v22  ;;  %v12573_v8 = vsel %vm222_vm0, %v12558_v5, %v12559_v21 }
 0x585   : > { %14536 = vmatmul.mubr.msk.bf16.vlgmr.msra.gmra.mxu0 %vm1251_vm9, %v20547_v48  ;;  %14541 = vmatprep.subr.msk.bf16.mxu1 %vm222_vm0, %v14526_v33  ;;  %v12637_v23 = vrot.slane %v12628_v12, 4  ;;  %v12626_v2 = vpop.permute.xlu0 %12625  ;;  %v13237_v16 = vsel %vm222_vm0, %v14523_v52, 0  ;;  %v12576_v15 = vsel %vm614_vm1, %v12549_v7, %v12575_v62  ;;  %v12574_v47 = vsel %vm614_vm1, %v20663_v17, %v12573_v8 }
 0x586   : > { %v12636_v49 = vrot.slane %v12626_v2, 4  ;;  %13501 = vmatpush1.bf16.msra.mxu0 %v13237_v16  ;;  %13542 = vmatpush1.bf16.msra.mxu1 %v13243_v36 }
 0x587   : > { %13526 = vmatprep.mubr.bf16.mxu0 %v21485_v3  ;;  %13567 = vmatprep.mubr.bf16.mxu1 %v21485_v3 }
 0x588   : > { %v12650_v28 = vsel %vm222_vm0, %v12635_v14, %v12636_v49  ;;  %v12652_v61 = vsel %vm222_vm0, %v12636_v49, %v12637_v23  ;;  %v12397_v35 = vpop.permute.xlu1 %12396 }
 0x589   : > { %v12653_v59 = vsel %vm692_vm2, %v12626_v2, %v12652_v61  ;;  %v12406_v26 = vrot.slane %v12397_v35, 4  ;;  %v12395_v5 = vpop.permute.xlu0 %12394  ;;  %v12651_v11 = vsel %vm692_vm2, %v20675_v44, %v12650_v28 }
 0x58a   : > { %v14509_v3 = vcombine.low %v12576_v15, %v12653_v59  ;;  %v14510_v9 = vcombine.high %v12576_v15, %v12653_v59  ;;  %v12405_v31 = vrot.slane %v12395_v5, 4  ;;  %v14507_v10 = vcombine.low %v12574_v47, %v12651_v11 }
 0x58b   : > { %v14508_v37 = vcombine.high %v12574_v47, %v12651_v11 }
 0x58c   : > { %13543 = vmatprep.subr.bf16.mxu1 %v14510_v9  ;;  %v12474_v14 = vpop.permute.xlu1 %12473  ;;  %v12421_v19 = vsel %vm222_vm0, %v12405_v31, %v12406_v26  ;;  %v12419_v17 = vsel %vm222_vm0, %v12404_v32, %v12405_v31 }
 0x58d   : > { %13502 = vmatprep.subr.bf16.mxu0 %v14508_v37  ;;  %v12483_v38 = vrot.slane %v12474_v14, 4  ;;  %v12472_v53 = vpop.permute.xlu0 %12471  ;;  %13544 = vmatpush1.bf16.msra.mxu1 %v14509_v3  ;;  %v12422_v44 = vsel %vm458_vm7, %v12395_v5, %v12421_v19  ;;  %v12420_v27 = vsel %vm458_vm7, %v20695_v1, %v12419_v17  ;;  %v12122_v14 = vld [vmem:[%s14628_s14 + $0x58] sm:$0xff] }
 0x58e   : > { %v12482_v34 = vrot.slane %v12472_v53, 4  ;;  %13503 = vmatpush1.bf16.msra.mxu0 %v14507_v10 }
 0x590   : > { %v12496_v41 = vsel %vm222_vm0, %v12481_v39, %v12482_v34  ;;  %v12498_v13 = vsel %vm222_vm0, %v12482_v34, %v12483_v38  ;;  %v12243_v63 = vpop.permute.xlu1 %12242  ;;  %v12121_v38 = vld [vmem:[%s14628_s14 + $0x50] sm:$0xff] }
 0x591   : > { %v12499_v24 = vsel %vm536_vm4, %v12472_v53, %v12498_v13  ;;  %v12252_v22 = vrot.slane %v12243_v63, 4  ;;  %v12241_v7 = vpop.permute.xlu0 %12240  ;;  %v12497_v32 = vsel %vm536_vm4, %v20702_v51, %v12496_v41  ;;  %v9769_v63 = vld [vmem:[%s19300_s11 + $0x40] sm:$0xff] }
 0x592   : > { %v14493_v55 = vcombine.low %v12422_v44, %v12499_v24  ;;  %v14494_v33 = vcombine.high %v12422_v44, %v12499_v24  ;;  %v12251_v21 = vrot.slane %v12241_v7, 4  ;;  %v14491_v4 = vcombine.low %v12420_v27, %v12497_v32 }
 0x593   : > { %v20814_v52 = vpop.f32.mrf.mxu0  ;;  %v14492_v39 = vcombine.high %v12420_v27, %v12497_v32  ;;  %v10598_v24 = vadd.f32 %v20475_v57, %v9769_v63  ;;  %v9770_v27 = vld [vmem:[%s19300_s11 + $0x48] sm:$0xff]  ;;  %v11260_v63 = vld [vmem:[%s19300_s11 + $0x30] sm:$0xff] }
 0x594   : > { %v20816_v12 = vpop.f32.mrf.mxu1  ;;  %13545 = vmatprep.subr.bf16.mxu1 %v14494_v33  ;;  %v12320_v36 = vpop.permute.xlu1 %12319  ;;  %v12267_v62 = vsel %vm222_vm0, %v12251_v21, %v12252_v22  ;;  %v12265_v51 = vsel %vm222_vm0, %v12250_v20, %v12251_v21  ;;  %v9772_v22 = vld [vmem:[%s19300_s11 + $0x58] sm:$0xff]  ;;  %v10599_v21 = vadd.f32 %v20482_v46, %v9770_v27  ;;  %v11259_v27 = vld [vmem:[%s19300_s11 + $0x28] sm:$0xff] }
 0x595   : > { %13504 = vmatprep.subr.bf16.mxu0 %v14492_v39  ;;  %v12329_v23 = vrot.slane %v12320_v36, 4  ;;  %v12318_v2 = vpop.permute.xlu0 %12317  ;;  %13546 = vmatpush1.bf16.msra.mxu1 %v14493_v55  ;;  %v20819_v1 = vpop.f32.mrf.mxu0  ;;  %v12268_v15 = vsel %vm302_vm6, %v12241_v7, %v12267_v62  ;;  %v12266_v47 = vsel %vm302_vm6, %v20719_v29, %v12265_v51  ;;  %v10601_v32 = vadd.f32 %v20484_v30, %v9772_v22  ;;  %v9775_v30 = vld [vmem:[%s19300_s11 + $0x70] sm:$0xff]  ;;  %v9773_v51 = vld [vmem:[%s19300_s11 + $0x60] sm:$0xff]  ;;  %v9776_v46 = vld [vmem:[%s19300_s11 + $0x78] sm:$0xff] }
 0x596   : > { %v12328_v16 = vrot.slane %v12318_v2, 4  ;;  %13505 = vmatpush1.bf16.msra.mxu0 %v14491_v4  ;;  %v20824_v8 = vpop.f32.mrf.mxu1  ;;  %v11261_v22 = vld [vmem:[%s19300_s11 + $0x38] sm:$0xff] }
 0x597   : > { %v11875_v49 = vpop.f32.mrf.mxu0 }
 0x598   : > { %v12342_v28 = vsel %vm222_vm0, %v12327_v43, %v12328_v16  ;;  %v12344_v61 = vsel %vm222_vm0, %v12328_v16, %v12329_v23  ;;  %v12166_v35 = vpop.permute.xlu1 %12165  ;;  %v11916_v59 = vpop.f32.mrf.mxu1  ;;  %v10604_v16 = vadd.f32 %v20554_v50, %v9775_v30  ;;  %v10602_v49 = vadd.f32 %v20552_v54, %v9773_v51 }
 0x599   : > { %v12345_v26 = vsel %vm380_vm5, %v12318_v2, %v12344_v61  ;;  %v12175_v20 = vrot.slane %v12166_v35, 4  ;;  %v12164_v5 = vpop.permute.xlu0 %12163  ;;  %v12343_v11 = vsel %vm380_vm5, %v20730_v45, %v12342_v28  ;;  %v11876_v3 = vpop.f32.mrf.mxu0  ;;  %v9774_v28 = vld [vmem:[%s19300_s11 + $0x68] sm:$0xff]  ;;  %v10605_v61 = vadd.f32 %v20575_v0, %v9776_v46 }
 0x59a   : > { %v14477_v9 = vcombine.low %v12268_v15, %v12345_v26  ;;  %v14478_v31 = vcombine.high %v12268_v15, %v12345_v26  ;;  %v12174_v10 = vrot.slane %v12164_v5, 4  ;;  %v14475_v43 = vcombine.low %v12266_v47, %v12343_v11  ;;  %v11917_v37 = vpop.f32.mrf.mxu1 }
 0x59b   : > { %v14476_v19 = vcombine.high %v12266_v47, %v12343_v11  ;;  %v10603_v26 = vadd.f32 %v20573_v25, %v9774_v28  ;;  %v11257_v37 = vld [vmem:[%s19300_s11 + $0x18] sm:$0xff] }
 0x59c   : > { %v12188_v53 = vsel %vm222_vm0, %v12173_v40, %v12174_v10  ;;  %v12190_v17 = vsel %vm222_vm0, %v12174_v10, %v12175_v20  ;;  %13547 = vmatprep.subr.bf16.mxu1 %v14478_v31  ;;  %v9771_v40 = vld [vmem:[%s19300_s11 + $0x50] sm:$0xff]  ;;  %v11254_v10 = vld [vmem:[%s19300_s11] sm:$0xff] }
 0x59d   : > { %v12191_v29 = vsel %vm224_vm8, %v12164_v5, %v12190_v17  ;;  %13506 = vmatprep.subr.bf16.mxu0 %v14476_v19  ;;  %13548 = vmatpush1.bf16.msra.mxu1 %v14477_v9  ;;  %v12189_v45 = vsel %vm224_vm8, %v20750_v6, %v12188_v53  ;;  %v10600_v6 = vadd.f32 %v20477_v58, %v9771_v40  ;;  %v11256_v31 = vld [vmem:[%s19300_s11 + $0x10] sm:$0xff]  ;;  %v11255_v19 = vld [vmem:[%s19300_s11 + $0x8] sm:$0xff] }
 0x59e   : > { %v14461_v34 = vcombine.low %v12122_v14, %v12191_v29  ;;  %v14462_v44 = vcombine.high %v12122_v14, %v12191_v29  ;;  %13507 = vmatpush1.bf16.msra.mxu0 %v14475_v43  ;;  %v14459_v41 = vcombine.low %v12121_v38, %v12189_v45  ;;  %v14460_v13 = vcombine.high %v12121_v38, %v12189_v45 }
 0x59f   : > { %v12085_v43 = vadd.f32 %v20728_v60, %v11256_v31  ;;  %v12083_v25 = vadd.f32 %v20726_v18, %v11254_v10  ;;  %v12086_v38 = vadd.f32 %v20741_v42, %v11257_v37  ;;  %v12084_v29 = vadd.f32 %v20736_v56, %v11255_v19 }
 0x5a0   : > { %13508 = vmatprep.subr.bf16.mxu0 %v14460_v13  ;;  %13549 = vmatprep.subr.bf16.mxu1 %v14462_v44  ;;  %v12089_v56 = vadd.f32 %v20816_v12, %v11260_v63 }
 0x5a1   : > { %13550 = vmatpush1.bf16.msra.mxu1 %v14461_v34 }
 0x5a2   : > { %13509 = vmatpush1.bf16.msra.mxu0 %v14459_v41 }
 0x5a4   : > { %14542 = vmatmul.mubr.msk.bf16.vlgmr.msra.gmra.mxu1 %vm1251_vm9, %v20547_v48 }
 0x5a5   : > { %14540 = vmatmul.mubr.msk.bf16.vlgmr.msra.gmra.mxu0 %vm1251_vm9, %v20547_v48 }
 0x5b3   : > { %v11994_v7 = vpop.f32.mrf.mxu1 }
 0x5b4   : > { %v11953_v55 = vpop.f32.mrf.mxu0  ;;  %v20856_v33 = vadd.f32 %v11994_v7, %v10600_v6  ;;  %v11258_v6 = vld [vmem:[%s19300_s11 + $0x20] sm:$0xff] }
 0x5b5   : > { %v20859_v48 = vadd.f32 %v11953_v55, %v10598_v24  ;;  %v11996_v4 = vpop.f32.mrf.mxu1  ;;  %v12087_v24 = vadd.f32 %v20814_v52, %v11258_v6 }
 0x5b6   : > { %v11955_v58 = vpop.f32.mrf.mxu0  ;;  %v20861_v39 = vadd.f32 %v11996_v4, %v10601_v32  ;;  %v12090_v32 = vadd.f32 %v20824_v8, %v11261_v22  ;;  %v12088_v4 = vadd.f32 %v20819_v1, %v11259_v27 }
 0x5b7   : > { %v20863_v57 = vadd.f32 %v11955_v58, %v10599_v21  ;;  %v11998_v36 = vpop.f32.mrf.mxu1 }
 0x5b8   : > { %v11957_v62 = vpop.f32.mrf.mxu0 }
 0x5b9   : > { %v11999_v23 = vpop.f32.mrf.mxu1 }
 0x5ba   : > { %v11958_v2 = vpop.f32.mrf.mxu0 }
 0x5d3   : > { %v12076_v15 = vpop.f32.mrf.mxu1 }
 0x5d4   : > { %v12035_v35 = vpop.f32.mrf.mxu0  ;;  %v20872_v59 = vadd.f32 %v12076_v15, %v10604_v16 }
 0x5d5   : > { %v20875_v20 = vadd.f32 %v12035_v35, %v10602_v49  ;;  %v12078_v5 = vpop.f32.mrf.mxu1 }
 0x5d6   : > { %v12037_v50 = vpop.f32.mrf.mxu0  ;;  %v20877_v47 = vadd.f32 %v12078_v5, %v10605_v61 }
 0x5d7   : > { %v20879_v54 = vadd.f32 %v12037_v50, %v10603_v26  ;;  %v12080_v11 = vpop.f32.mrf.mxu1 }
 0x5d8   : > { %v12039_v3 = vpop.f32.mrf.mxu0 }
 0x5d9   : > { %v12081_v9 = vpop.f32.mrf.mxu1 }
 0x5da   : > { %v12040_v0 = vpop.f32.mrf.mxu0 }
 0x603   : > { %v13323_v14 = vpop.f32.mrf.mxu1 }
 0x604   : > { %v13282_v53 = vpop.f32.mrf.mxu0  ;;  %v13578_v17 = vadd.f32 %v13323_v14, %v12085_v43 }
 0x605   : > { %v13576_v45 = vadd.f32 %v13282_v53, %v12083_v25  ;;  %v13325_v34 = vpop.f32.mrf.mxu1 }
 0x606   : > { %13594 = vst [vmem:[%s19300_s11 + $0x10] sm:$0xff] %v13578_v17  ;;  %v13284_v60 = vpop.f32.mrf.mxu0  ;;  %v13579_v18 = vadd.f32 %v13325_v34, %v12086_v38 }
 0x607   : > { %13592 = vst [vmem:[%s19300_s11] sm:$0xff] %v13576_v45  ;;  %v13577_v44 = vadd.f32 %v13284_v60, %v12084_v29  ;;  %v13327_v41 = vpop.f32.mrf.mxu1 }
 0x608   : > { %13595 = vst [vmem:[%s19300_s11 + $0x18] sm:$0xff] %v13579_v18  ;;  %v13286_v13 = vpop.f32.mrf.mxu0 }
 0x609   : > { %13593 = vst [vmem:[%s19300_s11 + $0x8] sm:$0xff] %v13577_v44  ;;  %v13328_v42 = vpop.f32.mrf.mxu1 }
 0x60a   : > { %v13287_v40 = vpop.f32.mrf.mxu0 }
 0x623   : > { %v13405_v7 = vpop.f32.mrf.mxu1 }
 0x624   : > { %v13364_v55 = vpop.f32.mrf.mxu0  ;;  %v13582_v21 = vadd.f32 %v13405_v7, %v12089_v56 }
 0x625   : > { %v13580_v58 = vadd.f32 %v13364_v55, %v12087_v24  ;;  %v13407_v36 = vpop.f32.mrf.mxu1 }
 0x626   : > { %13598 = vst [vmem:[%s19300_s11 + $0x30] sm:$0xff] %v13582_v21  ;;  %v13366_v62 = vpop.f32.mrf.mxu0  ;;  %v13583_v23 = vadd.f32 %v13407_v36, %v12090_v32 }
 0x627   : > { %13596 = vst [vmem:[%s19300_s11 + $0x20] sm:$0xff] %v13580_v58  ;;  %v13581_v52 = vadd.f32 %v13366_v62, %v12088_v4  ;;  %v13409_v12 = vpop.f32.mrf.mxu1 }
 0x628   : > { %13599 = vst [vmem:[%s19300_s11 + $0x38] sm:$0xff] %v13583_v23  ;;  %v13368_v2 = vpop.f32.mrf.mxu0 }
 0x629   : > { %13597 = vst [vmem:[%s19300_s11 + $0x28] sm:$0xff] %v13581_v52  ;;  %v13410_v8 = vpop.f32.mrf.mxu1 }
 0x62a   : > { %v13369_v30 = vpop.f32.mrf.mxu0 }
 0x644   : > { %v13487_v51 = vpop.f32.mrf.mxu1 }
 0x645   : > { %v13446_v16 = vpop.f32.mrf.mxu0  ;;  %v13586_v1 = vadd.f32 %v13487_v51, %v20856_v33 }
 0x646   : > { %v13584_v49 = vadd.f32 %v13446_v16, %v20859_v48  ;;  %v13489_v46 = vpop.f32.mrf.mxu1 }
 0x647   : > { %13602 = vst [vmem:[%s19300_s11 + $0x50] sm:$0xff] %v13586_v1  ;;  %v13448_v15 = vpop.f32.mrf.mxu0  ;;  %v13587_v28 = vadd.f32 %v13489_v46, %v20861_v39 }
 0x648   : > { %13600 = vst [vmem:[%s19300_s11 + $0x40] sm:$0xff] %v13584_v49  ;;  %v13585_v61 = vadd.f32 %v13448_v15, %v20863_v57  ;;  %v13491_v35 = vpop.f32.mrf.mxu1 }
 0x649   : > { %13603 = vst [vmem:[%s19300_s11 + $0x58] sm:$0xff] %v13587_v28  ;;  %v13450_v26 = vpop.f32.mrf.mxu0 }
 0x64a   : > { %13601 = vst [vmem:[%s19300_s11 + $0x48] sm:$0xff] %v13585_v61  ;;  %v13492_v5 = vpop.f32.mrf.mxu1 }
 0x64b   : > { %v13451_v33 = vpop.f32.mrf.mxu0 }
 0x664   : > { %v13569_v50 = vpop.f32.mrf.mxu1 }
 0x665   : > { %v13528_v48 = vpop.f32.mrf.mxu0  ;;  %v13590_v11 = vadd.f32 %v13569_v50, %v20872_v59 }
 0x666   : > { %v13588_v3 = vadd.f32 %v13528_v48, %v20875_v20  ;;  %v13571_v9 = vpop.f32.mrf.mxu1 }
 0x667   : > { %13606 = vst [vmem:[%s19300_s11 + $0x70] sm:$0xff] %v13590_v11  ;;  %v13530_v39 = vpop.f32.mrf.mxu0  ;;  %v13591_v0 = vadd.f32 %v13571_v9, %v20877_v47 }
 0x668   : > { %13604 = vst [vmem:[%s19300_s11 + $0x60] sm:$0xff] %v13588_v3  ;;  %v13589_v57 = vadd.f32 %v13530_v39, %v20879_v54  ;;  %v13573_v31 = vpop.f32.mrf.mxu1 }
 0x669   : > { %13607 = vst [vmem:[%s19300_s11 + $0x78] sm:$0xff] %v13591_v0  ;;  %v13532_v10 = vpop.f32.mrf.mxu0 }
 0x66a   : > { %13605 = vst [vmem:[%s19300_s11 + $0x68] sm:$0xff] %v13589_v57  ;;  %v13574_v43 = vpop.f32.mrf.mxu1 }
 0x66b   : > { %v13533_v25 = vpop.f32.mrf.mxu0 }
 0x66c PF: > { %s12_s9 = sadd.s32 1, %s14588_s9  }
 0x66d   : > { %p9_p4 = scmp.ge.s32.totalorder %s12_s9, 4  }
 0x66f   :  { %11 = sbr.rel (!%p9_p4) target bundleno = 1 (0x1), region = 66 }

</bundles_post_ra>
